<compile_context>
chip_gen: v5e
topology: v5e:2x2
jax: 0.10.0
libtpu: 0.0.40
codegen_flags: <defaults>
</compile_context>

<pallas_src>
import functools
import math

import jax
import jax.numpy as jnp
from jax.experimental import pallas as pl
from jax.experimental.pallas import tpu as pltpu

_BN_EPS = 1e-5
_AFFINE_VMEM_BUDGET = 8 << 20   # streamed-tile byte budget for the affine kernel


# ---------------------------------------------------------------------------
# Capability probe: (sublane, lane) -> lane merging reshapes
# ---------------------------------------------------------------------------

def _probe_kernel(x_ref, o_ref):
    a = x_ref[...]                                  # (64, 16)
    low3 = a.reshape(8, 8, 16)
    rep = jnp.concatenate([low3, low3], axis=2)     # lane concat
    flat = rep.reshape(8, 256)                      # 3-D (sublane,lane) -> lane merge
    c = a.reshape(8, 128)                           # 2-D rows -> lanes merge
    o_ref[...] = flat + jnp.concatenate([c, c], axis=1)


@functools.lru_cache(maxsize=None)
def _lane_merge_reshape_ok():
    """True if Mosaic supports the lane-merging reshapes used by the lane-dense conv
    store and the fused nearest-2x upsample; otherwise fall back to the safe paths."""
    try:
        x = jnp.ones((64, 16), jnp.bfloat16)
        out = pl.pallas_call(
            _probe_kernel,
            out_shape=jax.ShapeDtypeStruct((8, 256), jnp.bfloat16),
        )(x)
        jax.block_until_ready(out)
        return True
    except Exception:
        return False


# ---------------------------------------------------------------------------
# Pallas kernels
# ---------------------------------------------------------------------------

def _conv_kernel(*refs, K, H, W, Cin, Cout, pad, has_bias, compute_stats, lane_dense):
    """KxK 'same' stride-1 conv for one image as a K*K tap-accumulation loop.

    Per tap: acc += (H*W, Cin)bf16 @ (Cin, Cout)bf16, f32 accumulation (contraction stays
    Cin-wide, no f32 im2col window).  Padding is done on a VMEM scratch tile (no HBM pad).

    refs: x(1,H,W,Cin) bf16, w(K*K,Cin,Cout) bf16, [bias(1,Cout) f32],
          out, [sum(1,1,Cout) f32, ssq(1,1,Cout) f32], [padded scratch if K>1]
    """
    idx = 0
    x_ref = refs[idx]; idx += 1
    w_ref = refs[idx]; idx += 1
    b_ref = None
    if has_bias:
        b_ref = refs[idx]; idx += 1
    o_ref = refs[idx]; idx += 1
    sum_ref = ssq_ref = None
    if compute_stats:
        sum_ref = refs[idx]; ssq_ref = refs[idx + 1]; idx += 2

    if K > 1:
        xp_ref = refs[idx]; idx += 1
        # VMEM-local zero padding (removes the HBM-side jnp.pad round trip).
        xp_ref[...] = jnp.zeros_like(xp_ref)
        xp_ref[pl.ds(pad, H), pl.ds(pad, W), :] = x_ref[0]
        acc = None
        for dy in range(K):
            for dx in range(K):
                win = xp_ref[pl.ds(dy, H), pl.ds(dx, W), :].reshape(H * W, Cin)
                part = jnp.dot(win, w_ref[dy * K + dx],
                               preferred_element_type=jnp.float32)
                acc = part if acc is None else acc + part
    else:
        win = x_ref[0].reshape(H * W, Cin)
        acc = jnp.dot(win, w_ref[0], preferred_element_type=jnp.float32)

    if has_bias:
        acc = acc + b_ref[...]

    if compute_stats:
        # Per-program partial BN stats; reduced over the batch in XLA glue.  Keeps the
        # grid "parallel" (megacore-safe), no resident accumulator / pl.when init.
        sum_ref[0] = jnp.sum(acc, axis=0, keepdims=True)
        ssq_ref[0] = jnp.sum(acc * acc, axis=0, keepdims=True)

    out = acc.astype(o_ref.dtype)
    if lane_dense:
        # Small-Cout heads: store (H, W*Cout) so the epilogue uses full-width vst.
        o_ref[0] = out.reshape(H, W * Cout)
    else:
        o_ref[0] = out


def _affine_kernel(x_ref, sc_ref, sh_ref, *rest, relu, n_pre, n_post, has_up, up_c):
    """y = x*scale + shift (+pre adds) (ReLU) (+post adds) (+fused nearest-2x upsample).

    Full-res refs are (rt, L) lane-dense blocks.  When has_up, rows are packed as
    "super-rows" (two output rows per block row, L = 2*W*C) so the low-res addend
    (rt, (W/2)*C) is upsampled with lane concats only, never materialized in HBM.
    """
    o_ref = rest[-1]
    pres = rest[:n_pre]
    posts = rest[n_pre:n_pre + n_post]

    y = x_ref[...].astype(jnp.float32) * sc_ref[...] + sh_ref[...]
    for r in pres:
        y = y + r[...].astype(jnp.float32)
    if relu:
        y = jnp.maximum(y, 0.0)
    for r in posts:
        y = y + r[...].astype(jnp.float32)
    if has_up:
        up_ref = rest[n_pre + n_post]
        low = up_ref[...]                               # (rt, W2*C) bf16
        rt, l2 = low.shape
        w2 = l2 // up_c
        low3 = low.reshape(rt, w2, up_c)
        rep = jnp.concatenate([low3, low3], axis=2)     # W-direction nearest repeat
        flat = rep.reshape(rt, 2 * l2)                  # (rt, W*C)
        full = jnp.concatenate([flat, flat], axis=1)    # H-direction repeat (super-rows)
        y = y + full.astype(jnp.float32)
    o_ref[...] = y.astype(o_ref.dtype)


# ---------------------------------------------------------------------------
# pallas_call wrappers
# ---------------------------------------------------------------------------

def _compiler_params(semantics, streamed_bytes=0):
    kw = {}
    # Only raise the scoped-VMEM limit for large tile sets (never triggers at demo
    # shapes).  TODO(synk): make the cap generation-aware via pltpu.get_tpu_info().
    if streamed_bytes > (12 << 20):
        kw["vmem_limit_bytes"] = int(min(2 * streamed_bytes, 96 << 20))
    return pltpu.CompilerParams(dimension_semantics=semantics, **kw)


def conv2d(p, x, compute_stats=False):
    """KxK conv, stride 1, 'same'.  x: (N,H,W,Cin) bf16 -> (N,H,W,Cout) bf16
    (+ optional per-channel batch (sum, sumsq) f32 for a following BatchNorm).
    Bias is skipped when compute_stats=True (it cancels in training-mode BN)."""
    N, H, W, Cin = x.shape
    K = p["k"]
    Cout = p["w"].shape[-1]
    pad = K // 2
    lane_dense = (Cout < 128) and _lane_merge_reshape_ok()
    has_bias = not compute_stats

    ins = [x, p["w"]]
    in_specs = [pl.BlockSpec((1, H, W, Cin), lambda n: (n, 0, 0, 0)),
                pl.BlockSpec((K * K, Cin, Cout), lambda n: (0, 0, 0))]
    if has_bias:
        ins.append(p["b"])
        in_specs.append(pl.BlockSpec((1, Cout), lambda n: (0, 0)))

    if lane_dense:
        out_shape = [jax.ShapeDtypeStruct((N, H, W * Cout), jnp.bfloat16)]
        out_specs = [pl.BlockSpec((1, H, W * Cout), lambda n: (n, 0, 0))]
    else:
        out_shape = [jax.ShapeDtypeStruct((N, H * W, Cout), jnp.bfloat16)]
        out_specs = [pl.BlockSpec((1, H * W, Cout), lambda n: (n, 0, 0))]
    if compute_stats:
        out_shape += [jax.ShapeDtypeStruct((N, 1, Cout), jnp.float32)] * 2
        out_specs += [pl.BlockSpec((1, 1, Cout), lambda n: (n, 0, 0))] * 2

    scratch = []
    if K > 1:
        scratch = [pltpu.VMEM((H + 2 * pad, W + 2 * pad, Cin), jnp.bfloat16)]

    streamed = (2 * (H * W * Cin * 2 + H * W * Cout * 2)
                + K * K * Cin * Cout * 2
                + (H + 2 * pad) * (W + 2 * pad) * Cin * 2
                + H * W * Cout * 4)
    # TODO(synk): spatial halo tiling for production shapes (v7x 64 MiB VMEM); fold N
    # into the matmul rows for tiny problems; keep contraction a multiple of 256 on v6e.

    kern = functools.partial(_conv_kernel, K=K, H=H, W=W, Cin=Cin, Cout=Cout, pad=pad,
                             has_bias=has_bias, compute_stats=compute_stats,
                             lane_dense=lane_dense)
    outs = pl.pallas_call(
        kern,
        out_shape=out_shape,
        grid=(N,),
        in_specs=in_specs,
        out_specs=out_specs,
        scratch_shapes=tuple(scratch),
        compiler_params=_compiler_params(("parallel",), streamed),
    )(*ins)

    main = outs[0].reshape(N, H, W, Cout)
    if compute_stats:
        ssum = jnp.sum(outs[1], axis=0)     # (1, Cout)
        ssq = jnp.sum(outs[2], axis=0)      # (1, Cout)
        return main, ssum, ssq
    return main


def _pick_row_tile(n_rows, per_row_bytes, budget=_AFFINE_VMEM_BUDGET):
    best = n_rows
    for t in (n_rows, 1024, 512, 256, 128, 64, 32, 16, 8):
        if 0 < t <= n_rows and n_rows % t == 0:
            best = t
            if t * per_row_bytes <= budget:
                return t
    return best


def affine_apply(x, scale, shift, adds_pre=(), adds_post=(), up_add=None, relu=False):
    """Fused BN-apply epilogue, lane-dense.

    x: (N,H,W,C) bf16; scale/shift: (1,C) f32.
    y = relu(x*scale + shift + sum(adds_pre)) + sum(adds_post) [+ upsample2x(up_add)]
    up_add (optional): (N,H/2,W/2,C) tensor whose nearest-2x upsample is added in-kernel.
    """
    N, H, W, C = x.shape
    if up_add is None:
        R, L, reps = N * H, W * C, W
    else:
        assert H % 2 == 0 and W % 2 == 0
        R, L, reps = N * H // 2, 2 * W * C, 2 * W   # super-row packing

    x2 = x.reshape(R, L)
    sc = jnp.tile(scale, (1, reps))
    sh = jnp.tile(shift, (1, reps))
    pres = [a.reshape(R, L) for a in adds_pre]
    posts = [a.reshape(R, L) for a in adds_post]
    n_pre, n_post = len(pres), len(posts)

    per_row = (2 + n_pre + n_post) * L * 2 * 2 + L * 8
    if up_add is not None:
        per_row += L * 2
    rt = _pick_row_tile(R, per_row)
    # TODO(synk): also tile the L = W*C column dim (multiples of 128) when it is large.

    ins = [x2, sc, sh] + pres + posts
    in_specs = [pl.BlockSpec((rt, L), lambda i: (i, 0)),
                pl.BlockSpec((1, L), lambda i: (0, 0)),
                pl.BlockSpec((1, L), lambda i: (0, 0))]
    in_specs += [pl.BlockSpec((rt, L), lambda i: (i, 0))] * (n_pre + n_post)
    if up_add is not None:
        H2, W2 = H // 2, W // 2
        ins.append(up_add.reshape(N * H2, W2 * C))
        in_specs.append(pl.BlockSpec((rt, W2 * C), lambda i: (i, 0)))

    out2 = pl.pallas_call(
        functools.partial(_affine_kernel, relu=relu, n_pre=n_pre, n_post=n_post,
                          has_up=up_add is not None, up_c=C),
        out_shape=jax.ShapeDtypeStruct((R, L), jnp.bfloat16),
        grid=(R // rt,),
        in_specs=in_specs,
        out_specs=pl.BlockSpec((rt, L), lambda i: (i, 0)),
        compiler_params=_compiler_params(("parallel",), rt * per_row),
    )(*ins)
    return out2.reshape(N, H, W, C)


def bn_scale_shift(bnp, ssum, ssq, count, eps=_BN_EPS):
    """Per-channel BN (training-mode, biased var) finalize: O(C) scalar math in glue.
    TODO(synk): Welford-style (count, mean, M2) combination for very large N*H*W."""
    mean = ssum / count
    var = jnp.maximum(ssq / count - mean * mean, 0.0)
    scale = bnp["gamma"] * jax.lax.rsqrt(var + eps)
    shift = bnp["beta"] - mean * scale
    return scale, shift


# TODO(synk): 2x2 max-pool is pure data rearrangement; kept in XLA glue.
def maxpool2x2(x):
    N, H, W, C = x.shape
    return x.reshape(N, H // 2, 2, W // 2, 2, C).max(axis=(2, 4))


def upsample2x(x):   # glue fallback only (used when the fused-upsample path is unavailable)
    return jnp.repeat(jnp.repeat(x, 2, axis=1), 2, axis=2)


# ---------------------------------------------------------------------------
# Parameter init (deterministic, mimics PyTorch default conv init)
# ---------------------------------------------------------------------------

def init_conv(key, cin, cout, k):
    kw, kb = jax.random.split(key)
    bound = 1.0 / math.sqrt(cin * k * k)
    w = jax.random.uniform(kw, (k * k, cin, cout), jnp.float32, -bound, bound)
    b = jax.random.uniform(kb, (1, cout), jnp.float32, -bound, bound)
    return {"k": k, "w": w.astype(jnp.bfloat16), "b": b}


def init_bn(c):
    return {"gamma": jnp.ones((1, c), jnp.float32),
            "beta": jnp.zeros((1, c), jnp.float32)}


def init_residual(key, cin, cout):
    k1, k2, k3 = jax.random.split(key, 3)
    p = {"conv1": init_conv(k1, cin, cout, 3), "bn1": init_bn(cout),
         "conv2": init_conv(k2, cout, cout, 3), "bn2": init_bn(cout)}
    if cin != cout:
        p["skip"] = init_conv(k3, cin, cout, 1)
        p["skip_bn"] = init_bn(cout)
    return p


def init_skip(key, cin, cout):
    return {"conv": init_conv(key, cin, cout, 1), "bn": init_bn(cout)}


def init_hourglass(key, cin, cout, levels):
    keys = jax.random.split(key, 4)
    p = {"up1": init_residual(keys[0], cin, cout),
         "low1": init_residual(keys[1], cin, cout),
         "low3": init_residual(keys[3], cout, cout),
         "low2_is_hg": levels > 1}
    if levels > 1:
        p["low2"] = init_hourglass(keys[2], cout, cout, levels - 1)
    else:
        p["low2"] = init_residual(keys[2], cout, cout)
    return p


def init_hgn(key, cin, cout, levels):
    keys = jax.random.split(key, 6)
    return {"hg": init_hourglass(keys[0], cin, cin, levels),
            "conv_res": init_residual(keys[1], cin, cin),
            "conv_1x1": init_conv(keys[2], cin, cin, 1),
            "conv_bn": init_bn(cin),
            "out": init_conv(keys[3], cin, cout, 1),
            "skip1": init_skip(keys[4], cin, cin),
            "skip2": init_skip(keys[5], cout, cin)}


def init_shgn(key, cin, cout, levels, iterations):
    return [init_hgn(k, cin, cout, levels) for k in jax.random.split(key, iterations)]


# ---------------------------------------------------------------------------
# Forward pass (blocks)
# ---------------------------------------------------------------------------

def residual_apply(p, x, post_add=(), up_post=None):
    """ResidualBlock: relu(bn2(conv2(relu(bn1(conv1(x))))) + skip(x)) (+post adds)."""
    N, H, W, _ = x.shape
    count = float(N * H * W)
    c1, s1, q1 = conv2d(p["conv1"], x, compute_stats=True)
    sc1, sh1 = bn_scale_shift(p["bn1"], s1, q1, count)
    h = affine_apply(c1, sc1, sh1, relu=True)

    c2, s2, q2 = conv2d(p["conv2"], h, compute_stats=True)
    sc2, sh2 = bn_scale_shift(p["bn2"], s2, q2, count)

    if "skip" in p:
        ck, sk, qk = conv2d(p["skip"], x, compute_stats=True)
        sck, shk = bn_scale_shift(p["skip_bn"], sk, qk, count)
        skip_t = affine_apply(ck, sck, shk)
    else:
        skip_t = x

    if up_post is not None and not _lane_merge_reshape_ok():
        post_add = tuple(post_add) + (upsample2x(up_post),)   # safe fallback
        up_post = None
    return affine_apply(c2, sc2, sh2, adds_pre=(skip_t,), adds_post=post_add,
                        up_add=up_post, relu=True)


def skip_apply(p, x, post_add=()):
    """SkipBlock: relu(bn(conv1x1(x))) (+post adds)."""
    N, H, W, _ = x.shape
    c, s, q = conv2d(p["conv"], x, compute_stats=True)
    sc, sh = bn_scale_shift(p["bn"], s, q, float(N * H * W))
    return affine_apply(c, sc, sh, relu=True, adds_post=post_add)


def hourglass_apply(p, x):
    low = maxpool2x2(x)
    low = residual_apply(p["low1"], low)
    if p["low2_is_hg"]:
        low = hourglass_apply(p["low2"], low)
    else:
        low = residual_apply(p["low2"], low)
    low = residual_apply(p["low3"], low)
    # up1(x) + nearest-2x-upsample(low): the upsample+add is fused into up1's affine.
    return residual_apply(p["up1"], x, up_post=low)


def hgn_apply(p, x):
    N, H, W, _ = x.shape
    count = float(N * H * W)
    x1 = hourglass_apply(p["hg"], x)
    # self.conv = Sequential(ResidualBlock, Conv1x1, BatchNorm, ReLU)
    x1 = residual_apply(p["conv_res"], x1)
    c, s, q = conv2d(p["conv_1x1"], x1, compute_stats=True)
    sc, sh = bn_scale_shift(p["conv_bn"], s, q, count)
    x1 = affine_apply(c, sc, sh, relu=True)

    out = conv2d(p["out"], x1)                       # 1x1 conv, bias, no BN
    s1 = skip_apply(p["skip1"], x1)
    # features = skip1(x1) + skip2(out) + x  -- the 3-way add rides skip2's affine.
    feat = skip_apply(p["skip2"], out, post_add=(s1, x))
    return out, feat


def shgn_apply(params, x_nchw):
    """SHGN forward.  x_nchw: (N,Cin,H,W) -> (list of (N,Cout,H,W), (N,Cin,H,W))."""
    x = jnp.transpose(x_nchw, (0, 2, 3, 1)).astype(jnp.bfloat16)   # NCHW -> NHWC bf16
    outs = []
    for p in params:
        out, x = hgn_apply(p, x)
        outs.append(jnp.transpose(out, (0, 3, 1, 2)).astype(jnp.float32))
    return outs, jnp.transpose(x, (0, 3, 1, 2)).astype(jnp.float32)


# ---------------------------------------------------------------------------
# Demo
# ---------------------------------------------------------------------------

if __name__ == "__main__":
    in_channels, out_channels, levels, iterations = 8, 4, 2, 2
    batch, spatial = 2, 16

    _lane_merge_reshape_ok()   # run the capability probe eagerly (cached)

    key = jax.random.PRNGKey(0)
    k_params, k_x = jax.random.split(key)
    params = init_shgn(k_params, in_channels, out_channels, levels, iterations)
    x = jax.random.normal(k_x, (batch, in_channels, spatial, spatial), jnp.float32)

    outs, feats = jax.jit(lambda inp: shgn_apply(params, inp))(x)
    outs = jax.block_until_ready(outs)
    feats = jax.block_until_ready(feats)

    assert len(outs) == iterations
    assert all(o.shape == (batch, out_channels, spatial, spatial) for o in outs)
    assert feats.shape == (batch, in_channels, spatial, spatial)
    assert all(bool(jnp.isfinite(o).all()) for o in outs)
    assert bool(jnp.isfinite(feats).all())

    print("KERNEL_OK")
</pallas_src>

<mosaic_0001>
module attributes {stable_mosaic.version = 11 : i64} {
  func.func @_probe_kernel(%arg0: memref<64x16xbf16, #tpu.memory_space<vmem>>, %arg1: memref<8x256xbf16, #tpu.memory_space<vmem>>) attributes {dimension_semantics = [], scalar_prefetch = 0 : i64, scratch_operands = 0 : i64, tpu.core_type = #tpu.core_type<tc>} {
    %c0 = arith.constant 0 : index
    %c0_0 = arith.constant 0 : index
    %0 = vector.load %arg0[%c0, %c0_0] : memref<64x16xbf16, #tpu.memory_space<vmem>>, vector<64x16xbf16>
    %1 = vector.shape_cast %0 : vector<64x16xbf16> to vector<8x8x16xbf16>
    %2 = tpu.concatenate %1, %1 in 2 : vector<8x8x16xbf16>, vector<8x8x16xbf16> -> vector<8x8x32xbf16>
    %3 = vector.shape_cast %2 : vector<8x8x32xbf16> to vector<8x256xbf16>
    %4 = vector.shape_cast %0 : vector<64x16xbf16> to vector<8x128xbf16>
    %5 = tpu.concatenate %4, %4 in 1 : vector<8x128xbf16>, vector<8x128xbf16> -> vector<8x256xbf16>
    %6 = arith.addf %3, %5 : vector<8x256xbf16>
    %c0_1 = arith.constant 0 : index
    %c0_2 = arith.constant 0 : index
    %7 = vector.load %arg1[%c0_1, %c0_2] : memref<8x256xbf16, #tpu.memory_space<vmem>>, vector<8x256xbf16>
    tpu.vector_store %arg1[%c0_1, %c0_2], %6 {strides = array<i32>} : memref<8x256xbf16, #tpu.memory_space<vmem>>, vector<8x256xbf16>,
    return
  }
}

module attributes {stable_mosaic.version = 11 : i64} {
  func.func @_conv_kernel(%arg0: i32, %arg1: memref<1x8x8x8xbf16, #tpu.memory_space<vmem>>, %arg2: memref<9x8x8xbf16, #tpu.memory_space<vmem>>, %arg3: memref<1x64x8xbf16, #tpu.memory_space<vmem>>, %arg4: memref<1x1x8xf32, #tpu.memory_space<vmem>>, %arg5: memref<1x1x8xf32, #tpu.memory_space<vmem>>, %arg6: memref<10x10x8xbf16, #tpu.memory_space<vmem>>) attributes {dimension_semantics = [#tpu.dimension_semantics<parallel>], iteration_bounds = array<i64: 2>, scalar_prefetch = 0 : i64, scratch_operands = 1 : i64, tpu.core_type = #tpu.core_type<tc>, window_params = [{transform_indices = @transform_0, window_bounds = array<i64: 1, 8, 8, 8>}, {pipeline_mode = #tpu.pipeline_mode<synchronous>, transform_indices = @transform_1, window_bounds = array<i64: 9, 8, 8>}, {transform_indices = @transform_2, window_bounds = array<i64: 1, 64, 8>}, {transform_indices = @transform_3, window_bounds = array<i64: 1, 1, 8>}, {transform_indices = @transform_4, window_bounds = array<i64: 1, 1, 8>}]} {
    %cst = arith.constant 0.000000e+00 : bf16
    %0 = vector.broadcast %cst : bf16 to vector<10x10x8xbf16>
    %c0 = arith.constant 0 : index
    %c0_0 = arith.constant 0 : index
    %c0_1 = arith.constant 0 : index
    %1 = vector.load %arg6[%c0, %c0_0, %c0_1] : memref<10x10x8xbf16, #tpu.memory_space<vmem>>, vector<10x10x8xbf16>
    tpu.vector_store %arg6[%c0, %c0_0, %c0_1], %0 {strides = array<i32>} : memref<10x10x8xbf16, #tpu.memory_space<vmem>>, vector<10x10x8xbf16>,
    %c0_2 = arith.constant 0 : index
    %c0_3 = arith.constant 0 : index
    %c0_4 = arith.constant 0 : index
    %c0_5 = arith.constant 0 : index
    %2 = vector.load %arg1[%c0_2, %c0_3, %c0_4, %c0_5] : memref<1x8x8x8xbf16, #tpu.memory_space<vmem>>, vector<1x8x8x8xbf16>
    %3 = vector.shape_cast %2 : vector<1x8x8x8xbf16> to vector<8x8x8xbf16>
    %c1 = arith.constant 1 : index
    %c1_6 = arith.constant 1 : index
    %c0_7 = arith.constant 0 : index
    %4 = vector.load %arg6[%c1, %c1_6, %c0_7] : memref<10x10x8xbf16, #tpu.memory_space<vmem>>, vector<8x8x8xbf16>
    tpu.vector_store %arg6[%c1, %c1_6, %c0_7], %3 {strides = array<i32>} : memref<10x10x8xbf16, #tpu.memory_space<vmem>>, vector<8x8x8xbf16>,
    %c0_8 = arith.constant 0 : index
    %c0_9 = arith.constant 0 : index
    %c0_10 = arith.constant 0 : index
    %5 = vector.load %arg6[%c0_8, %c0_9, %c0_10] : memref<10x10x8xbf16, #tpu.memory_space<vmem>>, vector<8x8x8xbf16>
    %6 = vector.shape_cast %5 : vector<8x8x8xbf16> to vector<64x8xbf16>
    %c0_11 = arith.constant 0 : index
    %c0_12 = arith.constant 0 : index
    %c0_13 = arith.constant 0 : index
    %7 = vector.load %arg2[%c0_11, %c0_12, %c0_13] : memref<9x8x8xbf16, #tpu.memory_space<vmem>>, vector<1x8x8xbf16>
    %8 = vector.shape_cast %7 : vector<1x8x8xbf16> to vector<8x8xbf16>
    %cst_14 = arith.constant dense<0.000000e+00> : vector<64x8xf32>
    %9 = tpu.matmul %6, %8, %cst_14 {dimension_numbers = #tpu.dot_dimension_numbers<[1], [0], [0], [1], [0, 0, 1, 1], [], []>} : vector<64x8xbf16>, vector<8x8xbf16>, vector<64x8xf32> -> vector<64x8xf32>
    %c0_15 = arith.constant 0 : index
    %c1_16 = arith.constant 1 : index
    %c0_17 = arith.constant 0 : index
    %10 = vector.load %arg6[%c0_15, %c1_16, %c0_17] : memref<10x10x8xbf16, #tpu.memory_space<vmem>>, vector<8x8x8xbf16>
    %11 = vector.shape_cast %10 : vector<8x8x8xbf16> to vector<64x8xbf16>
    %c1_18 = arith.constant 1 : index
    %c0_19 = arith.constant 0 : index
    %c0_20 = arith.constant 0 : index
    %12 = vector.load %arg2[%c1_18, %c0_19, %c0_20] : memref<9x8x8xbf16, #tpu.memory_space<vmem>>, vector<1x8x8xbf16>
    %13 = vector.shape_cast %12 : vector<1x8x8xbf16> to vector<8x8xbf16>
    %cst_21 = arith.constant dense<0.000000e+00> : vector<64x8xf32>
    %14 = tpu.matmul %11, %13, %cst_21 {dimension_numbers = #tpu.dot_dimension_numbers<[1], [0], [0], [1], [0, 0, 1, 1], [], []>} : vector<64x8xbf16>, vector<8x8xbf16>, vector<64x8xf32> -> vector<64x8xf32>
    %15 = arith.addf %9, %14 : vector<64x8xf32>
    %c0_22 = arith.constant 0 : index
    %c2 = arith.constant 2 : index
    %c0_23 = arith.constant 0 : index
    %16 = vector.load %arg6[%c0_22, %c2, %c0_23] : memref<10x10x8xbf16, #tpu.memory_space<vmem>>, vector<8x8x8xbf16>
    %17 = vector.shape_cast %16 : vector<8x8x8xbf16> to vector<64x8xbf16>
    %c2_24 = arith.constant 2 : index
    %c0_25 = arith.constant 0 : index
    %c0_26 = arith.constant 0 : index
    %18 = vector.load %arg2[%c2_24, %c0_25, %c0_26] : memref<9x8x8xbf16, #tpu.memory_space<vmem>>, vector<1x8x8xbf16>
    %19 = vector.shape_cast %18 : vector<1x8x8xbf16> to vector<8x8xbf16>
    %cst_27 = arith.constant dense<0.000000e+00> : vector<64x8xf32>
    %20 = tpu.matmul %17, %19, %cst_27 {dimension_numbers = #tpu.dot_dimension_numbers<[1], [0], [0], [1], [0, 0, 1, 1], [], []>} : vector<64x8xbf16>, vector<8x8xbf16>, vector<64x8xf32> -> vector<64x8xf32>
    %21 = arith.addf %15, %20 : vector<64x8xf32>
    %c1_28 = arith.constant 1 : index
    %c0_29 = arith.constant 0 : index
    %c0_30 = arith.constant 0 : index
    %22 = vector.load %arg6[%c1_28, %c0_29, %c0_30] : memref<10x10x8xbf16, #tpu.memory_space<vmem>>, vector<8x8x8xbf16>
    %23 = vector.shape_cast %22 : vector<8x8x8xbf16> to vector<64x8xbf16>
    %c3 = arith.constant 3 : index
    %c0_31 = arith.constant 0 : index
    %c0_32 = arith.constant 0 : index
    %24 = vector.load %arg2[%c3, %c0_31, %c0_32] : memref<9x8x8xbf16, #tpu.memory_space<vmem>>, vector<1x8x8xbf16>
    %25 = vector.shape_cast %24 : vector<1x8x8xbf16> to vector<8x8xbf16>
    %cst_33 = arith.constant dense<0.000000e+00> : vector<64x8xf32>
    %26 = tpu.matmul %23, %25, %cst_33 {dimension_numbers = #tpu.dot_dimension_numbers<[1], [0], [0], [1], [0, 0, 1, 1], [], []>} : vector<64x8xbf16>, vector<8x8xbf16>, vector<64x8xf32> -> vector<64x8xf32>
    %27 = arith.addf %21, %26 : vector<64x8xf32>
    %c1_34 = arith.constant 1 : index
    %c1_35 = arith.constant 1 : index
    %c0_36 = arith.constant 0 : index
    %28 = vector.load %arg6[%c1_34, %c1_35, %c0_36] : memref<10x10x8xbf16, #tpu.memory_space<vmem>>, vector<8x8x8xbf16>
    %29 = vector.shape_cast %28 : vector<8x8x8xbf16> to vector<64x8xbf16>
    %c4 = arith.constant 4 : index
    %c0_37 = arith.constant 0 : index
    %c0_38 = arith.constant 0 : index
    %30 = vector.load %arg2[%c4, %c0_37, %c0_38] : memref<9x8x8xbf16, #tpu.memory_space<vmem>>, vector<1x8x8xbf16>
    %31 = vector.shape_cast %30 : vector<1x8x8xbf16> to vector<8x8xbf16>
    %cst_39 = arith.constant dense<0.000000e+00> : vector<64x8xf32>
    %32 = tpu.matmul %29, %31, %cst_39 {dimension_numbers = #tpu.dot_dimension_numbers<[1], [0], [0], [1], [0, 0, 1, 1], [], []>} : vector<64x8xbf16>, vector<8x8xbf16>, vector<64x8xf32> -> vector<64x8xf32>
    %33 = arith.addf %27, %32 : vector<64x8xf32>
    %c1_40 = arith.constant 1 : index
    %c2_41 = arith.constant 2 : index
    %c0_42 = arith.constant 0 : index
    %34 = vector.load %arg6[%c1_40, %c2_41, %c0_42] : memref<10x10x8xbf16, #tpu.memory_space<vmem>>, vector<8x8x8xbf16>
    %35 = vector.shape_cast %34 : vector<8x8x8xbf16> to vector<64x8xbf16>
    %c5 = arith.constant 5 : index
    %c0_43 = arith.constant 0 : index
    %c0_44 = arith.constant 0 : index
    %36 = vector.load %arg2[%c5, %c0_43, %c0_44] : memref<9x8x8xbf16, #tpu.memory_space<vmem>>, vector<1x8x8xbf16>
    %37 = vector.shape_cast %36 : vector<1x8x8xbf16> to vector<8x8xbf16>
    %cst_45 = arith.constant dense<0.000000e+00> : vector<64x8xf32>
    %38 = tpu.matmul %35, %37, %cst_45 {dimension_numbers = #tpu.dot_dimension_numbers<[1], [0], [0], [1], [0, 0, 1, 1], [], []>} : vector<64x8xbf16>, vector<8x8xbf16>, vector<64x8xf32> -> vector<64x8xf32>
    %39 = arith.addf %33, %38 : vector<64x8xf32>
    %c2_46 = arith.constant 2 : index
    %c0_47 = arith.constant 0 : index
    %c0_48 = arith.constant 0 : index
    %40 = vector.load %arg6[%c2_46, %c0_47, %c0_48] : memref<10x10x8xbf16, #tpu.memory_space<vmem>>, vector<8x8x8xbf16>
    %41 = vector.shape_cast %40 : vector<8x8x8xbf16> to vector<64x8xbf16>
    %c6 = arith.constant 6 : index
    %c0_49 = arith.constant 0 : index
    %c0_50 = arith.constant 0 : index
    %42 = vector.load %arg2[%c6, %c0_49, %c0_50] : memref<9x8x8xbf16, #tpu.memory_space<vmem>>, vector<1x8x8xbf16>
    %43 = vector.shape_cast %42 : vector<1x8x8xbf16> to vector<8x8xbf16>
    %cst_51 = arith.constant dense<0.000000e+00> : vector<64x8xf32>
    %44 = tpu.matmul %41, %43, %cst_51 {dimension_numbers = #tpu.dot_dimension_numbers<[1], [0], [0], [1], [0, 0, 1, 1], [], []>} : vector<64x8xbf16>, vector<8x8xbf16>, vector<64x8xf32> -> vector<64x8xf32>
    %45 = arith.addf %39, %44 : vector<64x8xf32>
    %c2_52 = arith.constant 2 : index
    %c1_53 = arith.constant 1 : index
    %c0_54 = arith.constant 0 : index
    %46 = vector.load %arg6[%c2_52, %c1_53, %c0_54] : memref<10x10x8xbf16, #tpu.memory_space<vmem>>, vector<8x8x8xbf16>
    %47 = vector.shape_cast %46 : vector<8x8x8xbf16> to vector<64x8xbf16>
    %c7 = arith.constant 7 : index
    %c0_55 = arith.constant 0 : index
    %c0_56 = arith.constant 0 : index
    %48 = vector.load %arg2[%c7, %c0_55, %c0_56] : memref<9x8x8xbf16, #tpu.memory_space<vmem>>, vector<1x8x8xbf16>
    %49 = vector.shape_cast %48 : vector<1x8x8xbf16> to vector<8x8xbf16>
    %cst_57 = arith.constant dense<0.000000e+00> : vector<64x8xf32>
    %50 = tpu.matmul %47, %49, %cst_57 {dimension_numbers = #tpu.dot_dimension_numbers<[1], [0], [0], [1], [0, 0, 1, 1], [], []>} : vector<64x8xbf16>, vector<8x8xbf16>, vector<64x8xf32> -> vector<64x8xf32>
    %51 = arith.addf %45, %50 : vector<64x8xf32>
    %c2_58 = arith.constant 2 : index
    %c2_59 = arith.constant 2 : index
    %c0_60 = arith.constant 0 : index
    %52 = vector.load %arg6[%c2_58, %c2_59, %c0_60] : memref<10x10x8xbf16, #tpu.memory_space<vmem>>, vector<8x8x8xbf16>
    %53 = vector.shape_cast %52 : vector<8x8x8xbf16> to vector<64x8xbf16>
    %c8 = arith.constant 8 : index
    %c0_61 = arith.constant 0 : index
    %c0_62 = arith.constant 0 : index
    %54 = vector.load %arg2[%c8, %c0_61, %c0_62] : memref<9x8x8xbf16, #tpu.memory_space<vmem>>, vector<1x8x8xbf16>
    %55 = vector.shape_cast %54 : vector<1x8x8xbf16> to vector<8x8xbf16>
    %cst_63 = arith.constant dense<0.000000e+00> : vector<64x8xf32>
    %56 = tpu.matmul %53, %55, %cst_63 {dimension_numbers = #tpu.dot_dimension_numbers<[1], [0], [0], [1], [0, 0, 1, 1], [], []>} : vector<64x8xbf16>, vector<8x8xbf16>, vector<64x8xf32> -> vector<64x8xf32>
    %57 = arith.addf %51, %56 : vector<64x8xf32>
    %cst_64 = arith.constant dense<0.000000e+00> : vector<8xf32>
    %58 = vector.multi_reduction <add>, %57, %cst_64 [0] : vector<64x8xf32> to vector<8xf32>
    %59 = vector.shape_cast %58 : vector<8xf32> to vector<1x8xf32>
    %c0_65 = arith.constant 0 : index
    %c0_66 = arith.constant 0 : index
    %c0_67 = arith.constant 0 : index
    %60 = vector.load %arg4[%c0_65, %c0_66, %c0_67] : memref<1x1x8xf32, #tpu.memory_space<vmem>>, vector<1x1x8xf32>
    %61 = vector.shape_cast %60 : vector<1x1x8xf32> to vector<1x8xf32>
    %62 = vector.shape_cast %59 : vector<1x8xf32> to vector<1x1x8xf32>
    tpu.vector_store %arg4[%c0_65, %c0_66, %c0_67], %62 {strides = array<i32>} : memref<1x1x8xf32, #tpu.memory_space<vmem>>, vector<1x1x8xf32>,
    %63 = arith.mulf %57, %57 : vector<64x8xf32>
    %cst_68 = arith.constant dense<0.000000e+00> : vector<8xf32>
    %64 = vector.multi_reduction <add>, %63, %cst_68 [0] : vector<64x8xf32> to vector<8xf32>
    %65 = vector.shape_cast %64 : vector<8xf32> to vector<1x8xf32>
    %c0_69 = arith.constant 0 : index
    %c0_70 = arith.constant 0 : index
    %c0_71 = arith.constant 0 : index
    %66 = vector.load %arg5[%c0_69, %c0_70, %c0_71] : memref<1x1x8xf32, #tpu.memory_space<vmem>>, vector<1x1x8xf32>
    %67 = vector.shape_cast %66 : vector<1x1x8xf32> to vector<1x8xf32>
    %68 = vector.shape_cast %65 : vector<1x8xf32> to vector<1x1x8xf32>
    tpu.vector_store %arg5[%c0_69, %c0_70, %c0_71], %68 {strides = array<i32>} : memref<1x1x8xf32, #tpu.memory_space<vmem>>, vector<1x1x8xf32>,
    %69 = arith.truncf %57 : vector<64x8xf32> to vector<64x8xbf16>
    %c0_72 = arith.constant 0 : index
    %c0_73 = arith.constant 0 : index
    %c0_74 = arith.constant 0 : index
    %70 = vector.load %arg3[%c0_72, %c0_73, %c0_74] : memref<1x64x8xbf16, #tpu.memory_space<vmem>>, vector<1x64x8xbf16>
    %71 = vector.shape_cast %70 : vector<1x64x8xbf16> to vector<64x8xbf16>
    %72 = vector.shape_cast %69 : vector<64x8xbf16> to vector<1x64x8xbf16>
    tpu.vector_store %arg3[%c0_72, %c0_73, %c0_74], %72 {strides = array<i32>} : memref<1x64x8xbf16, #tpu.memory_space<vmem>>, vector<1x64x8xbf16>,
    return
  }
  func.func @transform_0(%arg0: i32) -> (i32, i32, i32, i32) {
    %c0_i32 = arith.constant 0 : i32
    %c0_i32_0 = arith.constant 0 : i32
    %c0_i32_1 = arith.constant 0 : i32
    %c0_i32_2 = arith.constant 0 : i32
    return %arg0, %c0_i32, %c0_i32_0, %c0_i32_1 : i32, i32, i32, i32
  }
  func.func @transform_1(%arg0: i32) -> (i32, i32, i32) {
    %c0_i32 = arith.constant 0 : i32
    %c0_i32_0 = arith.constant 0 : i32
    %c0_i32_1 = arith.constant 0 : i32
    %c0_i32_2 = arith.constant 0 : i32
    return %c0_i32, %c0_i32_0, %c0_i32_1 : i32, i32, i32
  }
  func.func @transform_2(%arg0: i32) -> (i32, i32, i32) {
    %c0_i32 = arith.constant 0 : i32
    %c0_i32_0 = arith.constant 0 : i32
    %c0_i32_1 = arith.constant 0 : i32
    return %arg0, %c0_i32, %c0_i32_0 : i32, i32, i32
  }
  func.func @transform_3(%arg0: i32) -> (i32, i32, i32) {
    %c0_i32 = arith.constant 0 : i32
    %c0_i32_0 = arith.constant 0 : i32
    %c0_i32_1 = arith.constant 0 : i32
    return %arg0, %c0_i32, %c0_i32_0 : i32, i32, i32
  }
  func.func @transform_4(%arg0: i32) -> (i32, i32, i32) {
    %c0_i32 = arith.constant 0 : i32
    %c0_i32_0 = arith.constant 0 : i32
    %c0_i32_1 = arith.constant 0 : i32
    return %arg0, %c0_i32, %c0_i32_0 : i32, i32, i32
  }
}

module attributes {stable_mosaic.version = 11 : i64} {
  func.func @_affine_kernel(%arg0: i32, %arg1: memref<16x64xbf16, #tpu.memory_space<vmem>>, %arg2: memref<1x64xf32, #tpu.memory_space<vmem>>, %arg3: memref<1x64xf32, #tpu.memory_space<vmem>>, %arg4: memref<16x64xbf16, #tpu.memory_space<vmem>>) attributes {dimension_semantics = [#tpu.dimension_semantics<parallel>], iteration_bounds = array<i64: 1>, scalar_prefetch = 0 : i64, scratch_operands = 0 : i64, tpu.core_type = #tpu.core_type<tc>, window_params = [{transform_indices = @transform_0, window_bounds = array<i64: 16, 64>}, {pipeline_mode = #tpu.pipeline_mode<synchronous>, transform_indices = @transform_1, window_bounds = array<i64: 1, 64>}, {pipeline_mode = #tpu.pipeline_mode<synchronous>, transform_indices = @transform_2, window_bounds = array<i64: 1, 64>}, {transform_indices = @transform_3, window_bounds = array<i64: 16, 64>}]} {
    %c0 = arith.constant 0 : index
    %c0_0 = arith.constant 0 : index
    %0 = vector.load %arg1[%c0, %c0_0] : memref<16x64xbf16, #tpu.memory_space<vmem>>, vector<16x64xbf16>
    %1 = arith.extf %0 : vector<16x64xbf16> to vector<16x64xf32>
    %c0_1 = arith.constant 0 : index
    %c0_2 = arith.constant 0 : index
    %2 = vector.load %arg2[%c0_1, %c0_2] : memref<1x64xf32, #tpu.memory_space<vmem>>, vector<1x64xf32>
    %3 = vector.broadcast %2 : vector<1x64xf32> to vector<16x64xf32>
    %4 = arith.mulf %1, %3 : vector<16x64xf32>
    %c0_3 = arith.constant 0 : index
    %c0_4 = arith.constant 0 : index
    %5 = vector.load %arg3[%c0_3, %c0_4] : memref<1x64xf32, #tpu.memory_space<vmem>>, vector<1x64xf32>
    %6 = vector.broadcast %5 : vector<1x64xf32> to vector<16x64xf32>
    %7 = arith.addf %4, %6 : vector<16x64xf32>
    %cst = arith.constant 0.000000e+00 : f32
    %8 = vector.broadcast %cst : f32 to vector<16x64xf32>
    %9 = arith.maximumf %7, %8 : vector<16x64xf32>
    %10 = arith.truncf %9 : vector<16x64xf32> to vector<16x64xbf16>
    %c0_5 = arith.constant 0 : index
    %c0_6 = arith.constant 0 : index
    %11 = vector.load %arg4[%c0_5, %c0_6] : memref<16x64xbf16, #tpu.memory_space<vmem>>, vector<16x64xbf16>
    tpu.vector_store %arg4[%c0_5, %c0_6], %10 {strides = array<i32>} : memref<16x64xbf16, #tpu.memory_space<vmem>>, vector<16x64xbf16>,
    return
  }
  func.func @transform_0(%arg0: i32) -> (i32, i32) {
    %c0_i32 = arith.constant 0 : i32
    %c0_i32_0 = arith.constant 0 : i32
    return %arg0, %c0_i32 : i32, i32
  }
  func.func @transform_1(%arg0: i32) -> (i32, i32) {
    %c0_i32 = arith.constant 0 : i32
    %c0_i32_0 = arith.constant 0 : i32
    %c0_i32_1 = arith.constant 0 : i32
    return %c0_i32, %c0_i32_0 : i32, i32
  }
  func.func @transform_2(%arg0: i32) -> (i32, i32) {
    %c0_i32 = arith.constant 0 : i32
    %c0_i32_0 = arith.constant 0 : i32
    %c0_i32_1 = arith.constant 0 : i32
    return %c0_i32, %c0_i32_0 : i32, i32
  }
  func.func @transform_3(%arg0: i32) -> (i32, i32) {
    %c0_i32 = arith.constant 0 : i32
    %c0_i32_0 = arith.constant 0 : i32
    return %arg0, %c0_i32 : i32, i32
  }
}

module attributes {stable_mosaic.version = 11 : i64} {
  func.func @_affine_kernel(%arg0: i32, %arg1: memref<16x64xbf16, #tpu.memory_space<vmem>>, %arg2: memref<1x64xf32, #tpu.memory_space<vmem>>, %arg3: memref<1x64xf32, #tpu.memory_space<vmem>>, %arg4: memref<16x64xbf16, #tpu.memory_space<vmem>>, %arg5: memref<16x64xbf16, #tpu.memory_space<vmem>>) attributes {dimension_semantics = [#tpu.dimension_semantics<parallel>], iteration_bounds = array<i64: 1>, scalar_prefetch = 0 : i64, scratch_operands = 0 : i64, tpu.core_type = #tpu.core_type<tc>, window_params = [{transform_indices = @transform_0, window_bounds = array<i64: 16, 64>}, {pipeline_mode = #tpu.pipeline_mode<synchronous>, transform_indices = @transform_1, window_bounds = array<i64: 1, 64>}, {pipeline_mode = #tpu.pipeline_mode<synchronous>, transform_indices = @transform_2, window_bounds = array<i64: 1, 64>}, {transform_indices = @transform_3, window_bounds = array<i64: 16, 64>}, {transform_indices = @transform_4, window_bounds = array<i64: 16, 64>}]} {
    %c0 = arith.constant 0 : index
    %c0_0 = arith.constant 0 : index
    %0 = vector.load %arg1[%c0, %c0_0] : memref<16x64xbf16, #tpu.memory_space<vmem>>, vector<16x64xbf16>
    %1 = arith.extf %0 : vector<16x64xbf16> to vector<16x64xf32>
    %c0_1 = arith.constant 0 : index
    %c0_2 = arith.constant 0 : index
    %2 = vector.load %arg2[%c0_1, %c0_2] : memref<1x64xf32, #tpu.memory_space<vmem>>, vector<1x64xf32>
    %3 = vector.broadcast %2 : vector<1x64xf32> to vector<16x64xf32>
    %4 = arith.mulf %1, %3 : vector<16x64xf32>
    %c0_3 = arith.constant 0 : index
    %c0_4 = arith.constant 0 : index
    %5 = vector.load %arg3[%c0_3, %c0_4] : memref<1x64xf32, #tpu.memory_space<vmem>>, vector<1x64xf32>
    %6 = vector.broadcast %5 : vector<1x64xf32> to vector<16x64xf32>
    %7 = arith.addf %4, %6 : vector<16x64xf32>
    %c0_5 = arith.constant 0 : index
    %c0_6 = arith.constant 0 : index
    %8 = vector.load %arg4[%c0_5, %c0_6] : memref<16x64xbf16, #tpu.memory_space<vmem>>, vector<16x64xbf16>
    %9 = arith.extf %8 : vector<16x64xbf16> to vector<16x64xf32>
    %10 = arith.addf %7, %9 : vector<16x64xf32>
    %cst = arith.constant 0.000000e+00 : f32
    %11 = vector.broadcast %cst : f32 to vector<16x64xf32>
    %12 = arith.maximumf %10, %11 : vector<16x64xf32>
    %13 = arith.truncf %12 : vector<16x64xf32> to vector<16x64xbf16>
    %c0_7 = arith.constant 0 : index
    %c0_8 = arith.constant 0 : index
    %14 = vector.load %arg5[%c0_7, %c0_8] : memref<16x64xbf16, #tpu.memory_space<vmem>>, vector<16x64xbf16>
    tpu.vector_store %arg5[%c0_7, %c0_8], %13 {strides = array<i32>} : memref<16x64xbf16, #tpu.memory_space<vmem>>, vector<16x64xbf16>,
    return
  }
  func.func @transform_0(%arg0: i32) -> (i32, i32) {
    %c0_i32 = arith.constant 0 : i32
    %c0_i32_0 = arith.constant 0 : i32
    return %arg0, %c0_i32 : i32, i32
  }
  func.func @transform_1(%arg0: i32) -> (i32, i32) {
    %c0_i32 = arith.constant 0 : i32
    %c0_i32_0 = arith.constant 0 : i32
    %c0_i32_1 = arith.constant 0 : i32
    return %c0_i32, %c0_i32_0 : i32, i32
  }
  func.func @transform_2(%arg0: i32) -> (i32, i32) {
    %c0_i32 = arith.constant 0 : i32
    %c0_i32_0 = arith.constant 0 : i32
    %c0_i32_1 = arith.constant 0 : i32
    return %c0_i32, %c0_i32_0 : i32, i32
  }
  func.func @transform_3(%arg0: i32) -> (i32, i32) {
    %c0_i32 = arith.constant 0 : i32
    %c0_i32_0 = arith.constant 0 : i32
    return %arg0, %c0_i32 : i32, i32
  }
  func.func @transform_4(%arg0: i32) -> (i32, i32) {
    %c0_i32 = arith.constant 0 : i32
    %c0_i32_0 = arith.constant 0 : i32
    return %arg0, %c0_i32 : i32, i32
  }
}

module attributes {stable_mosaic.version = 11 : i64} {
  func.func @_conv_kernel(%arg0: i32, %arg1: memref<1x4x4x8xbf16, #tpu.memory_space<vmem>>, %arg2: memref<9x8x8xbf16, #tpu.memory_space<vmem>>, %arg3: memref<1x16x8xbf16, #tpu.memory_space<vmem>>, %arg4: memref<1x1x8xf32, #tpu.memory_space<vmem>>, %arg5: memref<1x1x8xf32, #tpu.memory_space<vmem>>, %arg6: memref<6x6x8xbf16, #tpu.memory_space<vmem>>) attributes {dimension_semantics = [#tpu.dimension_semantics<parallel>], iteration_bounds = array<i64: 2>, scalar_prefetch = 0 : i64, scratch_operands = 1 : i64, tpu.core_type = #tpu.core_type<tc>, window_params = [{transform_indices = @transform_0, window_bounds = array<i64: 1, 4, 4, 8>}, {pipeline_mode = #tpu.pipeline_mode<synchronous>, transform_indices = @transform_1, window_bounds = array<i64: 9, 8, 8>}, {transform_indices = @transform_2, window_bounds = array<i64: 1, 16, 8>}, {transform_indices = @transform_3, window_bounds = array<i64: 1, 1, 8>}, {transform_indices = @transform_4, window_bounds = array<i64: 1, 1, 8>}]} {
    %cst = arith.constant 0.000000e+00 : bf16
    %0 = vector.broadcast %cst : bf16 to vector<6x6x8xbf16>
    %c0 = arith.constant 0 : index
    %c0_0 = arith.constant 0 : index
    %c0_1 = arith.constant 0 : index
    %1 = vector.load %arg6[%c0, %c0_0, %c0_1] : memref<6x6x8xbf16, #tpu.memory_space<vmem>>, vector<6x6x8xbf16>
    tpu.vector_store %arg6[%c0, %c0_0, %c0_1], %0 {strides = array<i32>} : memref<6x6x8xbf16, #tpu.memory_space<vmem>>, vector<6x6x8xbf16>,
    %c0_2 = arith.constant 0 : index
    %c0_3 = arith.constant 0 : index
    %c0_4 = arith.constant 0 : index
    %c0_5 = arith.constant 0 : index
    %2 = vector.load %arg1[%c0_2, %c0_3, %c0_4, %c0_5] : memref<1x4x4x8xbf16, #tpu.memory_space<vmem>>, vector<1x4x4x8xbf16>
    %3 = vector.shape_cast %2 : vector<1x4x4x8xbf16> to vector<4x4x8xbf16>
    %c1 = arith.constant 1 : index
    %c1_6 = arith.constant 1 : index
    %c0_7 = arith.constant 0 : index
    %4 = vector.load %arg6[%c1, %c1_6, %c0_7] : memref<6x6x8xbf16, #tpu.memory_space<vmem>>, vector<4x4x8xbf16>
    tpu.vector_store %arg6[%c1, %c1_6, %c0_7], %3 {strides = array<i32>} : memref<6x6x8xbf16, #tpu.memory_space<vmem>>, vector<4x4x8xbf16>,
    %c0_8 = arith.constant 0 : index
    %c0_9 = arith.constant 0 : index
    %c0_10 = arith.constant 0 : index
    %5 = vector.load %arg6[%c0_8, %c0_9, %c0_10] : memref<6x6x8xbf16, #tpu.memory_space<vmem>>, vector<4x4x8xbf16>
    %6 = vector.shape_cast %5 : vector<4x4x8xbf16> to vector<16x8xbf16>
    %c0_11 = arith.constant 0 : index
    %c0_12 = arith.constant 0 : index
    %c0_13 = arith.constant 0 : index
    %7 = vector.load %arg2[%c0_11, %c0_12, %c0_13] : memref<9x8x8xbf16, #tpu.memory_space<vmem>>, vector<1x8x8xbf16>
    %8 = vector.shape_cast %7 : vector<1x8x8xbf16> to vector<8x8xbf16>
    %cst_14 = arith.constant dense<0.000000e+00> : vector<16x8xf32>
    %9 = tpu.matmul %6, %8, %cst_14 {dimension_numbers = #tpu.dot_dimension_numbers<[1], [0], [0], [1], [0, 0, 1, 1], [], []>} : vector<16x8xbf16>, vector<8x8xbf16>, vector<16x8xf32> -> vector<16x8xf32>
    %c0_15 = arith.constant 0 : index
    %c1_16 = arith.constant 1 : index
    %c0_17 = arith.constant 0 : index
    %10 = vector.load %arg6[%c0_15, %c1_16, %c0_17] : memref<6x6x8xbf16, #tpu.memory_space<vmem>>, vector<4x4x8xbf16>
    %11 = vector.shape_cast %10 : vector<4x4x8xbf16> to vector<16x8xbf16>
    %c1_18 = arith.constant 1 : index
    %c0_19 = arith.constant 0 : index
    %c0_20 = arith.constant 0 : index
    %12 = vector.load %arg2[%c1_18, %c0_19, %c0_20] : memref<9x8x8xbf16, #tpu.memory_space<vmem>>, vector<1x8x8xbf16>
    %13 = vector.shape_cast %12 : vector<1x8x8xbf16> to vector<8x8xbf16>
    %cst_21 = arith.constant dense<0.000000e+00> : vector<16x8xf32>
    %14 = tpu.matmul %11, %13, %cst_21 {dimension_numbers = #tpu.dot_dimension_numbers<[1], [0], [0], [1], [0, 0, 1, 1], [], []>} : vector<16x8xbf16>, vector<8x8xbf16>, vector<16x8xf32> -> vector<16x8xf32>
    %15 = arith.addf %9, %14 : vector<16x8xf32>
    %c0_22 = arith.constant 0 : index
    %c2 = arith.constant 2 : index
    %c0_23 = arith.constant 0 : index
    %16 = vector.load %arg6[%c0_22, %c2, %c0_23] : memref<6x6x8xbf16, #tpu.memory_space<vmem>>, vector<4x4x8xbf16>
    %17 = vector.shape_cast %16 : vector<4x4x8xbf16> to vector<16x8xbf16>
    %c2_24 = arith.constant 2 : index
    %c0_25 = arith.constant 0 : index
    %c0_26 = arith.constant 0 : index
    %18 = vector.load %arg2[%c2_24, %c0_25, %c0_26] : memref<9x8x8xbf16, #tpu.memory_space<vmem>>, vector<1x8x8xbf16>
    %19 = vector.shape_cast %18 : vector<1x8x8xbf16> to vector<8x8xbf16>
    %cst_27 = arith.constant dense<0.000000e+00> : vector<16x8xf32>
    %20 = tpu.matmul %17, %19, %cst_27 {dimension_numbers = #tpu.dot_dimension_numbers<[1], [0], [0], [1], [0, 0, 1, 1], [], []>} : vector<16x8xbf16>, vector<8x8xbf16>, vector<16x8xf32> -> vector<16x8xf32>
    %21 = arith.addf %15, %20 : vector<16x8xf32>
    %c1_28 = arith.constant 1 : index
    %c0_29 = arith.constant 0 : index
    %c0_30 = arith.constant 0 : index
    %22 = vector.load %arg6[%c1_28, %c0_29, %c0_30] : memref<6x6x8xbf16, #tpu.memory_space<vmem>>, vector<4x4x8xbf16>
    %23 = vector.shape_cast %22 : vector<4x4x8xbf16> to vector<16x8xbf16>
    %c3 = arith.constant 3 : index
    %c0_31 = arith.constant 0 : index
    %c0_32 = arith.constant 0 : index
    %24 = vector.load %arg2[%c3, %c0_31, %c0_32] : memref<9x8x8xbf16, #tpu.memory_space<vmem>>, vector<1x8x8xbf16>
    %25 = vector.shape_cast %24 : vector<1x8x8xbf16> to vector<8x8xbf16>
    %cst_33 = arith.constant dense<0.000000e+00> : vector<16x8xf32>
    %26 = tpu.matmul %23, %25, %cst_33 {dimension_numbers = #tpu.dot_dimension_numbers<[1], [0], [0], [1], [0, 0, 1, 1], [], []>} : vector<16x8xbf16>, vector<8x8xbf16>, vector<16x8xf32> -> vector<16x8xf32>
    %27 = arith.addf %21, %26 : vector<16x8xf32>
    %c1_34 = arith.constant 1 : index
    %c1_35 = arith.constant 1 : index
    %c0_36 = arith.constant 0 : index
    %28 = vector.load %arg6[%c1_34, %c1_35, %c0_36] : memref<6x6x8xbf16, #tpu.memory_space<vmem>>, vector<4x4x8xbf16>
    %29 = vector.shape_cast %28 : vector<4x4x8xbf16> to vector<16x8xbf16>
    %c4 = arith.constant 4 : index
    %c0_37 = arith.constant 0 : index
    %c0_38 = arith.constant 0 : index
    %30 = vector.load %arg2[%c4, %c0_37, %c0_38] : memref<9x8x8xbf16, #tpu.memory_space<vmem>>, vector<1x8x8xbf16>
    %31 = vector.shape_cast %30 : vector<1x8x8xbf16> to vector<8x8xbf16>
    %cst_39 = arith.constant dense<0.000000e+00> : vector<16x8xf32>
    %32 = tpu.matmul %29, %31, %cst_39 {dimension_numbers = #tpu.dot_dimension_numbers<[1], [0], [0], [1], [0, 0, 1, 1], [], []>} : vector<16x8xbf16>, vector<8x8xbf16>, vector<16x8xf32> -> vector<16x8xf32>
    %33 = arith.addf %27, %32 : vector<16x8xf32>
    %c1_40 = arith.constant 1 : index
    %c2_41 = arith.constant 2 : index
    %c0_42 = arith.constant 0 : index
    %34 = vector.load %arg6[%c1_40, %c2_41, %c0_42] : memref<6x6x8xbf16, #tpu.memory_space<vmem>>, vector<4x4x8xbf16>
    %35 = vector.shape_cast %34 : vector<4x4x8xbf16> to vector<16x8xbf16>
    %c5 = arith.constant 5 : index
    %c0_43 = arith.constant 0 : index
    %c0_44 = arith.constant 0 : index
    %36 = vector.load %arg2[%c5, %c0_43, %c0_44] : memref<9x8x8xbf16, #tpu.memory_space<vmem>>, vector<1x8x8xbf16>
    %37 = vector.shape_cast %36 : vector<1x8x8xbf16> to vector<8x8xbf16>
    %cst_45 = arith.constant dense<0.000000e+00> : vector<16x8xf32>
    %38 = tpu.matmul %35, %37, %cst_45 {dimension_numbers = #tpu.dot_dimension_numbers<[1], [0], [0], [1], [0, 0, 1, 1], [], []>} : vector<16x8xbf16>, vector<8x8xbf16>, vector<16x8xf32> -> vector<16x8xf32>
    %39 = arith.addf %33, %38 : vector<16x8xf32>
    %c2_46 = arith.constant 2 : index
    %c0_47 = arith.constant 0 : index
    %c0_48 = arith.constant 0 : index
    %40 = vector.load %arg6[%c2_46, %c0_47, %c0_48] : memref<6x6x8xbf16, #tpu.memory_space<vmem>>, vector<4x4x8xbf16>
    %41 = vector.shape_cast %40 : vector<4x4x8xbf16> to vector<16x8xbf16>
    %c6 = arith.constant 6 : index
    %c0_49 = arith.constant 0 : index
    %c0_50 = arith.constant 0 : index
    %42 = vector.load %arg2[%c6, %c0_49, %c0_50] : memref<9x8x8xbf16, #tpu.memory_space<vmem>>, vector<1x8x8xbf16>
    %43 = vector.shape_cast %42 : vector<1x8x8xbf16> to vector<8x8xbf16>
    %cst_51 = arith.constant dense<0.000000e+00> : vector<16x8xf32>
    %44 = tpu.matmul %41, %43, %cst_51 {dimension_numbers = #tpu.dot_dimension_numbers<[1], [0], [0], [1], [0, 0, 1, 1], [], []>} : vector<16x8xbf16>, vector<8x8xbf16>, vector<16x8xf32> -> vector<16x8xf32>
    %45 = arith.addf %39, %44 : vector<16x8xf32>
    %c2_52 = arith.constant 2 : index
    %c1_53 = arith.constant 1 : index
    %c0_54 = arith.constant 0 : index
    %46 = vector.load %arg6[%c2_52, %c1_53, %c0_54] : memref<6x6x8xbf16, #tpu.memory_space<vmem>>, vector<4x4x8xbf16>
    %47 = vector.shape_cast %46 : vector<4x4x8xbf16> to vector<16x8xbf16>
    %c7 = arith.constant 7 : index
    %c0_55 = arith.constant 0 : index
    %c0_56 = arith.constant 0 : index
    %48 = vector.load %arg2[%c7, %c0_55, %c0_56] : memref<9x8x8xbf16, #tpu.memory_space<vmem>>, vector<1x8x8xbf16>
    %49 = vector.shape_cast %48 : vector<1x8x8xbf16> to vector<8x8xbf16>
    %cst_57 = arith.constant dense<0.000000e+00> : vector<16x8xf32>
    %50 = tpu.matmul %47, %49, %cst_57 {dimension_numbers = #tpu.dot_dimension_numbers<[1], [0], [0], [1], [0, 0, 1, 1], [], []>} : vector<16x8xbf16>, vector<8x8xbf16>, vector<16x8xf32> -> vector<16x8xf32>
    %51 = arith.addf %45, %50 : vector<16x8xf32>
    %c2_58 = arith.constant 2 : index
    %c2_59 = arith.constant 2 : index
    %c0_60 = arith.constant 0 : index
    %52 = vector.load %arg6[%c2_58, %c2_59, %c0_60] : memref<6x6x8xbf16, #tpu.memory_space<vmem>>, vector<4x4x8xbf16>
    %53 = vector.shape_cast %52 : vector<4x4x8xbf16> to vector<16x8xbf16>
    %c8 = arith.constant 8 : index
    %c0_61 = arith.constant 0 : index
    %c0_62 = arith.constant 0 : index
    %54 = vector.load %arg2[%c8, %c0_61, %c0_62] : memref<9x8x8xbf16, #tpu.memory_space<vmem>>, vector<1x8x8xbf16>
    %55 = vector.shape_cast %54 : vector<1x8x8xbf16> to vector<8x8xbf16>
    %cst_63 = arith.constant dense<0.000000e+00> : vector<16x8xf32>
    %56 = tpu.matmul %53, %55, %cst_63 {dimension_numbers = #tpu.dot_dimension_numbers<[1], [0], [0], [1], [0, 0, 1, 1], [], []>} : vector<16x8xbf16>, vector<8x8xbf16>, vector<16x8xf32> -> vector<16x8xf32>
    %57 = arith.addf %51, %56 : vector<16x8xf32>
    %cst_64 = arith.constant dense<0.000000e+00> : vector<8xf32>
    %58 = vector.multi_reduction <add>, %57, %cst_64 [0] : vector<16x8xf32> to vector<8xf32>
    %59 = vector.shape_cast %58 : vector<8xf32> to vector<1x8xf32>
    %c0_65 = arith.constant 0 : index
    %c0_66 = arith.constant 0 : index
    %c0_67 = arith.constant 0 : index
    %60 = vector.load %arg4[%c0_65, %c0_66, %c0_67] : memref<1x1x8xf32, #tpu.memory_space<vmem>>, vector<1x1x8xf32>
    %61 = vector.shape_cast %60 : vector<1x1x8xf32> to vector<1x8xf32>
    %62 = vector.shape_cast %59 : vector<1x8xf32> to vector<1x1x8xf32>
    tpu.vector_store %arg4[%c0_65, %c0_66, %c0_67], %62 {strides = array<i32>} : memref<1x1x8xf32, #tpu.memory_space<vmem>>, vector<1x1x8xf32>,
    %63 = arith.mulf %57, %57 : vector<16x8xf32>
    %cst_68 = arith.constant dense<0.000000e+00> : vector<8xf32>
    %64 = vector.multi_reduction <add>, %63, %cst_68 [0] : vector<16x8xf32> to vector<8xf32>
    %65 = vector.shape_cast %64 : vector<8xf32> to vector<1x8xf32>
    %c0_69 = arith.constant 0 : index
    %c0_70 = arith.constant 0 : index
    %c0_71 = arith.constant 0 : index
    %66 = vector.load %arg5[%c0_69, %c0_70, %c0_71] : memref<1x1x8xf32, #tpu.memory_space<vmem>>, vector<1x1x8xf32>
    %67 = vector.shape_cast %66 : vector<1x1x8xf32> to vector<1x8xf32>
    %68 = vector.shape_cast %65 : vector<1x8xf32> to vector<1x1x8xf32>
    tpu.vector_store %arg5[%c0_69, %c0_70, %c0_71], %68 {strides = array<i32>} : memref<1x1x8xf32, #tpu.memory_space<vmem>>, vector<1x1x8xf32>,
    %69 = arith.truncf %57 : vector<16x8xf32> to vector<16x8xbf16>
    %c0_72 = arith.constant 0 : index
    %c0_73 = arith.constant 0 : index
    %c0_74 = arith.constant 0 : index
    %70 = vector.load %arg3[%c0_72, %c0_73, %c0_74] : memref<1x16x8xbf16, #tpu.memory_space<vmem>>, vector<1x16x8xbf16>
    %71 = vector.shape_cast %70 : vector<1x16x8xbf16> to vector<16x8xbf16>
    %72 = vector.shape_cast %69 : vector<16x8xbf16> to vector<1x16x8xbf16>
    tpu.vector_store %arg3[%c0_72, %c0_73, %c0_74], %72 {strides = array<i32>} : memref<1x16x8xbf16, #tpu.memory_space<vmem>>, vector<1x16x8xbf16>,
    return
  }
  func.func @transform_0(%arg0: i32) -> (i32, i32, i32, i32) {
    %c0_i32 = arith.constant 0 : i32
    %c0_i32_0 = arith.constant 0 : i32
    %c0_i32_1 = arith.constant 0 : i32
    %c0_i32_2 = arith.constant 0 : i32
    return %arg0, %c0_i32, %c0_i32_0, %c0_i32_1 : i32, i32, i32, i32
  }
  func.func @transform_1(%arg0: i32) -> (i32, i32, i32) {
    %c0_i32 = arith.constant 0 : i32
    %c0_i32_0 = arith.constant 0 : i32
    %c0_i32_1 = arith.constant 0 : i32
    %c0_i32_2 = arith.constant 0 : i32
    return %c0_i32, %c0_i32_0, %c0_i32_1 : i32, i32, i32
  }
  func.func @transform_2(%arg0: i32) -> (i32, i32, i32) {
    %c0_i32 = arith.constant 0 : i32
    %c0_i32_0 = arith.constant 0 : i32
    %c0_i32_1 = arith.constant 0 : i32
    return %arg0, %c0_i32, %c0_i32_0 : i32, i32, i32
  }
  func.func @transform_3(%arg0: i32) -> (i32, i32, i32) {
    %c0_i32 = arith.constant 0 : i32
    %c0_i32_0 = arith.constant 0 : i32
    %c0_i32_1 = arith.constant 0 : i32
    return %arg0, %c0_i32, %c0_i32_0 : i32, i32, i32
  }
  func.func @transform_4(%arg0: i32) -> (i32, i32, i32) {
    %c0_i32 = arith.constant 0 : i32
    %c0_i32_0 = arith.constant 0 : i32
    %c0_i32_1 = arith.constant 0 : i32
    return %arg0, %c0_i32, %c0_i32_0 : i32, i32, i32
  }
}

module attributes {stable_mosaic.version = 11 : i64} {
  func.func @_affine_kernel(%arg0: i32, %arg1: memref<8x32xbf16, #tpu.memory_space<vmem>>, %arg2: memref<1x32xf32, #tpu.memory_space<vmem>>, %arg3: memref<1x32xf32, #tpu.memory_space<vmem>>, %arg4: memref<8x32xbf16, #tpu.memory_space<vmem>>) attributes {dimension_semantics = [#tpu.dimension_semantics<parallel>], iteration_bounds = array<i64: 1>, scalar_prefetch = 0 : i64, scratch_operands = 0 : i64, tpu.core_type = #tpu.core_type<tc>, window_params = [{transform_indices = @transform_0, window_bounds = array<i64: 8, 32>}, {pipeline_mode = #tpu.pipeline_mode<synchronous>, transform_indices = @transform_1, window_bounds = array<i64: 1, 32>}, {pipeline_mode = #tpu.pipeline_mode<synchronous>, transform_indices = @transform_2, window_bounds = array<i64: 1, 32>}, {transform_indices = @transform_3, window_bounds = array<i64: 8, 32>}]} {
    %c0 = arith.constant 0 : index
    %c0_0 = arith.constant 0 : index
    %0 = vector.load %arg1[%c0, %c0_0] : memref<8x32xbf16, #tpu.memory_space<vmem>>, vector<8x32xbf16>
    %1 = arith.extf %0 : vector<8x32xbf16> to vector<8x32xf32>
    %c0_1 = arith.constant 0 : index
    %c0_2 = arith.constant 0 : index
    %2 = vector.load %arg2[%c0_1, %c0_2] : memref<1x32xf32, #tpu.memory_space<vmem>>, vector<1x32xf32>
    %3 = vector.broadcast %2 : vector<1x32xf32> to vector<8x32xf32>
    %4 = arith.mulf %1, %3 : vector<8x32xf32>
    %c0_3 = arith.constant 0 : index
    %c0_4 = arith.constant 0 : index
    %5 = vector.load %arg3[%c0_3, %c0_4] : memref<1x32xf32, #tpu.memory_space<vmem>>, vector<1x32xf32>
    %6 = vector.broadcast %5 : vector<1x32xf32> to vector<8x32xf32>
    %7 = arith.addf %4, %6 : vector<8x32xf32>
    %cst = arith.constant 0.000000e+00 : f32
    %8 = vector.broadcast %cst : f32 to vector<8x32xf32>
    %9 = arith.maximumf %7, %8 : vector<8x32xf32>
    %10 = arith.truncf %9 : vector<8x32xf32> to vector<8x32xbf16>
    %c0_5 = arith.constant 0 : index
    %c0_6 = arith.constant 0 : index
    %11 = vector.load %arg4[%c0_5, %c0_6] : memref<8x32xbf16, #tpu.memory_space<vmem>>, vector<8x32xbf16>
    tpu.vector_store %arg4[%c0_5, %c0_6], %10 {strides = array<i32>} : memref<8x32xbf16, #tpu.memory_space<vmem>>, vector<8x32xbf16>,
    return
  }
  func.func @transform_0(%arg0: i32) -> (i32, i32) {
    %c0_i32 = arith.constant 0 : i32
    %c0_i32_0 = arith.constant 0 : i32
    return %arg0, %c0_i32 : i32, i32
  }
  func.func @transform_1(%arg0: i32) -> (i32, i32) {
    %c0_i32 = arith.constant 0 : i32
    %c0_i32_0 = arith.constant 0 : i32
    %c0_i32_1 = arith.constant 0 : i32
    return %c0_i32, %c0_i32_0 : i32, i32
  }
  func.func @transform_2(%arg0: i32) -> (i32, i32) {
    %c0_i32 = arith.constant 0 : i32
    %c0_i32_0 = arith.constant 0 : i32
    %c0_i32_1 = arith.constant 0 : i32
    return %c0_i32, %c0_i32_0 : i32, i32
  }
  func.func @transform_3(%arg0: i32) -> (i32, i32) {
    %c0_i32 = arith.constant 0 : i32
    %c0_i32_0 = arith.constant 0 : i32
    return %arg0, %c0_i32 : i32, i32
  }
}

module attributes {stable_mosaic.version = 11 : i64} {
  func.func @_affine_kernel(%arg0: i32, %arg1: memref<8x32xbf16, #tpu.memory_space<vmem>>, %arg2: memref<1x32xf32, #tpu.memory_space<vmem>>, %arg3: memref<1x32xf32, #tpu.memory_space<vmem>>, %arg4: memref<8x32xbf16, #tpu.memory_space<vmem>>, %arg5: memref<8x32xbf16, #tpu.memory_space<vmem>>) attributes {dimension_semantics = [#tpu.dimension_semantics<parallel>], iteration_bounds = array<i64: 1>, scalar_prefetch = 0 : i64, scratch_operands = 0 : i64, tpu.core_type = #tpu.core_type<tc>, window_params = [{transform_indices = @transform_0, window_bounds = array<i64: 8, 32>}, {pipeline_mode = #tpu.pipeline_mode<synchronous>, transform_indices = @transform_1, window_bounds = array<i64: 1, 32>}, {pipeline_mode = #tpu.pipeline_mode<synchronous>, transform_indices = @transform_2, window_bounds = array<i64: 1, 32>}, {transform_indices = @transform_3, window_bounds = array<i64: 8, 32>}, {transform_indices = @transform_4, window_bounds = array<i64: 8, 32>}]} {
    %c0 = arith.constant 0 : index
    %c0_0 = arith.constant 0 : index
    %0 = vector.load %arg1[%c0, %c0_0] : memref<8x32xbf16, #tpu.memory_space<vmem>>, vector<8x32xbf16>
    %1 = arith.extf %0 : vector<8x32xbf16> to vector<8x32xf32>
    %c0_1 = arith.constant 0 : index
    %c0_2 = arith.constant 0 : index
    %2 = vector.load %arg2[%c0_1, %c0_2] : memref<1x32xf32, #tpu.memory_space<vmem>>, vector<1x32xf32>
    %3 = vector.broadcast %2 : vector<1x32xf32> to vector<8x32xf32>
    %4 = arith.mulf %1, %3 : vector<8x32xf32>
    %c0_3 = arith.constant 0 : index
    %c0_4 = arith.constant 0 : index
    %5 = vector.load %arg3[%c0_3, %c0_4] : memref<1x32xf32, #tpu.memory_space<vmem>>, vector<1x32xf32>
    %6 = vector.broadcast %5 : vector<1x32xf32> to vector<8x32xf32>
    %7 = arith.addf %4, %6 : vector<8x32xf32>
    %c0_5 = arith.constant 0 : index
    %c0_6 = arith.constant 0 : index
    %8 = vector.load %arg4[%c0_5, %c0_6] : memref<8x32xbf16, #tpu.memory_space<vmem>>, vector<8x32xbf16>
    %9 = arith.extf %8 : vector<8x32xbf16> to vector<8x32xf32>
    %10 = arith.addf %7, %9 : vector<8x32xf32>
    %cst = arith.constant 0.000000e+00 : f32
    %11 = vector.broadcast %cst : f32 to vector<8x32xf32>
    %12 = arith.maximumf %10, %11 : vector<8x32xf32>
    %13 = arith.truncf %12 : vector<8x32xf32> to vector<8x32xbf16>
    %c0_7 = arith.constant 0 : index
    %c0_8 = arith.constant 0 : index
    %14 = vector.load %arg5[%c0_7, %c0_8] : memref<8x32xbf16, #tpu.memory_space<vmem>>, vector<8x32xbf16>
    tpu.vector_store %arg5[%c0_7, %c0_8], %13 {strides = array<i32>} : memref<8x32xbf16, #tpu.memory_space<vmem>>, vector<8x32xbf16>,
    return
  }
  func.func @transform_0(%arg0: i32) -> (i32, i32) {
    %c0_i32 = arith.constant 0 : i32
    %c0_i32_0 = arith.constant 0 : i32
    return %arg0, %c0_i32 : i32, i32
  }
  func.func @transform_1(%arg0: i32) -> (i32, i32) {
    %c0_i32 = arith.constant 0 : i32
    %c0_i32_0 = arith.constant 0 : i32
    %c0_i32_1 = arith.constant 0 : i32
    return %c0_i32, %c0_i32_0 : i32, i32
  }
  func.func @transform_2(%arg0: i32) -> (i32, i32) {
    %c0_i32 = arith.constant 0 : i32
    %c0_i32_0 = arith.constant 0 : i32
    %c0_i32_1 = arith.constant 0 : i32
    return %c0_i32, %c0_i32_0 : i32, i32
  }
  func.func @transform_3(%arg0: i32) -> (i32, i32) {
    %c0_i32 = arith.constant 0 : i32
    %c0_i32_0 = arith.constant 0 : i32
    return %arg0, %c0_i32 : i32, i32
  }
  func.func @transform_4(%arg0: i32) -> (i32, i32) {
    %c0_i32 = arith.constant 0 : i32
    %c0_i32_0 = arith.constant 0 : i32
    return %arg0, %c0_i32 : i32, i32
  }
}

module attributes {stable_mosaic.version = 11 : i64} {
  func.func @_affine_kernel(%arg0: i32, %arg1: memref<16x64xbf16, #tpu.memory_space<vmem>>, %arg2: memref<1x64xf32, #tpu.memory_space<vmem>>, %arg3: memref<1x64xf32, #tpu.memory_space<vmem>>, %arg4: memref<16x64xbf16, #tpu.memory_space<vmem>>, %arg5: memref<16x64xbf16, #tpu.memory_space<vmem>>, %arg6: memref<16x64xbf16, #tpu.memory_space<vmem>>) attributes {dimension_semantics = [#tpu.dimension_semantics<parallel>], iteration_bounds = array<i64: 1>, scalar_prefetch = 0 : i64, scratch_operands = 0 : i64, tpu.core_type = #tpu.core_type<tc>, window_params = [{transform_indices = @transform_0, window_bounds = array<i64: 16, 64>}, {pipeline_mode = #tpu.pipeline_mode<synchronous>, transform_indices = @transform_1, window_bounds = array<i64: 1, 64>}, {pipeline_mode = #tpu.pipeline_mode<synchronous>, transform_indices = @transform_2, window_bounds = array<i64: 1, 64>}, {transform_indices = @transform_3, window_bounds = array<i64: 16, 64>}, {transform_indices = @transform_4, window_bounds = array<i64: 16, 64>}, {transform_indices = @transform_5, window_bounds = array<i64: 16, 64>}]} {
    %c0 = arith.constant 0 : index
    %c0_0 = arith.constant 0 : index
    %0 = vector.load %arg1[%c0, %c0_0] : memref<16x64xbf16, #tpu.memory_space<vmem>>, vector<16x64xbf16>
    %1 = arith.extf %0 : vector<16x64xbf16> to vector<16x64xf32>
    %c0_1 = arith.constant 0 : index
    %c0_2 = arith.constant 0 : index
    %2 = vector.load %arg2[%c0_1, %c0_2] : memref<1x64xf32, #tpu.memory_space<vmem>>, vector<1x64xf32>
    %3 = vector.broadcast %2 : vector<1x64xf32> to vector<16x64xf32>
    %4 = arith.mulf %1, %3 : vector<16x64xf32>
    %c0_3 = arith.constant 0 : index
    %c0_4 = arith.constant 0 : index
    %5 = vector.load %arg3[%c0_3, %c0_4] : memref<1x64xf32, #tpu.memory_space<vmem>>, vector<1x64xf32>
    %6 = vector.broadcast %5 : vector<1x64xf32> to vector<16x64xf32>
    %7 = arith.addf %4, %6 : vector<16x64xf32>
    %c0_5 = arith.constant 0 : index
    %c0_6 = arith.constant 0 : index
    %8 = vector.load %arg4[%c0_5, %c0_6] : memref<16x64xbf16, #tpu.memory_space<vmem>>, vector<16x64xbf16>
    %9 = arith.extf %8 : vector<16x64xbf16> to vector<16x64xf32>
    %10 = arith.addf %7, %9 : vector<16x64xf32>
    %cst = arith.constant 0.000000e+00 : f32
    %11 = vector.broadcast %cst : f32 to vector<16x64xf32>
    %12 = arith.maximumf %10, %11 : vector<16x64xf32>
    %c0_7 = arith.constant 0 : index
    %c0_8 = arith.constant 0 : index
    %13 = vector.load %arg5[%c0_7, %c0_8] : memref<16x64xbf16, #tpu.memory_space<vmem>>, vector<16x64xbf16>
    %14 = arith.extf %13 : vector<16x64xbf16> to vector<16x64xf32>
    %15 = arith.addf %12, %14 : vector<16x64xf32>
    %16 = arith.truncf %15 : vector<16x64xf32> to vector<16x64xbf16>
    %c0_9 = arith.constant 0 : index
    %c0_10 = arith.constant 0 : index
    %17 = vector.load %arg6[%c0_9, %c0_10] : memref<16x64xbf16, #tpu.memory_space<vmem>>, vector<16x64xbf16>
    tpu.vector_store %arg6[%c0_9, %c0_10], %16 {strides = array<i32>} : memref<16x64xbf16, #tpu.memory_space<vmem>>, vector<16x64xbf16>,
    return
  }
  func.func @transform_0(%arg0: i32) -> (i32, i32) {
    %c0_i32 = arith.constant 0 : i32
    %c0_i32_0 = arith.constant 0 : i32
    return %arg0, %c0_i32 : i32, i32
  }
  func.func @transform_1(%arg0: i32) -> (i32, i32) {
    %c0_i32 = arith.constant 0 : i32
    %c0_i32_0 = arith.constant 0 : i32
    %c0_i32_1 = arith.constant 0 : i32
    return %c0_i32, %c0_i32_0 : i32, i32
  }
  func.func @transform_2(%arg0: i32) -> (i32, i32) {
    %c0_i32 = arith.constant 0 : i32
    %c0_i32_0 = arith.constant 0 : i32
    %c0_i32_1 = arith.constant 0 : i32
    return %c0_i32, %c0_i32_0 : i32, i32
  }
  func.func @transform_3(%arg0: i32) -> (i32, i32) {
    %c0_i32 = arith.constant 0 : i32
    %c0_i32_0 = arith.constant 0 : i32
    return %arg0, %c0_i32 : i32, i32
  }
  func.func @transform_4(%arg0: i32) -> (i32, i32) {
    %c0_i32 = arith.constant 0 : i32
    %c0_i32_0 = arith.constant 0 : i32
    return %arg0, %c0_i32 : i32, i32
  }
  func.func @transform_5(%arg0: i32) -> (i32, i32) {
    %c0_i32 = arith.constant 0 : i32
    %c0_i32_0 = arith.constant 0 : i32
    return %arg0, %c0_i32 : i32, i32
  }
}

module attributes {stable_mosaic.version = 11 : i64} {
  func.func @_conv_kernel(%arg0: i32, %arg1: memref<1x16x16x8xbf16, #tpu.memory_space<vmem>>, %arg2: memref<9x8x8xbf16, #tpu.memory_space<vmem>>, %arg3: memref<1x256x8xbf16, #tpu.memory_space<vmem>>, %arg4: memref<1x1x8xf32, #tpu.memory_space<vmem>>, %arg5: memref<1x1x8xf32, #tpu.memory_space<vmem>>, %arg6: memref<18x18x8xbf16, #tpu.memory_space<vmem>>) attributes {dimension_semantics = [#tpu.dimension_semantics<parallel>], iteration_bounds = array<i64: 2>, scalar_prefetch = 0 : i64, scratch_operands = 1 : i64, tpu.core_type = #tpu.core_type<tc>, window_params = [{transform_indices = @transform_0, window_bounds = array<i64: 1, 16, 16, 8>}, {pipeline_mode = #tpu.pipeline_mode<synchronous>, transform_indices = @transform_1, window_bounds = array<i64: 9, 8, 8>}, {transform_indices = @transform_2, window_bounds = array<i64: 1, 256, 8>}, {transform_indices = @transform_3, window_bounds = array<i64: 1, 1, 8>}, {transform_indices = @transform_4, window_bounds = array<i64: 1, 1, 8>}]} {
    %cst = arith.constant 0.000000e+00 : bf16
    %0 = vector.broadcast %cst : bf16 to vector<18x18x8xbf16>
    %c0 = arith.constant 0 : index
    %c0_0 = arith.constant 0 : index
    %c0_1 = arith.constant 0 : index
    %1 = vector.load %arg6[%c0, %c0_0, %c0_1] : memref<18x18x8xbf16, #tpu.memory_space<vmem>>, vector<18x18x8xbf16>
    tpu.vector_store %arg6[%c0, %c0_0, %c0_1], %0 {strides = array<i32>} : memref<18x18x8xbf16, #tpu.memory_space<vmem>>, vector<18x18x8xbf16>,
    %c0_2 = arith.constant 0 : index
    %c0_3 = arith.constant 0 : index
    %c0_4 = arith.constant 0 : index
    %c0_5 = arith.constant 0 : index
    %2 = vector.load %arg1[%c0_2, %c0_3, %c0_4, %c0_5] : memref<1x16x16x8xbf16, #tpu.memory_space<vmem>>, vector<1x16x16x8xbf16>
    %3 = vector.shape_cast %2 : vector<1x16x16x8xbf16> to vector<16x16x8xbf16>
    %c1 = arith.constant 1 : index
    %c1_6 = arith.constant 1 : index
    %c0_7 = arith.constant 0 : index
    %4 = vector.load %arg6[%c1, %c1_6, %c0_7] : memref<18x18x8xbf16, #tpu.memory_space<vmem>>, vector<16x16x8xbf16>
    tpu.vector_store %arg6[%c1, %c1_6, %c0_7], %3 {strides = array<i32>} : memref<18x18x8xbf16, #tpu.memory_space<vmem>>, vector<16x16x8xbf16>,
    %c0_8 = arith.constant 0 : index
    %c0_9 = arith.constant 0 : index
    %c0_10 = arith.constant 0 : index
    %5 = vector.load %arg6[%c0_8, %c0_9, %c0_10] : memref<18x18x8xbf16, #tpu.memory_space<vmem>>, vector<16x16x8xbf16>
    %6 = vector.shape_cast %5 : vector<16x16x8xbf16> to vector<256x8xbf16>
    %c0_11 = arith.constant 0 : index
    %c0_12 = arith.constant 0 : index
    %c0_13 = arith.constant 0 : index
    %7 = vector.load %arg2[%c0_11, %c0_12, %c0_13] : memref<9x8x8xbf16, #tpu.memory_space<vmem>>, vector<1x8x8xbf16>
    %8 = vector.shape_cast %7 : vector<1x8x8xbf16> to vector<8x8xbf16>
    %cst_14 = arith.constant dense<0.000000e+00> : vector<256x8xf32>
    %9 = tpu.matmul %6, %8, %cst_14 {dimension_numbers = #tpu.dot_dimension_numbers<[1], [0], [0], [1], [0, 0, 1, 1], [], []>} : vector<256x8xbf16>, vector<8x8xbf16>, vector<256x8xf32> -> vector<256x8xf32>
    %c0_15 = arith.constant 0 : index
    %c1_16 = arith.constant 1 : index
    %c0_17 = arith.constant 0 : index
    %10 = vector.load %arg6[%c0_15, %c1_16, %c0_17] : memref<18x18x8xbf16, #tpu.memory_space<vmem>>, vector<16x16x8xbf16>
    %11 = vector.shape_cast %10 : vector<16x16x8xbf16> to vector<256x8xbf16>
    %c1_18 = arith.constant 1 : index
    %c0_19 = arith.constant 0 : index
    %c0_20 = arith.constant 0 : index
    %12 = vector.load %arg2[%c1_18, %c0_19, %c0_20] : memref<9x8x8xbf16, #tpu.memory_space<vmem>>, vector<1x8x8xbf16>
    %13 = vector.shape_cast %12 : vector<1x8x8xbf16> to vector<8x8xbf16>
    %cst_21 = arith.constant dense<0.000000e+00> : vector<256x8xf32>
    %14 = tpu.matmul %11, %13, %cst_21 {dimension_numbers = #tpu.dot_dimension_numbers<[1], [0], [0], [1], [0, 0, 1, 1], [], []>} : vector<256x8xbf16>, vector<8x8xbf16>, vector<256x8xf32> -> vector<256x8xf32>
    %15 = arith.addf %9, %14 : vector<256x8xf32>
    %c0_22 = arith.constant 0 : index
    %c2 = arith.constant 2 : index
    %c0_23 = arith.constant 0 : index
    %16 = vector.load %arg6[%c0_22, %c2, %c0_23] : memref<18x18x8xbf16, #tpu.memory_space<vmem>>, vector<16x16x8xbf16>
    %17 = vector.shape_cast %16 : vector<16x16x8xbf16> to vector<256x8xbf16>
    %c2_24 = arith.constant 2 : index
    %c0_25 = arith.constant 0 : index
    %c0_26 = arith.constant 0 : index
    %18 = vector.load %arg2[%c2_24, %c0_25, %c0_26] : memref<9x8x8xbf16, #tpu.memory_space<vmem>>, vector<1x8x8xbf16>
    %19 = vector.shape_cast %18 : vector<1x8x8xbf16> to vector<8x8xbf16>
    %cst_27 = arith.constant dense<0.000000e+00> : vector<256x8xf32>
    %20 = tpu.matmul %17, %19, %cst_27 {dimension_numbers = #tpu.dot_dimension_numbers<[1], [0], [0], [1], [0, 0, 1, 1], [], []>} : vector<256x8xbf16>, vector<8x8xbf16>, vector<256x8xf32> -> vector<256x8xf32>
    %21 = arith.addf %15, %20 : vector<256x8xf32>
    %c1_28 = arith.constant 1 : index
    %c0_29 = arith.constant 0 : index
    %c0_30 = arith.constant 0 : index
    %22 = vector.load %arg6[%c1_28, %c0_29, %c0_30] : memref<18x18x8xbf16, #tpu.memory_space<vmem>>, vector<16x16x8xbf16>
    %23 = vector.shape_cast %22 : vector<16x16x8xbf16> to vector<256x8xbf16>
    %c3 = arith.constant 3 : index
    %c0_31 = arith.constant 0 : index
    %c0_32 = arith.constant 0 : index
    %24 = vector.load %arg2[%c3, %c0_31, %c0_32] : memref<9x8x8xbf16, #tpu.memory_space<vmem>>, vector<1x8x8xbf16>
    %25 = vector.shape_cast %24 : vector<1x8x8xbf16> to vector<8x8xbf16>
    %cst_33 = arith.constant dense<0.000000e+00> : vector<256x8xf32>
    %26 = tpu.matmul %23, %25, %cst_33 {dimension_numbers = #tpu.dot_dimension_numbers<[1], [0], [0], [1], [0, 0, 1, 1], [], []>} : vector<256x8xbf16>, vector<8x8xbf16>, vector<256x8xf32> -> vector<256x8xf32>
    %27 = arith.addf %21, %26 : vector<256x8xf32>
    %c1_34 = arith.constant 1 : index
    %c1_35 = arith.constant 1 : index
    %c0_36 = arith.constant 0 : index
    %28 = vector.load %arg6[%c1_34, %c1_35, %c0_36] : memref<18x18x8xbf16, #tpu.memory_space<vmem>>, vector<16x16x8xbf16>
    %29 = vector.shape_cast %28 : vector<16x16x8xbf16> to vector<256x8xbf16>
    %c4 = arith.constant 4 : index
    %c0_37 = arith.constant 0 : index
    %c0_38 = arith.constant 0 : index
    %30 = vector.load %arg2[%c4, %c0_37, %c0_38] : memref<9x8x8xbf16, #tpu.memory_space<vmem>>, vector<1x8x8xbf16>
    %31 = vector.shape_cast %30 : vector<1x8x8xbf16> to vector<8x8xbf16>
    %cst_39 = arith.constant dense<0.000000e+00> : vector<256x8xf32>
    %32 = tpu.matmul %29, %31, %cst_39 {dimension_numbers = #tpu.dot_dimension_numbers<[1], [0], [0], [1], [0, 0, 1, 1], [], []>} : vector<256x8xbf16>, vector<8x8xbf16>, vector<256x8xf32> -> vector<256x8xf32>
    %33 = arith.addf %27, %32 : vector<256x8xf32>
    %c1_40 = arith.constant 1 : index
    %c2_41 = arith.constant 2 : index
    %c0_42 = arith.constant 0 : index
    %34 = vector.load %arg6[%c1_40, %c2_41, %c0_42] : memref<18x18x8xbf16, #tpu.memory_space<vmem>>, vector<16x16x8xbf16>
    %35 = vector.shape_cast %34 : vector<16x16x8xbf16> to vector<256x8xbf16>
    %c5 = arith.constant 5 : index
    %c0_43 = arith.constant 0 : index
    %c0_44 = arith.constant 0 : index
    %36 = vector.load %arg2[%c5, %c0_43, %c0_44] : memref<9x8x8xbf16, #tpu.memory_space<vmem>>, vector<1x8x8xbf16>
    %37 = vector.shape_cast %36 : vector<1x8x8xbf16> to vector<8x8xbf16>
    %cst_45 = arith.constant dense<0.000000e+00> : vector<256x8xf32>
    %38 = tpu.matmul %35, %37, %cst_45 {dimension_numbers = #tpu.dot_dimension_numbers<[1], [0], [0], [1], [0, 0, 1, 1], [], []>} : vector<256x8xbf16>, vector<8x8xbf16>, vector<256x8xf32> -> vector<256x8xf32>
    %39 = arith.addf %33, %38 : vector<256x8xf32>
    %c2_46 = arith.constant 2 : index
    %c0_47 = arith.constant 0 : index
    %c0_48 = arith.constant 0 : index
    %40 = vector.load %arg6[%c2_46, %c0_47, %c0_48] : memref<18x18x8xbf16, #tpu.memory_space<vmem>>, vector<16x16x8xbf16>
    %41 = vector.shape_cast %40 : vector<16x16x8xbf16> to vector<256x8xbf16>
    %c6 = arith.constant 6 : index
    %c0_49 = arith.constant 0 : index
    %c0_50 = arith.constant 0 : index
    %42 = vector.load %arg2[%c6, %c0_49, %c0_50] : memref<9x8x8xbf16, #tpu.memory_space<vmem>>, vector<1x8x8xbf16>
    %43 = vector.shape_cast %42 : vector<1x8x8xbf16> to vector<8x8xbf16>
    %cst_51 = arith.constant dense<0.000000e+00> : vector<256x8xf32>
    %44 = tpu.matmul %41, %43, %cst_51 {dimension_numbers = #tpu.dot_dimension_numbers<[1], [0], [0], [1], [0, 0, 1, 1], [], []>} : vector<256x8xbf16>, vector<8x8xbf16>, vector<256x8xf32> -> vector<256x8xf32>
    %45 = arith.addf %39, %44 : vector<256x8xf32>
    %c2_52 = arith.constant 2 : index
    %c1_53 = arith.constant 1 : index
    %c0_54 = arith.constant 0 : index
    %46 = vector.load %arg6[%c2_52, %c1_53, %c0_54] : memref<18x18x8xbf16, #tpu.memory_space<vmem>>, vector<16x16x8xbf16>
    %47 = vector.shape_cast %46 : vector<16x16x8xbf16> to vector<256x8xbf16>
    %c7 = arith.constant 7 : index
    %c0_55 = arith.constant 0 : index
    %c0_56 = arith.constant 0 : index
    %48 = vector.load %arg2[%c7, %c0_55, %c0_56] : memref<9x8x8xbf16, #tpu.memory_space<vmem>>, vector<1x8x8xbf16>
    %49 = vector.shape_cast %48 : vector<1x8x8xbf16> to vector<8x8xbf16>
    %cst_57 = arith.constant dense<0.000000e+00> : vector<256x8xf32>
    %50 = tpu.matmul %47, %49, %cst_57 {dimension_numbers = #tpu.dot_dimension_numbers<[1], [0], [0], [1], [0, 0, 1, 1], [], []>} : vector<256x8xbf16>, vector<8x8xbf16>, vector<256x8xf32> -> vector<256x8xf32>
    %51 = arith.addf %45, %50 : vector<256x8xf32>
    %c2_58 = arith.constant 2 : index
    %c2_59 = arith.constant 2 : index
    %c0_60 = arith.constant 0 : index
    %52 = vector.load %arg6[%c2_58, %c2_59, %c0_60] : memref<18x18x8xbf16, #tpu.memory_space<vmem>>, vector<16x16x8xbf16>
    %53 = vector.shape_cast %52 : vector<16x16x8xbf16> to vector<256x8xbf16>
    %c8 = arith.constant 8 : index
    %c0_61 = arith.constant 0 : index
    %c0_62 = arith.constant 0 : index
    %54 = vector.load %arg2[%c8, %c0_61, %c0_62] : memref<9x8x8xbf16, #tpu.memory_space<vmem>>, vector<1x8x8xbf16>
    %55 = vector.shape_cast %54 : vector<1x8x8xbf16> to vector<8x8xbf16>
    %cst_63 = arith.constant dense<0.000000e+00> : vector<256x8xf32>
    %56 = tpu.matmul %53, %55, %cst_63 {dimension_numbers = #tpu.dot_dimension_numbers<[1], [0], [0], [1], [0, 0, 1, 1], [], []>} : vector<256x8xbf16>, vector<8x8xbf16>, vector<256x8xf32> -> vector<256x8xf32>
    %57 = arith.addf %51, %56 : vector<256x8xf32>
    %cst_64 = arith.constant dense<0.000000e+00> : vector<8xf32>
    %58 = vector.multi_reduction <add>, %57, %cst_64 [0] : vector<256x8xf32> to vector<8xf32>
    %59 = vector.shape_cast %58 : vector<8xf32> to vector<1x8xf32>
    %c0_65 = arith.constant 0 : index
    %c0_66 = arith.constant 0 : index
    %c0_67 = arith.constant 0 : index
    %60 = vector.load %arg4[%c0_65, %c0_66, %c0_67] : memref<1x1x8xf32, #tpu.memory_space<vmem>>, vector<1x1x8xf32>
    %61 = vector.shape_cast %60 : vector<1x1x8xf32> to vector<1x8xf32>
    %62 = vector.shape_cast %59 : vector<1x8xf32> to vector<1x1x8xf32>
    tpu.vector_store %arg4[%c0_65, %c0_66, %c0_67], %62 {strides = array<i32>} : memref<1x1x8xf32, #tpu.memory_space<vmem>>, vector<1x1x8xf32>,
    %63 = arith.mulf %57, %57 : vector<256x8xf32>
    %cst_68 = arith.constant dense<0.000000e+00> : vector<8xf32>
    %64 = vector.multi_reduction <add>, %63, %cst_68 [0] : vector<256x8xf32> to vector<8xf32>
    %65 = vector.shape_cast %64 : vector<8xf32> to vector<1x8xf32>
    %c0_69 = arith.constant 0 : index
    %c0_70 = arith.constant 0 : index
    %c0_71 = arith.constant 0 : index
    %66 = vector.load %arg5[%c0_69, %c0_70, %c0_71] : memref<1x1x8xf32, #tpu.memory_space<vmem>>, vector<1x1x8xf32>
    %67 = vector.shape_cast %66 : vector<1x1x8xf32> to vector<1x8xf32>
    %68 = vector.shape_cast %65 : vector<1x8xf32> to vector<1x1x8xf32>
    tpu.vector_store %arg5[%c0_69, %c0_70, %c0_71], %68 {strides = array<i32>} : memref<1x1x8xf32, #tpu.memory_space<vmem>>, vector<1x1x8xf32>,
    %69 = arith.truncf %57 : vector<256x8xf32> to vector<256x8xbf16>
    %c0_72 = arith.constant 0 : index
    %c0_73 = arith.constant 0 : index
    %c0_74 = arith.constant 0 : index
    %70 = vector.load %arg3[%c0_72, %c0_73, %c0_74] : memref<1x256x8xbf16, #tpu.memory_space<vmem>>, vector<1x256x8xbf16>
    %71 = vector.shape_cast %70 : vector<1x256x8xbf16> to vector<256x8xbf16>
    %72 = vector.shape_cast %69 : vector<256x8xbf16> to vector<1x256x8xbf16>
    tpu.vector_store %arg3[%c0_72, %c0_73, %c0_74], %72 {strides = array<i32>} : memref<1x256x8xbf16, #tpu.memory_space<vmem>>, vector<1x256x8xbf16>,
    return
  }
  func.func @transform_0(%arg0: i32) -> (i32, i32, i32, i32) {
    %c0_i32 = arith.constant 0 : i32
    %c0_i32_0 = arith.constant 0 : i32
    %c0_i32_1 = arith.constant 0 : i32
    %c0_i32_2 = arith.constant 0 : i32
    return %arg0, %c0_i32, %c0_i32_0, %c0_i32_1 : i32, i32, i32, i32
  }
  func.func @transform_1(%arg0: i32) -> (i32, i32, i32) {
    %c0_i32 = arith.constant 0 : i32
    %c0_i32_0 = arith.constant 0 : i32
    %c0_i32_1 = arith.constant 0 : i32
    %c0_i32_2 = arith.constant 0 : i32
    return %c0_i32, %c0_i32_0, %c0_i32_1 : i32, i32, i32
  }
  func.func @transform_2(%arg0: i32) -> (i32, i32, i32) {
    %c0_i32 = arith.constant 0 : i32
    %c0_i32_0 = arith.constant 0 : i32
    %c0_i32_1 = arith.constant 0 : i32
    return %arg0, %c0_i32, %c0_i32_0 : i32, i32, i32
  }
  func.func @transform_3(%arg0: i32) -> (i32, i32, i32) {
    %c0_i32 = arith.constant 0 : i32
    %c0_i32_0 = arith.constant 0 : i32
    %c0_i32_1 = arith.constant 0 : i32
    return %arg0, %c0_i32, %c0_i32_0 : i32, i32, i32
  }
  func.func @transform_4(%arg0: i32) -> (i32, i32, i32) {
    %c0_i32 = arith.constant 0 : i32
    %c0_i32_0 = arith.constant 0 : i32
    %c0_i32_1 = arith.constant 0 : i32
    return %arg0, %c0_i32, %c0_i32_0 : i32, i32, i32
  }
}

module attributes {stable_mosaic.version = 11 : i64} {
  func.func @_affine_kernel(%arg0: i32, %arg1: memref<32x128xbf16, #tpu.memory_space<vmem>>, %arg2: memref<1x128xf32, #tpu.memory_space<vmem>>, %arg3: memref<1x128xf32, #tpu.memory_space<vmem>>, %arg4: memref<32x128xbf16, #tpu.memory_space<vmem>>, %arg5: memref<32x128xbf16, #tpu.memory_space<vmem>>, %arg6: memref<32x128xbf16, #tpu.memory_space<vmem>>) attributes {dimension_semantics = [#tpu.dimension_semantics<parallel>], iteration_bounds = array<i64: 1>, scalar_prefetch = 0 : i64, scratch_operands = 0 : i64, tpu.core_type = #tpu.core_type<tc>, window_params = [{transform_indices = @transform_0, window_bounds = array<i64: 32, 128>}, {pipeline_mode = #tpu.pipeline_mode<synchronous>, transform_indices = @transform_1, window_bounds = array<i64: 1, 128>}, {pipeline_mode = #tpu.pipeline_mode<synchronous>, transform_indices = @transform_2, window_bounds = array<i64: 1, 128>}, {transform_indices = @transform_3, window_bounds = array<i64: 32, 128>}, {transform_indices = @transform_4, window_bounds = array<i64: 32, 128>}, {transform_indices = @transform_5, window_bounds = array<i64: 32, 128>}]} {
    %c0 = arith.constant 0 : index
    %c0_0 = arith.constant 0 : index
    %0 = vector.load %arg1[%c0, %c0_0] : memref<32x128xbf16, #tpu.memory_space<vmem>>, vector<32x128xbf16>
    %1 = arith.extf %0 : vector<32x128xbf16> to vector<32x128xf32>
    %c0_1 = arith.constant 0 : index
    %c0_2 = arith.constant 0 : index
    %2 = vector.load %arg2[%c0_1, %c0_2] : memref<1x128xf32, #tpu.memory_space<vmem>>, vector<1x128xf32>
    %3 = vector.broadcast %2 : vector<1x128xf32> to vector<32x128xf32>
    %4 = arith.mulf %1, %3 : vector<32x128xf32>
    %c0_3 = arith.constant 0 : index
    %c0_4 = arith.constant 0 : index
    %5 = vector.load %arg3[%c0_3, %c0_4] : memref<1x128xf32, #tpu.memory_space<vmem>>, vector<1x128xf32>
    %6 = vector.broadcast %5 : vector<1x128xf32> to vector<32x128xf32>
    %7 = arith.addf %4, %6 : vector<32x128xf32>
    %c0_5 = arith.constant 0 : index
    %c0_6 = arith.constant 0 : index
    %8 = vector.load %arg4[%c0_5, %c0_6] : memref<32x128xbf16, #tpu.memory_space<vmem>>, vector<32x128xbf16>
    %9 = arith.extf %8 : vector<32x128xbf16> to vector<32x128xf32>
    %10 = arith.addf %7, %9 : vector<32x128xf32>
    %cst = arith.constant 0.000000e+00 : f32
    %11 = vector.broadcast %cst : f32 to vector<32x128xf32>
    %12 = arith.maximumf %10, %11 : vector<32x128xf32>
    %c0_7 = arith.constant 0 : index
    %c0_8 = arith.constant 0 : index
    %13 = vector.load %arg5[%c0_7, %c0_8] : memref<32x128xbf16, #tpu.memory_space<vmem>>, vector<32x128xbf16>
    %14 = arith.extf %13 : vector<32x128xbf16> to vector<32x128xf32>
    %15 = arith.addf %12, %14 : vector<32x128xf32>
    %16 = arith.truncf %15 : vector<32x128xf32> to vector<32x128xbf16>
    %c0_9 = arith.constant 0 : index
    %c0_10 = arith.constant 0 : index
    %17 = vector.load %arg6[%c0_9, %c0_10] : memref<32x128xbf16, #tpu.memory_space<vmem>>, vector<32x128xbf16>
    tpu.vector_store %arg6[%c0_9, %c0_10], %16 {strides = array<i32>} : memref<32x128xbf16, #tpu.memory_space<vmem>>, vector<32x128xbf16>,
    return
  }
  func.func @transform_0(%arg0: i32) -> (i32, i32) {
    %c0_i32 = arith.constant 0 : i32
    %c0_i32_0 = arith.constant 0 : i32
    return %arg0, %c0_i32 : i32, i32
  }
  func.func @transform_1(%arg0: i32) -> (i32, i32) {
    %c0_i32 = arith.constant 0 : i32
    %c0_i32_0 = arith.constant 0 : i32
    %c0_i32_1 = arith.constant 0 : i32
    return %c0_i32, %c0_i32_0 : i32, i32
  }
  func.func @transform_2(%arg0: i32) -> (i32, i32) {
    %c0_i32 = arith.constant 0 : i32
    %c0_i32_0 = arith.constant 0 : i32
    %c0_i32_1 = arith.constant 0 : i32
    return %c0_i32, %c0_i32_0 : i32, i32
  }
  func.func @transform_3(%arg0: i32) -> (i32, i32) {
    %c0_i32 = arith.constant 0 : i32
    %c0_i32_0 = arith.constant 0 : i32
    return %arg0, %c0_i32 : i32, i32
  }
  func.func @transform_4(%arg0: i32) -> (i32, i32) {
    %c0_i32 = arith.constant 0 : i32
    %c0_i32_0 = arith.constant 0 : i32
    return %arg0, %c0_i32 : i32, i32
  }
  func.func @transform_5(%arg0: i32) -> (i32, i32) {
    %c0_i32 = arith.constant 0 : i32
    %c0_i32_0 = arith.constant 0 : i32
    return %arg0, %c0_i32 : i32, i32
  }
}

module attributes {stable_mosaic.version = 11 : i64} {
  func.func @_affine_kernel(%arg0: i32, %arg1: memref<32x128xbf16, #tpu.memory_space<vmem>>, %arg2: memref<1x128xf32, #tpu.memory_space<vmem>>, %arg3: memref<1x128xf32, #tpu.memory_space<vmem>>, %arg4: memref<32x128xbf16, #tpu.memory_space<vmem>>) attributes {dimension_semantics = [#tpu.dimension_semantics<parallel>], iteration_bounds = array<i64: 1>, scalar_prefetch = 0 : i64, scratch_operands = 0 : i64, tpu.core_type = #tpu.core_type<tc>, window_params = [{transform_indices = @transform_0, window_bounds = array<i64: 32, 128>}, {pipeline_mode = #tpu.pipeline_mode<synchronous>, transform_indices = @transform_1, window_bounds = array<i64: 1, 128>}, {pipeline_mode = #tpu.pipeline_mode<synchronous>, transform_indices = @transform_2, window_bounds = array<i64: 1, 128>}, {transform_indices = @transform_3, window_bounds = array<i64: 32, 128>}]} {
    %c0 = arith.constant 0 : index
    %c0_0 = arith.constant 0 : index
    %0 = vector.load %arg1[%c0, %c0_0] : memref<32x128xbf16, #tpu.memory_space<vmem>>, vector<32x128xbf16>
    %1 = arith.extf %0 : vector<32x128xbf16> to vector<32x128xf32>
    %c0_1 = arith.constant 0 : index
    %c0_2 = arith.constant 0 : index
    %2 = vector.load %arg2[%c0_1, %c0_2] : memref<1x128xf32, #tpu.memory_space<vmem>>, vector<1x128xf32>
    %3 = vector.broadcast %2 : vector<1x128xf32> to vector<32x128xf32>
    %4 = arith.mulf %1, %3 : vector<32x128xf32>
    %c0_3 = arith.constant 0 : index
    %c0_4 = arith.constant 0 : index
    %5 = vector.load %arg3[%c0_3, %c0_4] : memref<1x128xf32, #tpu.memory_space<vmem>>, vector<1x128xf32>
    %6 = vector.broadcast %5 : vector<1x128xf32> to vector<32x128xf32>
    %7 = arith.addf %4, %6 : vector<32x128xf32>
    %cst = arith.constant 0.000000e+00 : f32
    %8 = vector.broadcast %cst : f32 to vector<32x128xf32>
    %9 = arith.maximumf %7, %8 : vector<32x128xf32>
    %10 = arith.truncf %9 : vector<32x128xf32> to vector<32x128xbf16>
    %c0_5 = arith.constant 0 : index
    %c0_6 = arith.constant 0 : index
    %11 = vector.load %arg4[%c0_5, %c0_6] : memref<32x128xbf16, #tpu.memory_space<vmem>>, vector<32x128xbf16>
    tpu.vector_store %arg4[%c0_5, %c0_6], %10 {strides = array<i32>} : memref<32x128xbf16, #tpu.memory_space<vmem>>, vector<32x128xbf16>,
    return
  }
  func.func @transform_0(%arg0: i32) -> (i32, i32) {
    %c0_i32 = arith.constant 0 : i32
    %c0_i32_0 = arith.constant 0 : i32
    return %arg0, %c0_i32 : i32, i32
  }
  func.func @transform_1(%arg0: i32) -> (i32, i32) {
    %c0_i32 = arith.constant 0 : i32
    %c0_i32_0 = arith.constant 0 : i32
    %c0_i32_1 = arith.constant 0 : i32
    return %c0_i32, %c0_i32_0 : i32, i32
  }
  func.func @transform_2(%arg0: i32) -> (i32, i32) {
    %c0_i32 = arith.constant 0 : i32
    %c0_i32_0 = arith.constant 0 : i32
    %c0_i32_1 = arith.constant 0 : i32
    return %c0_i32, %c0_i32_0 : i32, i32
  }
  func.func @transform_3(%arg0: i32) -> (i32, i32) {
    %c0_i32 = arith.constant 0 : i32
    %c0_i32_0 = arith.constant 0 : i32
    return %arg0, %c0_i32 : i32, i32
  }
}

module attributes {stable_mosaic.version = 11 : i64} {
  func.func @_conv_kernel(%arg0: i32, %arg1: memref<1x16x16x8xbf16, #tpu.memory_space<vmem>>, %arg2: memref<1x8x8xbf16, #tpu.memory_space<vmem>>, %arg3: memref<1x256x8xbf16, #tpu.memory_space<vmem>>, %arg4: memref<1x1x8xf32, #tpu.memory_space<vmem>>, %arg5: memref<1x1x8xf32, #tpu.memory_space<vmem>>) attributes {dimension_semantics = [#tpu.dimension_semantics<parallel>], iteration_bounds = array<i64: 2>, scalar_prefetch = 0 : i64, scratch_operands = 0 : i64, tpu.core_type = #tpu.core_type<tc>, window_params = [{transform_indices = @transform_0, window_bounds = array<i64: 1, 16, 16, 8>}, {pipeline_mode = #tpu.pipeline_mode<synchronous>, transform_indices = @transform_1, window_bounds = array<i64: 1, 8, 8>}, {transform_indices = @transform_2, window_bounds = array<i64: 1, 256, 8>}, {transform_indices = @transform_3, window_bounds = array<i64: 1, 1, 8>}, {transform_indices = @transform_4, window_bounds = array<i64: 1, 1, 8>}]} {
    %c0 = arith.constant 0 : index
    %c0_0 = arith.constant 0 : index
    %c0_1 = arith.constant 0 : index
    %c0_2 = arith.constant 0 : index
    %0 = vector.load %arg1[%c0, %c0_0, %c0_1, %c0_2] : memref<1x16x16x8xbf16, #tpu.memory_space<vmem>>, vector<1x16x16x8xbf16>
    %1 = vector.shape_cast %0 : vector<1x16x16x8xbf16> to vector<16x16x8xbf16>
    %2 = vector.shape_cast %1 : vector<16x16x8xbf16> to vector<256x8xbf16>
    %c0_3 = arith.constant 0 : index
    %c0_4 = arith.constant 0 : index
    %c0_5 = arith.constant 0 : index
    %3 = vector.load %arg2[%c0_3, %c0_4, %c0_5] : memref<1x8x8xbf16, #tpu.memory_space<vmem>>, vector<1x8x8xbf16>
    %4 = vector.shape_cast %3 : vector<1x8x8xbf16> to vector<8x8xbf16>
    %cst = arith.constant dense<0.000000e+00> : vector<256x8xf32>
    %5 = tpu.matmul %2, %4, %cst {dimension_numbers = #tpu.dot_dimension_numbers<[1], [0], [0], [1], [0, 0, 1, 1], [], []>} : vector<256x8xbf16>, vector<8x8xbf16>, vector<256x8xf32> -> vector<256x8xf32>
    %cst_6 = arith.constant dense<0.000000e+00> : vector<8xf32>
    %6 = vector.multi_reduction <add>, %5, %cst_6 [0] : vector<256x8xf32> to vector<8xf32>
    %7 = vector.shape_cast %6 : vector<8xf32> to vector<1x8xf32>
    %c0_7 = arith.constant 0 : index
    %c0_8 = arith.constant 0 : index
    %c0_9 = arith.constant 0 : index
    %8 = vector.load %arg4[%c0_7, %c0_8, %c0_9] : memref<1x1x8xf32, #tpu.memory_space<vmem>>, vector<1x1x8xf32>
    %9 = vector.shape_cast %8 : vector<1x1x8xf32> to vector<1x8xf32>
    %10 = vector.shape_cast %7 : vector<1x8xf32> to vector<1x1x8xf32>
    tpu.vector_store %arg4[%c0_7, %c0_8, %c0_9], %10 {strides = array<i32>} : memref<1x1x8xf32, #tpu.memory_space<vmem>>, vector<1x1x8xf32>,
    %11 = arith.mulf %5, %5 : vector<256x8xf32>
    %cst_10 = arith.constant dense<0.000000e+00> : vector<8xf32>
    %12 = vector.multi_reduction <add>, %11, %cst_10 [0] : vector<256x8xf32> to vector<8xf32>
    %13 = vector.shape_cast %12 : vector<8xf32> to vector<1x8xf32>
    %c0_11 = arith.constant 0 : index
    %c0_12 = arith.constant 0 : index
    %c0_13 = arith.constant 0 : index
    %14 = vector.load %arg5[%c0_11, %c0_12, %c0_13] : memref<1x1x8xf32, #tpu.memory_space<vmem>>, vector<1x1x8xf32>
    %15 = vector.shape_cast %14 : vector<1x1x8xf32> to vector<1x8xf32>
    %16 = vector.shape_cast %13 : vector<1x8xf32> to vector<1x1x8xf32>
    tpu.vector_store %arg5[%c0_11, %c0_12, %c0_13], %16 {strides = array<i32>} : memref<1x1x8xf32, #tpu.memory_space<vmem>>, vector<1x1x8xf32>,
    %17 = arith.truncf %5 : vector<256x8xf32> to vector<256x8xbf16>
    %c0_14 = arith.constant 0 : index
    %c0_15 = arith.constant 0 : index
    %c0_16 = arith.constant 0 : index
    %18 = vector.load %arg3[%c0_14, %c0_15, %c0_16] : memref<1x256x8xbf16, #tpu.memory_space<vmem>>, vector<1x256x8xbf16>
    %19 = vector.shape_cast %18 : vector<1x256x8xbf16> to vector<256x8xbf16>
    %20 = vector.shape_cast %17 : vector<256x8xbf16> to vector<1x256x8xbf16>
    tpu.vector_store %arg3[%c0_14, %c0_15, %c0_16], %20 {strides = array<i32>} : memref<1x256x8xbf16, #tpu.memory_space<vmem>>, vector<1x256x8xbf16>,
    return
  }
  func.func @transform_0(%arg0: i32) -> (i32, i32, i32, i32) {
    %c0_i32 = arith.constant 0 : i32
    %c0_i32_0 = arith.constant 0 : i32
    %c0_i32_1 = arith.constant 0 : i32
    %c0_i32_2 = arith.constant 0 : i32
    return %arg0, %c0_i32, %c0_i32_0, %c0_i32_1 : i32, i32, i32, i32
  }
  func.func @transform_1(%arg0: i32) -> (i32, i32, i32) {
    %c0_i32 = arith.constant 0 : i32
    %c0_i32_0 = arith.constant 0 : i32
    %c0_i32_1 = arith.constant 0 : i32
    %c0_i32_2 = arith.constant 0 : i32
    return %c0_i32, %c0_i32_0, %c0_i32_1 : i32, i32, i32
  }
  func.func @transform_2(%arg0: i32) -> (i32, i32, i32) {
    %c0_i32 = arith.constant 0 : i32
    %c0_i32_0 = arith.constant 0 : i32
    %c0_i32_1 = arith.constant 0 : i32
    return %arg0, %c0_i32, %c0_i32_0 : i32, i32, i32
  }
  func.func @transform_3(%arg0: i32) -> (i32, i32, i32) {
    %c0_i32 = arith.constant 0 : i32
    %c0_i32_0 = arith.constant 0 : i32
    %c0_i32_1 = arith.constant 0 : i32
    return %arg0, %c0_i32, %c0_i32_0 : i32, i32, i32
  }
  func.func @transform_4(%arg0: i32) -> (i32, i32, i32) {
    %c0_i32 = arith.constant 0 : i32
    %c0_i32_0 = arith.constant 0 : i32
    %c0_i32_1 = arith.constant 0 : i32
    return %arg0, %c0_i32, %c0_i32_0 : i32, i32, i32
  }
}

module attributes {stable_mosaic.version = 11 : i64} {
  func.func @_affine_kernel(%arg0: i32, %arg1: memref<32x128xbf16, #tpu.memory_space<vmem>>, %arg2: memref<1x128xf32, #tpu.memory_space<vmem>>, %arg3: memref<1x128xf32, #tpu.memory_space<vmem>>, %arg4: memref<32x128xbf16, #tpu.memory_space<vmem>>, %arg5: memref<32x128xbf16, #tpu.memory_space<vmem>>) attributes {dimension_semantics = [#tpu.dimension_semantics<parallel>], iteration_bounds = array<i64: 1>, scalar_prefetch = 0 : i64, scratch_operands = 0 : i64, tpu.core_type = #tpu.core_type<tc>, window_params = [{transform_indices = @transform_0, window_bounds = array<i64: 32, 128>}, {pipeline_mode = #tpu.pipeline_mode<synchronous>, transform_indices = @transform_1, window_bounds = array<i64: 1, 128>}, {pipeline_mode = #tpu.pipeline_mode<synchronous>, transform_indices = @transform_2, window_bounds = array<i64: 1, 128>}, {transform_indices = @transform_3, window_bounds = array<i64: 32, 128>}, {transform_indices = @transform_4, window_bounds = array<i64: 32, 128>}]} {
    %c0 = arith.constant 0 : index
    %c0_0 = arith.constant 0 : index
    %0 = vector.load %arg1[%c0, %c0_0] : memref<32x128xbf16, #tpu.memory_space<vmem>>, vector<32x128xbf16>
    %1 = arith.extf %0 : vector<32x128xbf16> to vector<32x128xf32>
    %c0_1 = arith.constant 0 : index
    %c0_2 = arith.constant 0 : index
    %2 = vector.load %arg2[%c0_1, %c0_2] : memref<1x128xf32, #tpu.memory_space<vmem>>, vector<1x128xf32>
    %3 = vector.broadcast %2 : vector<1x128xf32> to vector<32x128xf32>
    %4 = arith.mulf %1, %3 : vector<32x128xf32>
    %c0_3 = arith.constant 0 : index
    %c0_4 = arith.constant 0 : index
    %5 = vector.load %arg3[%c0_3, %c0_4] : memref<1x128xf32, #tpu.memory_space<vmem>>, vector<1x128xf32>
    %6 = vector.broadcast %5 : vector<1x128xf32> to vector<32x128xf32>
    %7 = arith.addf %4, %6 : vector<32x128xf32>
    %c0_5 = arith.constant 0 : index
    %c0_6 = arith.constant 0 : index
    %8 = vector.load %arg4[%c0_5, %c0_6] : memref<32x128xbf16, #tpu.memory_space<vmem>>, vector<32x128xbf16>
    %9 = arith.extf %8 : vector<32x128xbf16> to vector<32x128xf32>
    %10 = arith.addf %7, %9 : vector<32x128xf32>
    %cst = arith.constant 0.000000e+00 : f32
    %11 = vector.broadcast %cst : f32 to vector<32x128xf32>
    %12 = arith.maximumf %10, %11 : vector<32x128xf32>
    %13 = arith.truncf %12 : vector<32x128xf32> to vector<32x128xbf16>
    %c0_7 = arith.constant 0 : index
    %c0_8 = arith.constant 0 : index
    %14 = vector.load %arg5[%c0_7, %c0_8] : memref<32x128xbf16, #tpu.memory_space<vmem>>, vector<32x128xbf16>
    tpu.vector_store %arg5[%c0_7, %c0_8], %13 {strides = array<i32>} : memref<32x128xbf16, #tpu.memory_space<vmem>>, vector<32x128xbf16>,
    return
  }
  func.func @transform_0(%arg0: i32) -> (i32, i32) {
    %c0_i32 = arith.constant 0 : i32
    %c0_i32_0 = arith.constant 0 : i32
    return %arg0, %c0_i32 : i32, i32
  }
  func.func @transform_1(%arg0: i32) -> (i32, i32) {
    %c0_i32 = arith.constant 0 : i32
    %c0_i32_0 = arith.constant 0 : i32
    %c0_i32_1 = arith.constant 0 : i32
    return %c0_i32, %c0_i32_0 : i32, i32
  }
  func.func @transform_2(%arg0: i32) -> (i32, i32) {
    %c0_i32 = arith.constant 0 : i32
    %c0_i32_0 = arith.constant 0 : i32
    %c0_i32_1 = arith.constant 0 : i32
    return %c0_i32, %c0_i32_0 : i32, i32
  }
  func.func @transform_3(%arg0: i32) -> (i32, i32) {
    %c0_i32 = arith.constant 0 : i32
    %c0_i32_0 = arith.constant 0 : i32
    return %arg0, %c0_i32 : i32, i32
  }
  func.func @transform_4(%arg0: i32) -> (i32, i32) {
    %c0_i32 = arith.constant 0 : i32
    %c0_i32_0 = arith.constant 0 : i32
    return %arg0, %c0_i32 : i32, i32
  }
}

module attributes {stable_mosaic.version = 11 : i64} {
  func.func @_conv_kernel(%arg0: i32, %arg1: memref<1x16x16x8xbf16, #tpu.memory_space<vmem>>, %arg2: memref<1x8x4xbf16, #tpu.memory_space<vmem>>, %arg3: memref<1x4xf32, #tpu.memory_space<vmem>>, %arg4: memref<1x256x4xbf16, #tpu.memory_space<vmem>>) attributes {dimension_semantics = [#tpu.dimension_semantics<parallel>], iteration_bounds = array<i64: 2>, scalar_prefetch = 0 : i64, scratch_operands = 0 : i64, tpu.core_type = #tpu.core_type<tc>, window_params = [{transform_indices = @transform_0, window_bounds = array<i64: 1, 16, 16, 8>}, {pipeline_mode = #tpu.pipeline_mode<synchronous>, transform_indices = @transform_1, window_bounds = array<i64: 1, 8, 4>}, {pipeline_mode = #tpu.pipeline_mode<synchronous>, transform_indices = @transform_2, window_bounds = array<i64: 1, 4>}, {transform_indices = @transform_3, window_bounds = array<i64: 1, 256, 4>}]} {
    %c0 = arith.constant 0 : index
    %c0_0 = arith.constant 0 : index
    %c0_1 = arith.constant 0 : index
    %c0_2 = arith.constant 0 : index
    %0 = vector.load %arg1[%c0, %c0_0, %c0_1, %c0_2] : memref<1x16x16x8xbf16, #tpu.memory_space<vmem>>, vector<1x16x16x8xbf16>
    %1 = vector.shape_cast %0 : vector<1x16x16x8xbf16> to vector<16x16x8xbf16>
    %2 = vector.shape_cast %1 : vector<16x16x8xbf16> to vector<256x8xbf16>
    %c0_3 = arith.constant 0 : index
    %c0_4 = arith.constant 0 : index
    %c0_5 = arith.constant 0 : index
    %3 = vector.load %arg2[%c0_3, %c0_4, %c0_5] : memref<1x8x4xbf16, #tpu.memory_space<vmem>>, vector<1x8x4xbf16>
    %4 = vector.shape_cast %3 : vector<1x8x4xbf16> to vector<8x4xbf16>
    %cst = arith.constant dense<0.000000e+00> : vector<256x4xf32>
    %5 = tpu.matmul %2, %4, %cst {dimension_numbers = #tpu.dot_dimension_numbers<[1], [0], [0], [1], [0, 0, 1, 1], [], []>} : vector<256x8xbf16>, vector<8x4xbf16>, vector<256x4xf32> -> vector<256x4xf32>
    %c0_6 = arith.constant 0 : index
    %c0_7 = arith.constant 0 : index
    %6 = vector.load %arg3[%c0_6, %c0_7] : memref<1x4xf32, #tpu.memory_space<vmem>>, vector<1x4xf32>
    %7 = vector.broadcast %6 : vector<1x4xf32> to vector<256x4xf32>
    %8 = arith.addf %5, %7 : vector<256x4xf32>
    %9 = arith.truncf %8 : vector<256x4xf32> to vector<256x4xbf16>
    %c0_8 = arith.constant 0 : index
    %c0_9 = arith.constant 0 : index
    %c0_10 = arith.constant 0 : index
    %10 = vector.load %arg4[%c0_8, %c0_9, %c0_10] : memref<1x256x4xbf16, #tpu.memory_space<vmem>>, vector<1x256x4xbf16>
    %11 = vector.shape_cast %10 : vector<1x256x4xbf16> to vector<256x4xbf16>
    %12 = vector.shape_cast %9 : vector<256x4xbf16> to vector<1x256x4xbf16>
    tpu.vector_store %arg4[%c0_8, %c0_9, %c0_10], %12 {strides = array<i32>} : memref<1x256x4xbf16, #tpu.memory_space<vmem>>, vector<1x256x4xbf16>,
    return
  }
  func.func @transform_0(%arg0: i32) -> (i32, i32, i32, i32) {
    %c0_i32 = arith.constant 0 : i32
    %c0_i32_0 = arith.constant 0 : i32
    %c0_i32_1 = arith.constant 0 : i32
    %c0_i32_2 = arith.constant 0 : i32
    return %arg0, %c0_i32, %c0_i32_0, %c0_i32_1 : i32, i32, i32, i32
  }
  func.func @transform_1(%arg0: i32) -> (i32, i32, i32) {
    %c0_i32 = arith.constant 0 : i32
    %c0_i32_0 = arith.constant 0 : i32
    %c0_i32_1 = arith.constant 0 : i32
    %c0_i32_2 = arith.constant 0 : i32
    return %c0_i32, %c0_i32_0, %c0_i32_1 : i32, i32, i32
  }
  func.func @transform_2(%arg0: i32) -> (i32, i32) {
    %c0_i32 = arith.constant 0 : i32
    %c0_i32_0 = arith.constant 0 : i32
    %c0_i32_1 = arith.constant 0 : i32
    return %c0_i32, %c0_i32_0 : i32, i32
  }
  func.func @transform_3(%arg0: i32) -> (i32, i32, i32) {
    %c0_i32 = arith.constant 0 : i32
    %c0_i32_0 = arith.constant 0 : i32
    %c0_i32_1 = arith.constant 0 : i32
    return %arg0, %c0_i32, %c0_i32_0 : i32, i32, i32
  }
}

module attributes {stable_mosaic.version = 11 : i64} {
  func.func @_affine_kernel(%arg0: i32, %arg1: memref<32x128xbf16, #tpu.memory_space<vmem>>, %arg2: memref<1x128xf32, #tpu.memory_space<vmem>>, %arg3: memref<1x128xf32, #tpu.memory_space<vmem>>, %arg4: memref<32x128xbf16, #tpu.memory_space<vmem>>, %arg5: memref<32x128xbf16, #tpu.memory_space<vmem>>, %arg6: memref<32x128xbf16, #tpu.memory_space<vmem>>) attributes {dimension_semantics = [#tpu.dimension_semantics<parallel>], iteration_bounds = array<i64: 1>, scalar_prefetch = 0 : i64, scratch_operands = 0 : i64, tpu.core_type = #tpu.core_type<tc>, window_params = [{transform_indices = @transform_0, window_bounds = array<i64: 32, 128>}, {pipeline_mode = #tpu.pipeline_mode<synchronous>, transform_indices = @transform_1, window_bounds = array<i64: 1, 128>}, {pipeline_mode = #tpu.pipeline_mode<synchronous>, transform_indices = @transform_2, window_bounds = array<i64: 1, 128>}, {transform_indices = @transform_3, window_bounds = array<i64: 32, 128>}, {transform_indices = @transform_4, window_bounds = array<i64: 32, 128>}, {transform_indices = @transform_5, window_bounds = array<i64: 32, 128>}]} {
    %c0 = arith.constant 0 : index
    %c0_0 = arith.constant 0 : index
    %0 = vector.load %arg1[%c0, %c0_0] : memref<32x128xbf16, #tpu.memory_space<vmem>>, vector<32x128xbf16>
    %1 = arith.extf %0 : vector<32x128xbf16> to vector<32x128xf32>
    %c0_1 = arith.constant 0 : index
    %c0_2 = arith.constant 0 : index
    %2 = vector.load %arg2[%c0_1, %c0_2] : memref<1x128xf32, #tpu.memory_space<vmem>>, vector<1x128xf32>
    %3 = vector.broadcast %2 : vector<1x128xf32> to vector<32x128xf32>
    %4 = arith.mulf %1, %3 : vector<32x128xf32>
    %c0_3 = arith.constant 0 : index
    %c0_4 = arith.constant 0 : index
    %5 = vector.load %arg3[%c0_3, %c0_4] : memref<1x128xf32, #tpu.memory_space<vmem>>, vector<1x128xf32>
    %6 = vector.broadcast %5 : vector<1x128xf32> to vector<32x128xf32>
    %7 = arith.addf %4, %6 : vector<32x128xf32>
    %cst = arith.constant 0.000000e+00 : f32
    %8 = vector.broadcast %cst : f32 to vector<32x128xf32>
    %9 = arith.maximumf %7, %8 : vector<32x128xf32>
    %c0_5 = arith.constant 0 : index
    %c0_6 = arith.constant 0 : index
    %10 = vector.load %arg4[%c0_5, %c0_6] : memref<32x128xbf16, #tpu.memory_space<vmem>>, vector<32x128xbf16>
    %11 = arith.extf %10 : vector<32x128xbf16> to vector<32x128xf32>
    %12 = arith.addf %9, %11 : vector<32x128xf32>
    %c0_7 = arith.constant 0 : index
    %c0_8 = arith.constant 0 : index
    %13 = vector.load %arg5[%c0_7, %c0_8] : memref<32x128xbf16, #tpu.memory_space<vmem>>, vector<32x128xbf16>
    %14 = arith.extf %13 : vector<32x128xbf16> to vector<32x128xf32>
    %15 = arith.addf %12, %14 : vector<32x128xf32>
    %16 = arith.truncf %15 : vector<32x128xf32> to vector<32x128xbf16>
    %c0_9 = arith.constant 0 : index
    %c0_10 = arith.constant 0 : index
    %17 = vector.load %arg6[%c0_9, %c0_10] : memref<32x128xbf16, #tpu.memory_space<vmem>>, vector<32x128xbf16>
    tpu.vector_store %arg6[%c0_9, %c0_10], %16 {strides = array<i32>} : memref<32x128xbf16, #tpu.memory_space<vmem>>, vector<32x128xbf16>,
    return
  }
  func.func @transform_0(%arg0: i32) -> (i32, i32) {
    %c0_i32 = arith.constant 0 : i32
    %c0_i32_0 = arith.constant 0 : i32
    return %arg0, %c0_i32 : i32, i32
  }
  func.func @transform_1(%arg0: i32) -> (i32, i32) {
    %c0_i32 = arith.constant 0 : i32
    %c0_i32_0 = arith.constant 0 : i32
    %c0_i32_1 = arith.constant 0 : i32
    return %c0_i32, %c0_i32_0 : i32, i32
  }
  func.func @transform_2(%arg0: i32) -> (i32, i32) {
    %c0_i32 = arith.constant 0 : i32
    %c0_i32_0 = arith.constant 0 : i32
    %c0_i32_1 = arith.constant 0 : i32
    return %c0_i32, %c0_i32_0 : i32, i32
  }
  func.func @transform_3(%arg0: i32) -> (i32, i32) {
    %c0_i32 = arith.constant 0 : i32
    %c0_i32_0 = arith.constant 0 : i32
    return %arg0, %c0_i32 : i32, i32
  }
  func.func @transform_4(%arg0: i32) -> (i32, i32) {
    %c0_i32 = arith.constant 0 : i32
    %c0_i32_0 = arith.constant 0 : i32
    return %arg0, %c0_i32 : i32, i32
  }
  func.func @transform_5(%arg0: i32) -> (i32, i32) {
    %c0_i32 = arith.constant 0 : i32
    %c0_i32_0 = arith.constant 0 : i32
    return %arg0, %c0_i32 : i32, i32
  }
}

module attributes {stable_mosaic.version = 11 : i64} {
  func.func @_conv_kernel(%arg0: i32, %arg1: memref<1x16x16x4xbf16, #tpu.memory_space<vmem>>, %arg2: memref<1x4x8xbf16, #tpu.memory_space<vmem>>, %arg3: memref<1x256x8xbf16, #tpu.memory_space<vmem>>, %arg4: memref<1x1x8xf32, #tpu.memory_space<vmem>>, %arg5: memref<1x1x8xf32, #tpu.memory_space<vmem>>) attributes {dimension_semantics = [#tpu.dimension_semantics<parallel>], iteration_bounds = array<i64: 2>, scalar_prefetch = 0 : i64, scratch_operands = 0 : i64, tpu.core_type = #tpu.core_type<tc>, window_params = [{transform_indices = @transform_0, window_bounds = array<i64: 1, 16, 16, 4>}, {pipeline_mode = #tpu.pipeline_mode<synchronous>, transform_indices = @transform_1, window_bounds = array<i64: 1, 4, 8>}, {transform_indices = @transform_2, window_bounds = array<i64: 1, 256, 8>}, {transform_indices = @transform_3, window_bounds = array<i64: 1, 1, 8>}, {transform_indices = @transform_4, window_bounds = array<i64: 1, 1, 8>}]} {
    %c0 = arith.constant 0 : index
    %c0_0 = arith.constant 0 : index
    %c0_1 = arith.constant 0 : index
    %c0_2 = arith.constant 0 : index
    %0 = vector.load %arg1[%c0, %c0_0, %c0_1, %c0_2] : memref<1x16x16x4xbf16, #tpu.memory_space<vmem>>, vector<1x16x16x4xbf16>
    %1 = vector.shape_cast %0 : vector<1x16x16x4xbf16> to vector<16x16x4xbf16>
    %2 = vector.shape_cast %1 : vector<16x16x4xbf16> to vector<256x4xbf16>
    %c0_3 = arith.constant 0 : index
    %c0_4 = arith.constant 0 : index
    %c0_5 = arith.constant 0 : index
    %3 = vector.load %arg2[%c0_3, %c0_4, %c0_5] : memref<1x4x8xbf16, #tpu.memory_space<vmem>>, vector<1x4x8xbf16>
    %4 = vector.shape_cast %3 : vector<1x4x8xbf16> to vector<4x8xbf16>
    %cst = arith.constant dense<0.000000e+00> : vector<256x8xf32>
    %5 = tpu.matmul %2, %4, %cst {dimension_numbers = #tpu.dot_dimension_numbers<[1], [0], [0], [1], [0, 0, 1, 1], [], []>} : vector<256x4xbf16>, vector<4x8xbf16>, vector<256x8xf32> -> vector<256x8xf32>
    %cst_6 = arith.constant dense<0.000000e+00> : vector<8xf32>
    %6 = vector.multi_reduction <add>, %5, %cst_6 [0] : vector<256x8xf32> to vector<8xf32>
    %7 = vector.shape_cast %6 : vector<8xf32> to vector<1x8xf32>
    %c0_7 = arith.constant 0 : index
    %c0_8 = arith.constant 0 : index
    %c0_9 = arith.constant 0 : index
    %8 = vector.load %arg4[%c0_7, %c0_8, %c0_9] : memref<1x1x8xf32, #tpu.memory_space<vmem>>, vector<1x1x8xf32>
    %9 = vector.shape_cast %8 : vector<1x1x8xf32> to vector<1x8xf32>
    %10 = vector.shape_cast %7 : vector<1x8xf32> to vector<1x1x8xf32>
    tpu.vector_store %arg4[%c0_7, %c0_8, %c0_9], %10 {strides = array<i32>} : memref<1x1x8xf32, #tpu.memory_space<vmem>>, vector<1x1x8xf32>,
    %11 = arith.mulf %5, %5 : vector<256x8xf32>
    %cst_10 = arith.constant dense<0.000000e+00> : vector<8xf32>
    %12 = vector.multi_reduction <add>, %11, %cst_10 [0] : vector<256x8xf32> to vector<8xf32>
    %13 = vector.shape_cast %12 : vector<8xf32> to vector<1x8xf32>
    %c0_11 = arith.constant 0 : index
    %c0_12 = arith.constant 0 : index
    %c0_13 = arith.constant 0 : index
    %14 = vector.load %arg5[%c0_11, %c0_12, %c0_13] : memref<1x1x8xf32, #tpu.memory_space<vmem>>, vector<1x1x8xf32>
    %15 = vector.shape_cast %14 : vector<1x1x8xf32> to vector<1x8xf32>
    %16 = vector.shape_cast %13 : vector<1x8xf32> to vector<1x1x8xf32>
    tpu.vector_store %arg5[%c0_11, %c0_12, %c0_13], %16 {strides = array<i32>} : memref<1x1x8xf32, #tpu.memory_space<vmem>>, vector<1x1x8xf32>,
    %17 = arith.truncf %5 : vector<256x8xf32> to vector<256x8xbf16>
    %c0_14 = arith.constant 0 : index
    %c0_15 = arith.constant 0 : index
    %c0_16 = arith.constant 0 : index
    %18 = vector.load %arg3[%c0_14, %c0_15, %c0_16] : memref<1x256x8xbf16, #tpu.memory_space<vmem>>, vector<1x256x8xbf16>
    %19 = vector.shape_cast %18 : vector<1x256x8xbf16> to vector<256x8xbf16>
    %20 = vector.shape_cast %17 : vector<256x8xbf16> to vector<1x256x8xbf16>
    tpu.vector_store %arg3[%c0_14, %c0_15, %c0_16], %20 {strides = array<i32>} : memref<1x256x8xbf16, #tpu.memory_space<vmem>>, vector<1x256x8xbf16>,
    return
  }
  func.func @transform_0(%arg0: i32) -> (i32, i32, i32, i32) {
    %c0_i32 = arith.constant 0 : i32
    %c0_i32_0 = arith.constant 0 : i32
    %c0_i32_1 = arith.constant 0 : i32
    %c0_i32_2 = arith.constant 0 : i32
    return %arg0, %c0_i32, %c0_i32_0, %c0_i32_1 : i32, i32, i32, i32
  }
  func.func @transform_1(%arg0: i32) -> (i32, i32, i32) {
    %c0_i32 = arith.constant 0 : i32
    %c0_i32_0 = arith.constant 0 : i32
    %c0_i32_1 = arith.constant 0 : i32
    %c0_i32_2 = arith.constant 0 : i32
    return %c0_i32, %c0_i32_0, %c0_i32_1 : i32, i32, i32
  }
  func.func @transform_2(%arg0: i32) -> (i32, i32, i32) {
    %c0_i32 = arith.constant 0 : i32
    %c0_i32_0 = arith.constant 0 : i32
    %c0_i32_1 = arith.constant 0 : i32
    return %arg0, %c0_i32, %c0_i32_0 : i32, i32, i32
  }
  func.func @transform_3(%arg0: i32) -> (i32, i32, i32) {
    %c0_i32 = arith.constant 0 : i32
    %c0_i32_0 = arith.constant 0 : i32
    %c0_i32_1 = arith.constant 0 : i32
    return %arg0, %c0_i32, %c0_i32_0 : i32, i32, i32
  }
  func.func @transform_4(%arg0: i32) -> (i32, i32, i32) {
    %c0_i32 = arith.constant 0 : i32
    %c0_i32_0 = arith.constant 0 : i32
    %c0_i32_1 = arith.constant 0 : i32
    return %arg0, %c0_i32, %c0_i32_0 : i32, i32, i32
  }
}

</mosaic_0001>

<bundles_post_ra>
// kernel: _lambda_.79
= control target key start
LH: loop header
LB: loop body
LE: loop exit
PB: predicated region body
PF: predicated region fallthrough
CT: control target
= control target key end

     0   :  { %vm34_vm0 = vcmask 519168   ;;  %s82_s0 = inlined_call_operand.vmem [shape: bf16[16,64], index: 0, kind: input, shape index: {}]   ;;  %s83_s1 = inlined_call_operand.vmem [shape: f32[1,64], index: 1, kind: input, shape index: {}]   ;;  %s84_s2 = inlined_call_operand.vmem [shape: f32[1,64], index: 2, kind: input, shape index: {}]   ;;  %s85_s3 = inlined_call_operand.vmem [shape: bf16[16,64], index: 3, kind: output, shape index: {}]  }
   0x1   :  { %v42_v0 = vld [vmem:[%s82_s0] sm:$0xff]  }
   0x2   :  { %v45_v1 = vld [vmem:[%s83_s1] ss:$0 sm:$0xff]  ;;  %v43_v2 = vunpack.c.l.bf16 %v42_v0  ;;  %v44_v4 = vunpack.c.h.bf16 %v42_v0 }
   0x3   :  { %v46_v3 = vld [vmem:[%s84_s2] ss:$0 sm:$0xff] }
   0x4   :  { %v22_v5 = vmul.f32 %v45_v1, %v43_v2  ;;  %v23_v6 = vmul.f32 %v45_v1, %v44_v4 }
   0x6   :  { %v28_v7 = vadd.f32 %v46_v3, %v22_v5  ;;  %v29_v8 = vadd.f32 %v46_v3, %v23_v6 }
   0x8   :  { %v30_v9 = vmax.f32 %v28_v7, 0.0  ;;  %v31_v10 = vmax.f32 %v29_v8, 0.0 }
   0xa   :  { %v32_v11 = vpack.c.bf16 %v30_v9, %v30_v9  ;;  %v33_v12 = vpack.c.bf16 %v31_v10, %v31_v10 }
   0xc   :  { %35 = vst.msk [vmem:[%s85_s3] sm:$0xf] %vm34_vm0, %v32_v11 }
   0xd   :  { %36 = vst.msk [vmem:[%s85_s3 + $0x4] sm:$0xf] %vm34_vm0, %v33_v12 }

// kernel: _lambda_.78
= control target key start
LH: loop header
LB: loop body
LE: loop exit
PB: predicated region body
PF: predicated region fallthrough
CT: control target
= control target key end

     0   :  { %s1919_s15 = smov 0   ;;  %s2403_s0 = inlined_call_operand.vmem [shape: bf16[2,8,8,8], index: 0, kind: input, shape index: {}]   ;;  %s2404_s1 = inlined_call_operand.vmem [shape: bf16[9,8,8], index: 1, kind: input, shape index: {}]   ;;  %s2405_s2 = inlined_call_operand.vmem [shape: bf16[2,64,8], index: 2, kind: output, shape index: {0}]   ;;  %s2406_s3 = inlined_call_operand.vmem [shape: f32[2,1,8], index: 3, kind: output, shape index: {1}]   ;;  %s2407_s4 = inlined_call_operand.vmem [shape: f32[2,1,8], index: 4, kind: output, shape index: {2}]  }
   0x1 LB: > { %s1732_s16 = sadd.s32 4294967295, %s1891_s15   ;;  %p1736_p0 = scmp.ge.s32.totalorder %s1891_s15, 1  ;;  %s1891_s15 = sphi %s1919_s15, %s15_s15  }
   0x2   : > { %p167_p1 = scmp.lt.s32.totalorder %s1891_s15, 3 }
   0x4   : > { %p168_p2 = pnand %p1736_p0, %p167_p1 }
   0x5   : > { %p199_p3 = scmp.lt.s32.totalorder (!%p168_p2), %s1732_s16, 1 }
   0x6   : > { %171 = sbr.rel (%p168_p2) target bundleno = 355 (0x163), region = 28 }
   0xb   : > { %v1741_v0 = vld [vmem:[%s2404_s1 + $0x4] sm:$0xf]  ;;  %vm540_vm0 = vcmask 1043456   ;;  %vm216_vm1 = vcmask 60416   ;;  %vm218_vm2 = vcmask 57344   ;;  %v1893_v2 = vmov 0  }
   0xc   : > { %v542_v1 = vsel %vm540_vm0, %v1741_v0, 0  ;;  %222 = vst.msk [vmem:[#allocation2 + $0x10] sm:$0xf] %vm216_vm1, %v1893_v2  ;;  %s2417_s16 = smov (!%p199_p3, %s1732_s16), 1  ;;  %vm328_vm3 = vsmask.f32 7938 }
   0xd   : > { %1873 = vmatpush.bf16.msra.mxu1 %v542_v1  ;;  %1874 = vmatpush.bf16.msra.mxu2 %v542_v1  ;;  %223 = vst.msk [vmem:[#allocation2 + $0x14] sm:$0x1] %vm218_vm2, %v1893_v2  ;;  %s1859_s19 = sshll.u32 %s2417_s16, 5  ;;  %vm334_vm4 = vsmask.f32 256  ;;  %vm1962_vm5 = vmand %vm216_vm1, %vm328_vm3  ;;  %vm527_vm10 = vcmask 64512   ;;  %s211_s20 = scalar_lea.vmem %s2406_s3, %s2417_s16 }
   0xe   : > { %1875 = vmatpush.bf16.msra.mxu3 %v542_v1  ;;  %551 = vmatpush.bf16.msra.mxu0 %v542_v1  ;;  %224 = vst.msk [vmem:[#allocation2 + $0x18] sm:$0xf] %vm216_vm1, %v1893_v2  ;;  %s1947_s22 = scalar_lea.vmem %s2403_s0, %s1859_s19  ;;  %vm1970_vm6 = vmand %vm218_vm2, %vm334_vm4  ;;  %vm398_vm7 = vsmask.f32 3328  ;;  %vm399_vm8 = vsmask.f32 7440  ;;  %s2334_s17 = scalar_lea.vmem %s2405_s2, %s1859_s19 }
   0xf   : > { %225 = vst.msk [vmem:[#allocation2 + $0x1c] sm:$0x1] %vm218_vm2, %v1893_v2  ;;  %v239_v3 = vld [vmem:[%s1947_s22 + $0x4] sm:$0xf]  ;;  %v240_v4 = vld [vmem:[%s1947_s22 + $0x8] sm:$0xf]  ;;  %vm2028_vm9 = vmor %vm398_vm7, %vm399_vm8  ;;  %s214_s23 = scalar_lea.vmem %s2407_s4, %s2417_s16 }
  0x10   : > { %217 = vst.msk [vmem:[#allocation2] sm:$0xf] %vm216_vm1, %v1893_v2  ;;  %v255_v5 = vshrl.u32 %v239_v3, 16  ;;  %v258_v6 = vshll.u32 %v239_v3, 16  ;;  %v263_v7 = vshrl.u32 %v240_v4, 16  ;;  %v266_v8 = vshll.u32 %v240_v4, 16 }
  0x11   : > { %219 = vst.msk [vmem:[#allocation2 + $0x4] sm:$0x1] %vm218_vm2, %v1893_v2  ;;  %v241_v10 = vld [vmem:[%s1947_s22 + $0xc] sm:$0xf]  ;;  %v242_v17 = vld [vmem:[%s1947_s22 + $0x10] sm:$0xf] }
  0x12   : > { %220 = vst.msk [vmem:[#allocation2 + $0x8] sm:$0xf] %vm216_vm1, %v1893_v2  ;;  %v257_v11 = vrot.slane %v255_v5, 7  ;;  %v265_v12 = vrot.slane %v263_v7, 7  ;;  %v271_v23 = vshrl.u32 %v241_v10, 16  ;;  %v279_v24 = vshrl.u32 %v242_v17, 16 }
  0x13   : > { %v339_v9 = vld [vmem:[#allocation2 + $0x10] sm:$0xf]  ;;  %221 = vst.msk [vmem:[#allocation2 + $0xc] sm:$0x1] %vm218_vm2, %v1893_v2  ;;  %v243_v28 = vld [vmem:[%s1947_s22 + $0x14] sm:$0xf] }
  0x14   : > { %v342_v14 = vld [vmem:[#allocation2 + $0x14] sm:$0x1]  ;;  %226 = vst.msk [vmem:[#allocation2 + $0x20] sm:$0xf] %vm216_vm1, %v1893_v2  ;;  %v260_v18 = vor.u32 %v258_v6, %v257_v11  ;;  %v261_v19 = vrot.slane %v257_v11, 4  ;;  %v268_v20 = vor.u32 %v266_v8, %v265_v12  ;;  %v269_v21 = vrot.slane %v265_v12, 4 }
  0x15   : > { %v345_v16 = vld [vmem:[#allocation2 + $0x18] sm:$0xf]  ;;  %227 = vst.msk [vmem:[#allocation2 + $0x24] sm:$0x1] %vm218_vm2, %v1893_v2  ;;  %v273_v31 = vrot.slane %v271_v23, 7  ;;  %v274_v32 = vshll.u32 %v241_v10, 16 }
  0x16   : > { %v348_v22 = vld [vmem:[#allocation2 + $0x1c] sm:$0x1]  ;;  %228 = vst.msk [vmem:[#allocation2 + $0x28] sm:$0xf] %vm216_vm1, %v1893_v2  ;;  %v340_v25 = vsel %vm1962_vm5, %v260_v18, %v339_v9  ;;  %v343_v26 = vsel %vm1970_vm6, %v261_v19, %v342_v14  ;;  %v346_v27 = vsel %vm1962_vm5, %v268_v20, %v345_v16  ;;  %v244_v29 = vld [vmem:[%s1947_s22 + $0x18] sm:$0xf] }
  0x17   : > { %229 = vst.msk [vmem:[#allocation2 + $0x2c] sm:$0x1] %vm218_vm2, %v1893_v2  ;;  %v349_v30 = vsel %vm1970_vm6, %v269_v21, %v348_v22  ;;  %v287_v33 = vshrl.u32 %v243_v28, 16  ;;  %v295_v34 = vshrl.u32 %v244_v29, 16  ;;  %v238_v35 = vld [vmem:[%s1947_s22] sm:$0xf]  ;;  %v276_v40 = vor.u32 %v274_v32, %v273_v31 }
  0x18   : > { %230 = vst.msk [vmem:[#allocation2 + $0x30] sm:$0xf] %vm216_vm1, %v1893_v2  ;;  %v281_v36 = vrot.slane %v279_v24, 7  ;;  %v282_v37 = vshll.u32 %v242_v17, 16  ;;  %v290_v38 = vshll.u32 %v243_v28, 16  ;;  %v298_v39 = vshll.u32 %v244_v29, 16 }
  0x19   : > { %341 = vst [vmem:[#allocation2 + $0x10] sm:$0xf] %v340_v25  ;;  %v277_v43 = vrot.slane %v273_v31, 4  ;;  %v289_v44 = vrot.slane %v287_v33, 7  ;;  %v1998_v45 = vrot.slane %v295_v34, 7  ;;  %v247_v46 = vshrl.u32 %v238_v35, 16 }
  0x1a   : > { %344 = vst [vmem:[#allocation2 + $0x14] sm:$0x1] %v343_v26  ;;  %v285_v47 = vrot.slane %v281_v36, 4  ;;  %v250_v49 = vshll.u32 %v238_v35, 16  ;;  %v284_v51 = vor.u32 %v282_v37, %v281_v36  ;;  %v330_v19 = vld [vmem:[#allocation2 + $0x8] sm:$0xf] }
  0x1b   : > { %347 = vst [vmem:[#allocation2 + $0x18] sm:$0xf] %v346_v27  ;;  %v351_v41 = vld [vmem:[#allocation2 + $0x20] sm:$0xf]  ;;  %v293_v53 = vrot.slane %v289_v44, 4  ;;  %v301_v54 = vrot.slane %v1998_v45, 4  ;;  %v292_v63 = vor.u32 %v290_v38, %v289_v44  ;;  %v300_v10 = vor.u32 %v298_v39, %v1998_v45 }
  0x1c   : > { %350 = vst [vmem:[#allocation2 + $0x1c] sm:$0x1] %v349_v30  ;;  %v354_v42 = vld [vmem:[#allocation2 + $0x24] sm:$0x1]  ;;  %v352_v58 = vsel %vm1962_vm5, %v276_v40, %v351_v41  ;;  %v249_v0 = vrot.slane %v247_v46, 7  ;;  %vm661_vm11 = vcmask 1042432  }
  0x1d   : > { %231 = vst.msk [vmem:[#allocation2 + $0x34] sm:$0x1] %vm218_vm2, %v1893_v2  ;;  %v357_v48 = vld [vmem:[#allocation2 + $0x28] sm:$0xf]  ;;  %v355_v62 = vsel %vm1970_vm6, %v277_v43, %v354_v42  ;;  %v336_v31 = vld [vmem:[#allocation2 + $0xc] sm:$0x1] }
  0x1e   : > { %232 = vst.msk [vmem:[#allocation2 + $0x38] sm:$0xf] %vm216_vm1, %v1893_v2  ;;  %v360_v52 = vld [vmem:[#allocation2 + $0x2c] sm:$0x1]  ;;  %v358_v9 = vsel %vm1962_vm5, %v284_v51, %v357_v48  ;;  %v252_v22 = vor.u32 %v250_v49, %v249_v0  ;;  %v253_v23 = vrot.slane %v249_v0, 4  ;;  %vm662_vm12 = vcmask 1046532  }
  0x1f   : > { %233 = vst.msk [vmem:[#allocation2 + $0x3c] sm:$0x1] %vm218_vm2, %v1893_v2  ;;  %v363_v59 = vld [vmem:[#allocation2 + $0x30] sm:$0xf]  ;;  %v361_v17 = vsel %vm1970_vm6, %v285_v47, %v360_v52  ;;  %v1774_v28 = vld [vmem:[%s2404_s1 + $0x8] sm:$0xf]  ;;  %vm2105_vm13 = vmor %vm661_vm11, %vm662_vm12 }
  0x20   : > { %v383_v50 = vld [vmem:[#allocation2 + $0x10] sm:$0xf]  ;;  %234 = vst.msk [vmem:[#allocation2 + $0x40] sm:$0xf] %vm216_vm1, %v1893_v2  ;;  %v723_v30 = vsel %vm540_vm0, %v1774_v28, 0  ;;  %v331_v37 = vsel %vm1962_vm5, %v252_v22, %v330_v19  ;;  %v337_v42 = vsel %vm1970_vm6, %v253_v23, %v336_v31 }
  0x21   : > { %v2005_v55 = vld [vmem:[#allocation2 + $0x14] sm:$0x1]  ;;  %v430_v56 = vshrl.u32 %v383_v50, 16  ;;  %v433_v57 = vshll.u32 %v383_v50, 16  ;;  %235 = vst.msk [vmem:[#allocation2 + $0x44] sm:$0x1] %vm218_vm2, %v1893_v2  ;;  %732 = vmatpush.bf16.msrb.mxu2 %v723_v30 }
  0x22   : > { %v384_v60 = vld [vmem:[#allocation2 + $0x18] sm:$0xf]  ;;  %v439_v61 = vshll.u32 %v2005_v55, 16  ;;  %236 = vst.msk [vmem:[#allocation2 + $0x48] sm:$0xf] %vm216_vm1, %v1893_v2 }
  0x23   : > { %v2016_v1 = vld [vmem:[#allocation2 + $0x1c] sm:$0x1]  ;;  %v432_v3 = vrot.slane %v430_v56, 4  ;;  %v435_v4 = vrot.slane %v433_v57, 5  ;;  %v444_v5 = vshrl.u32 %v384_v60, 16  ;;  %v447_v6 = vshll.u32 %v384_v60, 16 }
  0x24   : > { %v441_v7 = vrot.slane %v439_v61, 5  ;;  %v453_v8 = vshll.u32 %v2016_v1, 16  ;;  %237 = vst.msk [vmem:[#allocation2 + $0x4c] sm:$0x1] %vm218_vm2, %v1893_v2  ;;  %v366_v11 = vld [vmem:[#allocation2 + $0x34] sm:$0x1]  ;;  %v364_v2 = vsel %vm1962_vm5, %v292_v63, %v363_v59 }
  0x25   : > { %v436_v12 = vor.u32 %v435_v4, %v432_v3  ;;  %v446_v14 = vrot.slane %v444_v5, 4  ;;  %v449_v16 = vrot.slane %v447_v6, 5  ;;  %353 = vst [vmem:[#allocation2 + $0x20] sm:$0xf] %v352_v58  ;;  %v369_v18 = vld [vmem:[#allocation2 + $0x38] sm:$0xf]  ;;  %v367_v27 = vsel %vm1970_vm6, %v293_v53, %v366_v11 }
  0x26   : > { %356 = vst [vmem:[#allocation2 + $0x24] sm:$0x1] %v355_v62  ;;  %v372_v21 = vld [vmem:[#allocation2 + $0x3c] sm:$0x1]  ;;  %v455_v26 = vrot.slane %v453_v8, 5  ;;  %v370_v29 = vsel %vm1962_vm5, %v300_v10, %v369_v18 }
  0x27   : > { %v437_v24 = vrot.slane %v436_v12, 4  ;;  %v450_v25 = vor.u32 %v449_v16, %v446_v14  ;;  %359 = vst [vmem:[#allocation2 + $0x28] sm:$0xf] %v358_v9  ;;  %v373_v34 = vsel %vm1970_vm6, %v301_v54, %v372_v21  ;;  %v381_v35 = vld [vmem:[#allocation2] sm:$0xf] }
  0x28   : > { %362 = vst [vmem:[#allocation2 + $0x2c] sm:$0x1] %v361_v17  ;;  %v2048_v38 = vld [vmem:[#allocation2 + $0x4] sm:$0x1]  ;;  %v402_v39 = vshrl.u32 %v381_v35, 16  ;;  %v405_v40 = vshll.u32 %v381_v35, 16 }
  0x29   : > { %v442_v32 = vsel %vm2028_vm9, %v437_v24, %v441_v7  ;;  %v451_v33 = vrot.slane %v450_v25, 4  ;;  %365 = vst [vmem:[#allocation2 + $0x30] sm:$0xf] %v364_v2  ;;  %v411_v43 = vshll.u32 %v2048_v38, 16  ;;  %v1779_v44 = vld [vmem:[%s2404_s1 + $0xc] sm:$0xf] }
  0x2a   : > { %v517_v36 = vunpack.c.l.b16 %v442_v32  ;;  %368 = vst [vmem:[#allocation2 + $0x34] sm:$0x1] %v367_v27  ;;  %v404_v47 = vrot.slane %v402_v39, 4  ;;  %v407_v48 = vrot.slane %v405_v40, 5  ;;  %v666_v56 = vrot.slane %v2048_v38, 5 }
  0x2b   : > { %v456_v41 = vsel %vm2028_vm9, %v451_v33, %v455_v26  ;;  %371 = vst [vmem:[#allocation2 + $0x38] sm:$0xf] %v370_v29  ;;  %v805_v4 = vsel %vm540_vm0, %v1779_v44, 0  ;;  %v2070_v16 = vrot.slane %v411_v43, 5 }
  0x2c   : > { %v518_v45 = vunpack.c.l.b16 %v456_v41  ;;  %v385_v46 = vld [vmem:[#allocation2 + $0x20] sm:$0xf]  ;;  %374 = vst [vmem:[#allocation2 + $0x3c] sm:$0x1] %v373_v34  ;;  %v408_v3 = vor.u32 %v407_v48, %v404_v47  ;;  %814 = vmatpush.bf16.msrb.mxu3 %v805_v4  ;;  %v1818_v4 = vld [vmem:[%s2404_s1 + $0x18] sm:$0xf] }
  0x2d   : > { %v2058_v49 = vld [vmem:[#allocation2 + $0x24] sm:$0x1]  ;;  %v458_v50 = vshrl.u32 %v385_v46, 16  ;;  %v461_v51 = vshll.u32 %v385_v46, 16  ;;  %332 = vst [vmem:[#allocation2 + $0x8] sm:$0xf] %v331_v37 }
  0x2e   : > { %v524_v52 = vpack.c.b16 %v518_v45, %v517_v36  ;;  %v386_v53 = vld [vmem:[#allocation2 + $0x28] sm:$0xf]  ;;  %v467_v54 = vshll.u32 %v2058_v49, 16  ;;  %338 = vst [vmem:[#allocation2 + $0xc] sm:$0x1] %v337_v42  ;;  %v409_v26 = vrot.slane %v408_v3, 4 }
  0x2f   : > { %v2062_v57 = vld [vmem:[#allocation2 + $0x2c] sm:$0x1]  ;;  %v460_v58 = vrot.slane %v458_v50, 4  ;;  %v463_v59 = vrot.slane %v461_v51, 5  ;;  %v472_v60 = vshrl.u32 %v386_v53, 16  ;;  %v475_v61 = vshll.u32 %v386_v53, 16 }
  0x30   : > { %1743 = vmatmul.msk.bf16.vlgmr.msra.gmra.mxu1 %vm527_vm10, %v524_v52  ;;  %v469_v62 = vrot.slane %v467_v54, 5  ;;  %v481_v63 = vshll.u32 %v2062_v57, 16  ;;  %v387_v0 = vld [vmem:[#allocation2 + $0x30] sm:$0xf]  ;;  %v389_v36 = vld [vmem:[%s2404_s1] sm:$0xf]  ;;  %v414_v48 = vsel %vm2028_vm9, %v409_v26, %v2070_v16 }
  0x31   : > { %v464_v5 = vor.u32 %v463_v59, %v460_v58  ;;  %v474_v6 = vrot.slane %v472_v60, 4  ;;  %v477_v7 = vrot.slane %v475_v61, 5  ;;  %v2067_v8 = vld [vmem:[#allocation2 + $0x34] sm:$0x1]  ;;  %v486_v9 = vshrl.u32 %v387_v0, 16 }
  0x32   : > { %v483_v10 = vrot.slane %v481_v63, 5  ;;  %v388_v11 = vld [vmem:[#allocation2 + $0x38] sm:$0xf]  ;;  %v489_v12 = vshll.u32 %v387_v0, 16  ;;  %v495_v14 = vshll.u32 %v2067_v8, 16  ;;  %v606_v51 = vsel %vm540_vm0, %v389_v36, 0 }
  0x33   : > { %v465_v17 = vrot.slane %v464_v5, 4  ;;  %v478_v18 = vor.u32 %v477_v7, %v474_v6  ;;  %v2072_v19 = vld [vmem:[#allocation2 + $0x3c] sm:$0x1]  ;;  %v488_v2 = vrot.slane %v486_v9, 4  ;;  %v500_v21 = vshrl.u32 %v388_v11, 16  ;;  %615 = vmatpush.bf16.msrb.mxu1 %v606_v51 }
  0x34   : > { %v491_v22 = vrot.slane %v489_v12, 5  ;;  %v503_v23 = vshll.u32 %v388_v11, 16  ;;  %v509_v24 = vshll.u32 %v2072_v19, 16  ;;  %v382_v25 = vld [vmem:[#allocation2 + $0x8] sm:$0xf]  ;;  %v497_v34 = vrot.slane %v495_v14, 5 }
  0x35   : > { %v470_v27 = vsel %vm2028_vm9, %v465_v17, %v469_v62  ;;  %v479_v28 = vrot.slane %v478_v18, 4  ;;  %v502_v29 = vrot.slane %v500_v21, 4  ;;  %v2077_v30 = vld [vmem:[#allocation2 + $0xc] sm:$0x1]  ;;  %v416_v31 = vshrl.u32 %v382_v25, 16 }
  0x36   : > { %v519_v32 = vunpack.c.l.b16 %v470_v27  ;;  %v492_v33 = vor.u32 %v491_v22, %v488_v2  ;;  %v505_v35 = vrot.slane %v503_v23, 5  ;;  %v419_v40 = vshll.u32 %v382_v25, 16  ;;  %v1800_v42 = vld [vmem:[%s2404_s1 + $0x10] sm:$0xf]  ;;  %v1748_v47 = vld [vmem:[#allocation2] sm:$0xf] }
  0x37   : > { %v484_v37 = vsel %vm2028_vm9, %v479_v28, %v483_v10  ;;  %v418_v39 = vrot.slane %v416_v31, 4  ;;  %v425_v41 = vshll.u32 %v2077_v30, 16  ;;  %v511_v46 = vrot.slane %v509_v24, 5  ;;  %v1861_v52 = vld [vmem:[#allocation2 + $0x4] sm:$0xf0] }
  0x38   : > { %v520_v43 = vunpack.c.l.b16 %v484_v37  ;;  %v493_v44 = vrot.slane %v492_v33, 4  ;;  %v506_v45 = vor.u32 %v505_v35, %v502_v29  ;;  %v421_v50 = vrot.slane %v419_v40, 5  ;;  %v637_v53 = vld [vmem:[#allocation2] sm:$0xe]  ;;  %v638_v61 = vld [vmem:[#allocation2 + $0x8] sm:$0xe] }
  0x39   : > { %v999_v60 = vsel %vm540_vm0, %v1800_v42, 0  ;;  %v427_v0 = vrot.slane %v425_v41, 5  ;;  %v670_v3 = vrot.slane %v2077_v30, 5  ;;  %v844_v5 = vld [vmem:[#allocation2 + $0x8] sm:$0xf]  ;;  %v1749_v7 = vor.u32 %v1861_v52, %v1748_v47 }
  0x3a   : > { %v525_v54 = vpack.c.b16 %v520_v43, %v519_v32  ;;  %v498_v58 = vsel %vm2028_vm9, %v493_v44, %v497_v34  ;;  %v507_v59 = vrot.slane %v506_v45, 4  ;;  %v422_v63 = vor.u32 %v421_v50, %v418_v39  ;;  %1008 = vmatpush.bf16.msrb.mxu0 %v999_v60  ;;  %v846_v17 = vld [vmem:[#allocation2 + $0x10] sm:$0xf]  ;;  %v2109_v21 = vld [vmem:[#allocation2 + $0xc] sm:$0x1] }
  0x3b   : > { %v521_v62 = vunpack.c.l.b16 %v498_v58  ;;  %v1766_v9 = vrot.slane %v637_v53, 9  ;;  %v1204_v10 = vsel %vm540_vm0, %v1818_v4, 0  ;;  %v1767_v16 = vrot.slane %v638_v61, 9  ;;  %v2111_v22 = vld [vmem:[#allocation2 + $0x14] sm:$0x1] }
  0x3c   : > { %1744 = vmatmul.msk.bf16.vlgmr.msra.gmra.mxu2 %vm527_vm10, %v525_v54  ;;  %v512_v6 = vsel %vm2028_vm9, %v507_v59, %v511_v46  ;;  %v423_v12 = vrot.slane %v422_v63, 4  ;;  %v861_v18 = vshrl.u32 %v844_v5, 16  ;;  %v515_v2 = vunpack.c.l.b16 %v414_v48  ;;  %v1839_v31 = vld [vmem:[%s2404_s1 + $0x1c] sm:$0xf]  ;;  %v1813_v32 = vld [vmem:[%s2404_s1 + $0x14] sm:$0xf] }
  0x3d   : > { %v522_v11 = vunpack.c.l.b16 %v512_v6  ;;  %1213 = vmatpush.bf16.msra.mxu2 %v1204_v10  ;;  %v864_v23 = vshll.u32 %v844_v5, 16  ;;  %v667_v28 = vsel %vm2105_vm13, %v1766_v9, %v666_v56  ;;  %v875_v30 = vshrl.u32 %v846_v17, 16  ;;  %v1852_v35 = vld [vmem:[%s2404_s1 + $0x20] sm:$0xf]  ;;  %v848_v51 = vld [vmem:[#allocation2 + $0x18] sm:$0xf] }
  0x3e   : > { %v428_v25 = vsel %vm2028_vm9, %v423_v12, %v427_v0  ;;  %v863_v26 = vrot.slane %v861_v18, 4  ;;  %v671_v33 = vsel %vm2105_vm13, %v1767_v16, %v670_v3  ;;  %v870_v38 = vshll.u32 %v2109_v21, 16  ;;  %v850_v52 = vld [vmem:[#allocation2 + $0x20] sm:$0xf]  ;;  %v1752_v54 = vld [vmem:[#allocation2 + $0x10] sm:$0xf] }
  0x3f   : > { %v526_v24 = vpack.c.b16 %v522_v11, %v521_v62  ;;  %v516_v27 = vunpack.c.l.b16 %v428_v25  ;;  %v866_v29 = vrot.slane %v864_v23, 5  ;;  %v878_v34 = vshll.u32 %v846_v17, 16  ;;  %v1862_v58 = vld [vmem:[#allocation2 + $0x14] sm:$0xf0]  ;;  %v639_v60 = vld [vmem:[#allocation2 + $0x10] sm:$0xe] }
  0x40   : > { %1762 = vmatmul.msk.bf16.vlgmr.msrb.gmra.mxu1 %vm527_vm10, %v1749_v7  ;;  %v884_v56 = vshll.u32 %v2111_v22, 16  ;;  %v877_v39 = vrot.slane %v875_v30, 4  ;;  %v1398_v41 = vsel %vm540_vm0, %v1839_v31, 0  ;;  %v1121_v42 = vsel %vm540_vm0, %v1813_v32, 0  ;;  %v640_v61 = vld [vmem:[#allocation2 + $0x18] sm:$0xe] }
  0x41   : > { %1745 = vmatmul.msk.bf16.vlgmr.msra.gmra.mxu3 %vm527_vm10, %v526_v24  ;;  %v523_v36 = vpack.c.b16 %v516_v27, %v515_v2  ;;  %v867_v37 = vor.u32 %v866_v29, %v863_v26  ;;  %v880_v40 = vrot.slane %v878_v34, 5  ;;  %v698_v43 = vunpack.c.l.b16 %v667_v28  ;;  %1130 = vmatpush.bf16.msra.mxu1 %v1121_v42  ;;  %v1782_v6 = vld [vmem:[#allocation2 + $0x8] sm:$0xf]  ;;  %v1865_v7 = vld [vmem:[#allocation2 + $0xc] sm:$0xf0] }
  0x42   : > { %v699_v44 = vunpack.c.l.b16 %v671_v33  ;;  %1407 = vmatpush.bf16.msra.mxu3 %v1398_v41  ;;  %v1520_v45 = vsel %vm540_vm0, %v1852_v35, 0  ;;  %v872_v47 = vrot.slane %v870_v38, 5  ;;  %v886_v50 = vrot.slane %v884_v56, 5  ;;  %v2145_v25 = vld [vmem:[#allocation2 + $0x1c] sm:$0x1] }
  0x43   : > { %1742 = vmatmul.msk.bf16.vlgmr.msra.gmra.mxu0 %vm527_vm10, %v523_v36  ;;  %v868_v46 = vrot.slane %v867_v37, 4  ;;  %v881_v48 = vor.u32 %v880_v40, %v877_v39  ;;  %v889_v62 = vshrl.u32 %v848_v51, 16  ;;  %v892_v63 = vshll.u32 %v848_v51, 16  ;;  %v2147_v28 = vld [vmem:[#allocation2 + $0x24] sm:$0x1] }
  0x44   : > { %1529 = vmatpush.bf16.msra.mxu0 %v1520_v45  ;;  %v706_v59 = vpack.c.b16 %v699_v44, %v698_v43  ;;  %v903_v4 = vshrl.u32 %v850_v52, 16  ;;  %v906_v5 = vshll.u32 %v850_v52, 16  ;;  %v1753_v9 = vor.u32 %v1862_v58, %v1752_v54  ;;  %v245_v32 = vld [vmem:[%s1947_s22 + $0x1c] sm:$0xf]  ;;  %v1786_v39 = vld [vmem:[#allocation2 + $0x18] sm:$0xf] }
  0x45   : > { %v882_v53 = vrot.slane %v881_v48, 4  ;;  %v873_v0 = vsel %vm2028_vm9, %v868_v46, %v872_v47  ;;  %v1768_v10 = vrot.slane %v639_v60, 9  ;;  %v674_v11 = vrot.slane %v2005_v55, 5  ;;  %v1866_v40 = vld [vmem:[#allocation2 + $0x1c] sm:$0xf0] }
  0x46   : > { %v1769_v12 = vrot.slane %v640_v61, 9  ;;  %v678_v16 = vrot.slane %v2016_v1, 5  ;;  %v974_v17 = vunpack.c.l.b16 %v873_v0  ;;  %v891_v2 = vrot.slane %v889_v62, 4  ;;  %v852_v43 = vld [vmem:[#allocation2 + $0x28] sm:$0xf] }
  0x47   : > { %v887_v3 = vsel %vm2028_vm9, %v882_v53, %v886_v50  ;;  %v894_v23 = vrot.slane %v892_v63, 5  ;;  %v1783_v24 = vor.u32 %v1865_v7, %v1782_v6  ;;  %v905_v26 = vrot.slane %v903_v4, 4  ;;  %v1756_v44 = vld [vmem:[#allocation2 + $0x20] sm:$0xf]  ;;  %v1863_v45 = vld [vmem:[#allocation2 + $0x24] sm:$0xf0] }
  0x48   : > { %v975_v18 = vunpack.c.l.b16 %v887_v3  ;;  %v908_v27 = vrot.slane %v906_v5, 5  ;;  %v675_v55 = vsel %vm2105_vm13, %v1768_v10, %v674_v11  ;;  %v679_v1 = vsel %vm2105_vm13, %v1769_v12, %v678_v16  ;;  %v854_v46 = vld [vmem:[#allocation2 + $0x30] sm:$0xf]  ;;  %v641_v50 = vld [vmem:[#allocation2 + $0x20] sm:$0xe] }
  0x49   : > { %v895_v30 = vor.u32 %v894_v23, %v891_v2  ;;  %v898_v31 = vshll.u32 %v2145_v25, 16  ;;  %v912_v38 = vshll.u32 %v2147_v28, 16  ;;  %v700_v34 = vunpack.c.l.b16 %v675_v55  ;;  %v378_v52 = vld [vmem:[#allocation2 + $0x44] sm:$0x1]  ;;  %v375_v60 = vld [vmem:[#allocation2 + $0x40] sm:$0xf] }
  0x4a   : > { %v982_v29 = vpack.c.b16 %v975_v18, %v974_v17  ;;  %v909_v33 = vor.u32 %v908_v27, %v905_v26  ;;  %v701_v56 = vunpack.c.l.b16 %v679_v1  ;;  %v303_v35 = vshrl.u32 %v245_v32, 16  ;;  %v642_v62 = vld [vmem:[#allocation2 + $0x28] sm:$0xe]  ;;  %v2172_v26 = vld [vmem:[#allocation2 + $0x34] sm:$0x1] }
  0x4b   : > { %v896_v36 = vrot.slane %v895_v30, 4  ;;  %v900_v37 = vrot.slane %v898_v31, 5  ;;  %v914_v42 = vrot.slane %v912_v38, 5  ;;  %v306_v51 = vshll.u32 %v245_v32, 16  ;;  %v856_v32 = vld [vmem:[#allocation2 + $0x38] sm:$0xf] }
  0x4c   : > { %1775 = vmatmul.msk.bf16.vlgmr.msrb.gmra.mxu2 %vm527_vm10, %v706_v59  ;;  %v910_v41 = vrot.slane %v909_v33, 4  ;;  %v305_v47 = vrot.slane %v303_v35, 7  ;;  %v707_v48 = vpack.c.b16 %v701_v56, %v700_v34  ;;  %v917_v54 = vshrl.u32 %v852_v43, 16 }
  0x4d   : > { %v901_v53 = vsel %vm2028_vm9, %v896_v36, %v900_v37  ;;  %v920_v58 = vshll.u32 %v852_v43, 16  ;;  %v931_v63 = vshrl.u32 %v854_v46, 16  ;;  %v934_v0 = vshll.u32 %v854_v46, 16  ;;  %v643_v36 = vld [vmem:[#allocation2 + $0x30] sm:$0xe] }
  0x4e   : > { %v309_v59 = vrot.slane %v305_v47, 4  ;;  %v915_v61 = vsel %vm2028_vm9, %v910_v41, %v914_v42  ;;  %v308_v3 = vor.u32 %v306_v51, %v305_v47  ;;  %v1787_v4 = vor.u32 %v1866_v40, %v1786_v39  ;;  %v644_v37 = vld [vmem:[#allocation2 + $0x38] sm:$0xe]  ;;  %v1790_v42 = vld [vmem:[#allocation2 + $0x28] sm:$0xf] }
  0x4f   : > { %v1757_v6 = vor.u32 %v1863_v45, %v1756_v44  ;;  %v1770_v7 = vrot.slane %v641_v50, 9  ;;  %v976_v11 = vunpack.c.l.b16 %v901_v53  ;;  %v977_v12 = vunpack.c.l.b16 %v915_v61  ;;  %v1760_v45 = vld [vmem:[#allocation2 + $0x30] sm:$0xf]  ;;  %v1864_v46 = vld [vmem:[#allocation2 + $0x34] sm:$0xf0] }
  0x50   : > { %1763 = vmatmul.msk.bf16.gmra.mxu1 %vm527_vm10, %v1753_v9  ;;  %v379_v5 = vsel %vm1970_vm6, %v309_v59, %v378_v52  ;;  %v682_v9 = vrot.slane %v2058_v49, 5  ;;  %v376_v10 = vsel %vm1962_vm5, %v308_v3, %v375_v60  ;;  %v1771_v16 = vrot.slane %v642_v62, 9  ;;  %v1867_v50 = vld [vmem:[#allocation2 + $0x2c] sm:$0xf0] }
  0x51   : > { %1796 = vmatmul.msk.bf16.vlgmr.msrb.gmra.mxu3 %vm527_vm10, %v1783_v24  ;;  %380 = vst [vmem:[#allocation2 + $0x44] sm:$0x1] %v379_v5  ;;  %v686_v17 = vrot.slane %v2062_v57, 5  ;;  %v919_v18 = vrot.slane %v917_v54, 4  ;;  %v922_v2 = vrot.slane %v920_v58, 5  ;;  %v933_v15 = vrot.slane %v931_v63, 4 }
  0x52   : > { %377 = vst [vmem:[#allocation2 + $0x40] sm:$0xf] %v376_v10  ;;  %v936_v23 = vrot.slane %v934_v0, 5  ;;  %v2170_v24 = vld [vmem:[#allocation2 + $0x2c] sm:$0x1]  ;;  %v983_v49 = vpack.c.b16 %v977_v12, %v976_v11  ;;  %v683_v13 = vsel %vm2105_vm13, %v1770_v7, %v682_v9  ;;  %v940_v1 = vshll.u32 %v2172_v26, 16 }
  0x53   : > { %1801 = vmatmul.msk.bf16.vlgmr.msrb.gmra.mxu0 %vm527_vm10, %v982_v29  ;;  %v687_v27 = vsel %vm2105_vm13, %v1771_v16, %v686_v17  ;;  %v923_v57 = vor.u32 %v922_v2, %v919_v18  ;;  %v926_v55 = vshll.u32 %v2170_v24, 16  ;;  %v702_v30 = vunpack.c.l.b16 %v683_v13  ;;  %v2190_v63 = vld [vmem:[#allocation2 + $0x3c] sm:$0x1]  ;;  %v1038_v0 = vld [vmem:[#allocation2 + $0x8] sm:$0xe] }
  0x54   : > { %v937_v29 = vor.u32 %v936_v23, %v933_v15  ;;  %v703_v31 = vunpack.c.l.b16 %v687_v27  ;;  %v942_v56 = vrot.slane %v940_v1, 5  ;;  %v945_v39 = vshrl.u32 %v856_v32, 16  ;;  %v1039_v3 = vld [vmem:[#allocation2 + $0x10] sm:$0xe]  ;;  %v1245_v15 = vld [vmem:[#allocation2 + $0x18] sm:$0xf] }
  0x55   : > { %v924_v33 = vrot.slane %v923_v57, 4  ;;  %v928_v38 = vrot.slane %v926_v55, 5  ;;  %v948_v40 = vshll.u32 %v856_v32, 16  ;;  %v1772_v51 = vrot.slane %v643_v36, 9  ;;  %v1243_v2 = vld [vmem:[#allocation2 + $0x10] sm:$0xf] }
  0x56   : > { %v938_v34 = vrot.slane %v937_v29, 4  ;;  %v708_v41 = vpack.c.b16 %v703_v31, %v702_v30  ;;  %v690_v52 = vrot.slane %v2067_v8, 5  ;;  %v1773_v53 = vrot.slane %v644_v37, 9  ;;  %v1244_v36 = vld [vmem:[#allocation2 + $0x14] sm:$0x1] }
  0x57   : > { %v929_v43 = vsel %vm2028_vm9, %v924_v33, %v928_v38  ;;  %v694_v54 = vrot.slane %v2072_v19, 5  ;;  %v947_v58 = vrot.slane %v945_v39, 4  ;;  %v950_v59 = vrot.slane %v948_v40, 5 }
  0x58   : > { %v943_v44 = vsel %vm2028_vm9, %v938_v34, %v942_v56  ;;  %v978_v60 = vunpack.c.l.b16 %v929_v43  ;;  %v1761_v62 = vor.u32 %v1864_v46, %v1760_v45  ;;  %v1064_v7 = vrot.slane %v2109_v21, 5  ;;  %v2198_v10 = vld [vmem:[#allocation2 + $0x44] sm:$0x1]  ;;  %v1246_v43 = vld [vmem:[#allocation2 + $0x1c] sm:$0x1] }
  0x59   : > { %v858_v35 = vld [vmem:[#allocation2 + $0x40] sm:$0xf]  ;;  %v979_v61 = vunpack.c.l.b16 %v943_v44  ;;  %v1068_v8 = vrot.slane %v2111_v22, 5  ;;  %v691_v19 = vsel %vm2105_vm13, %v1772_v51, %v690_v52  ;;  %v695_v9 = vsel %vm2105_vm13, %v1773_v53, %v694_v54  ;;  %v1794_v44 = vld [vmem:[#allocation2 + $0x38] sm:$0xf] }
  0x5a   : > { %v959_v47 = vshrl.u32 %v858_v35, 16  ;;  %v951_v11 = vor.u32 %v950_v59, %v947_v58  ;;  %v954_v12 = vshll.u32 %v2190_v63, 16  ;;  %v1805_v16 = vrot.slane %v1038_v0, 9  ;;  %v1868_v45 = vld [vmem:[#allocation2 + $0x3c] sm:$0xf0] }
  0x5b   : > { %v1806_v17 = vrot.slane %v1039_v3, 9  ;;  %v984_v18 = vpack.c.b16 %v979_v61, %v978_v60  ;;  %v968_v22 = vshll.u32 %v2198_v10, 16  ;;  %v704_v23 = vunpack.c.l.b16 %v691_v19  ;;  %v1040_v58 = vld [vmem:[#allocation2 + $0x18] sm:$0xe]  ;;  %v1041_v59 = vld [vmem:[#allocation2 + $0x20] sm:$0xe] }
  0x5c   : > { %1776 = vmatmul.msk.bf16.gmra.mxu2 %vm527_vm10, %v707_v48  ;;  %v962_v48 = vshll.u32 %v858_v35, 16  ;;  %v961_v5 = vrot.slane %v959_v47, 4  ;;  %v952_v13 = vrot.slane %v951_v11, 4  ;;  %v956_v27 = vrot.slane %v954_v12, 5  ;;  %v1249_v11 = vld [vmem:[#allocation2 + $0x28] sm:$0xf] }
  0x5d   : > { %v1065_v57 = vsel %vm2105_vm13, %v1805_v16, %v1064_v7  ;;  %v1069_v55 = vsel %vm2105_vm13, %v1806_v17, %v1068_v8  ;;  %v1260_v29 = vshrl.u32 %v1243_v2, 16  ;;  %v1263_v1 = vshll.u32 %v1243_v2, 16 }
  0x5e   : > { %v1274_v30 = vshrl.u32 %v1245_v15, 16  ;;  %v1277_v31 = vshll.u32 %v1245_v15, 16  ;;  %v970_v33 = vrot.slane %v968_v22, 5  ;;  %v957_v34 = vsel %vm2028_vm9, %v952_v13, %v956_v27  ;;  %v1869_v22 = vld [vmem:[#allocation2 + $0x14] sm:$0xf0] }
  0x5f   : > { %v1096_v56 = vunpack.c.l.b16 %v1065_v57  ;;  %v1097_v35 = vunpack.c.l.b16 %v1069_v55  ;;  %v1262_v37 = vrot.slane %v1260_v29, 4  ;;  %v1265_v39 = vrot.slane %v1263_v1, 5 }
  0x60   : > { %1764 = vmatmul.msk.bf16.gmra.mxu1 %vm527_vm10, %v1757_v6  ;;  %v964_v6 = vrot.slane %v962_v48, 5  ;;  %v1276_v40 = vrot.slane %v1274_v30, 4  ;;  %v980_v46 = vunpack.c.l.b16 %v957_v34  ;;  %v1269_v48 = vshll.u32 %v1244_v36, 16 }
  0x61   : > { %1797 = vmatmul.msk.bf16.gmra.mxu3 %vm527_vm10, %v1787_v4  ;;  %v1791_v4 = vor.u32 %v1867_v50, %v1790_v42  ;;  %v1104_v47 = vpack.c.b16 %v1097_v35, %v1096_v56  ;;  %v1266_v51 = vor.u32 %v1265_v39, %v1262_v37  ;;  %v1283_v53 = vshll.u32 %v1246_v43, 16 }
  0x62   : > { %v965_v21 = vor.u32 %v964_v6, %v961_v5  ;;  %v1795_v54 = vor.u32 %v1868_v45, %v1794_v44  ;;  %v1271_v60 = vrot.slane %v1269_v48, 5  ;;  %v1438_v5 = vld [vmem:[#allocation2 + $0x18] sm:$0xe]  ;;  %v1807_v6 = vrot.slane %v1040_v58, 9  ;;  %v1439_v48 = vld [vmem:[#allocation2 + $0x20] sm:$0xe] }
  0x63   : > { %1802 = vmatmul.msk.bf16.gmra.mxu0 %vm527_vm10, %v983_v49  ;;  %v705_v49 = vunpack.c.l.b16 %v695_v9  ;;  %v1285_v3 = vrot.slane %v1283_v53, 5  ;;  %v1072_v7 = vrot.slane %v2145_v25, 5  ;;  %v1808_v8 = vrot.slane %v1041_v59, 9  ;;  %v1247_v9 = vld [vmem:[#allocation2 + $0x20] sm:$0xf] }
  0x64   : > { %v966_v32 = vrot.slane %v965_v21, 4  ;;  %v1076_v19 = vrot.slane %v2147_v28, 5  ;;  %v1463_v16 = vrot.slane %v1244_v36, 5  ;;  %v1845_v17 = vrot.slane %v1438_v5, 9  ;;  %v1821_v21 = vld [vmem:[#allocation2 + $0x10] sm:$0xf] }
  0x65   : > { %v709_v38 = vpack.c.b16 %v705_v49, %v704_v23  ;;  %v1073_v25 = vsel %vm2105_vm13, %v1807_v6, %v1072_v7  ;;  %v1288_v23 = vshrl.u32 %v1247_v9, 16  ;;  %v1291_v49 = vshll.u32 %v1247_v9, 16  ;;  %v1440_v58 = vld [vmem:[#allocation2 + $0x28] sm:$0xe]  ;;  %v1825_v6 = vld [vmem:[#allocation2 + $0x20] sm:$0xf] }
  0x66   : > { %v971_v42 = vsel %vm2028_vm9, %v966_v32, %v970_v33  ;;  %v1077_v28 = vsel %vm2105_vm13, %v1808_v8, %v1076_v19  ;;  %v1302_v13 = vshrl.u32 %v1249_v11, 16  ;;  %v1305_v27 = vshll.u32 %v1249_v11, 16  ;;  %v1248_v33 = vld [vmem:[#allocation2 + $0x24] sm:$0x1]  ;;  %v1870_v7 = vld [vmem:[#allocation2 + $0x24] sm:$0xf0] }
  0x67   : > { %v981_v50 = vunpack.c.l.b16 %v971_v42  ;;  %v1822_v57 = vor.u32 %v1869_v22, %v1821_v21  ;;  %v1098_v55 = vunpack.c.l.b16 %v1073_v25  ;;  %v1099_v29 = vunpack.c.l.b16 %v1077_v28  ;;  %v1043_v42 = vld [vmem:[#allocation2 + $0x30] sm:$0xe]  ;;  %v1252_v28 = vld [vmem:[#allocation2 + $0x34] sm:$0x1] }
  0x68   : > { %v1290_v34 = vrot.slane %v1288_v23, 4  ;;  %v1293_v56 = vrot.slane %v1291_v49, 5  ;;  %v1304_v35 = vrot.slane %v1302_v13, 4  ;;  %v1307_v36 = vrot.slane %v1305_v27, 5 }
  0x69   : > { %v985_v61 = vpack.c.b16 %v981_v50, %v980_v46  ;;  %v1297_v44 = vshll.u32 %v1248_v33, 16  ;;  %v1084_v53 = vrot.slane %v2172_v26, 5  ;;  %v1471_v5 = vrot.slane %v1248_v33, 5 }
  0x6a   : > { %v1294_v46 = vor.u32 %v1293_v56, %v1290_v34 }
  0x6b   : > { %v1299_v59 = vrot.slane %v1297_v44, 5  ;;  %v1442_v44 = vld [vmem:[#allocation2 + $0x38] sm:$0xe] }
  0x6c   : > { %1777 = vmatmul.msk.bf16.gmra.mxu2 %vm527_vm10, %v708_v41  ;;  %v1279_v41 = vrot.slane %v1277_v31, 5 }
  0x6e   : > { %v1280_v52 = vor.u32 %v1279_v41, %v1276_v40  ;;  %v1105_v40 = vpack.c.b16 %v1099_v29, %v1098_v55  ;;  %v1042_v41 = vld [vmem:[#allocation2 + $0x28] sm:$0xe]  ;;  %v1254_v29 = vld [vmem:[#allocation2 + $0x3c] sm:$0x1] }
  0x6f   : > { %v1809_v50 = vrot.slane %v1042_v41, 9  ;;  %v1339_v34 = vshll.u32 %v1254_v29, 16 }
  0x70   : > { %1765 = vmatmul.msk.bf16.gmra.mxu1 %vm527_vm10, %v1761_v62  ;;  %v1267_v62 = vrot.slane %v1266_v51, 4  ;;  %v1281_v0 = vrot.slane %v1280_v52, 4  ;;  %v1080_v51 = vrot.slane %v2170_v24, 5  ;;  %v1810_v52 = vrot.slane %v1043_v42, 9 }
  0x71   : > { %1798 = vmatmul.msk.bf16.gmra.mxu3 %vm527_vm10, %v1791_v4  ;;  %v1437_v4 = vld [vmem:[#allocation2 + $0x10] sm:$0xe]  ;;  %v1847_v24 = vrot.slane %v1440_v58, 9  ;;  %v1341_v42 = vrot.slane %v1339_v34, 5  ;;  %v1483_v58 = vrot.slane %v1254_v29, 5 }
  0x72   : > { %v1844_v12 = vrot.slane %v1437_v4, 9  ;;  %v1272_v2 = vsel %vm2028_vm9, %v1267_v62, %v1271_v60  ;;  %v1286_v15 = vsel %vm2028_vm9, %v1281_v0, %v1285_v3  ;;  %v1253_v62 = vld [vmem:[#allocation2 + $0x38] sm:$0xf]  ;;  %v1295_v0 = vrot.slane %v1294_v46, 4  ;;  %v1833_v34 = vld [vmem:[#allocation2 + $0x40] sm:$0xf] }
  0x73   : > { %1803 = vmatmul.msk.bf16.gmra.mxu0 %vm527_vm10, %v984_v18  ;;  %v1467_v18 = vrot.slane %v1246_v43, 5  ;;  %v1373_v1 = vunpack.c.l.b16 %v1272_v2  ;;  %v1374_v30 = vunpack.c.l.b16 %v1286_v15  ;;  %v1846_v4 = vrot.slane %v1439_v48, 9 }
  0x74   : > { %v1464_v31 = vsel %vm2105_vm13, %v1844_v12, %v1463_v16  ;;  %v1081_v26 = vsel %vm2105_vm13, %v1809_v50, %v1080_v51  ;;  %v1085_v19 = vsel %vm2105_vm13, %v1810_v52, %v1084_v53  ;;  %v1330_v12 = vshrl.u32 %v1253_v62, 16  ;;  %v1255_v50 = vld [vmem:[#allocation2 + $0x40] sm:$0xf]  ;;  %v1257_v51 = vld [vmem:[#allocation2 + $0x48] sm:$0xf] }
  0x75   : > { %v1468_v32 = vsel %vm2105_vm13, %v1845_v17, %v1467_v18  ;;  %v1495_v37 = vunpack.c.l.b16 %v1464_v31  ;;  %v1381_v43 = vpack.c.b16 %v1374_v30, %v1373_v1  ;;  %v1333_v16 = vshll.u32 %v1253_v62, 16 }
  0x76   : > { %v1496_v39 = vunpack.c.l.b16 %v1468_v32  ;;  %v1826_v17 = vor.u32 %v1870_v7, %v1825_v6  ;;  %v1300_v18 = vsel %vm2028_vm9, %v1295_v0, %v1299_v59  ;;  %v1472_v22 = vsel %vm2105_vm13, %v1846_v4, %v1471_v5  ;;  %v1829_v59 = vld [vmem:[#allocation2 + $0x30] sm:$0xf] }
  0x77   : > { %v1100_v15 = vunpack.c.l.b16 %v1081_v26  ;;  %v1101_v25 = vunpack.c.l.b16 %v1085_v19  ;;  %v1332_v13 = vrot.slane %v1330_v12, 4  ;;  %v1335_v27 = vrot.slane %v1333_v16, 5 }
  0x78   : > { %v1497_v1 = vunpack.c.l.b16 %v1472_v22  ;;  %v1325_v31 = vshll.u32 %v1252_v28, 16  ;;  %v1088_v46 = vrot.slane %v2190_v63, 5  ;;  %v1092_v48 = vrot.slane %v2198_v10, 5 }
  0x79   : > { %v1106_v32 = vpack.c.b16 %v1101_v25, %v1100_v15  ;;  %v1479_v53 = vrot.slane %v1252_v28, 5  ;;  %v1344_v0 = vshrl.u32 %v1255_v50, 16  ;;  %v1358_v4 = vshrl.u32 %v1257_v51, 16 }
  0x7a   : > { %v1361_v5 = vshll.u32 %v1257_v51, 16 }
  0x7b   : > { %v1360_v16 = vrot.slane %v1358_v4, 4 }
  0x7c   : > { %1778 = vmatmul.msk.bf16.gmra.mxu2 %vm527_vm10, %v709_v38  ;;  %v1250_v38 = vld [vmem:[#allocation2 + $0x2c] sm:$0x1] }
  0x7d   : > { %v1311_v45 = vshll.u32 %v1250_v38, 16  ;;  %v1475_v8 = vrot.slane %v1250_v38, 5  ;;  %v1336_v38 = vor.u32 %v1335_v27, %v1332_v13 }
  0x7f   : > { %v1313_v60 = vrot.slane %v1311_v45, 5  ;;  %v1476_v2 = vsel %vm2105_vm13, %v1847_v24, %v1475_v8  ;;  %v1337_v41 = vrot.slane %v1336_v38, 4 }
  0x80   : > { %1814 = vmatmul.msk.bf16.vlgmr.msra.gmra.mxu1 %vm527_vm10, %v1104_v47  ;;  %v1308_v47 = vor.u32 %v1307_v36, %v1304_v35  ;;  %v1498_v30 = vunpack.c.l.b16 %v1476_v2  ;;  %v1044_v35 = vld [vmem:[#allocation2 + $0x38] sm:$0xe]  ;;  %v1045_v36 = vld [vmem:[#allocation2 + $0x40] sm:$0xe] }
  0x81   : > { %1799 = vmatmul.msk.bf16.gmra.mxu3 %vm527_vm10, %v1795_v54  ;;  %v1503_v54 = vpack.c.b16 %v1496_v39, %v1495_v37  ;;  %v1811_v45 = vrot.slane %v1044_v35, 9  ;;  %v1342_v62 = vsel %vm2028_vm9, %v1337_v41, %v1341_v42 }
  0x82   : > { %v1309_v3 = vrot.slane %v1308_v47, 4  ;;  %v1504_v37 = vpack.c.b16 %v1498_v30, %v1497_v1  ;;  %v1812_v47 = vrot.slane %v1045_v36, 9  ;;  %v1378_v26 = vunpack.c.l.b16 %v1342_v62 }
  0x83   : > { %1804 = vmatmul.msk.bf16.gmra.mxu0 %vm527_vm10, %v985_v61  ;;  %v1251_v61 = vld [vmem:[#allocation2 + $0x30] sm:$0xf]  ;;  %v1089_v63 = vsel %vm2105_vm13, %v1811_v45, %v1088_v46 }
  0x84   : > { %v1316_v9 = vshrl.u32 %v1251_v61, 16  ;;  %v1319_v11 = vshll.u32 %v1251_v61, 16  ;;  %v1314_v21 = vsel %vm2028_vm9, %v1309_v3, %v1313_v60  ;;  %v1871_v60 = vld [vmem:[#allocation2 + $0x34] sm:$0xf0]  ;;  %v1093_v10 = vsel %vm2105_vm13, %v1812_v47, %v1092_v48 }
  0x85   : > { %v1376_v55 = vunpack.c.l.b16 %v1314_v21  ;;  %v1347_v3 = vshll.u32 %v1255_v50, 16  ;;  %v1830_v6 = vor.u32 %v1871_v60, %v1829_v59  ;;  %v1102_v7 = vunpack.c.l.b16 %v1089_v63  ;;  %v1258_v21 = vld [vmem:[#allocation2 + $0x4c] sm:$0x1] }
  0x86   : > { %v1318_v23 = vrot.slane %v1316_v9, 4  ;;  %v1321_v49 = vrot.slane %v1319_v11, 5  ;;  %v1103_v24 = vunpack.c.l.b16 %v1093_v10  ;;  %v1346_v11 = vrot.slane %v1344_v0, 4 }
  0x87   : > { %v1349_v12 = vrot.slane %v1347_v3, 5  ;;  %v1367_v27 = vshll.u32 %v1258_v21, 16  ;;  %v1491_v36 = vrot.slane %v1258_v21, 5 }
  0x88   : > { %v1322_v33 = vor.u32 %v1321_v49, %v1318_v23  ;;  %v1107_v15 = vpack.c.b16 %v1103_v24, %v1102_v7 }
  0x89   : > { %v1350_v23 = vor.u32 %v1349_v12, %v1346_v11 }
  0x8a   : > { %v1323_v39 = vrot.slane %v1322_v33, 4 }
  0x8b   : > { %v1351_v29 = vrot.slane %v1350_v23, 4 }
  0x8c   : > { %1835 = vmatmul.msk.bf16.vlgmr.msra.gmra.mxu2 %vm527_vm10, %v1822_v57  ;;  %v1375_v57 = vunpack.c.l.b16 %v1300_v18  ;;  %v1256_v18 = vld [vmem:[#allocation2 + $0x44] sm:$0x1] }
  0x8d   : > { %v1353_v49 = vshll.u32 %v1256_v18, 16  ;;  %v1487_v38 = vrot.slane %v1256_v18, 5 }
  0x8e   : > { %v1382_v56 = vpack.c.b16 %v1376_v55, %v1375_v57  ;;  %v1443_v55 = vld [vmem:[#allocation2 + $0x40] sm:$0xe] }
  0x8f   : > { %v1355_v1 = vrot.slane %v1353_v49, 5  ;;  %v1850_v33 = vrot.slane %v1443_v55, 9 }
  0x90   : > { %1815 = vmatmul.msk.bf16.gmra.mxu1 %vm527_vm10, %v1105_v40  ;;  %v1327_v40 = vrot.slane %v1325_v31, 5  ;;  %v1369_v31 = vrot.slane %v1367_v27, 5 }
  0x91   : > { %1840 = vmatmul.msk.bf16.vlgmr.msra.gmra.mxu3 %vm527_vm10, %v1381_v43  ;;  %v1441_v43 = vld [vmem:[#allocation2 + $0x30] sm:$0xe] }
  0x92   : > { %v1848_v52 = vrot.slane %v1441_v43, 9  ;;  %v1328_v61 = vsel %vm2028_vm9, %v1323_v39, %v1327_v40  ;;  %v1356_v39 = vsel %vm2028_vm9, %v1351_v29, %v1355_v1 }
  0x93   : > { %1853 = vmatmul.msk.bf16.vlgmr.msra.gmra.mxu0 %vm527_vm10, %v1503_v54  ;;  %v1849_v54 = vrot.slane %v1442_v44, 9  ;;  %v1377_v8 = vunpack.c.l.b16 %v1328_v61  ;;  %v1379_v42 = vunpack.c.l.b16 %v1356_v39  ;;  %v1488_v44 = vsel %vm2105_vm13, %v1850_v33, %v1487_v38 }
  0x94   : > { %v1480_v19 = vsel %vm2105_vm13, %v1848_v52, %v1479_v53  ;;  %v1501_v46 = vunpack.c.l.b16 %v1488_v44 }
  0x95   : > { %v1484_v9 = vsel %vm2105_vm13, %v1849_v54, %v1483_v58  ;;  %v1499_v22 = vunpack.c.l.b16 %v1480_v19  ;;  %v1383_v25 = vpack.c.b16 %v1378_v26, %v1377_v8 }
  0x96   : > { %v1500_v2 = vunpack.c.l.b16 %v1484_v9 }
  0x98   : > { %v1505_v57 = vpack.c.b16 %v1500_v2, %v1499_v22 }
  0x9c   : > { %1836 = vmatmul.msk.bf16.gmra.mxu2 %vm527_vm10, %v1826_v17  ;;  %v1363_v17 = vrot.slane %v1361_v5, 5 }
  0x9e   : > { %v1364_v13 = vor.u32 %v1363_v17, %v1360_v16 }
  0xa0   : > { %1816 = vmatmul.msk.bf16.gmra.mxu1 %vm527_vm10, %v1106_v32  ;;  %v1365_v30 = vrot.slane %v1364_v13, 4  ;;  %v1444_v32 = vld [vmem:[#allocation2 + $0x48] sm:$0xe] }
  0xa1   : > { %1841 = vmatmul.msk.bf16.gmra.mxu3 %vm527_vm10, %v1382_v56  ;;  %v1872_v56 = vld [vmem:[#allocation2 + $0x44] sm:$0xf0]  ;;  %v1851_v35 = vrot.slane %v1444_v32, 9 }
  0xa2   : > { %v1370_v40 = vsel %vm2028_vm9, %v1365_v30, %v1369_v31  ;;  %v1834_v41 = vor.u32 %v1872_v56, %v1833_v34 }
  0xa3   : > { %1854 = vmatmul.msk.bf16.gmra.mxu0 %vm527_vm10, %v1504_v37  ;;  %v1380_v43 = vunpack.c.l.b16 %v1370_v40  ;;  %v1492_v45 = vsel %vm2105_vm13, %v1851_v35, %v1491_v36 }
  0xa4   : > { %v1502_v47 = vunpack.c.l.b16 %v1492_v45 }
  0xa5   : > { %v1384_v48 = vpack.c.b16 %v1380_v43, %v1379_v42 }
  0xa6   : > { %v1506_v52 = vpack.c.b16 %v1502_v47, %v1501_v46 }
  0xac   : > { %1837 = vmatmul.msk.bf16.gmra.mxu2 %vm527_vm10, %v1830_v6 }
  0xad   : > { %v2268_v28 = vpop.f32.mrf.mxu1 }
  0xb0   : > { %1817 = vmatmul.msk.bf16.gmra.mxu1 %vm527_vm10, %v1107_v15 }
  0xb1   : > { %1842 = vmatmul.msk.bf16.gmra.mxu3 %vm527_vm10, %v1383_v25 }
  0xb3   : > { %1855 = vmatmul.msk.bf16.gmra.mxu0 %vm527_vm10, %v1505_v57 }
  0xb5   : > { %v2273_v37 = vpop.f32.mrf.mxu1 }
  0xbc   : > { %1838 = vmatmul.msk.bf16.gmra.mxu2 %vm527_vm10, %v1834_v41 }
  0xbd   : > { %v617_v50 = vpop.f32.mrf.mxu1 }
  0xbf   : > { %v2284_v51 = vpop.f32.mrf.mxu2 }
  0xc0   : > { %v553_v20 = vpop.f32.mrf.mxu0 }
  0xc1   : > { %1843 = vmatmul.msk.bf16.gmra.mxu3 %vm527_vm10, %v1384_v48  ;;  %v618_v49 = vadd.f32 %v617_v50, %v553_v20 }
  0xc3   : > { %1856 = vmatmul.msk.bf16.gmra.mxu0 %vm527_vm10, %v1506_v52 }
  0xc4   : > { %v2288_v53 = vpop.f32.mrf.mxu3 }
  0xc5   : > { %v619_v54 = vpop.f32.mrf.mxu1 }
  0xc7   : > { %v2290_v58 = vpop.f32.mrf.mxu2 }
  0xc8   : > { %v555_v14 = vpop.f32.mrf.mxu0 }
  0xc9   : > { %v620_v30 = vadd.f32 %v619_v54, %v555_v14 }
  0xcc   : > { %v2292_v59 = vpop.f32.mrf.mxu3 }
  0xcd   : > { %v622_v60 = vpop.f32.mrf.mxu1 }
  0xce   : > { %v623_v40 = vadd.f32 %v622_v60, %v2268_v28 }
  0xcf   : > { %v734_v61 = vpop.f32.mrf.mxu2 }
  0xd0   : > { %v1010_v62 = vpop.f32.mrf.mxu0  ;;  %v754_v27 = vadd.f32 %v734_v61, %v618_v49 }
  0xd4   : > { %v816_v63 = vpop.f32.mrf.mxu3 }
  0xd5   : > { %v624_v10 = vpop.f32.mrf.mxu1  ;;  %v836_v29 = vadd.f32 %v816_v63, %v754_v27 }
  0xd6   : > { %v625_v28 = vadd.f32 %v624_v10, %v2273_v37 }
  0xd7   : > { %v736_v0 = vpop.f32.mrf.mxu2  ;;  %v1030_v33 = vadd.f32 %v1010_v62, %v836_v29 }
  0xd8   : > { %v1012_v3 = vpop.f32.mrf.mxu0  ;;  %v755_v32 = vadd.f32 %v736_v0, %v620_v30 }
  0xdc   : > { %v818_v4 = vpop.f32.mrf.mxu3 }
  0xdd   : > { %v2294_v5 = vpop.f32.mrf.mxu1  ;;  %v837_v56 = vadd.f32 %v818_v4, %v755_v32 }
  0xdf   : > { %v739_v6 = vpop.f32.mrf.mxu2  ;;  %v1031_v44 = vadd.f32 %v1012_v3, %v837_v56 }
  0xe0   : > { %v1015_v7 = vpop.f32.mrf.mxu0  ;;  %v756_v42 = vadd.f32 %v739_v6, %v623_v40 }
  0xe4   : > { %v821_v24 = vpop.f32.mrf.mxu3 }
  0xe5   : > { %v2296_v8 = vpop.f32.mrf.mxu1  ;;  %v838_v48 = vadd.f32 %v821_v24, %v756_v42 }
  0xe7   : > { %v741_v26 = vpop.f32.mrf.mxu2  ;;  %v1032_v62 = vadd.f32 %v1015_v7, %v838_v48 }
  0xe8   : > { %v2298_v19 = vpop.f32.mrf.mxu0  ;;  %v757_v14 = vadd.f32 %v741_v26, %v625_v28  ;;  %v628_v26 = vadd.f32 %v2294_v5, %v2284_v51 }
  0xec   : > { %v823_v9 = vpop.f32.mrf.mxu3 }
  0xed   : > { %v2300_v11 = vpop.f32.mrf.mxu1  ;;  %v839_v6 = vadd.f32 %v823_v9, %v757_v14 }
  0xef   : > { %v2302_v12 = vpop.f32.mrf.mxu2 }
  0xf0   : > { %v2304_v16 = vpop.f32.mrf.mxu0  ;;  %v758_v9 = vadd.f32 %v2302_v12, %v628_v26  ;;  %v630_v12 = vadd.f32 %v2296_v8, %v2290_v58 }
  0xf4   : > { %v2306_v17 = vpop.f32.mrf.mxu3 }
  0xf5   : > { %v2308_v18 = vpop.f32.mrf.mxu1  ;;  %v840_v51 = vadd.f32 %v2306_v17, %v758_v9 }
  0xf7   : > { %v2310_v21 = vpop.f32.mrf.mxu2 }
  0xf8   : > { %v2312_v22 = vpop.f32.mrf.mxu0 }
  0xfc   : > { %v2314_v2 = vpop.f32.mrf.mxu3 }
  0xfd   : > { %v1132_v15 = vpop.f32.mrf.mxu1 }
  0xfe   : > { %v1152_v38 = vadd.f32 %v1132_v15, %v1030_v33 }
  0xff   : > { %v2316_v25 = vpop.f32.mrf.mxu2 }
 0x100   : > { %v2318_v23 = vpop.f32.mrf.mxu0 }
 0x104   : > { %v2320_v13 = vpop.f32.mrf.mxu3 }
 0x105   : > { %v1134_v55 = vpop.f32.mrf.mxu1 }
 0x106   : > { %v1153_v46 = vadd.f32 %v1134_v55, %v1031_v44 }
 0x107   : > { %v2322_v57 = vpop.f32.mrf.mxu2 }
 0x108   : > { %v2324_v1 = vpop.f32.mrf.mxu0 }
 0x10c   : > { %v2326_v31 = vpop.f32.mrf.mxu3 }
 0x10d   : > { %v1137_v39 = vpop.f32.mrf.mxu1 }
 0x10e   : > { %v1154_v3 = vadd.f32 %v1137_v39, %v1032_v62 }
 0x10f   : > { %v1215_v34 = vpop.f32.mrf.mxu2 }
 0x110   : > { %v1531_v35 = vpop.f32.mrf.mxu0  ;;  %v1235_v36 = vadd.f32 %v1215_v34, %v1152_v38  ;;  %v1033_v38 = vadd.f32 %v2298_v19, %v839_v6  ;;  %v759_v19 = vadd.f32 %v2310_v21, %v630_v12  ;;  %v633_v21 = vadd.f32 %v2300_v11, %v2288_v53 }
 0x112   : > { %v841_v28 = vadd.f32 %v2314_v2, %v759_v19 }
 0x114   : > { %v1409_v41 = vpop.f32.mrf.mxu3 }
 0x115   : > { %v1429_v43 = vadd.f32 %v1409_v41, %v1235_v36  ;;  %v1139_v54 = vpop.f32.mrf.mxu1 }
 0x117   : > { %v1551_v45 = vadd.f32 %v1531_v35, %v1429_v43  ;;  %v1217_v47 = vpop.f32.mrf.mxu2  ;;  %v1155_v35 = vadd.f32 %v1139_v54, %v1033_v38 }
 0x118   : > { %v1533_v52 = vpop.f32.mrf.mxu0  ;;  %v1236_v20 = vadd.f32 %v1217_v47, %v1153_v46  ;;  %v1034_v47 = vadd.f32 %v2304_v16, %v840_v51  ;;  %v760_v16 = vadd.f32 %v2316_v25, %v633_v21  ;;  %v635_v25 = vadd.f32 %v2308_v18, %v2292_v59 }
 0x119   : > { %v1611_v50 = vpack.c.bf16 %v1551_v45, %v1551_v45  ;;  %v1581_v63 = vmul.f32 %v1551_v45, %v1551_v45  ;;  %v1559_v24 = vsel %vm527_vm10, %v1551_v45, 0.0 }
 0x11b   : > { %1619 = vst.msk [vmem:[%s2334_s17] sm:$0xf] %vm216_vm1, %v1611_v50  ;;  %v1589_v7 = vsel %vm527_vm10, %v1581_v63, 0.0 }
 0x11c   : > { %v1411_v60 = vpop.f32.mrf.mxu3 }
 0x11d   : > { %v1430_v61 = vadd.f32 %v1411_v60, %v1236_v20  ;;  %v1142_v34 = vpop.f32.mrf.mxu1 }
 0x11e   : > { %v1156_v50 = vadd.f32 %v1142_v34, %v1034_v47 }
 0x11f   : > { %v1552_v0 = vadd.f32 %v1533_v52, %v1430_v61  ;;  %v1220_v4 = vpop.f32.mrf.mxu2 }
 0x120   : > { %v1536_v37 = vpop.f32.mrf.mxu0  ;;  %v1237_v10 = vadd.f32 %v1220_v4, %v1154_v3  ;;  %v1035_v3 = vadd.f32 %v2312_v22, %v841_v28  ;;  %v761_v22 = vadd.f32 %v2322_v57, %v635_v25 }
 0x121   : > { %v1560_v15 = vsel %vm527_vm10, %v1552_v0, 0.0  ;;  %v1582_v49 = vmul.f32 %v1552_v0, %v1552_v0  ;;  %v1612_v27 = vpack.c.bf16 %v1552_v0, %v1552_v0 }
 0x122   : > { %v1561_v55 = vadd.f32 %v1560_v15, %v1559_v24  ;;  %v842_v15 = vadd.f32 %v2320_v13, %v760_v16  ;;  %v843_v38 = vadd.f32 %v2326_v31, %v761_v22 }
 0x123   : > { %v1590_v29 = vsel %vm527_vm10, %v1582_v49, 0.0  ;;  %1620 = vst.msk [vmem:[%s2334_s17 + $0x4] sm:$0xf] %vm216_vm1, %v1612_v27 }
 0x124   : > { %v1591_v30 = vadd.f32 %v1590_v29, %v1589_v7  ;;  %v1414_v32 = vpop.f32.mrf.mxu3  ;;  %v1036_v9 = vadd.f32 %v2318_v23, %v842_v15 }
 0x125   : > { %v1431_v33 = vadd.f32 %v1414_v32, %v1237_v10  ;;  %v1144_v20 = vpop.f32.mrf.mxu1 }
 0x126   : > { %v1157_v6 = vadd.f32 %v1144_v20, %v1035_v3 }
 0x127   : > { %v1553_v56 = vadd.f32 %v1536_v37, %v1431_v33  ;;  %v1222_v36 = vpop.f32.mrf.mxu2 }
 0x128   : > { %v1538_v41 = vpop.f32.mrf.mxu0  ;;  %v1238_v42 = vadd.f32 %v1222_v36, %v1155_v35 }
 0x129   : > { %v1562_v5 = vsel %vm527_vm10, %v1553_v56, 0.0  ;;  %v1583_v39 = vmul.f32 %v1553_v56, %v1553_v56  ;;  %v1613_v40 = vpack.c.bf16 %v1553_v56, %v1553_v56 }
 0x12a   : > { %v1563_v43 = vadd.f32 %v1562_v5, %v1561_v55 }
 0x12b   : > { %v1592_v44 = vsel %vm527_vm10, %v1583_v39, 0.0  ;;  %1621 = vst.msk [vmem:[%s2334_s17 + $0x8] sm:$0xf] %vm216_vm1, %v1613_v40  ;;  %v1037_v40 = vadd.f32 %v2324_v1, %v843_v38 }
 0x12c   : > { %v1593_v45 = vadd.f32 %v1592_v44, %v1591_v30  ;;  %v1416_v46 = vpop.f32.mrf.mxu3 }
 0x12d   : > { %v1432_v17 = vadd.f32 %v1416_v46, %v1238_v42  ;;  %v1147_v37 = vpop.f32.mrf.mxu1 }
 0x12e   : > { %v1158_v32 = vadd.f32 %v1147_v37, %v1036_v9 }
 0x12f   : > { %v1554_v48 = vadd.f32 %v1538_v41, %v1432_v17  ;;  %v1225_v52 = vpop.f32.mrf.mxu2 }
 0x130   : > { %v1541_v14 = vpop.f32.mrf.mxu0  ;;  %v1239_v60 = vadd.f32 %v1225_v52, %v1156_v50 }
 0x131   : > { %v1564_v58 = vsel %vm527_vm10, %v1554_v48, 0.0  ;;  %v1584_v8 = vmul.f32 %v1554_v48, %v1554_v48  ;;  %v1614_v54 = vpack.c.bf16 %v1554_v48, %v1554_v48 }
 0x132   : > { %v1565_v61 = vadd.f32 %v1564_v58, %v1563_v43 }
 0x133   : > { %v1594_v62 = vsel %vm527_vm10, %v1584_v8, 0.0  ;;  %1622 = vst.msk [vmem:[%s2334_s17 + $0xc] sm:$0xf] %vm216_vm1, %v1614_v54 }
 0x134   : > { %v1595_v63 = vadd.f32 %v1594_v62, %v1593_v45  ;;  %v1419_v0 = vpop.f32.mrf.mxu3 }
 0x135   : > { %v1433_v2 = vadd.f32 %v1419_v0, %v1239_v60  ;;  %v1149_v57 = vpop.f32.mrf.mxu1 }
 0x136   : > { %v1159_v31 = vadd.f32 %v1149_v57, %v1037_v40 }
 0x137   : > { %v1555_v4 = vadd.f32 %v1541_v14, %v1433_v2  ;;  %v1227_v24 = vpop.f32.mrf.mxu2 }
 0x138   : > { %v1240_v27 = vadd.f32 %v1227_v24, %v1157_v6  ;;  %v1543_v26 = vpop.f32.mrf.mxu0 }
 0x139   : > { %v1566_v53 = vsel %vm527_vm10, %v1555_v4, 0.0  ;;  %v1585_v11 = vmul.f32 %v1555_v4, %v1555_v4  ;;  %v1615_v49 = vpack.c.bf16 %v1555_v4, %v1555_v4 }
 0x13a   : > { %v1567_v10 = vadd.f32 %v1566_v53, %v1565_v61 }
 0x13b   : > { %v1596_v55 = vsel %vm527_vm10, %v1585_v11, 0.0  ;;  %1623 = vst.msk [vmem:[%s2334_s17 + $0x10] sm:$0xf] %vm216_vm1, %v1615_v49 }
 0x13c   : > { %v1597_v7 = vadd.f32 %v1596_v55, %v1595_v63  ;;  %v1421_v13 = vpop.f32.mrf.mxu3 }
 0x13d   : > { %v1434_v29 = vadd.f32 %v1421_v13, %v1240_v27 }
 0x13f   : > { %v1556_v30 = vadd.f32 %v1543_v26, %v1434_v29  ;;  %v1230_v33 = vpop.f32.mrf.mxu2 }
 0x140   : > { %v1241_v56 = vadd.f32 %v1230_v33, %v1158_v32  ;;  %v1546_v5 = vpop.f32.mrf.mxu0 }
 0x141   : > { %v1568_v59 = vsel %vm527_vm10, %v1556_v30, 0.0  ;;  %v1586_v18 = vmul.f32 %v1556_v30, %v1556_v30  ;;  %v1616_v34 = vpack.c.bf16 %v1556_v30, %v1556_v30 }
 0x142   : > { %v1569_v35 = vadd.f32 %v1568_v59, %v1567_v10 }
 0x143   : > { %v1598_v36 = vsel %vm527_vm10, %v1586_v18, 0.0  ;;  %1624 = vst.msk [vmem:[%s2334_s17 + $0x14] sm:$0xf] %vm216_vm1, %v1616_v34 }
 0x144   : > { %v1599_v51 = vadd.f32 %v1598_v36, %v1597_v7  ;;  %v1424_v23 = vpop.f32.mrf.mxu3 }
 0x145   : > { %v1435_v39 = vadd.f32 %v1424_v23, %v1241_v56 }
 0x147   : > { %v1557_v41 = vadd.f32 %v1546_v5, %v1435_v39  ;;  %v1232_v42 = vpop.f32.mrf.mxu2 }
 0x148   : > { %v1242_v19 = vadd.f32 %v1232_v42, %v1159_v31  ;;  %v1548_v50 = vpop.f32.mrf.mxu0 }
 0x149   : > { %v1570_v12 = vsel %vm527_vm10, %v1557_v41, 0.0  ;;  %v1587_v43 = vmul.f32 %v1557_v41, %v1557_v41  ;;  %v1617_v44 = vpack.c.bf16 %v1557_v41, %v1557_v41 }
 0x14a   : > { %v1571_v45 = vadd.f32 %v1570_v12, %v1569_v35 }
 0x14b   : > { %v1600_v46 = vsel %vm527_vm10, %v1587_v43, 0.0  ;;  %1625 = vst.msk [vmem:[%s2334_s17 + $0x18] sm:$0xf] %vm216_vm1, %v1617_v44 }
 0x14c   : > { %v1601_v17 = vadd.f32 %v1600_v46, %v1599_v51  ;;  %v1426_v47 = vpop.f32.mrf.mxu3 }
 0x14d   : > { %v1436_v48 = vadd.f32 %v1426_v47, %v1242_v19 }
 0x14f   : > { %v1558_v52 = vadd.f32 %v1548_v50, %v1436_v48 }
 0x151   : > { %v1572_v1 = vsel %vm527_vm10, %v1558_v52, 0.0  ;;  %v1588_v20 = vmul.f32 %v1558_v52, %v1558_v52  ;;  %v1618_v28 = vpack.c.bf16 %v1558_v52, %v1558_v52 }
 0x152   : > { %v1573_v58 = vadd.f32 %v1572_v1, %v1571_v45 }
 0x153   : > { %v1602_v8 = vsel %vm527_vm10, %v1588_v20, 0.0  ;;  %1626 = vst.msk [vmem:[%s2334_s17 + $0x1c] sm:$0xf] %vm216_vm1, %v1618_v28 }
 0x154   : > { %v1574_v54 = vrot.slane %v1573_v58, 4  ;;  %v1603_v14 = vadd.f32 %v1602_v8, %v1601_v17 }
 0x156   : > { %v1575_v60 = vadd.f32 %v1574_v54, %v1573_v58  ;;  %v1604_v21 = vrot.slane %v1603_v14, 4 }
 0x158   : > { %v1576_v61 = vrot.slane %v1575_v60, 2  ;;  %v1605_v62 = vadd.f32 %v1604_v21, %v1603_v14 }
 0x15a   : > { %v1577_v16 = vadd.f32 %v1576_v61, %v1575_v60  ;;  %v1606_v63 = vrot.slane %v1605_v62, 2 }
 0x15c   : > { %v1578_v0 = vrot.slane %v1577_v16, 1  ;;  %v1607_v2 = vadd.f32 %v1606_v63, %v1605_v62 }
 0x15e   : > { %v1579_v3 = vadd.f32 %v1578_v0, %v1577_v16  ;;  %v1608_v4 = vrot.slane %v1607_v2, 1 }
 0x160   : > { %1580 = vst.msk [vmem:[%s211_s20] sm:$0x1] %vm218_vm2, %v1579_v3  ;;  %v1609_v6 = vadd.f32 %v1608_v4, %v1607_v2 }
 0x162   : > { %1610 = vst.msk [vmem:[%s214_s23] sm:$0x1] %vm218_vm2, %v1609_v6 }
 0x163 PF: > { %s15_s15 = sadd.s32 1, %s1891_s15  }
 0x164   : > { %p12_p4 = scmp.ge.s32.totalorder %s15_s15, 4  }
 0x166   :  { %14 = sbr.rel (!%p12_p4) target bundleno = 1 (0x1), region = 92 }

// kernel: _lambda_.81
= control target key start
LH: loop header
LB: loop body
LE: loop exit
PB: predicated region body
PF: predicated region fallthrough
CT: control target
= control target key end

     0   :  { %vm43_vm0 = vcmask 519168   ;;  %s103_s0 = inlined_call_operand.vmem [shape: bf16[16,64], index: 0, kind: input, shape index: {}]   ;;  %s104_s1 = inlined_call_operand.vmem [shape: f32[1,64], index: 1, kind: input, shape index: {}]   ;;  %s105_s2 = inlined_call_operand.vmem [shape: f32[1,64], index: 2, kind: input, shape index: {}]   ;;  %s106_s3 = inlined_call_operand.vmem [shape: bf16[16,64], index: 3, kind: input, shape index: {}]   ;;  %s107_s4 = inlined_call_operand.vmem [shape: bf16[16,64], index: 4, kind: output, shape index: {}]  }
   0x1   :  { %v51_v0 = vld [vmem:[%s103_s0] sm:$0xff]  }
   0x2   :  { %v58_v1 = vld [vmem:[%s104_s1] ss:$0 sm:$0xff]  ;;  %v52_v2 = vunpack.c.l.bf16 %v51_v0  ;;  %v53_v5 = vunpack.c.h.bf16 %v51_v0 }
   0x3   :  { %v59_v3 = vld [vmem:[%s105_s2] ss:$0 sm:$0xff] }
   0x4   :  { %v55_v4 = vld [vmem:[%s106_s3] sm:$0xff]   ;;  %v25_v6 = vmul.f32 %v58_v1, %v52_v2  ;;  %v26_v8 = vmul.f32 %v58_v1, %v53_v5 }
   0x5   :  { %v56_v7 = vunpack.c.l.bf16 %v55_v4  ;;  %v57_v9 = vunpack.c.h.bf16 %v55_v4 }
   0x6   :  { %v31_v10 = vadd.f32 %v59_v3, %v25_v6  ;;  %v32_v11 = vadd.f32 %v59_v3, %v26_v8 }
   0x8   :  { %v37_v12 = vadd.f32 %v56_v7, %v31_v10  ;;  %v38_v13 = vadd.f32 %v57_v9, %v32_v11 }
   0xa   :  { %v39_v14 = vmax.f32 %v37_v12, 0.0  ;;  %v40_v15 = vmax.f32 %v38_v13, 0.0 }
   0xc   :  { %v41_v16 = vpack.c.bf16 %v39_v14, %v39_v14  ;;  %v42_v17 = vpack.c.bf16 %v40_v15, %v40_v15 }
   0xe   :  { %44 = vst.msk [vmem:[%s107_s4] sm:$0xf] %vm43_vm0, %v41_v16 }
   0xf   :  { %45 = vst.msk [vmem:[%s107_s4 + $0x4] sm:$0xf] %vm43_vm0, %v42_v17 }

// kernel: _lambda_.83
= control target key start
LH: loop header
LB: loop body
LE: loop exit
PB: predicated region body
PF: predicated region fallthrough
CT: control target
= control target key end

     0   :  { %vm28_vm0 = vcmask 257024   ;;  %s68_s0 = inlined_call_operand.vmem [shape: bf16[8,32], index: 0, kind: input, shape index: {}]   ;;  %s69_s1 = inlined_call_operand.vmem [shape: f32[1,32], index: 1, kind: input, shape index: {}]   ;;  %s70_s2 = inlined_call_operand.vmem [shape: f32[1,32], index: 2, kind: input, shape index: {}]   ;;  %s71_s3 = inlined_call_operand.vmem [shape: bf16[8,32], index: 3, kind: output, shape index: {}]  }
   0x1   :  { %v14_v0 = vld [vmem:[%s68_s0] sm:$0xf] }
   0x2   :  { %v34_v1 = vld [vmem:[%s69_s1] ss:$0 sm:$0xff]  ;;  %v15_v2 = vunpack.c.l.bf16 %v14_v0 }
   0x3   :  { %v35_v3 = vld [vmem:[%s70_s2] ss:$0 sm:$0xff] }
   0x4   :  { %v20_v4 = vmul.f32 %v34_v1, %v15_v2 }
   0x6   :  { %v25_v5 = vadd.f32 %v35_v3, %v20_v4 }
   0x8   :  { %v26_v6 = vmax.f32 %v25_v5, 0.0 }
   0xa   :  { %v27_v7 = vpack.c.bf16 %v26_v6, %v26_v6 }
   0xc   :  { %29 = vst.msk [vmem:[%s71_s3] sm:$0xf] %vm28_vm0, %v27_v7 }

// kernel: _lambda_.82
= control target key start
LH: loop header
LB: loop body
LE: loop exit
PB: predicated region body
PF: predicated region fallthrough
CT: control target
= control target key end

     0   :  { %s1289_s15 = smov 0   ;;  %s1509_s0 = inlined_call_operand.vmem [shape: bf16[2,4,4,8], index: 0, kind: input, shape index: {}]   ;;  %s1510_s1 = inlined_call_operand.vmem [shape: bf16[9,8,8], index: 1, kind: input, shape index: {}]   ;;  %s1511_s2 = inlined_call_operand.vmem [shape: bf16[2,16,8], index: 2, kind: output, shape index: {0}]   ;;  %s1512_s3 = inlined_call_operand.vmem [shape: f32[2,1,8], index: 3, kind: output, shape index: {1}]   ;;  %s1513_s4 = inlined_call_operand.vmem [shape: f32[2,1,8], index: 4, kind: output, shape index: {2}]  }
   0x1 LB: > { %s1192_s16 = sadd.s32 4294967295, %s1261_s15   ;;  %p1196_p0 = scmp.ge.s32.totalorder %s1261_s15, 1  ;;  %s1261_s15 = sphi %s1289_s15, %s15_s15  }
   0x2   : > { %p167_p1 = scmp.lt.s32.totalorder %s1261_s15, 3 }
   0x4   : > { %p168_p2 = pnand %p1196_p0, %p167_p1 }
   0x5   : > { %p199_p3 = scmp.lt.s32.totalorder (!%p168_p2), %s1192_s16, 1 }
   0x6   : > { %171 = sbr.rel (%p168_p2) target bundleno = 307 (0x133), region = 28 }
   0xb   : > { %v1201_v0 = vld [vmem:[%s1510_s1 + $0x4] sm:$0xf]  ;;  %vm405_vm0 = vcmask 1043456   ;;  %vm216_vm1 = vcmask 59392   ;;  %v1263_v2 = vmov 0   ;;  %s1523_s16 = smov (!%p199_p3, %s1192_s16), 1 }
   0xc   : > { %v407_v1 = vsel %vm405_vm0, %v1201_v0, 0  ;;  %217 = vst.msk [vmem:[#allocation2] sm:$0x7] %vm216_vm1, %v1263_v2  ;;  %s1244_s19 = sshll.u32 %s1523_s16, 3  ;;  %vm303_vm2 = vcmask 1041408   ;;  %vm307_vm3 = vcmask 1043458   ;;  %s211_s20 = scalar_lea.vmem %s1512_s3, %s1523_s16 }
   0xd   : > { %416 = vmatpush.bf16.msra.mxu0 %v407_v1  ;;  %218 = vst.msk [vmem:[#allocation2 + $0x4] sm:$0x7] %vm216_vm1, %v1263_v2  ;;  %s1313_s22 = scalar_lea.vmem %s1509_s0, %s1244_s19  ;;  %vm329_vm4 = vsmask.f32 1280  ;;  %vm330_vm5 = vsmask.f32 3336  ;;  %s208_s17 = scalar_lea.vmem %s1511_s2, %s1244_s19 }
   0xe   : > { %219 = vst.msk [vmem:[#allocation2 + $0x8] sm:$0x7] %vm216_vm1, %v1263_v2  ;;  %v223_v3 = vld [vmem:[%s1313_s22] sm:$0x3]  ;;  %v224_v4 = vld [vmem:[%s1313_s22 + $0x2] sm:$0x3]  ;;  %vm331_vm6 = vmor %vm329_vm4, %vm330_vm5  ;;  %s214_s23 = scalar_lea.vmem %s1513_s4, %s1523_s16 }
   0xf   : > { %220 = vst.msk [vmem:[#allocation2 + $0xc] sm:$0x7] %vm216_vm1, %v1263_v2  ;;  %v225_v5 = vld [vmem:[%s1313_s22 + $0x4] sm:$0x3]  ;;  %vm332_vm7 = vsmask.f32 5392 }
  0x10   : > { %221 = vst.msk [vmem:[#allocation2 + $0x10] sm:$0x7] %vm216_vm1, %v1263_v2  ;;  %vm272_vm8 = vsmask.f32 2306  ;;  %vm334_vm9 = vsmask.f32 7448  ;;  %vm1322_vm10 = vmor %vm331_vm6, %vm332_vm7 }
  0x11   : > { %228 = vst [vmem:[#allocation1] ss:$2 sm:$0xff] %v223_v3  ;;  %vm1329_vm11 = vmor %vm1322_vm10, %vm334_vm9  ;;  %v226_v30 = vld [vmem:[%s1313_s22 + $0x6] sm:$0x3]  ;;  %v1212_v44 = vld [vmem:[%s1510_s1 + $0x8] sm:$0xf] }
  0x12   : > { %232 = vst [vmem:[#allocation1 + $0x10] ss:$2 sm:$0xff] %v224_v4  ;;  %vm1336_vm12 = vmand %vm216_vm1, %vm272_vm8  ;;  %v534_v46 = vsel %vm405_vm0, %v1212_v44, 0  ;;  %vm494_vm13 = vcmask 1040384   ;;  %vm495_vm14 = vcmask 1042434   ;;  %vm402_vm15 = vcmask 64512  }
  0x13   : > { %v291_v6 = vld [vmem:[#allocation2] sm:$0x7]  ;;  %236 = vst [vmem:[#allocation1 + $0x20] ss:$2 sm:$0xff] %v225_v5  ;;  %543 = vmatpush.bf16.msra.mxu2 %v534_v46  ;;  %vm497_vm4 = vcmask 1044484   ;;  %vm499_vm6 = vcmask 1046534  }
  0x14   : > { %v299_v7 = vrot.slane %v291_v6, 2  ;;  %222 = vst.msk [vmem:[#allocation2 + $0x14] sm:$0x7] %vm216_vm1, %v1263_v2  ;;  %v274_v33 = vld [vmem:[#allocation2 + $0x4] sm:$0x7]  ;;  %vm496_vm1 = vmor %vm494_vm13, %vm495_vm14 }
  0x15   : > { %240 = vst [vmem:[#allocation1 + $0x30] ss:$2 sm:$0xff] %v226_v30  ;;  %v277_v37 = vld [vmem:[#allocation2 + $0x8] sm:$0x7]  ;;  %vm498_vm5 = vmor %vm496_vm1, %vm497_vm4 }
  0x16   : > { %v306_v8 = vsel %vm303_vm2, %v291_v6, %v299_v7  ;;  %v308_v9 = vsel %vm307_vm3, %v291_v6, %v299_v7  ;;  %v280_v39 = vld [vmem:[#allocation2 + $0xc] sm:$0x7]  ;;  %vm1387_vm7 = vmor %vm498_vm5, %vm499_vm6 }
  0x17   : > { %v310_v10 = vrot.slane %v308_v9, 2  ;;  %v336_v11 = vshrl.u32 %v306_v8, 16  ;;  %v339_v12 = vshll.u32 %v306_v8, 16 }
  0x18   : > { %v229_v13 = vld.sshfl [vmem:[#allocation1] sm:$0xff pattern:$0x75643120] }
  0x19   : > { %v338_v15 = vrot.slane %v336_v11, 6  ;;  %v341_v16 = vrot.slane %v339_v12, 7  ;;  %v345_v17 = vshll.u32 %v310_v10, 16  ;;  %v233_v18 = vld.sshfl [vmem:[#allocation1 + $0x10] sm:$0xff pattern:$0x75643120] }
  0x1a   : > { %v242_v19 = vshrl.u32 %v229_v13, 16  ;;  %v245_v20 = vshll.u32 %v229_v13, 16  ;;  %v237_v21 = vld.sshfl [vmem:[#allocation1 + $0x20] sm:$0xff pattern:$0x75643120]  ;;  %v248_v22 = vshrl.u32 %v233_v18, 16 }
  0x1b   : > { %v251_v23 = vshll.u32 %v233_v18, 16  ;;  %v342_v24 = vor.u32 %v341_v16, %v338_v15  ;;  %v347_v25 = vrot.slane %v345_v17, 7  ;;  %v254_v27 = vshrl.u32 %v237_v21, 16 }
  0x1c   : > { %v244_v26 = vrot.slane %v242_v19, 7  ;;  %v257_v28 = vshll.u32 %v237_v21, 16  ;;  %v250_v31 = vrot.slane %v248_v22, 7  ;;  %v241_v47 = vld.sshfl [vmem:[#allocation1 + $0x30] sm:$0xff pattern:$0x75643120] }
  0x1d   : > { %v343_v34 = vrot.slane %v342_v24, 2  ;;  %v256_v36 = vrot.slane %v254_v27, 7  ;;  %v260_v53 = vshrl.u32 %v241_v47, 16  ;;  %v263_v57 = vshll.u32 %v241_v47, 16 }
  0x1e   : > { %v247_v35 = vor.u32 %v245_v20, %v244_v26  ;;  %v253_v38 = vor.u32 %v251_v23, %v250_v31  ;;  %v290_v31 = vld [vmem:[%s1510_s1] sm:$0xf] }
  0x1f   : > { %v348_v40 = vsel %vm1329_vm11, %v343_v34, %v347_v25  ;;  %v259_v41 = vor.u32 %v257_v28, %v256_v36  ;;  %v262_v13 = vrot.slane %v260_v53, 7  ;;  %v283_v28 = vld [vmem:[#allocation2 + $0x10] sm:$0x7]  ;;  %v1214_v34 = vld [vmem:[%s1510_s1 + $0xc] sm:$0xf] }
  0x20   : > { %v275_v42 = vsel %vm1336_vm12, %v247_v35, %v274_v33  ;;  %391 = vst [vmem:[#allocation1] ss:$4 sm:$0xff] %v348_v40  ;;  %v278_v43 = vsel %vm1336_vm12, %v253_v38, %v277_v37  ;;  %v438_v35 = vsel %vm405_vm0, %v290_v31, 0  ;;  %v573_v36 = vsel %vm405_vm0, %v1214_v34, 0  ;;  %v454_v38 = vld [vmem:[#allocation2] sm:$0x6] }
  0x21   : > { %276 = vst [vmem:[#allocation2 + $0x4] sm:$0x7] %v275_v42  ;;  %v281_v45 = vsel %vm1336_vm12, %v259_v41, %v280_v39  ;;  %v265_v26 = vor.u32 %v263_v57, %v262_v13  ;;  %447 = vmatpush.bf16.msra.mxu1 %v438_v35  ;;  %582 = vmatpush.bf16.msra.mxu3 %v573_v36  ;;  %v286_v41 = vld [vmem:[#allocation2] sm:$0x3] }
  0x22   : > { %279 = vst [vmem:[#allocation2 + $0x8] sm:$0x7] %v278_v43  ;;  %v462_v43 = vrot.slane %v454_v38, 2 }
  0x23   : > { %282 = vst [vmem:[#allocation2 + $0xc] sm:$0x7] %v281_v45  ;;  %v284_v37 = vsel %vm1336_vm12, %v265_v26, %v283_v28 }
  0x24   : > { %285 = vst [vmem:[#allocation2 + $0x10] sm:$0x7] %v284_v37 }
  0x28   : > { %v292_v48 = vld [vmem:[#allocation2 + $0x4] sm:$0x7] }
  0x29   : > { %v293_v49 = vld [vmem:[#allocation2 + $0x8] sm:$0x7]  ;;  %v300_v50 = vrot.slane %v292_v48, 2  ;;  %v455_v39 = vld [vmem:[#allocation2 + $0x4] sm:$0x6] }
  0x2a   : > { %v294_v51 = vld [vmem:[#allocation2 + $0xc] sm:$0x7]  ;;  %v301_v52 = vrot.slane %v293_v49, 2  ;;  %v456_v40 = vld [vmem:[#allocation2 + $0x8] sm:$0x6]  ;;  %v463_v46 = vrot.slane %v455_v39, 2 }
  0x2b   : > { %v302_v54 = vrot.slane %v294_v51, 2  ;;  %v313_v55 = vsel %vm303_vm2, %v292_v48, %v300_v50  ;;  %v314_v56 = vsel %vm307_vm3, %v292_v48, %v300_v50  ;;  %v457_v42 = vld [vmem:[#allocation2 + $0xc] sm:$0x6]  ;;  %v287_v44 = vld [vmem:[#allocation2 + $0x4] sm:$0x3]  ;;  %v464_v48 = vrot.slane %v456_v40, 2 }
  0x2c   : > { %v316_v58 = vrot.slane %v314_v56, 2  ;;  %v319_v59 = vsel %vm303_vm2, %v293_v49, %v301_v52  ;;  %v320_v60 = vsel %vm307_vm3, %v293_v49, %v301_v52  ;;  %v349_v61 = vshrl.u32 %v313_v55, 16  ;;  %v288_v45 = vld [vmem:[#allocation2 + $0x8] sm:$0x3]  ;;  %v289_v32 = vld [vmem:[#allocation2 + $0xc] sm:$0x3] }
  0x2d   : > { %v322_v62 = vrot.slane %v320_v60, 2  ;;  %v325_v63 = vsel %vm303_vm2, %v294_v51, %v302_v54  ;;  %v326_v0 = vsel %vm307_vm3, %v294_v51, %v302_v54  ;;  %v352_v1 = vshll.u32 %v313_v55, 16  ;;  %v1216_v52 = vld [vmem:[%s1510_s1 + $0x10] sm:$0xf] }
  0x2e   : > { %v328_v2 = vrot.slane %v326_v0, 2  ;;  %v351_v3 = vrot.slane %v349_v61, 6  ;;  %v358_v4 = vshll.u32 %v316_v58, 16  ;;  %v362_v5 = vshrl.u32 %v319_v59, 16 }
  0x2f   : > { %v354_v6 = vrot.slane %v352_v1, 7  ;;  %v365_v7 = vshll.u32 %v319_v59, 16  ;;  %v371_v8 = vshll.u32 %v322_v62, 16  ;;  %v375_v9 = vshrl.u32 %v325_v63, 16  ;;  %v591_v62 = vld [vmem:[#allocation2 + $0x4] sm:$0x7] }
  0x30   : > { %v364_v10 = vrot.slane %v362_v5, 6  ;;  %v378_v11 = vshll.u32 %v325_v63, 16  ;;  %v384_v12 = vshll.u32 %v328_v2, 16  ;;  %v360_v15 = vrot.slane %v358_v4, 7  ;;  %v592_v2 = vld [vmem:[#allocation2 + $0x8] sm:$0x7] }
  0x31   : > { %v355_v14 = vor.u32 %v354_v6, %v351_v3  ;;  %v367_v16 = vrot.slane %v365_v7, 7  ;;  %v377_v17 = vrot.slane %v375_v9, 6  ;;  %v373_v21 = vrot.slane %v371_v8, 7  ;;  %v593_v5 = vld [vmem:[#allocation2 + $0xc] sm:$0x7] }
  0x32   : > { %v380_v18 = vrot.slane %v378_v11, 7  ;;  %v386_v23 = vrot.slane %v384_v12, 7  ;;  %v465_v49 = vrot.slane %v457_v42, 2  ;;  %v468_v50 = vsel %vm303_vm2, %v454_v38, %v462_v43  ;;  %v594_v8 = vld [vmem:[#allocation2 + $0x10] sm:$0x7] }
  0x33   : > { %v356_v19 = vrot.slane %v355_v14, 2  ;;  %v368_v20 = vor.u32 %v367_v16, %v364_v10  ;;  %v470_v51 = vsel %vm307_vm3, %v454_v38, %v462_v43  ;;  %v475_v53 = vsel %vm303_vm2, %v455_v39, %v463_v46 }
  0x34   : > { %v381_v22 = vor.u32 %v380_v18, %v377_v17  ;;  %v477_v54 = vsel %vm307_vm3, %v455_v39, %v463_v46  ;;  %v696_v55 = vsel %vm405_vm0, %v1216_v52, 0  ;;  %v482_v56 = vsel %vm303_vm2, %v456_v40, %v464_v48  ;;  %v552_v39 = vld [vmem:[#allocation2 + $0x4] sm:$0x3] }
  0x35   : > { %v361_v24 = vsel %vm1329_vm11, %v356_v19, %v360_v15  ;;  %v369_v25 = vrot.slane %v368_v20, 2  ;;  %v484_v57 = vsel %vm307_vm3, %v456_v40, %v464_v48  ;;  %705 = vmatpush.bf16.msrb.mxu0 %v696_v55  ;;  %v489_v58 = vsel %vm303_vm2, %v457_v42, %v465_v49  ;;  %v1226_v20 = vld [vmem:[%s1510_s1 + $0x14] sm:$0xf]  ;;  %v555_v55 = vld [vmem:[#allocation2 + $0x10] sm:$0x3] }
  0x36   : > { %v382_v27 = vrot.slane %v381_v22, 2  ;;  %394 = vst [vmem:[#allocation1 + $0x1] ss:$4 sm:$0xff] %v361_v24  ;;  %v491_v59 = vsel %vm307_vm3, %v457_v42, %v465_v49  ;;  %v1204_v60 = vrot.slane %v468_v50, 9  ;;  %v1205_v61 = vrot.slane %v470_v51, 9 }
  0x37   : > { %v374_v30 = vsel %vm1329_vm11, %v369_v25, %v373_v21  ;;  %v1206_v0 = vrot.slane %v475_v53, 9  ;;  %v1207_v1 = vrot.slane %v477_v54, 9  ;;  %v1208_v3 = vrot.slane %v482_v56, 9  ;;  %v1228_v21 = vld [vmem:[%s1510_s1 + $0x18] sm:$0xf] }
  0x38   : > { %v387_v33 = vsel %vm1329_vm11, %v382_v27, %v386_v23  ;;  %397 = vst [vmem:[#allocation1 + $0x2] ss:$4 sm:$0xff] %v374_v30  ;;  %v1209_v4 = vrot.slane %v484_v57, 9  ;;  %v1210_v6 = vrot.slane %v489_v58, 9  ;;  %v1211_v7 = vrot.slane %v491_v59, 9 }
  0x39   : > { %400 = vst [vmem:[#allocation1 + $0x3] ss:$4 sm:$0xff] %v387_v33  ;;  %v599_v9 = vrot.slane %v591_v62, 2  ;;  %v504_v10 = vsel %vm1387_vm7, %v1204_v60, %v1205_v61  ;;  %v600_v11 = vrot.slane %v592_v2, 2  ;;  %v508_v12 = vsel %vm1387_vm7, %v1206_v0, %v1207_v1  ;;  %v554_v48 = vld [vmem:[#allocation2 + $0xc] sm:$0x3] }
  0x3a   : > { %v601_v13 = vrot.slane %v593_v5, 2  ;;  %v512_v15 = vsel %vm1387_vm7, %v1208_v3, %v1209_v4  ;;  %v602_v16 = vrot.slane %v594_v8, 2  ;;  %v516_v17 = vsel %vm1387_vm7, %v1210_v6, %v1211_v7  ;;  %v1230_v60 = vld [vmem:[%s1510_s1 + $0x1c] sm:$0xf]  ;;  %v714_v7 = vld [vmem:[#allocation2 + $0x4] sm:$0x6] }
  0x3b   : > { %v605_v18 = vsel %vm303_vm2, %v591_v62, %v599_v9  ;;  %v611_v19 = vsel %vm303_vm2, %v592_v2, %v600_v11  ;;  %v787_v23 = vsel %vm405_vm0, %v1226_v20, 0  ;;  %v827_v24 = vsel %vm405_vm0, %v1228_v21, 0 }
  0x3c   : > { %v617_v22 = vsel %vm303_vm2, %v593_v5, %v601_v13  ;;  %v623_v25 = vsel %vm303_vm2, %v594_v8, %v602_v16  ;;  %v627_v26 = vshrl.u32 %v605_v18, 16  ;;  %v630_v27 = vshll.u32 %v605_v18, 16  ;;  %796 = vmatpush.bf16.msrb.mxu1 %v787_v23  ;;  %836 = vmatpush.bf16.msrb.mxu2 %v827_v24 }
  0x3d   : > { %v606_v28 = vsel %vm307_vm3, %v591_v62, %v599_v9  ;;  %v640_v30 = vshrl.u32 %v611_v19, 16  ;;  %v643_v31 = vshll.u32 %v611_v19, 16  ;;  %v612_v33 = vsel %vm307_vm3, %v592_v2, %v600_v11 }
  0x3e   : > { %v653_v34 = vshrl.u32 %v617_v22, 16  ;;  %v656_v35 = vshll.u32 %v617_v22, 16  ;;  %v618_v36 = vsel %vm307_vm3, %v593_v5, %v601_v13  ;;  %v666_v37 = vshrl.u32 %v623_v25, 16  ;;  %v716_v13 = vld [vmem:[#allocation2 + $0xc] sm:$0x6] }
  0x3f   : > { %v669_v38 = vshll.u32 %v623_v25, 16  ;;  %v608_v40 = vrot.slane %v606_v28, 2  ;;  %v629_v42 = vrot.slane %v627_v26, 6  ;;  %v632_v43 = vrot.slane %v630_v27, 7  ;;  %v1240_v26 = vld [vmem:[%s1510_s1 + $0x20] sm:$0xf] }
  0x40   : > { %v401_v47 = vld.sshfl [vmem:[#allocation1] sm:$0xff pattern:$0x73625140]  ;;  %v642_v46 = vrot.slane %v640_v30, 6  ;;  %v655_v49 = vrot.slane %v653_v34, 6  ;;  %v658_v50 = vrot.slane %v656_v35, 7 }
  0x41   : > { %1202 = vmatmul.msk.bf16.vlgmr.msra.gmra.mxu0 %vm402_vm15, %v401_v47  ;;  %424 = vst [vmem:[#allocation1] ss:$4 sm:$0xff] %v286_v41  ;;  %v624_v41 = vsel %vm307_vm3, %v594_v8, %v602_v16  ;;  %v645_v47 = vrot.slane %v643_v31, 7  ;;  %v668_v53 = vrot.slane %v666_v37, 6  ;;  %v671_v54 = vrot.slane %v669_v38, 7 }
  0x42   : > { %427 = vst [vmem:[#allocation1 + $0x1] ss:$4 sm:$0xff] %v287_v44  ;;  %v553_v44 = vld [vmem:[#allocation2 + $0x8] sm:$0x3]  ;;  %v626_v52 = vrot.slane %v624_v41, 2  ;;  %v633_v56 = vor.u32 %v632_v43, %v629_v42  ;;  %v636_v57 = vshll.u32 %v608_v40, 16  ;;  %v659_v61 = vor.u32 %v658_v50, %v655_v49 }
  0x43   : > { %430 = vst [vmem:[#allocation1 + $0x2] ss:$4 sm:$0xff] %v288_v45  ;;  %v614_v45 = vrot.slane %v612_v33, 2  ;;  %v646_v58 = vor.u32 %v645_v47, %v642_v46  ;;  %v950_v0 = vsel %vm405_vm0, %v1230_v60, 0  ;;  %v672_v1 = vor.u32 %v671_v54, %v668_v53  ;;  %v845_v38 = vld [vmem:[#allocation2 + $0x8] sm:$0x7] }
  0x44   : > { %433 = vst [vmem:[#allocation1 + $0x3] ss:$4 sm:$0xff] %v289_v32  ;;  %v620_v32 = vrot.slane %v618_v36, 2  ;;  %v675_v2 = vshll.u32 %v626_v52, 16  ;;  %959 = vmatpush.bf16.msrb.mxu3 %v950_v0  ;;  %v634_v3 = vrot.slane %v633_v56, 2  ;;  %v638_v4 = vrot.slane %v636_v57, 7 }
  0x45   : > { %v649_v59 = vshll.u32 %v614_v45, 16  ;;  %v647_v5 = vrot.slane %v646_v58, 2  ;;  %v660_v8 = vrot.slane %v659_v61, 2  ;;  %v673_v11 = vrot.slane %v672_v1, 2  ;;  %v846_v41 = vld [vmem:[#allocation2 + $0xc] sm:$0x7] }
  0x46   : > { %v662_v62 = vshll.u32 %v620_v32, 16  ;;  %v722_v16 = vrot.slane %v714_v7, 2  ;;  %v724_v21 = vrot.slane %v716_v13, 2  ;;  %v1041_v30 = vsel %vm405_vm0, %v1240_v26, 0  ;;  %v848_v47 = vld [vmem:[#allocation2 + $0x14] sm:$0x7] }
  0x47   : > { %v651_v6 = vrot.slane %v649_v59, 7  ;;  %1050 = vmatpush.bf16.msra.mxu0 %v1041_v30  ;;  %v854_v49 = vrot.slane %v846_v41, 2  ;;  %v856_v54 = vrot.slane %v848_v47, 2  ;;  %vm1084_vm0 = vcmask 60416  }
  0x48   : > { %v664_v9 = vrot.slane %v662_v62, 7  ;;  %v728_v24 = vsel %vm303_vm2, %v714_v7, %v722_v16  ;;  %v730_v25 = vsel %vm307_vm3, %v714_v7, %v722_v16  ;;  %v742_v31 = vsel %vm303_vm2, %v716_v13, %v724_v21 }
  0x49   : > { %v744_v33 = vsel %vm307_vm3, %v716_v13, %v724_v21  ;;  %v1218_v36 = vrot.slane %v728_v24, 9  ;;  %v1219_v37 = vrot.slane %v730_v25, 9  ;;  %v1222_v42 = vrot.slane %v742_v31, 9  ;;  %v807_v13 = vld [vmem:[#allocation2 + $0xc] sm:$0x3] }
  0x4a   : > { %v665_v20 = vsel %vm1329_vm11, %v660_v8, %v664_v9  ;;  %v1223_v43 = vrot.slane %v744_v33, 9  ;;  %v865_v57 = vsel %vm303_vm2, %v846_v41, %v854_v49  ;;  %v877_v59 = vsel %vm303_vm2, %v848_v47, %v856_v54  ;;  %v806_v8 = vld [vmem:[#allocation2 + $0x8] sm:$0x3]  ;;  %v809_v25 = vld [vmem:[#allocation2 + $0x14] sm:$0x3] }
  0x4b   : > { %v434_v14 = vld.sshfl [vmem:[#allocation1] sm:$0xff pattern:$0x73625140]  ;;  %v757_v32 = vsel %vm1387_vm7, %v1218_v36, %v1219_v37  ;;  %v894_v0 = vshrl.u32 %v865_v57, 16  ;;  %v897_v1 = vshll.u32 %v865_v57, 16  ;;  %v923_v7 = vshll.u32 %v877_v59, 16 }
  0x4c   : > { %520 = vst [vmem:[#allocation1] ss:$4 sm:$0xff] %v504_v10  ;;  %1203 = vmatmul.msk.bf16.vlgmr.msra.gmra.mxu1 %vm402_vm15, %v434_v14  ;;  %v715_v10 = vld [vmem:[#allocation2 + $0x8] sm:$0x6]  ;;  %v639_v14 = vsel %vm1329_vm11, %v634_v3, %v638_v4  ;;  %v765_v53 = vsel %vm1387_vm7, %v1222_v42, %v1223_v43  ;;  %v969_v43 = vld [vmem:[#allocation2 + $0xc] sm:$0x6] }
  0x4d   : > { %523 = vst [vmem:[#allocation1 + $0x1] ss:$4 sm:$0xff] %v508_v12  ;;  %v677_v12 = vrot.slane %v675_v2, 7  ;;  %v723_v18 = vrot.slane %v715_v10, 2  ;;  %v866_v2 = vsel %vm307_vm3, %v846_v41, %v854_v49  ;;  %v899_v16 = vrot.slane %v897_v1, 7 }
  0x4e   : > { %526 = vst [vmem:[#allocation1 + $0x2] ss:$4 sm:$0xff] %v512_v15  ;;  %v717_v15 = vld [vmem:[#allocation2 + $0x10] sm:$0x6]  ;;  %v925_v24 = vrot.slane %v923_v7, 7 }
  0x4f   : > { %529 = vst [vmem:[#allocation1 + $0x3] ss:$4 sm:$0xff] %v516_v17  ;;  %v652_v17 = vsel %vm1329_vm11, %v647_v5, %v651_v6  ;;  %v678_v22 = vsel %vm1329_vm11, %v673_v11, %v677_v12  ;;  %v725_v23 = vrot.slane %v717_v15, 2  ;;  %v735_v27 = vsel %vm303_vm2, %v715_v10, %v723_v18 }
  0x50   : > { %v737_v28 = vsel %vm307_vm3, %v715_v10, %v723_v18  ;;  %v920_v6 = vshrl.u32 %v877_v59, 16  ;;  %v878_v10 = vsel %vm307_vm3, %v848_v47, %v856_v54 }
  0x51   : > { %v749_v34 = vsel %vm303_vm2, %v717_v15, %v725_v23  ;;  %v751_v35 = vsel %vm307_vm3, %v717_v15, %v725_v23  ;;  %v1221_v40 = vrot.slane %v737_v28, 9  ;;  %v896_v15 = vrot.slane %v894_v0, 6 }
  0x52   : > { %v1224_v45 = vrot.slane %v749_v34, 9  ;;  %v1225_v46 = vrot.slane %v751_v35, 9  ;;  %v922_v23 = vrot.slane %v920_v6, 6 }
  0x53   : > { %v900_v28 = vor.u32 %v899_v16, %v896_v15 }
  0x54   : > { %v926_v34 = vor.u32 %v925_v24, %v922_v23 }
  0x56   : > { %v530_v51 = vld.sshfl [vmem:[#allocation1] sm:$0xff pattern:$0x73625140] }
  0x57   : > { %1213 = vmatmul.msk.bf16.vlgmr.msra.gmra.mxu2 %vm402_vm15, %v530_v51  ;;  %559 = vst [vmem:[#allocation1] ss:$4 sm:$0xff] %v552_v39  ;;  %v1220_v39 = vrot.slane %v735_v27, 9 }
  0x58   : > { %562 = vst [vmem:[#allocation1 + $0x1] ss:$4 sm:$0xff] %v553_v44  ;;  %v847_v44 = vld [vmem:[#allocation2 + $0x10] sm:$0x7] }
  0x59   : > { %565 = vst [vmem:[#allocation1 + $0x2] ss:$4 sm:$0xff] %v554_v48  ;;  %v853_v48 = vrot.slane %v845_v38, 2  ;;  %v761_v50 = vsel %vm1387_vm7, %v1220_v39, %v1221_v40  ;;  %v855_v51 = vrot.slane %v847_v44, 2  ;;  %v968_v40 = vld [vmem:[#allocation2 + $0x8] sm:$0x6] }
  0x5a   : > { %568 = vst [vmem:[#allocation1 + $0x3] ss:$4 sm:$0xff] %v555_v55  ;;  %v769_v55 = vsel %vm1387_vm7, %v1224_v45, %v1225_v46  ;;  %v970_v46 = vld [vmem:[#allocation2 + $0x10] sm:$0x6] }
  0x5b   : > { %v859_v56 = vsel %vm303_vm2, %v845_v38, %v853_v48  ;;  %v871_v58 = vsel %vm303_vm2, %v847_v44, %v855_v51  ;;  %v860_v62 = vsel %vm307_vm3, %v845_v38, %v853_v48  ;;  %v872_v5 = vsel %vm307_vm3, %v847_v44, %v855_v51  ;;  %v971_v48 = vld [vmem:[#allocation2 + $0x14] sm:$0x6] }
  0x5c   : > { %v881_v60 = vshrl.u32 %v859_v56, 16  ;;  %v884_v61 = vshll.u32 %v859_v56, 16  ;;  %v907_v3 = vshrl.u32 %v871_v58, 16  ;;  %v910_v4 = vshll.u32 %v871_v58, 16 }
  0x5d   : > { %v862_v9 = vrot.slane %v860_v62, 2  ;;  %v874_v18 = vrot.slane %v872_v5, 2  ;;  %v901_v38 = vrot.slane %v900_v28, 2  ;;  %v927_v44 = vrot.slane %v926_v34, 2 }
  0x5e   : > { %v883_v11 = vrot.slane %v881_v60, 6  ;;  %v886_v12 = vrot.slane %v884_v61, 7 }
  0x5f   : > { %v890_v27 = vshll.u32 %v862_v9, 16  ;;  %v916_v33 = vshll.u32 %v874_v18, 16 }
  0x60   : > { %v887_v26 = vor.u32 %v886_v12, %v883_v11 }
  0x61   : > { %v569_v19 = vld.sshfl [vmem:[#allocation1] sm:$0xff pattern:$0x73625140]  ;;  %v892_v37 = vrot.slane %v890_v27, 7  ;;  %v918_v42 = vrot.slane %v916_v33, 7 }
  0x62   : > { %1215 = vmatmul.msk.bf16.vlgmr.msra.gmra.mxu3 %vm402_vm15, %v569_v19  ;;  %682 = vst [vmem:[#allocation1] ss:$4 sm:$0xff] %v639_v14  ;;  %v868_v14 = vrot.slane %v866_v2, 2  ;;  %v909_v19 = vrot.slane %v907_v3, 6  ;;  %v888_v36 = vrot.slane %v887_v26, 2 }
  0x63   : > { %685 = vst [vmem:[#allocation1 + $0x1] ss:$4 sm:$0xff] %v652_v17  ;;  %v808_v17 = vld [vmem:[#allocation2 + $0x10] sm:$0x3] }
  0x64   : > { %688 = vst [vmem:[#allocation1 + $0x2] ss:$4 sm:$0xff] %v665_v20  ;;  %v912_v20 = vrot.slane %v910_v4, 7  ;;  %v903_v30 = vshll.u32 %v868_v14, 16  ;;  %v893_v47 = vsel %vm1329_vm11, %v888_v36, %v892_v37 }
  0x65   : > { %691 = vst [vmem:[#allocation1 + $0x3] ss:$4 sm:$0xff] %v678_v22  ;;  %v880_v22 = vrot.slane %v878_v10, 2 }
  0x66   : > { %v913_v31 = vor.u32 %v912_v20, %v909_v19  ;;  %v905_v39 = vrot.slane %v903_v30, 7 }
  0x67   : > { %v929_v35 = vshll.u32 %v880_v22, 16 }
  0x68   : > { %v914_v41 = vrot.slane %v913_v31, 2  ;;  %v906_v49 = vsel %vm1329_vm11, %v901_v38, %v905_v39 }
  0x69   : > { %v931_v45 = vrot.slane %v929_v35, 7 }
  0x6b   : > { %v932_v54 = vsel %vm1329_vm11, %v927_v44, %v931_v45 }
  0x6c   : > { %v692_v52 = vld.sshfl [vmem:[#allocation1] sm:$0xff pattern:$0x73625140] }
  0x6d   : > { %1217 = vmatmul.msk.bf16.vlgmr.msrb.gmra.mxu0 %vm402_vm15, %v692_v52  ;;  %773 = vst [vmem:[#allocation1] ss:$4 sm:$0xff] %v757_v32  ;;  %v976_v32 = vrot.slane %v968_v40, 2  ;;  %v919_v52 = vsel %vm1329_vm11, %v914_v41, %v918_v42 }
  0x6e   : > { %776 = vst [vmem:[#allocation1 + $0x1] ss:$4 sm:$0xff] %v761_v50  ;;  %v977_v50 = vrot.slane %v969_v43, 2 }
  0x6f   : > { %779 = vst [vmem:[#allocation1 + $0x2] ss:$4 sm:$0xff] %v765_v53  ;;  %v978_v53 = vrot.slane %v970_v46, 2  ;;  %v982_v56 = vsel %vm303_vm2, %v968_v40, %v976_v32  ;;  %v984_v57 = vsel %vm307_vm3, %v968_v40, %v976_v32 }
  0x70   : > { %782 = vst [vmem:[#allocation1 + $0x3] ss:$4 sm:$0xff] %v769_v55  ;;  %v979_v55 = vrot.slane %v971_v48, 2  ;;  %v989_v58 = vsel %vm303_vm2, %v969_v43, %v977_v50  ;;  %v991_v59 = vsel %vm307_vm3, %v969_v43, %v977_v50  ;;  %v1232_v0 = vrot.slane %v982_v56, 9 }
  0x71   : > { %v996_v60 = vsel %vm303_vm2, %v970_v46, %v978_v53  ;;  %v998_v61 = vsel %vm307_vm3, %v970_v46, %v978_v53  ;;  %v1233_v1 = vrot.slane %v984_v57, 9  ;;  %v1234_v2 = vrot.slane %v989_v58, 9 }
  0x72   : > { %v1003_v29 = vsel %vm303_vm2, %v971_v48, %v979_v55  ;;  %v1005_v62 = vsel %vm307_vm3, %v971_v48, %v979_v55  ;;  %v1235_v3 = vrot.slane %v991_v59, 9  ;;  %v1236_v4 = vrot.slane %v996_v60, 9 }
  0x73   : > { %v1237_v5 = vrot.slane %v998_v61, 9  ;;  %v1238_v6 = vrot.slane %v1003_v29, 9  ;;  %v1239_v7 = vrot.slane %v1005_v62, 9  ;;  %vm1068_vm2 = vcmask 57344  }
  0x74   : > { %v1015_v9 = vsel %vm1387_vm7, %v1234_v2, %v1235_v3 }
  0x75   : > { %v1019_v11 = vsel %vm1387_vm7, %v1236_v4, %v1237_v5  ;;  %v1023_v12 = vsel %vm1387_vm7, %v1238_v6, %v1239_v7 }
  0x77   : > { %v783_v21 = vld.sshfl [vmem:[#allocation1] sm:$0xff pattern:$0x73625140] }
  0x78   : > { %1227 = vmatmul.msk.bf16.vlgmr.msrb.gmra.mxu1 %vm402_vm15, %v783_v21  ;;  %813 = vst [vmem:[#allocation1] ss:$4 sm:$0xff] %v806_v8  ;;  %v1011_v8 = vsel %vm1387_vm7, %v1232_v0, %v1233_v1 }
  0x79   : > { %816 = vst [vmem:[#allocation1 + $0x1] ss:$4 sm:$0xff] %v807_v13 }
  0x7a   : > { %819 = vst [vmem:[#allocation1 + $0x2] ss:$4 sm:$0xff] %v808_v17 }
  0x7b   : > { %822 = vst [vmem:[#allocation1 + $0x3] ss:$4 sm:$0xff] %v809_v25 }
  0x82   : > { %v823_v51 = vld.sshfl [vmem:[#allocation1] sm:$0xff pattern:$0x73625140] }
  0x83   : > { %1229 = vmatmul.msk.bf16.vlgmr.msrb.gmra.mxu2 %vm402_vm15, %v823_v51  ;;  %936 = vst [vmem:[#allocation1] ss:$4 sm:$0xff] %v893_v47 }
  0x84   : > { %939 = vst [vmem:[#allocation1 + $0x1] ss:$4 sm:$0xff] %v906_v49 }
  0x85   : > { %942 = vst [vmem:[#allocation1 + $0x2] ss:$4 sm:$0xff] %v919_v52 }
  0x86   : > { %945 = vst [vmem:[#allocation1 + $0x3] ss:$4 sm:$0xff] %v932_v54 }
  0x8d   : > { %v946_v10 = vld.sshfl [vmem:[#allocation1] sm:$0xff pattern:$0x73625140] }
  0x8e   : > { %1231 = vmatmul.msk.bf16.vlgmr.msrb.gmra.mxu3 %vm402_vm15, %v946_v10  ;;  %1027 = vst [vmem:[#allocation1] ss:$4 sm:$0xff] %v1011_v8 }
  0x8f   : > { %1030 = vst [vmem:[#allocation1 + $0x1] ss:$4 sm:$0xff] %v1015_v9 }
  0x90   : > { %1033 = vst [vmem:[#allocation1 + $0x2] ss:$4 sm:$0xff] %v1019_v11 }
  0x91   : > { %1036 = vst [vmem:[#allocation1 + $0x3] ss:$4 sm:$0xff] %v1023_v12 }
  0x98   : > { %v1037_v13 = vld.sshfl [vmem:[#allocation1] sm:$0xff pattern:$0x73625140] }
  0x99   : > { %1241 = vmatmul.msk.bf16.vlgmr.msra.gmra.mxu0 %vm402_vm15, %v1037_v13 }
  0xbe   : > { %v418_v14 = vpop.f32.mrf.mxu0 }
  0xc6   : > { %v420_v16 = vpop.f32.mrf.mxu0 }
  0xc9   : > { %v449_v15 = vpop.f32.mrf.mxu1 }
  0xca   : > { %v450_v18 = vadd.f32 %v449_v15, %v418_v14 }
  0xd1   : > { %v451_v20 = vpop.f32.mrf.mxu1 }
  0xd2   : > { %v452_v26 = vadd.f32 %v451_v20, %v420_v16 }
  0xda   : > { %v545_v17 = vpop.f32.mrf.mxu2 }
  0xdb   : > { %v550_v21 = vadd.f32 %v545_v17, %v450_v18 }
  0xe2   : > { %v547_v23 = vpop.f32.mrf.mxu2 }
  0xe3   : > { %v551_v31 = vadd.f32 %v547_v23, %v452_v26 }
  0xe5   : > { %v584_v19 = vpop.f32.mrf.mxu3 }
  0xe6   : > { %v589_v24 = vadd.f32 %v584_v19, %v550_v21 }
  0xea   : > { %v707_v22 = vpop.f32.mrf.mxu0 }
  0xeb   : > { %v712_v27 = vadd.f32 %v707_v22, %v589_v24 }
  0xed   : > { %v586_v63 = vpop.f32.mrf.mxu3 }
  0xee   : > { %v590_v34 = vadd.f32 %v586_v63, %v551_v31 }
  0xf2   : > { %v709_v30 = vpop.f32.mrf.mxu0 }
  0xf3   : > { %v713_v39 = vadd.f32 %v709_v30, %v590_v34 }
  0xf5   : > { %v798_v25 = vpop.f32.mrf.mxu1 }
  0xf6   : > { %v803_v33 = vadd.f32 %v798_v25, %v712_v27 }
  0xfd   : > { %v800_v38 = vpop.f32.mrf.mxu1 }
  0xfe   : > { %v804_v42 = vadd.f32 %v800_v38, %v713_v39 }
 0x106   : > { %v838_v28 = vpop.f32.mrf.mxu2 }
 0x107   : > { %v843_v35 = vadd.f32 %v838_v28, %v803_v33 }
 0x10e   : > { %v840_v40 = vpop.f32.mrf.mxu2 }
 0x10f   : > { %v844_v44 = vadd.f32 %v840_v40, %v804_v42 }
 0x111   : > { %v961_v36 = vpop.f32.mrf.mxu3 }
 0x112   : > { %v966_v37 = vadd.f32 %v961_v36, %v843_v35 }
 0x116   : > { %v1052_v41 = vpop.f32.mrf.mxu0 }
 0x117   : > { %v1057_v43 = vadd.f32 %v1052_v41, %v966_v37 }
 0x119   : > { %v1082_v45 = vpack.c.bf16 %v1057_v43, %v1057_v43  ;;  %v963_v46 = vpop.f32.mrf.mxu3  ;;  %v1070_v32 = vmul.f32 %v1057_v43, %v1057_v43  ;;  %v1059_v50 = vsel %vm402_vm15, %v1057_v43, 0.0 }
 0x11a   : > { %v967_v47 = vadd.f32 %v963_v46, %v844_v44 }
 0x11b   : > { %1085 = vst.msk [vmem:[%s208_s17] sm:$0xf] %vm1084_vm0, %v1082_v45  ;;  %v1072_v55 = vsel %vm402_vm15, %v1070_v32, 0.0 }
 0x11e   : > { %v1054_v48 = vpop.f32.mrf.mxu0 }
 0x11f   : > { %v1058_v49 = vadd.f32 %v1054_v48, %v967_v47 }
 0x121   : > { %v1060_v51 = vsel %vm402_vm15, %v1058_v49, 0.0  ;;  %v1071_v52 = vmul.f32 %v1058_v49, %v1058_v49  ;;  %v1083_v53 = vpack.c.bf16 %v1058_v49, %v1058_v49 }
 0x122   : > { %v1061_v54 = vadd.f32 %v1060_v51, %v1059_v50 }
 0x123   : > { %v1073_v56 = vsel %vm402_vm15, %v1071_v52, 0.0  ;;  %1086 = vst.msk [vmem:[%s208_s17 + $0x4] sm:$0xf] %vm1084_vm0, %v1083_v53 }
 0x124   : > { %v1062_v57 = vrot.slane %v1061_v54, 4  ;;  %v1074_v58 = vadd.f32 %v1073_v56, %v1072_v55 }
 0x126   : > { %v1063_v59 = vadd.f32 %v1062_v57, %v1061_v54  ;;  %v1075_v60 = vrot.slane %v1074_v58, 4 }
 0x128   : > { %v1064_v61 = vrot.slane %v1063_v59, 2  ;;  %v1076_v29 = vadd.f32 %v1075_v60, %v1074_v58 }
 0x12a   : > { %v1065_v62 = vadd.f32 %v1064_v61, %v1063_v59  ;;  %v1077_v0 = vrot.slane %v1076_v29, 2 }
 0x12c   : > { %v1066_v1 = vrot.slane %v1065_v62, 1  ;;  %v1078_v2 = vadd.f32 %v1077_v0, %v1076_v29 }
 0x12e   : > { %v1067_v3 = vadd.f32 %v1066_v1, %v1065_v62  ;;  %v1079_v4 = vrot.slane %v1078_v2, 1 }
 0x130   : > { %1069 = vst.msk [vmem:[%s211_s20] sm:$0x1] %vm1068_vm2, %v1067_v3  ;;  %v1080_v5 = vadd.f32 %v1079_v4, %v1078_v2 }
 0x132   : > { %1081 = vst.msk [vmem:[%s214_s23] sm:$0x1] %vm1068_vm2, %v1080_v5 }
 0x133 PF: > { %s15_s15 = sadd.s32 1, %s1261_s15  }
 0x134   : > { %p12_p4 = scmp.ge.s32.totalorder %s15_s15, 4  }
 0x136   :  { %14 = sbr.rel (!%p12_p4) target bundleno = 1 (0x1), region = 122 }

// kernel: _lambda_.85
= control target key start
LH: loop header
LB: loop body
LE: loop exit
PB: predicated region body
PF: predicated region fallthrough
CT: control target
= control target key end

     0   :  { %vm34_vm0 = vcmask 257024   ;;  %s82_s0 = inlined_call_operand.vmem [shape: bf16[8,32], index: 0, kind: input, shape index: {}]   ;;  %s83_s1 = inlined_call_operand.vmem [shape: f32[1,32], index: 1, kind: input, shape index: {}]   ;;  %s84_s2 = inlined_call_operand.vmem [shape: f32[1,32], index: 2, kind: input, shape index: {}]   ;;  %s85_s3 = inlined_call_operand.vmem [shape: bf16[8,32], index: 3, kind: input, shape index: {}]   ;;  %s86_s4 = inlined_call_operand.vmem [shape: bf16[8,32], index: 4, kind: output, shape index: {}]  }
   0x1   :  { %v17_v0 = vld [vmem:[%s82_s0] sm:$0xf] }
   0x2   :  { %v40_v1 = vld [vmem:[%s83_s1] ss:$0 sm:$0xff]  ;;  %v18_v2 = vunpack.c.l.bf16 %v17_v0 }
   0x3   :  { %v41_v3 = vld [vmem:[%s84_s2] ss:$0 sm:$0xff] }
   0x4   :  { %v29_v4 = vld [vmem:[%s85_s3] sm:$0xf]  ;;  %v23_v5 = vmul.f32 %v40_v1, %v18_v2 }
   0x5   :  { %v30_v6 = vunpack.c.l.bf16 %v29_v4 }
   0x6   :  { %v28_v7 = vadd.f32 %v41_v3, %v23_v5 }
   0x8   :  { %v31_v8 = vadd.f32 %v30_v6, %v28_v7 }
   0xa   :  { %v32_v9 = vmax.f32 %v31_v8, 0.0 }
   0xc   :  { %v33_v10 = vpack.c.bf16 %v32_v9, %v32_v9 }
   0xe   :  { %35 = vst.msk [vmem:[%s86_s4] sm:$0xf] %vm34_vm0, %v33_v10 }

// kernel: _lambda_.97
= control target key start
LH: loop header
LB: loop body
LE: loop exit
PB: predicated region body
PF: predicated region fallthrough
CT: control target
= control target key end

     0   :  { %vm52_vm0 = vcmask 519168   ;;  %s124_s0 = inlined_call_operand.vmem [shape: bf16[16,64], index: 0, kind: input, shape index: {}]   ;;  %s125_s1 = inlined_call_operand.vmem [shape: f32[1,64], index: 1, kind: input, shape index: {}]   ;;  %s126_s2 = inlined_call_operand.vmem [shape: f32[1,64], index: 2, kind: input, shape index: {}]   ;;  %s127_s3 = inlined_call_operand.vmem [shape: bf16[16,64], index: 3, kind: input, shape index: {}]   ;;  %s128_s4 = inlined_call_operand.vmem [shape: bf16[16,64], index: 4, kind: input, shape index: {}]   ;;  %s129_s5 = inlined_call_operand.vmem [shape: bf16[16,64], index: 5, kind: output, shape index: {}]  }
   0x1   :  { %v60_v0 = vld [vmem:[%s124_s0] sm:$0xff]  }
   0x2   :  { %v71_v1 = vld [vmem:[%s125_s1] ss:$0 sm:$0xff]  ;;  %v61_v2 = vunpack.c.l.bf16 %v60_v0  ;;  %v62_v5 = vunpack.c.h.bf16 %v60_v0 }
   0x3   :  { %v72_v3 = vld [vmem:[%s126_s2] ss:$0 sm:$0xff] }
   0x4   :  { %v64_v4 = vld [vmem:[%s127_s3] sm:$0xff]   ;;  %v28_v6 = vmul.f32 %v71_v1, %v61_v2  ;;  %v29_v8 = vmul.f32 %v71_v1, %v62_v5 }
   0x5   :  { %v65_v7 = vunpack.c.l.bf16 %v64_v4  ;;  %v66_v9 = vunpack.c.h.bf16 %v64_v4  ;;  %v68_v10 = vld [vmem:[%s128_s4] sm:$0xff]  }
   0x6   :  { %v34_v11 = vadd.f32 %v72_v3, %v28_v6  ;;  %v35_v12 = vadd.f32 %v72_v3, %v29_v8  ;;  %v69_v14 = vunpack.c.l.bf16 %v68_v10  ;;  %v70_v16 = vunpack.c.h.bf16 %v68_v10 }
   0x8   :  { %v40_v13 = vadd.f32 %v65_v7, %v34_v11  ;;  %v41_v15 = vadd.f32 %v66_v9, %v35_v12 }
   0xa   :  { %v42_v17 = vmax.f32 %v40_v13, 0.0  ;;  %v43_v18 = vmax.f32 %v41_v15, 0.0 }
   0xc   :  { %v48_v19 = vadd.f32 %v69_v14, %v42_v17  ;;  %v49_v20 = vadd.f32 %v70_v16, %v43_v18 }
   0xe   :  { %v50_v21 = vpack.c.bf16 %v48_v19, %v48_v19  ;;  %v51_v22 = vpack.c.bf16 %v49_v20, %v49_v20 }
  0x10   :  { %53 = vst.msk [vmem:[%s129_s5] sm:$0xf] %vm52_vm0, %v50_v21 }
  0x11   :  { %54 = vst.msk [vmem:[%s129_s5 + $0x4] sm:$0xf] %vm52_vm0, %v51_v22 }

// kernel: _lambda_.105
= control target key start
LH: loop header
LB: loop body
LE: loop exit
PB: predicated region body
PF: predicated region fallthrough
CT: control target
= control target key end

     0   :  { %s184_s0 = inlined_call_operand.vmem [shape: bf16[32,128], index: 0, kind: input, shape index: {}]   ;;  %s185_s1 = inlined_call_operand.vmem [shape: f32[1,128], index: 1, kind: input, shape index: {}]   ;;  %s186_s2 = inlined_call_operand.vmem [shape: f32[1,128], index: 2, kind: input, shape index: {}]   ;;  %s187_s3 = inlined_call_operand.vmem [shape: bf16[32,128], index: 3, kind: input, shape index: {}]   ;;  %s188_s4 = inlined_call_operand.vmem [shape: bf16[32,128], index: 4, kind: input, shape index: {}]   ;;  %s189_s5 = inlined_call_operand.vmem [shape: bf16[32,128], index: 5, kind: output, shape index: {}]  }
   0x1   :  { %v85_v0 = vld [vmem:[%s184_s0] sm:$0xff]   ;;  %v118_v6 = vld [vmem:[%s184_s0 + $0x8] sm:$0xff]  }
   0x2   :  { %v122_v1 = vld [vmem:[%s185_s1] ss:$0 sm:$0xff]  ;;  %v86_v2 = vunpack.c.l.bf16 %v85_v0  ;;  %v87_v3 = vunpack.c.h.bf16 %v85_v0  ;;  %v119_v11 = vld [vmem:[%s187_s3 + $0x8] sm:$0xff]   ;;  %v90_v13 = vunpack.c.l.bf16 %v118_v6  ;;  %v91_v14 = vunpack.c.h.bf16 %v118_v6 }
   0x3   :  { %v123_v4 = vld [vmem:[%s186_s2] ss:$0 sm:$0xff]  ;;  %v98_v19 = vunpack.c.l.bf16 %v119_v11  ;;  %v99_v20 = vunpack.c.h.bf16 %v119_v11  ;;  %v120_v25 = vld [vmem:[%s188_s4 + $0x8] sm:$0xff]  }
   0x4   :  { %v93_v5 = vld [vmem:[%s187_s3] sm:$0xff]   ;;  %v32_v7 = vmul.f32 %v122_v1, %v86_v2  ;;  %v33_v8 = vmul.f32 %v122_v1, %v87_v3  ;;  %v34_v17 = vmul.f32 %v122_v1, %v90_v13  ;;  %v35_v18 = vmul.f32 %v122_v1, %v91_v14 }
   0x5   :  { %v94_v9 = vunpack.c.l.bf16 %v93_v5  ;;  %v95_v10 = vunpack.c.h.bf16 %v93_v5  ;;  %v101_v12 = vld [vmem:[%s188_s4] sm:$0xff]   ;;  %v106_v32 = vunpack.c.l.bf16 %v120_v25  ;;  %v107_v33 = vunpack.c.h.bf16 %v120_v25 }
   0x6   :  { %v40_v15 = vadd.f32 %v123_v4, %v32_v7  ;;  %v41_v16 = vadd.f32 %v123_v4, %v33_v8  ;;  %v102_v23 = vunpack.c.l.bf16 %v101_v12  ;;  %v103_v24 = vunpack.c.h.bf16 %v101_v12 }
   0x7   :  { %v42_v26 = vadd.f32 %v123_v4, %v34_v17  ;;  %v43_v27 = vadd.f32 %v123_v4, %v35_v18 }
   0x8   :  { %v52_v21 = vadd.f32 %v94_v9, %v40_v15  ;;  %v53_v22 = vadd.f32 %v95_v10, %v41_v16 }
   0x9   :  { %v54_v30 = vadd.f32 %v98_v19, %v42_v26  ;;  %v55_v31 = vadd.f32 %v99_v20, %v43_v27 }
   0xa   :  { %v56_v28 = vmax.f32 %v52_v21, 0.0  ;;  %v57_v29 = vmax.f32 %v53_v22, 0.0 }
   0xb   :  { %v58_v36 = vmax.f32 %v54_v30, 0.0  ;;  %v59_v37 = vmax.f32 %v55_v31, 0.0 }
   0xc   :  { %v68_v34 = vadd.f32 %v102_v23, %v56_v28  ;;  %v69_v35 = vadd.f32 %v103_v24, %v57_v29 }
   0xd   :  { %v70_v39 = vadd.f32 %v106_v32, %v58_v36  ;;  %v71_v40 = vadd.f32 %v107_v33, %v59_v37 }
   0xe   :  { %v111_v38 = vpack.c.bf16 %v69_v35, %v68_v34 }
   0xf   :  { %v116_v41 = vpack.c.bf16 %v71_v40, %v70_v39 }
  0x10   :  { %112 = vst [vmem:[%s189_s5] sm:$0xff] %v111_v38  }
  0x11   :  { %121 = vst [vmem:[%s189_s5 + $0x8] sm:$0xff] %v116_v41  }

// kernel: _lambda_.103
= control target key start
LH: loop header
LB: loop body
LE: loop exit
PB: predicated region body
PF: predicated region fallthrough
CT: control target
= control target key end

     0   :  { %s114_s0 = inlined_call_operand.vmem [shape: bf16[32,128], index: 0, kind: input, shape index: {}]   ;;  %s115_s1 = inlined_call_operand.vmem [shape: f32[1,128], index: 1, kind: input, shape index: {}]   ;;  %s116_s2 = inlined_call_operand.vmem [shape: f32[1,128], index: 2, kind: input, shape index: {}]   ;;  %s117_s3 = inlined_call_operand.vmem [shape: bf16[32,128], index: 3, kind: output, shape index: {}]  }
   0x1   :  { %v55_v0 = vld [vmem:[%s114_s0] sm:$0xff]   ;;  %v72_v5 = vld [vmem:[%s114_s0 + $0x8] sm:$0xff]  }
   0x2   :  { %v74_v1 = vld [vmem:[%s115_s1] ss:$0 sm:$0xff]  ;;  %v56_v2 = vunpack.c.l.bf16 %v55_v0  ;;  %v57_v3 = vunpack.c.h.bf16 %v55_v0  ;;  %v60_v6 = vunpack.c.l.bf16 %v72_v5  ;;  %v61_v7 = vunpack.c.h.bf16 %v72_v5 }
   0x3   :  { %v75_v4 = vld [vmem:[%s116_s2] ss:$0 sm:$0xff] }
   0x4   :  { %v26_v8 = vmul.f32 %v74_v1, %v56_v2  ;;  %v27_v9 = vmul.f32 %v74_v1, %v57_v3  ;;  %v28_v10 = vmul.f32 %v74_v1, %v60_v6  ;;  %v29_v11 = vmul.f32 %v74_v1, %v61_v7 }
   0x6   :  { %v34_v12 = vadd.f32 %v75_v4, %v26_v8  ;;  %v35_v13 = vadd.f32 %v75_v4, %v27_v9  ;;  %v36_v14 = vadd.f32 %v75_v4, %v28_v10  ;;  %v37_v15 = vadd.f32 %v75_v4, %v29_v11 }
   0x8   :  { %v38_v16 = vmax.f32 %v34_v12, 0.0  ;;  %v39_v17 = vmax.f32 %v35_v13, 0.0  ;;  %v40_v18 = vmax.f32 %v36_v14, 0.0  ;;  %v41_v19 = vmax.f32 %v37_v15, 0.0 }
   0xa   :  { %v65_v20 = vpack.c.bf16 %v39_v17, %v38_v16  ;;  %v70_v21 = vpack.c.bf16 %v41_v19, %v40_v18 }
   0xc   :  { %66 = vst [vmem:[%s117_s3] sm:$0xff] %v65_v20  }
   0xd   :  { %73 = vst [vmem:[%s117_s3 + $0x8] sm:$0xff] %v70_v21  }

// kernel: _lambda_.110
= control target key start
LH: loop header
LB: loop body
LE: loop exit
PB: predicated region body
PF: predicated region fallthrough
CT: control target
= control target key end

     0   :  { %s967_s15 = smov 0   ;;  %s1316_s0 = inlined_call_operand.vmem [shape: bf16[2,16,16,8], index: 0, kind: input, shape index: {}]   ;;  %s1317_s1 = inlined_call_operand.vmem [shape: bf16[1,8,8], index: 1, kind: input, shape index: {}]   ;;  %s1318_s2 = inlined_call_operand.vmem [shape: bf16[2,256,8], index: 2, kind: output, shape index: {0}]   ;;  %s1319_s3 = inlined_call_operand.vmem [shape: f32[2,1,8], index: 3, kind: output, shape index: {1}]   ;;  %s1320_s4 = inlined_call_operand.vmem [shape: f32[2,1,8], index: 4, kind: output, shape index: {2}]  }
   0x1 LB: > { %s814_s16 = sadd.s32 4294967295, %s940_s15   ;;  %p818_p0 = scmp.ge.s32.totalorder %s940_s15, 1  ;;  %s940_s15 = sphi %s967_s15, %s15_s15  }
   0x2   : > { %p167_p1 = scmp.lt.s32.totalorder %s940_s15, 3 }
   0x4   : > { %p168_p2 = pnand %p818_p0, %p167_p1 }
   0x5   : > { %p199_p3 = scmp.lt.s32.totalorder (!%p168_p2), %s814_s16, 1 }
   0x6   : > { %171 = sbr.rel (%p168_p2) target bundleno = 264 (0x108), region = 28 }
   0xb   : > { %v248_v0 = vld [vmem:[%s1317_s1] sm:$0xf]  ;;  %vm378_vm0 = vcmask 1043456   ;;  %s1322_s16 = smov (!%p199_p3, %s814_s16), 1  ;;  %vm329_vm1 = vcmask 64512   ;;  %vm676_vm2 = vcmask 60416  }
   0xc   : > { %v380_v1 = vsel %vm378_vm0, %v248_v0, 0  ;;  %s905_s19 = sshll.u32 %s1322_s16, 7  ;;  %s211_s28 = scalar_lea.vmem %s1319_s3, %s1322_s16  ;;  %vm540_vm3 = vcmask 57344  }
   0xd   : > { %389 = vmatpush.bf16.msra.mxu0 %v380_v1  ;;  %923 = vmatpush.bf16.msra.mxu1 %v380_v1  ;;  %s203_s22 = scalar_lea.vmem %s1316_s0, %s905_s19  ;;  %s1007_s25 = scalar_lea.vmem %s1318_s2, %s905_s19 }
   0xe   : > { %924 = vmatpush.bf16.msra.mxu2 %v380_v1  ;;  %925 = vmatpush.bf16.msra.mxu3 %v380_v1  ;;  %v907_v2 = vld [vmem:[%s203_s22] sm:$0xff]  ;;  %v908_v6 = vld [vmem:[%s203_s22 + $0x8] sm:$0xff]  ;;  %v909_v10 = vld [vmem:[%s203_s22 + $0x10] sm:$0xff]  ;;  %s214_s5 = scalar_lea.vmem %s1320_s4, %s1322_s16 }
   0xf   : > { %v911_v3 = vld [vmem:[%s203_s22 + $0x20] sm:$0xff]  ;;  %v912_v7 = vld [vmem:[%s203_s22 + $0x28] sm:$0xff]  ;;  %v913_v11 = vld [vmem:[%s203_s22 + $0x30] sm:$0xff] }
  0x10   : > { %v915_v4 = vld [vmem:[%s203_s22 + $0x40] sm:$0xff]  ;;  %887 = vmatmul.msk.bf16.vlgmr.msra.gmra.mxu0 %vm329_vm1, %v907_v2  ;;  %891 = vmatmul.msk.bf16.vlgmr.msra.gmra.mxu1 %vm329_vm1, %v911_v3  ;;  %v916_v8 = vld [vmem:[%s203_s22 + $0x48] sm:$0xff]  ;;  %v917_v12 = vld [vmem:[%s203_s22 + $0x50] sm:$0xff] }
  0x11   : > { %v919_v5 = vld [vmem:[%s203_s22 + $0x60] sm:$0xff]  ;;  %895 = vmatmul.msk.bf16.vlgmr.msra.gmra.mxu2 %vm329_vm1, %v915_v4  ;;  %v920_v9 = vld [vmem:[%s203_s22 + $0x68] sm:$0xff]  ;;  %v921_v13 = vld [vmem:[%s203_s22 + $0x70] sm:$0xff] }
  0x12   : > { %899 = vmatmul.msk.bf16.vlgmr.msra.gmra.mxu3 %vm329_vm1, %v919_v5  ;;  %v910_v14 = vld [vmem:[%s203_s22 + $0x18] sm:$0xff] }
  0x13   : > { %v914_v15 = vld [vmem:[%s203_s22 + $0x38] sm:$0xff] }
  0x14   : > { %v918_v16 = vld [vmem:[%s203_s22 + $0x58] sm:$0xff] }
  0x15   : > { %v922_v17 = vld [vmem:[%s203_s22 + $0x78] sm:$0xff] }
  0x20   : > { %888 = vmatmul.msk.bf16.gmra.mxu0 %vm329_vm1, %v908_v6  ;;  %892 = vmatmul.msk.bf16.gmra.mxu1 %vm329_vm1, %v912_v7 }
  0x21   : > { %896 = vmatmul.msk.bf16.gmra.mxu2 %vm329_vm1, %v916_v8 }
  0x22   : > { %900 = vmatmul.msk.bf16.gmra.mxu3 %vm329_vm1, %v920_v9 }
  0x30   : > { %889 = vmatmul.msk.bf16.gmra.mxu0 %vm329_vm1, %v909_v10  ;;  %893 = vmatmul.msk.bf16.gmra.mxu1 %vm329_vm1, %v913_v11 }
  0x31   : > { %897 = vmatmul.msk.bf16.gmra.mxu2 %vm329_vm1, %v917_v12 }
  0x32   : > { %901 = vmatmul.msk.bf16.gmra.mxu3 %vm329_vm1, %v921_v13 }
  0x40   : > { %890 = vmatmul.msk.bf16.gmra.mxu0 %vm329_vm1, %v910_v14  ;;  %894 = vmatmul.msk.bf16.gmra.mxu1 %vm329_vm1, %v914_v15 }
  0x41   : > { %898 = vmatmul.msk.bf16.gmra.mxu2 %vm329_vm1, %v918_v16 }
  0x42   : > { %902 = vmatmul.msk.bf16.gmra.mxu3 %vm329_vm1, %v922_v17 }
  0x8d   : > { %v1009_v18 = vpop.f32.mrf.mxu0  ;;  %v1011_v19 = vpop.f32.mrf.mxu1 }
  0x8e   : > { %v644_v20 = vpack.c.bf16 %v1009_v18, %v1009_v18  ;;  %v652_v21 = vpack.c.bf16 %v1011_v19, %v1011_v19  ;;  %v542_v62 = vmul.f32 %v1009_v18, %v1009_v18  ;;  %v471_v1 = vsel %vm329_vm1, %v1009_v18, 0.0 }
  0x90   : > { %677 = vst.msk [vmem:[%s1007_s25] sm:$0xf] %vm676_vm2, %v644_v20  ;;  %v574_v6 = vsel %vm329_vm1, %v542_v62, 0.0 }
  0x91   : > { %685 = vst.msk [vmem:[%s1007_s25 + $0x20] sm:$0xf] %vm676_vm2, %v652_v21 }
  0x94   : > { %v1021_v22 = vpop.f32.mrf.mxu2 }
  0x95   : > { %v393_v23 = vpop.f32.mrf.mxu0  ;;  %v1023_v24 = vpop.f32.mrf.mxu1  ;;  %v660_v25 = vpack.c.bf16 %v1021_v22, %v1021_v22 }
  0x96   : > { %v645_v26 = vpack.c.bf16 %v393_v23, %v393_v23  ;;  %v1027_v27 = vpop.f32.mrf.mxu3  ;;  %v653_v28 = vpack.c.bf16 %v1023_v24, %v1023_v24  ;;  %v543_v58 = vmul.f32 %v393_v23, %v393_v23  ;;  %v472_v63 = vsel %vm329_vm1, %v393_v23, 0.0 }
  0x97   : > { %693 = vst.msk [vmem:[%s1007_s25 + $0x40] sm:$0xf] %vm676_vm2, %v660_v25  ;;  %v668_v29 = vpack.c.bf16 %v1027_v27, %v1027_v27  ;;  %v473_v5 = vadd.f32 %v472_v63, %v471_v1 }
  0x98   : > { %678 = vst.msk [vmem:[%s1007_s25 + $0x4] sm:$0xf] %vm676_vm2, %v645_v26  ;;  %v575_v2 = vsel %vm329_vm1, %v543_v58, 0.0 }
  0x99   : > { %686 = vst.msk [vmem:[%s1007_s25 + $0x24] sm:$0xf] %vm676_vm2, %v653_v28  ;;  %v576_v11 = vadd.f32 %v575_v2, %v574_v6  ;;  %v486_v2 = vsel %vm329_vm1, %v1011_v19, 0.0 }
  0x9a   : > { %701 = vst.msk [vmem:[%s1007_s25 + $0x60] sm:$0xf] %vm676_vm2, %v668_v29 }
  0x9c   : > { %v1039_v30 = vpop.f32.mrf.mxu2 }
  0x9d   : > { %v396_v31 = vpop.f32.mrf.mxu0  ;;  %v1043_v32 = vpop.f32.mrf.mxu1  ;;  %v661_v33 = vpack.c.bf16 %v1039_v30, %v1039_v30 }
  0x9e   : > { %v646_v34 = vpack.c.bf16 %v396_v31, %v396_v31  ;;  %v1047_v35 = vpop.f32.mrf.mxu3  ;;  %v654_v36 = vpack.c.bf16 %v1043_v32, %v1043_v32  ;;  %v544_v0 = vmul.f32 %v396_v31, %v396_v31  ;;  %v474_v3 = vsel %vm329_vm1, %v396_v31, 0.0 }
  0x9f   : > { %694 = vst.msk [vmem:[%s1007_s25 + $0x44] sm:$0xf] %vm676_vm2, %v661_v33  ;;  %v669_v37 = vpack.c.bf16 %v1047_v35, %v1047_v35  ;;  %v475_v12 = vadd.f32 %v474_v3, %v473_v5  ;;  %v551_v3 = vmul.f32 %v1023_v24, %v1023_v24  ;;  %v552_v5 = vmul.f32 %v1043_v32, %v1043_v32 }
  0xa0   : > { %679 = vst.msk [vmem:[%s1007_s25 + $0x8] sm:$0xf] %vm676_vm2, %v646_v34  ;;  %v577_v7 = vsel %vm329_vm1, %v544_v0, 0.0 }
  0xa1   : > { %687 = vst.msk [vmem:[%s1007_s25 + $0x28] sm:$0xf] %vm676_vm2, %v654_v36  ;;  %v578_v23 = vadd.f32 %v577_v7, %v576_v11 }
  0xa2   : > { %702 = vst.msk [vmem:[%s1007_s25 + $0x64] sm:$0xf] %vm676_vm2, %v669_v37 }
  0xa4   : > { %v1061_v38 = vpop.f32.mrf.mxu2 }
  0xa5   : > { %v398_v39 = vpop.f32.mrf.mxu0  ;;  %v1063_v40 = vpop.f32.mrf.mxu1  ;;  %v662_v41 = vpack.c.bf16 %v1061_v38, %v1061_v38 }
  0xa6   : > { %v647_v42 = vpack.c.bf16 %v398_v39, %v398_v39  ;;  %v1067_v43 = vpop.f32.mrf.mxu3  ;;  %v655_v44 = vpack.c.bf16 %v1063_v40, %v1063_v40  ;;  %v545_v4 = vmul.f32 %v398_v39, %v398_v39  ;;  %v476_v8 = vsel %vm329_vm1, %v398_v39, 0.0 }
  0xa7   : > { %695 = vst.msk [vmem:[%s1007_s25 + $0x48] sm:$0xf] %vm676_vm2, %v662_v41  ;;  %v670_v52 = vpack.c.bf16 %v1067_v43, %v1067_v43  ;;  %v477_v25 = vadd.f32 %v476_v8, %v475_v12  ;;  %v591_v12 = vsel %vm329_vm1, %v551_v3, 0.0 }
  0xa8   : > { %680 = vst.msk [vmem:[%s1007_s25 + $0xc] sm:$0xf] %vm676_vm2, %v647_v42  ;;  %v579_v16 = vsel %vm329_vm1, %v545_v4, 0.0 }
  0xa9   : > { %688 = vst.msk [vmem:[%s1007_s25 + $0x2c] sm:$0xf] %vm676_vm2, %v655_v44  ;;  %v580_v34 = vadd.f32 %v579_v16, %v578_v23 }
  0xaa   : > { %703 = vst.msk [vmem:[%s1007_s25 + $0x68] sm:$0xf] %vm676_vm2, %v670_v52 }
  0xac   : > { %v1077_v45 = vpop.f32.mrf.mxu2 }
  0xad   : > { %v401_v46 = vpop.f32.mrf.mxu0  ;;  %v1079_v47 = vpop.f32.mrf.mxu1  ;;  %v663_v48 = vpack.c.bf16 %v1077_v45, %v1077_v45 }
  0xae   : > { %v648_v49 = vpack.c.bf16 %v401_v46, %v401_v46  ;;  %v1083_v50 = vpop.f32.mrf.mxu3  ;;  %v656_v51 = vpack.c.bf16 %v1079_v47, %v1079_v47  ;;  %v546_v9 = vmul.f32 %v401_v46, %v401_v46  ;;  %v478_v17 = vsel %vm329_vm1, %v401_v46, 0.0 }
  0xaf   : > { %696 = vst.msk [vmem:[%s1007_s25 + $0x4c] sm:$0xf] %vm676_vm2, %v663_v48  ;;  %v671_v53 = vpack.c.bf16 %v1083_v50, %v1083_v50  ;;  %v479_v36 = vadd.f32 %v478_v17, %v477_v25  ;;  %v593_v17 = vsel %vm329_vm1, %v552_v5, 0.0  ;;  %v554_v23 = vmul.f32 %v1079_v47, %v1079_v47 }
  0xb0   : > { %681 = vst.msk [vmem:[%s1007_s25 + $0x10] sm:$0xf] %vm676_vm2, %v648_v49  ;;  %v581_v28 = vsel %vm329_vm1, %v546_v9, 0.0  ;;  %v488_v9 = vsel %vm329_vm1, %v1023_v24, 0.0  ;;  %v492_v24 = vsel %vm329_vm1, %v1063_v40, 0.0 }
  0xb1   : > { %689 = vst.msk [vmem:[%s1007_s25 + $0x30] sm:$0xf] %vm676_vm2, %v656_v51  ;;  %v582_v42 = vadd.f32 %v581_v28, %v580_v34 }
  0xb2   : > { %704 = vst.msk [vmem:[%s1007_s25 + $0x6c] sm:$0xf] %vm676_vm2, %v671_v53 }
  0xb4   : > { %v1099_v54 = vpop.f32.mrf.mxu2 }
  0xb5   : > { %v403_v55 = vpop.f32.mrf.mxu0  ;;  %v1103_v56 = vpop.f32.mrf.mxu1  ;;  %v664_v57 = vpack.c.bf16 %v1099_v54, %v1099_v54 }
  0xb6   : > { %v649_v59 = vpack.c.bf16 %v403_v55, %v403_v55  ;;  %v1107_v60 = vpop.f32.mrf.mxu3  ;;  %v657_v61 = vpack.c.bf16 %v1103_v56, %v1103_v56  ;;  %v547_v18 = vmul.f32 %v403_v55, %v403_v55  ;;  %v480_v29 = vsel %vm329_vm1, %v403_v55, 0.0 }
  0xb7   : > { %697 = vst.msk [vmem:[%s1007_s25 + $0x50] sm:$0xf] %vm676_vm2, %v664_v57  ;;  %v672_v33 = vpack.c.bf16 %v1107_v60, %v1107_v60  ;;  %v481_v44 = vadd.f32 %v480_v29, %v479_v36  ;;  %v550_v57 = vmul.f32 %v1011_v19, %v1011_v19 }
  0xb8   : > { %682 = vst.msk [vmem:[%s1007_s25 + $0x14] sm:$0xf] %vm676_vm2, %v649_v59  ;;  %v583_v37 = vsel %vm329_vm1, %v547_v18, 0.0 }
  0xb9   : > { %690 = vst.msk [vmem:[%s1007_s25 + $0x34] sm:$0xf] %vm676_vm2, %v657_v61  ;;  %v584_v49 = vadd.f32 %v583_v37, %v582_v42  ;;  %v589_v8 = vsel %vm329_vm1, %v550_v57, 0.0  ;;  %v558_v57 = vmul.f32 %v1021_v22, %v1021_v22 }
  0xba   : > { %705 = vst.msk [vmem:[%s1007_s25 + $0x70] sm:$0xf] %vm676_vm2, %v672_v33  ;;  %v494_v33 = vsel %vm329_vm1, %v1079_v47, 0.0 }
  0xbb   : > { %v605_v3 = vsel %vm329_vm1, %v558_v57, 0.0  ;;  %v569_v57 = vmul.f32 %v1083_v50, %v1083_v50 }
  0xbc   : > { %v1127_v10 = vpop.f32.mrf.mxu2 }
  0xbd   : > { %v406_v13 = vpop.f32.mrf.mxu0  ;;  %v1129_v14 = vpop.f32.mrf.mxu1  ;;  %v665_v15 = vpack.c.bf16 %v1127_v10, %v1127_v10 }
  0xbe   : > { %v650_v20 = vpack.c.bf16 %v406_v13, %v406_v13  ;;  %v1135_v21 = vpop.f32.mrf.mxu3  ;;  %v658_v26 = vpack.c.bf16 %v1129_v14, %v1129_v14  ;;  %v548_v31 = vmul.f32 %v406_v13, %v406_v13  ;;  %v482_v39 = vsel %vm329_vm1, %v406_v13, 0.0 }
  0xbf   : > { %698 = vst.msk [vmem:[%s1007_s25 + $0x54] sm:$0xf] %vm676_vm2, %v665_v15  ;;  %v673_v41 = vpack.c.bf16 %v1135_v21, %v1135_v21  ;;  %v483_v51 = vadd.f32 %v482_v39, %v481_v44  ;;  %v490_v13 = vsel %vm329_vm1, %v1043_v32, 0.0  ;;  %v553_v15 = vmul.f32 %v1063_v40, %v1063_v40 }
  0xc0   : > { %683 = vst.msk [vmem:[%s1007_s25 + $0x18] sm:$0xf] %vm676_vm2, %v650_v20  ;;  %v585_v46 = vsel %vm329_vm1, %v548_v31, 0.0  ;;  %v555_v40 = vmul.f32 %v1103_v56, %v1103_v56  ;;  %v597_v39 = vsel %vm329_vm1, %v554_v23, 0.0  ;;  %v556_v47 = vmul.f32 %v1129_v14, %v1129_v14 }
  0xc1   : > { %691 = vst.msk [vmem:[%s1007_s25 + $0x38] sm:$0xf] %vm676_vm2, %v658_v26  ;;  %v586_v63 = vadd.f32 %v585_v46, %v584_v49  ;;  %v595_v31 = vsel %vm329_vm1, %v553_v15, 0.0  ;;  %v498_v49 = vsel %vm329_vm1, %v1129_v14, 0.0 }
  0xc2   : > { %706 = vst.msk [vmem:[%s1007_s25 + $0x74] sm:$0xf] %vm676_vm2, %v673_v41  ;;  %v496_v41 = vsel %vm329_vm1, %v1103_v56, 0.0  ;;  %v599_v46 = vsel %vm329_vm1, %v555_v40, 0.0  ;;  %v601_v56 = vsel %vm329_vm1, %v556_v47, 0.0 }
  0xc4   : > { %v1156_v48 = vpop.f32.mrf.mxu2 }
  0xc5   : > { %v408_v52 = vpop.f32.mrf.mxu0  ;;  %v428_v53 = vpop.f32.mrf.mxu1  ;;  %v666_v55 = vpack.c.bf16 %v1156_v48, %v1156_v48 }
  0xc6   : > { %v484_v58 = vsel %vm329_vm1, %v408_v52, 0.0  ;;  %v549_v59 = vmul.f32 %v408_v52, %v408_v52  ;;  %v651_v61 = vpack.c.bf16 %v408_v52, %v408_v52  ;;  %v1165_v62 = vpop.f32.mrf.mxu3  ;;  %v659_v1 = vpack.c.bf16 %v428_v53, %v428_v53 }
  0xc7   : > { %v485_v0 = vadd.f32 %v484_v58, %v483_v51  ;;  %699 = vst.msk [vmem:[%s1007_s25 + $0x58] sm:$0xf] %vm676_vm2, %v666_v55  ;;  %v674_v25 = vpack.c.bf16 %v1165_v62, %v1165_v62  ;;  %v557_v51 = vmul.f32 %v428_v53, %v428_v53  ;;  %v500_v58 = vsel %vm329_vm1, %v428_v53, 0.0 }
  0xc8   : > { %v587_v4 = vsel %vm329_vm1, %v549_v59, 0.0  ;;  %684 = vst.msk [vmem:[%s1007_s25 + $0x1c] sm:$0xf] %vm676_vm2, %v651_v61  ;;  %v560_v53 = vmul.f32 %v1061_v38, %v1061_v38 }
  0xc9   : > { %v487_v6 = vadd.f32 %v486_v2, %v485_v0  ;;  %v588_v7 = vadd.f32 %v587_v4, %v586_v63  ;;  %692 = vst.msk [vmem:[%s1007_s25 + $0x3c] sm:$0xf] %vm676_vm2, %v659_v1  ;;  %v502_v63 = vsel %vm329_vm1, %v1021_v22, 0.0  ;;  %v559_v0 = vmul.f32 %v1039_v30, %v1039_v30 }
  0xca   : > { %707 = vst.msk [vmem:[%s1007_s25 + $0x78] sm:$0xf] %vm676_vm2, %v674_v25  ;;  %v603_v14 = vsel %vm329_vm1, %v557_v51, 0.0  ;;  %v504_v4 = vsel %vm329_vm1, %v1039_v30, 0.0  ;;  %v506_v22 = vsel %vm329_vm1, %v1061_v38, 0.0  ;;  %v508_v30 = vsel %vm329_vm1, %v1077_v45, 0.0 }
  0xcb   : > { %v489_v19 = vadd.f32 %v488_v9, %v487_v6  ;;  %v590_v11 = vadd.f32 %v589_v8, %v588_v7  ;;  %v607_v7 = vsel %vm329_vm1, %v559_v0, 0.0  ;;  %v561_v8 = vmul.f32 %v1077_v45, %v1077_v45 }
  0xcc   : > { %v1188_v16 = vpop.f32.mrf.mxu2  ;;  %v510_v38 = vsel %vm329_vm1, %v1099_v54, 0.0  ;;  %v512_v45 = vsel %vm329_vm1, %v1127_v10, 0.0 }
  0xcd   : > { %v491_v18 = vadd.f32 %v490_v13, %v489_v19  ;;  %v592_v20 = vadd.f32 %v591_v12, %v590_v11  ;;  %v667_v32 = vpack.c.bf16 %v1188_v16, %v1188_v16  ;;  %v609_v11 = vsel %vm329_vm1, %v560_v53, 0.0 }
  0xce   : > { %v1199_v26 = vpop.f32.mrf.mxu3  ;;  %v562_v12 = vmul.f32 %v1099_v54, %v1099_v54  ;;  %v514_v54 = vsel %vm329_vm1, %v1156_v48, 0.0  ;;  %v572_v53 = vmul.f32 %v1165_v62, %v1165_v62 }
  0xcf   : > { %v594_v28 = vadd.f32 %v593_v17, %v592_v20  ;;  %v493_v29 = vadd.f32 %v492_v24, %v491_v18  ;;  %700 = vst.msk [vmem:[%s1007_s25 + $0x5c] sm:$0xf] %vm676_vm2, %v667_v32  ;;  %v675_v34 = vpack.c.bf16 %v1199_v26, %v1199_v26  ;;  %v611_v17 = vsel %vm329_vm1, %v561_v8, 0.0 }
  0xd0   : > { %v563_v18 = vmul.f32 %v1127_v10, %v1127_v10  ;;  %v613_v23 = vsel %vm329_vm1, %v562_v12, 0.0  ;;  %v564_v32 = vmul.f32 %v1156_v48, %v1156_v48  ;;  %v567_v48 = vmul.f32 %v1047_v35, %v1047_v35 }
  0xd1   : > { %v495_v36 = vadd.f32 %v494_v33, %v493_v29  ;;  %v596_v37 = vadd.f32 %v595_v31, %v594_v28  ;;  %708 = vst.msk [vmem:[%s1007_s25 + $0x7c] sm:$0xf] %vm676_vm2, %v675_v34  ;;  %v565_v31 = vmul.f32 %v1188_v16, %v1188_v16  ;;  %v566_v34 = vmul.f32 %v1027_v27, %v1027_v27 }
  0xd2   : > { %v615_v29 = vsel %vm329_vm1, %v563_v18, 0.0  ;;  %v617_v10 = vsel %vm329_vm1, %v564_v32, 0.0 }
  0xd3   : > { %v497_v42 = vadd.f32 %v496_v41, %v495_v36  ;;  %v598_v44 = vadd.f32 %v597_v39, %v596_v37  ;;  %v516_v36 = vsel %vm329_vm1, %v1188_v16, 0.0  ;;  %v518_v41 = vsel %vm329_vm1, %v1027_v27, 0.0 }
  0xd4   : > { %v619_v47 = vsel %vm329_vm1, %v565_v31, 0.0  ;;  %v568_v16 = vmul.f32 %v1067_v43, %v1067_v43  ;;  %v522_v27 = vsel %vm329_vm1, %v1067_v43, 0.0  ;;  %v526_v43 = vsel %vm329_vm1, %v1107_v60, 0.0 }
  0xd5   : > { %v499_v52 = vadd.f32 %v498_v49, %v497_v42  ;;  %v600_v55 = vadd.f32 %v599_v46, %v598_v44  ;;  %v621_v46 = vsel %vm329_vm1, %v566_v34, 0.0  ;;  %v520_v49 = vsel %vm329_vm1, %v1047_v35, 0.0 }
  0xd6   : > { %v524_v35 = vsel %vm329_vm1, %v1083_v50, 0.0  ;;  %v528_v50 = vsel %vm329_vm1, %v1135_v21, 0.0 }
  0xd7   : > { %v602_v59 = vadd.f32 %v601_v56, %v600_v55  ;;  %v501_v61 = vadd.f32 %v500_v58, %v499_v52  ;;  %v623_v55 = vsel %vm329_vm1, %v567_v48, 0.0 }
  0xd9   : > { %v503_v1 = vadd.f32 %v502_v63, %v501_v61  ;;  %v604_v2 = vadd.f32 %v603_v14, %v602_v59  ;;  %v625_v59 = vsel %vm329_vm1, %v568_v16, 0.0  ;;  %v570_v61 = vmul.f32 %v1107_v60, %v1107_v60 }
  0xda   : > { %v627_v14 = vsel %vm329_vm1, %v569_v57, 0.0  ;;  %v530_v60 = vsel %vm329_vm1, %v1165_v62, 0.0 }
  0xdb   : > { %v505_v5 = vadd.f32 %v504_v4, %v503_v1  ;;  %v606_v6 = vadd.f32 %v605_v3, %v604_v2  ;;  %v571_v1 = vmul.f32 %v1135_v21, %v1135_v21  ;;  %v629_v4 = vsel %vm329_vm1, %v570_v61, 0.0 }
  0xdc   : > { %v532_v21 = vsel %vm329_vm1, %v1199_v26, 0.0 }
  0xdd   : > { %v507_v9 = vadd.f32 %v506_v22, %v505_v5  ;;  %v608_v19 = vadd.f32 %v607_v7, %v606_v6  ;;  %v631_v7 = vsel %vm329_vm1, %v571_v1, 0.0  ;;  %v573_v22 = vmul.f32 %v1199_v26, %v1199_v26 }
  0xdf   : > { %v610_v13 = vadd.f32 %v609_v11, %v608_v19  ;;  %v509_v15 = vadd.f32 %v508_v30, %v507_v9  ;;  %v633_v19 = vsel %vm329_vm1, %v572_v53, 0.0  ;;  %v635_v12 = vsel %vm329_vm1, %v573_v22, 0.0 }
  0xe1   : > { %v511_v20 = vadd.f32 %v510_v38, %v509_v15  ;;  %v612_v24 = vadd.f32 %v611_v17, %v610_v13 }
  0xe3   : > { %v513_v25 = vadd.f32 %v512_v45, %v511_v20  ;;  %v614_v28 = vadd.f32 %v613_v23, %v612_v24 }
  0xe5   : > { %v616_v33 = vadd.f32 %v615_v29, %v614_v28  ;;  %v515_v40 = vadd.f32 %v514_v54, %v513_v25 }
  0xe7   : > { %v618_v37 = vadd.f32 %v617_v10, %v616_v33  ;;  %v517_v39 = vadd.f32 %v516_v36, %v515_v40 }
  0xe9   : > { %v519_v42 = vadd.f32 %v518_v41, %v517_v39  ;;  %v620_v44 = vadd.f32 %v619_v47, %v618_v37 }
  0xeb   : > { %v521_v51 = vadd.f32 %v520_v49, %v519_v42  ;;  %v622_v52 = vadd.f32 %v621_v46, %v620_v44 }
  0xed   : > { %v523_v56 = vadd.f32 %v522_v27, %v521_v51  ;;  %v624_v58 = vadd.f32 %v623_v55, %v622_v52 }
  0xef   : > { %v626_v63 = vadd.f32 %v625_v59, %v624_v58  ;;  %v525_v0 = vadd.f32 %v524_v35, %v523_v56 }
  0xf1   : > { %v527_v2 = vadd.f32 %v526_v43, %v525_v0  ;;  %v628_v3 = vadd.f32 %v627_v14, %v626_v63 }
  0xf3   : > { %v529_v5 = vadd.f32 %v528_v50, %v527_v2  ;;  %v630_v6 = vadd.f32 %v629_v4, %v628_v3 }
  0xf5   : > { %v632_v8 = vadd.f32 %v631_v7, %v630_v6  ;;  %v531_v9 = vadd.f32 %v530_v60, %v529_v5 }
  0xf7   : > { %v634_v11 = vadd.f32 %v633_v19, %v632_v8  ;;  %v533_v30 = vadd.f32 %v532_v21, %v531_v9 }
  0xf9   : > { %v534_v13 = vrot.slane %v533_v30, 4  ;;  %v636_v15 = vadd.f32 %v635_v12, %v634_v11 }
  0xfb   : > { %v535_v17 = vadd.f32 %v534_v13, %v533_v30  ;;  %v637_v62 = vrot.slane %v636_v15, 4 }
  0xfd   : > { %v536_v38 = vrot.slane %v535_v17, 2  ;;  %v638_v18 = vadd.f32 %v637_v62, %v636_v15 }
  0xff   : > { %v537_v20 = vadd.f32 %v536_v38, %v535_v17  ;;  %v639_v24 = vrot.slane %v638_v18, 2 }
 0x101   : > { %v538_v23 = vrot.slane %v537_v20, 1  ;;  %v640_v45 = vadd.f32 %v639_v24, %v638_v18 }
 0x103   : > { %v539_v26 = vadd.f32 %v538_v23, %v537_v20  ;;  %v641_v32 = vrot.slane %v640_v45, 1 }
 0x105   : > { %541 = vst.msk [vmem:[%s211_s28] sm:$0x1] %vm540_vm3, %v539_v26  ;;  %v642_v25 = vadd.f32 %v641_v32, %v640_v45 }
 0x107   : > { %643 = vst.msk [vmem:[%s214_s5] sm:$0x1] %vm540_vm3, %v642_v25 }
 0x108 PF: > { %s15_s15 = sadd.s32 1, %s940_s15  }
 0x109   : > { %p12_p4 = scmp.ge.s32.totalorder %s15_s15, 4  }
 0x10b   :  { %14 = sbr.rel (!%p12_p4) target bundleno = 1 (0x1), region = 82 }

// kernel: _lambda_.109
= control target key start
LH: loop header
LB: loop body
LE: loop exit
PB: predicated region body
PF: predicated region fallthrough
CT: control target
= control target key end

     0   :  { %s149_s0 = inlined_call_operand.vmem [shape: bf16[32,128], index: 0, kind: input, shape index: {}]   ;;  %s150_s1 = inlined_call_operand.vmem [shape: f32[1,128], index: 1, kind: input, shape index: {}]   ;;  %s151_s2 = inlined_call_operand.vmem [shape: f32[1,128], index: 2, kind: input, shape index: {}]   ;;  %s152_s3 = inlined_call_operand.vmem [shape: bf16[32,128], index: 3, kind: input, shape index: {}]   ;;  %s153_s4 = inlined_call_operand.vmem [shape: bf16[32,128], index: 4, kind: output, shape index: {}]  }
   0x1   :  { %v70_v0 = vld [vmem:[%s149_s0] sm:$0xff]   ;;  %v95_v8 = vld [vmem:[%s149_s0 + $0x8] sm:$0xff]  }
   0x2   :  { %v98_v1 = vld [vmem:[%s150_s1] ss:$0 sm:$0xff]  ;;  %v71_v2 = vunpack.c.l.bf16 %v70_v0  ;;  %v72_v3 = vunpack.c.h.bf16 %v70_v0  ;;  %v96_v9 = vld [vmem:[%s152_s3 + $0x8] sm:$0xff]   ;;  %v75_v12 = vunpack.c.l.bf16 %v95_v8  ;;  %v76_v13 = vunpack.c.h.bf16 %v95_v8 }
   0x3   :  { %v99_v4 = vld [vmem:[%s151_s2] ss:$0 sm:$0xff]  ;;  %v83_v14 = vunpack.c.l.bf16 %v96_v9  ;;  %v84_v15 = vunpack.c.h.bf16 %v96_v9 }
   0x4   :  { %v78_v5 = vld [vmem:[%s152_s3] sm:$0xff]   ;;  %v29_v10 = vmul.f32 %v98_v1, %v71_v2  ;;  %v30_v11 = vmul.f32 %v98_v1, %v72_v3  ;;  %v31_v18 = vmul.f32 %v98_v1, %v75_v12  ;;  %v32_v19 = vmul.f32 %v98_v1, %v76_v13 }
   0x5   :  { %v79_v6 = vunpack.c.l.bf16 %v78_v5  ;;  %v80_v7 = vunpack.c.h.bf16 %v78_v5 }
   0x6   :  { %v37_v16 = vadd.f32 %v99_v4, %v29_v10  ;;  %v38_v17 = vadd.f32 %v99_v4, %v30_v11  ;;  %v39_v22 = vadd.f32 %v99_v4, %v31_v18  ;;  %v40_v23 = vadd.f32 %v99_v4, %v32_v19 }
   0x8   :  { %v49_v20 = vadd.f32 %v79_v6, %v37_v16  ;;  %v50_v21 = vadd.f32 %v80_v7, %v38_v17  ;;  %v51_v26 = vadd.f32 %v83_v14, %v39_v22  ;;  %v52_v27 = vadd.f32 %v84_v15, %v40_v23 }
   0xa   :  { %v53_v24 = vmax.f32 %v49_v20, 0.0  ;;  %v54_v25 = vmax.f32 %v50_v21, 0.0  ;;  %v55_v29 = vmax.f32 %v51_v26, 0.0  ;;  %v56_v30 = vmax.f32 %v52_v27, 0.0 }
   0xc   :  { %v88_v28 = vpack.c.bf16 %v54_v25, %v53_v24  ;;  %v93_v31 = vpack.c.bf16 %v56_v30, %v55_v29 }
   0xe   :  { %89 = vst [vmem:[%s153_s4] sm:$0xff] %v88_v28  }
   0xf   :  { %97 = vst [vmem:[%s153_s4 + $0x8] sm:$0xff] %v93_v31  }

// kernel: _lambda_.112
= control target key start
LH: loop header
LB: loop body
LE: loop exit
PB: predicated region body
PF: predicated region fallthrough
CT: control target
= control target key end

     0   :  { %s700_s12 = smov 0   ;;  %s846_s0 = inlined_call_operand.vmem [shape: bf16[2,16,16,8], index: 0, kind: input, shape index: {}]   ;;  %s847_s1 = inlined_call_operand.vmem [shape: bf16[1,8,4], index: 1, kind: input, shape index: {}]   ;;  %s848_s2 = inlined_call_operand.vmem [shape: f32[1,4], index: 2, kind: input, shape index: {}]   ;;  %s849_s3 = inlined_call_operand.vmem [shape: bf16[2,256,4], index: 3, kind: output, shape index: {}]  }
   0x1 LB: > { %s551_s13 = sadd.s32 4294967295, %s678_s12   ;;  %p555_p0 = scmp.ge.s32.totalorder %s678_s12, 1  ;;  %s678_s12 = sphi %s700_s12, %s13_s12  }
   0x2   : > { %p137_p1 = scmp.lt.s32.totalorder %s678_s12, 3 }
   0x4   : > { %p138_p2 = pnand %p555_p0, %p137_p1 }
   0x5   : > { %p161_p3 = scmp.lt.s32.totalorder (!%p138_p2), %s551_s13, 1 }
   0x6   : > { %141 = sbr.rel (%p138_p2) target bundleno = 211 (0xd3), region = 32 }
   0xb   : > { %v204_v0 = vld [vmem:[%s847_s1] sm:$0xf]  ;;  %vm338_vm0 = vcmask 1043456   ;;  %s851_s13 = smov (!%p161_p3, %s551_s13), 1  ;;  %vm289_vm1 = vcmask 64512   ;;  %vm463_vm2 = vcmask 27648  }
   0xc   : > { %v340_v1 = vsel %vm338_vm0, %v204_v0, 0  ;;  %s642_s16 = sshll.u32 %s851_s13, 7  ;;  %v738_v18 = vld [vmem:[%s848_s2] ss:$0 sm:$0xff] }
   0xd   : > { %349 = vmatpush.bf16.msra.mxu0 %v340_v1  ;;  %660 = vmatpush.bf16.msra.mxu1 %v340_v1  ;;  %s165_s19 = scalar_lea.vmem %s846_s0, %s642_s16  ;;  %s747_s24 = scalar_lea.vmem %s849_s3, %s642_s16 }
   0xe   : > { %661 = vmatpush.bf16.msra.mxu2 %v340_v1  ;;  %662 = vmatpush.bf16.msra.mxu3 %v340_v1  ;;  %v644_v2 = vld [vmem:[%s165_s19] sm:$0xff]  ;;  %v645_v6 = vld [vmem:[%s165_s19 + $0x8] sm:$0xff]  ;;  %v646_v10 = vld [vmem:[%s165_s19 + $0x10] sm:$0xff] }
   0xf   : > { %v648_v3 = vld [vmem:[%s165_s19 + $0x20] sm:$0xff]  ;;  %v649_v7 = vld [vmem:[%s165_s19 + $0x28] sm:$0xff]  ;;  %v650_v11 = vld [vmem:[%s165_s19 + $0x30] sm:$0xff] }
  0x10   : > { %v652_v4 = vld [vmem:[%s165_s19 + $0x40] sm:$0xff]  ;;  %624 = vmatmul.msk.bf16.vlgmr.msra.gmra.mxu0 %vm289_vm1, %v644_v2  ;;  %628 = vmatmul.msk.bf16.vlgmr.msra.gmra.mxu1 %vm289_vm1, %v648_v3  ;;  %v653_v8 = vld [vmem:[%s165_s19 + $0x48] sm:$0xff]  ;;  %v654_v12 = vld [vmem:[%s165_s19 + $0x50] sm:$0xff] }
  0x11   : > { %v656_v5 = vld [vmem:[%s165_s19 + $0x60] sm:$0xff]  ;;  %632 = vmatmul.msk.bf16.vlgmr.msra.gmra.mxu2 %vm289_vm1, %v652_v4  ;;  %v657_v9 = vld [vmem:[%s165_s19 + $0x68] sm:$0xff]  ;;  %v658_v13 = vld [vmem:[%s165_s19 + $0x70] sm:$0xff] }
  0x12   : > { %636 = vmatmul.msk.bf16.vlgmr.msra.gmra.mxu3 %vm289_vm1, %v656_v5  ;;  %v647_v14 = vld [vmem:[%s165_s19 + $0x18] sm:$0xff] }
  0x13   : > { %v651_v15 = vld [vmem:[%s165_s19 + $0x38] sm:$0xff] }
  0x14   : > { %v655_v16 = vld [vmem:[%s165_s19 + $0x58] sm:$0xff] }
  0x15   : > { %v659_v17 = vld [vmem:[%s165_s19 + $0x78] sm:$0xff] }
  0x20   : > { %625 = vmatmul.msk.bf16.gmra.mxu0 %vm289_vm1, %v645_v6  ;;  %629 = vmatmul.msk.bf16.gmra.mxu1 %vm289_vm1, %v649_v7 }
  0x21   : > { %633 = vmatmul.msk.bf16.gmra.mxu2 %vm289_vm1, %v653_v8 }
  0x22   : > { %637 = vmatmul.msk.bf16.gmra.mxu3 %vm289_vm1, %v657_v9 }
  0x30   : > { %626 = vmatmul.msk.bf16.gmra.mxu0 %vm289_vm1, %v646_v10  ;;  %630 = vmatmul.msk.bf16.gmra.mxu1 %vm289_vm1, %v650_v11 }
  0x31   : > { %634 = vmatmul.msk.bf16.gmra.mxu2 %vm289_vm1, %v654_v12 }
  0x32   : > { %638 = vmatmul.msk.bf16.gmra.mxu3 %vm289_vm1, %v658_v13 }
  0x40   : > { %627 = vmatmul.msk.bf16.gmra.mxu0 %vm289_vm1, %v647_v14  ;;  %631 = vmatmul.msk.bf16.gmra.mxu1 %vm289_vm1, %v651_v15 }
  0x41   : > { %635 = vmatmul.msk.bf16.gmra.mxu2 %vm289_vm1, %v655_v16 }
  0x42   : > { %639 = vmatmul.msk.bf16.gmra.mxu3 %vm289_vm1, %v659_v17 }
  0x8d   : > { %v351_v19 = vpop.f32.mrf.mxu0  ;;  %v371_v20 = vpop.f32.mrf.mxu1 }
  0x8e   : > { %v352_v21 = vadd.f32 %v738_v18, %v351_v19  ;;  %v372_v22 = vadd.f32 %v738_v18, %v371_v20 }
  0x90   : > { %v431_v23 = vpack.c.bf16 %v352_v21, %v352_v21  ;;  %v439_v24 = vpack.c.bf16 %v372_v22, %v372_v22 }
  0x92   : > { %464 = vst.msk [vmem:[%s747_s24] sm:$0xf] %vm463_vm2, %v431_v23 }
  0x93   : > { %472 = vst.msk [vmem:[%s747_s24 + $0x20] sm:$0xf] %vm463_vm2, %v439_v24 }
  0x94   : > { %v391_v25 = vpop.f32.mrf.mxu2 }
  0x95   : > { %v411_v26 = vpop.f32.mrf.mxu3  ;;  %v392_v27 = vadd.f32 %v738_v18, %v391_v25  ;;  %v353_v29 = vpop.f32.mrf.mxu0 }
  0x96   : > { %v412_v28 = vadd.f32 %v738_v18, %v411_v26  ;;  %v373_v30 = vpop.f32.mrf.mxu1  ;;  %v354_v31 = vadd.f32 %v738_v18, %v353_v29 }
  0x97   : > { %v374_v32 = vadd.f32 %v738_v18, %v373_v30  ;;  %v447_v33 = vpack.c.bf16 %v392_v27, %v392_v27 }
  0x98   : > { %v455_v34 = vpack.c.bf16 %v412_v28, %v412_v28  ;;  %v432_v35 = vpack.c.bf16 %v354_v31, %v354_v31 }
  0x99   : > { %v440_v36 = vpack.c.bf16 %v374_v32, %v374_v32  ;;  %480 = vst.msk [vmem:[%s747_s24 + $0x40] sm:$0xf] %vm463_vm2, %v447_v33 }
  0x9a   : > { %488 = vst.msk [vmem:[%s747_s24 + $0x60] sm:$0xf] %vm463_vm2, %v455_v34 }
  0x9b   : > { %465 = vst.msk [vmem:[%s747_s24 + $0x4] sm:$0xf] %vm463_vm2, %v432_v35 }
  0x9c   : > { %473 = vst.msk [vmem:[%s747_s24 + $0x24] sm:$0xf] %vm463_vm2, %v440_v36  ;;  %v393_v37 = vpop.f32.mrf.mxu2 }
  0x9d   : > { %v413_v38 = vpop.f32.mrf.mxu3  ;;  %v394_v39 = vadd.f32 %v738_v18, %v393_v37  ;;  %v356_v41 = vpop.f32.mrf.mxu0 }
  0x9e   : > { %v414_v40 = vadd.f32 %v738_v18, %v413_v38  ;;  %v376_v42 = vpop.f32.mrf.mxu1  ;;  %v357_v43 = vadd.f32 %v738_v18, %v356_v41 }
  0x9f   : > { %v377_v44 = vadd.f32 %v738_v18, %v376_v42  ;;  %v448_v45 = vpack.c.bf16 %v394_v39, %v394_v39 }
  0xa0   : > { %v456_v46 = vpack.c.bf16 %v414_v40, %v414_v40  ;;  %v433_v47 = vpack.c.bf16 %v357_v43, %v357_v43 }
  0xa1   : > { %v441_v48 = vpack.c.bf16 %v377_v44, %v377_v44  ;;  %481 = vst.msk [vmem:[%s747_s24 + $0x44] sm:$0xf] %vm463_vm2, %v448_v45 }
  0xa2   : > { %489 = vst.msk [vmem:[%s747_s24 + $0x64] sm:$0xf] %vm463_vm2, %v456_v46 }
  0xa3   : > { %466 = vst.msk [vmem:[%s747_s24 + $0x8] sm:$0xf] %vm463_vm2, %v433_v47 }
  0xa4   : > { %474 = vst.msk [vmem:[%s747_s24 + $0x28] sm:$0xf] %vm463_vm2, %v441_v48  ;;  %v396_v49 = vpop.f32.mrf.mxu2 }
  0xa5   : > { %v416_v50 = vpop.f32.mrf.mxu3  ;;  %v397_v51 = vadd.f32 %v738_v18, %v396_v49  ;;  %v358_v53 = vpop.f32.mrf.mxu0 }
  0xa6   : > { %v417_v52 = vadd.f32 %v738_v18, %v416_v50  ;;  %v378_v54 = vpop.f32.mrf.mxu1  ;;  %v359_v55 = vadd.f32 %v738_v18, %v358_v53 }
  0xa7   : > { %v379_v56 = vadd.f32 %v738_v18, %v378_v54  ;;  %v449_v57 = vpack.c.bf16 %v397_v51, %v397_v51 }
  0xa8   : > { %v457_v58 = vpack.c.bf16 %v417_v52, %v417_v52  ;;  %v434_v59 = vpack.c.bf16 %v359_v55, %v359_v55 }
  0xa9   : > { %v442_v60 = vpack.c.bf16 %v379_v56, %v379_v56  ;;  %482 = vst.msk [vmem:[%s747_s24 + $0x48] sm:$0xf] %vm463_vm2, %v449_v57 }
  0xaa   : > { %490 = vst.msk [vmem:[%s747_s24 + $0x68] sm:$0xf] %vm463_vm2, %v457_v58 }
  0xab   : > { %467 = vst.msk [vmem:[%s747_s24 + $0xc] sm:$0xf] %vm463_vm2, %v434_v59 }
  0xac   : > { %475 = vst.msk [vmem:[%s747_s24 + $0x2c] sm:$0xf] %vm463_vm2, %v442_v60  ;;  %v398_v61 = vpop.f32.mrf.mxu2 }
  0xad   : > { %v418_v62 = vpop.f32.mrf.mxu3  ;;  %v399_v63 = vadd.f32 %v738_v18, %v398_v61  ;;  %v361_v1 = vpop.f32.mrf.mxu0 }
  0xae   : > { %v419_v0 = vadd.f32 %v738_v18, %v418_v62  ;;  %v381_v2 = vpop.f32.mrf.mxu1  ;;  %v362_v3 = vadd.f32 %v738_v18, %v361_v1 }
  0xaf   : > { %v382_v4 = vadd.f32 %v738_v18, %v381_v2  ;;  %v450_v5 = vpack.c.bf16 %v399_v63, %v399_v63 }
  0xb0   : > { %v458_v6 = vpack.c.bf16 %v419_v0, %v419_v0  ;;  %v435_v7 = vpack.c.bf16 %v362_v3, %v362_v3 }
  0xb1   : > { %v443_v8 = vpack.c.bf16 %v382_v4, %v382_v4  ;;  %483 = vst.msk [vmem:[%s747_s24 + $0x4c] sm:$0xf] %vm463_vm2, %v450_v5 }
  0xb2   : > { %491 = vst.msk [vmem:[%s747_s24 + $0x6c] sm:$0xf] %vm463_vm2, %v458_v6 }
  0xb3   : > { %468 = vst.msk [vmem:[%s747_s24 + $0x10] sm:$0xf] %vm463_vm2, %v435_v7 }
  0xb4   : > { %476 = vst.msk [vmem:[%s747_s24 + $0x30] sm:$0xf] %vm463_vm2, %v443_v8  ;;  %v401_v9 = vpop.f32.mrf.mxu2 }
  0xb5   : > { %v421_v10 = vpop.f32.mrf.mxu3  ;;  %v402_v11 = vadd.f32 %v738_v18, %v401_v9  ;;  %v363_v13 = vpop.f32.mrf.mxu0 }
  0xb6   : > { %v422_v12 = vadd.f32 %v738_v18, %v421_v10  ;;  %v383_v14 = vpop.f32.mrf.mxu1  ;;  %v364_v15 = vadd.f32 %v738_v18, %v363_v13 }
  0xb7   : > { %v384_v16 = vadd.f32 %v738_v18, %v383_v14  ;;  %v451_v17 = vpack.c.bf16 %v402_v11, %v402_v11 }
  0xb8   : > { %v459_v19 = vpack.c.bf16 %v422_v12, %v422_v12  ;;  %v436_v20 = vpack.c.bf16 %v364_v15, %v364_v15 }
  0xb9   : > { %v444_v21 = vpack.c.bf16 %v384_v16, %v384_v16  ;;  %484 = vst.msk [vmem:[%s747_s24 + $0x50] sm:$0xf] %vm463_vm2, %v451_v17 }
  0xba   : > { %492 = vst.msk [vmem:[%s747_s24 + $0x70] sm:$0xf] %vm463_vm2, %v459_v19 }
  0xbb   : > { %469 = vst.msk [vmem:[%s747_s24 + $0x14] sm:$0xf] %vm463_vm2, %v436_v20 }
  0xbc   : > { %477 = vst.msk [vmem:[%s747_s24 + $0x34] sm:$0xf] %vm463_vm2, %v444_v21  ;;  %v403_v22 = vpop.f32.mrf.mxu2 }
  0xbd   : > { %v423_v23 = vpop.f32.mrf.mxu3  ;;  %v404_v24 = vadd.f32 %v738_v18, %v403_v22  ;;  %v366_v26 = vpop.f32.mrf.mxu0 }
  0xbe   : > { %v424_v25 = vadd.f32 %v738_v18, %v423_v23  ;;  %v386_v27 = vpop.f32.mrf.mxu1  ;;  %v367_v28 = vadd.f32 %v738_v18, %v366_v26 }
  0xbf   : > { %v387_v29 = vadd.f32 %v738_v18, %v386_v27  ;;  %v452_v30 = vpack.c.bf16 %v404_v24, %v404_v24 }
  0xc0   : > { %v460_v31 = vpack.c.bf16 %v424_v25, %v424_v25  ;;  %v437_v32 = vpack.c.bf16 %v367_v28, %v367_v28 }
  0xc1   : > { %v445_v33 = vpack.c.bf16 %v387_v29, %v387_v29  ;;  %485 = vst.msk [vmem:[%s747_s24 + $0x54] sm:$0xf] %vm463_vm2, %v452_v30 }
  0xc2   : > { %493 = vst.msk [vmem:[%s747_s24 + $0x74] sm:$0xf] %vm463_vm2, %v460_v31 }
  0xc3   : > { %470 = vst.msk [vmem:[%s747_s24 + $0x18] sm:$0xf] %vm463_vm2, %v437_v32 }
  0xc4   : > { %478 = vst.msk [vmem:[%s747_s24 + $0x38] sm:$0xf] %vm463_vm2, %v445_v33  ;;  %v406_v34 = vpop.f32.mrf.mxu2 }
  0xc5   : > { %v426_v35 = vpop.f32.mrf.mxu3  ;;  %v407_v36 = vadd.f32 %v738_v18, %v406_v34  ;;  %v368_v38 = vpop.f32.mrf.mxu0 }
  0xc6   : > { %v427_v37 = vadd.f32 %v738_v18, %v426_v35  ;;  %v388_v39 = vpop.f32.mrf.mxu1  ;;  %v369_v40 = vadd.f32 %v738_v18, %v368_v38 }
  0xc7   : > { %v389_v41 = vadd.f32 %v738_v18, %v388_v39  ;;  %v453_v42 = vpack.c.bf16 %v407_v36, %v407_v36 }
  0xc8   : > { %v461_v43 = vpack.c.bf16 %v427_v37, %v427_v37  ;;  %v438_v44 = vpack.c.bf16 %v369_v40, %v369_v40 }
  0xc9   : > { %v446_v45 = vpack.c.bf16 %v389_v41, %v389_v41  ;;  %486 = vst.msk [vmem:[%s747_s24 + $0x58] sm:$0xf] %vm463_vm2, %v453_v42 }
  0xca   : > { %494 = vst.msk [vmem:[%s747_s24 + $0x78] sm:$0xf] %vm463_vm2, %v461_v43 }
  0xcb   : > { %471 = vst.msk [vmem:[%s747_s24 + $0x1c] sm:$0xf] %vm463_vm2, %v438_v44 }
  0xcc   : > { %479 = vst.msk [vmem:[%s747_s24 + $0x3c] sm:$0xf] %vm463_vm2, %v446_v45  ;;  %v408_v46 = vpop.f32.mrf.mxu2 }
  0xcd   : > { %v428_v47 = vpop.f32.mrf.mxu3  ;;  %v409_v48 = vadd.f32 %v738_v18, %v408_v46 }
  0xce   : > { %v429_v49 = vadd.f32 %v738_v18, %v428_v47 }
  0xcf   : > { %v454_v50 = vpack.c.bf16 %v409_v48, %v409_v48 }
  0xd0   : > { %v462_v51 = vpack.c.bf16 %v429_v49, %v429_v49 }
  0xd1   : > { %487 = vst.msk [vmem:[%s747_s24 + $0x5c] sm:$0xf] %vm463_vm2, %v454_v50 }
  0xd2   : > { %495 = vst.msk [vmem:[%s747_s24 + $0x7c] sm:$0xf] %vm463_vm2, %v462_v51 }
  0xd3 PF: > { %s13_s12 = sadd.s32 1, %s678_s12  }
  0xd4   : > { %p10_p4 = scmp.ge.s32.totalorder %s13_s12, 4  }
  0xd6   :  { %12 = sbr.rel (!%p10_p4) target bundleno = 1 (0x1), region = 62 }

// kernel: _lambda_.116
= control target key start
LH: loop header
LB: loop body
LE: loop exit
PB: predicated region body
PF: predicated region fallthrough
CT: control target
= control target key end

     0   :  { %s184_s0 = inlined_call_operand.vmem [shape: bf16[32,128], index: 0, kind: input, shape index: {}]   ;;  %s185_s1 = inlined_call_operand.vmem [shape: f32[1,128], index: 1, kind: input, shape index: {}]   ;;  %s186_s2 = inlined_call_operand.vmem [shape: f32[1,128], index: 2, kind: input, shape index: {}]   ;;  %s187_s3 = inlined_call_operand.vmem [shape: bf16[32,128], index: 3, kind: input, shape index: {}]   ;;  %s188_s4 = inlined_call_operand.vmem [shape: bf16[32,128], index: 4, kind: input, shape index: {}]   ;;  %s189_s5 = inlined_call_operand.vmem [shape: bf16[32,128], index: 5, kind: output, shape index: {}]  }
   0x1   :  { %v85_v0 = vld [vmem:[%s184_s0] sm:$0xff]   ;;  %v118_v6 = vld [vmem:[%s184_s0 + $0x8] sm:$0xff]  }
   0x2   :  { %v122_v1 = vld [vmem:[%s185_s1] ss:$0 sm:$0xff]  ;;  %v86_v2 = vunpack.c.l.bf16 %v85_v0  ;;  %v87_v3 = vunpack.c.h.bf16 %v85_v0  ;;  %v90_v10 = vunpack.c.l.bf16 %v118_v6  ;;  %v91_v11 = vunpack.c.h.bf16 %v118_v6  ;;  %v119_v16 = vld [vmem:[%s187_s3 + $0x8] sm:$0xff]  }
   0x3   :  { %v123_v4 = vld [vmem:[%s186_s2] ss:$0 sm:$0xff]  ;;  %v120_v23 = vld [vmem:[%s188_s4 + $0x8] sm:$0xff]   ;;  %v98_v26 = vunpack.c.l.bf16 %v119_v16  ;;  %v99_v27 = vunpack.c.h.bf16 %v119_v16 }
   0x4   :  { %v93_v5 = vld [vmem:[%s187_s3] sm:$0xff]   ;;  %v32_v7 = vmul.f32 %v122_v1, %v86_v2  ;;  %v33_v8 = vmul.f32 %v122_v1, %v87_v3  ;;  %v34_v17 = vmul.f32 %v122_v1, %v90_v10  ;;  %v35_v18 = vmul.f32 %v122_v1, %v91_v11 }
   0x5   :  { %v101_v9 = vld [vmem:[%s188_s4] sm:$0xff]   ;;  %v94_v14 = vunpack.c.l.bf16 %v93_v5  ;;  %v95_v15 = vunpack.c.h.bf16 %v93_v5  ;;  %v106_v32 = vunpack.c.l.bf16 %v120_v23  ;;  %v107_v33 = vunpack.c.h.bf16 %v120_v23 }
   0x6   :  { %v40_v12 = vadd.f32 %v123_v4, %v32_v7  ;;  %v41_v13 = vadd.f32 %v123_v4, %v33_v8  ;;  %v102_v21 = vunpack.c.l.bf16 %v101_v9  ;;  %v103_v22 = vunpack.c.h.bf16 %v101_v9 }
   0x7   :  { %v42_v24 = vadd.f32 %v123_v4, %v34_v17  ;;  %v43_v25 = vadd.f32 %v123_v4, %v35_v18 }
   0x8   :  { %v44_v19 = vmax.f32 %v40_v12, 0.0  ;;  %v45_v20 = vmax.f32 %v41_v13, 0.0 }
   0x9   :  { %v46_v30 = vmax.f32 %v42_v24, 0.0  ;;  %v47_v31 = vmax.f32 %v43_v25, 0.0 }
   0xa   :  { %v56_v28 = vadd.f32 %v94_v14, %v44_v19  ;;  %v57_v29 = vadd.f32 %v95_v15, %v45_v20 }
   0xb   :  { %v58_v36 = vadd.f32 %v98_v26, %v46_v30  ;;  %v59_v37 = vadd.f32 %v99_v27, %v47_v31 }
   0xc   :  { %v68_v34 = vadd.f32 %v102_v21, %v56_v28  ;;  %v69_v35 = vadd.f32 %v103_v22, %v57_v29 }
   0xd   :  { %v70_v39 = vadd.f32 %v106_v32, %v58_v36  ;;  %v71_v40 = vadd.f32 %v107_v33, %v59_v37 }
   0xe   :  { %v111_v38 = vpack.c.bf16 %v69_v35, %v68_v34 }
   0xf   :  { %v116_v41 = vpack.c.bf16 %v71_v40, %v70_v39 }
  0x10   :  { %112 = vst [vmem:[%s189_s5] sm:$0xff] %v111_v38  }
  0x11   :  { %121 = vst [vmem:[%s189_s5 + $0x8] sm:$0xff] %v116_v41  }

// kernel: _lambda_.115
= control target key start
LH: loop header
LB: loop body
LE: loop exit
PB: predicated region body
PF: predicated region fallthrough
CT: control target
= control target key end

     0   :  { %s968_s15 = smov 0   ;;  %s1317_s0 = inlined_call_operand.vmem [shape: bf16[2,16,16,4], index: 0, kind: input, shape index: {}]   ;;  %s1318_s1 = inlined_call_operand.vmem [shape: bf16[1,4,8], index: 1, kind: input, shape index: {}]   ;;  %s1319_s2 = inlined_call_operand.vmem [shape: bf16[2,256,8], index: 2, kind: output, shape index: {0}]   ;;  %s1320_s3 = inlined_call_operand.vmem [shape: f32[2,1,8], index: 3, kind: output, shape index: {1}]   ;;  %s1321_s4 = inlined_call_operand.vmem [shape: f32[2,1,8], index: 4, kind: output, shape index: {2}]  }
   0x1 LB: > { %s815_s16 = sadd.s32 4294967295, %s941_s15   ;;  %p819_p0 = scmp.ge.s32.totalorder %s941_s15, 1  ;;  %s941_s15 = sphi %s968_s15, %s15_s15  }
   0x2   : > { %p167_p1 = scmp.lt.s32.totalorder %s941_s15, 3 }
   0x4   : > { %p168_p2 = pnand %p819_p0, %p167_p1 }
   0x5   : > { %p199_p3 = scmp.lt.s32.totalorder (!%p168_p2), %s815_s16, 1 }
   0x6   : > { %171 = sbr.rel (%p168_p2) target bundleno = 264 (0x108), region = 28 }
   0xb   : > { %v248_v0 = vld [vmem:[%s1318_s1] sm:$0x3]  ;;  %vm378_vm0 = vcmask 1041408   ;;  %s1323_s16 = smov (!%p199_p3, %s815_s16), 1  ;;  %vm329_vm1 = vcmask 31744   ;;  %vm677_vm2 = vcmask 60416  }
   0xc   : > { %v380_v1 = vsel %vm378_vm0, %v248_v0, 0  ;;  %s906_s19 = sshll.u32 %s1323_s16, 7  ;;  %vm471_vm3 = vcmask 64512   ;;  %s211_s28 = scalar_lea.vmem %s1320_s3, %s1323_s16  ;;  %vm541_vm4 = vcmask 57344  }
   0xd   : > { %389 = vmatpush.bf16.msra.mxu0 %v380_v1  ;;  %924 = vmatpush.bf16.msra.mxu1 %v380_v1  ;;  %s203_s22 = scalar_lea.vmem %s1317_s0, %s906_s19  ;;  %s1008_s25 = scalar_lea.vmem %s1319_s2, %s906_s19 }
   0xe   : > { %925 = vmatpush.bf16.msra.mxu2 %v380_v1  ;;  %926 = vmatpush.bf16.msra.mxu3 %v380_v1  ;;  %v908_v2 = vld [vmem:[%s203_s22] sm:$0xff]  ;;  %v909_v6 = vld [vmem:[%s203_s22 + $0x8] sm:$0xff]  ;;  %v910_v10 = vld [vmem:[%s203_s22 + $0x10] sm:$0xff]  ;;  %s214_s5 = scalar_lea.vmem %s1321_s4, %s1323_s16 }
   0xf   : > { %v912_v3 = vld [vmem:[%s203_s22 + $0x20] sm:$0xff]  ;;  %v913_v7 = vld [vmem:[%s203_s22 + $0x28] sm:$0xff]  ;;  %v914_v11 = vld [vmem:[%s203_s22 + $0x30] sm:$0xff] }
  0x10   : > { %v916_v4 = vld [vmem:[%s203_s22 + $0x40] sm:$0xff]  ;;  %888 = vmatmul.msk.bf16.vlgmr.msra.gmra.mxu0 %vm329_vm1, %v908_v2  ;;  %892 = vmatmul.msk.bf16.vlgmr.msra.gmra.mxu1 %vm329_vm1, %v912_v3  ;;  %v917_v8 = vld [vmem:[%s203_s22 + $0x48] sm:$0xff]  ;;  %v918_v12 = vld [vmem:[%s203_s22 + $0x50] sm:$0xff] }
  0x11   : > { %v920_v5 = vld [vmem:[%s203_s22 + $0x60] sm:$0xff]  ;;  %896 = vmatmul.msk.bf16.vlgmr.msra.gmra.mxu2 %vm329_vm1, %v916_v4  ;;  %v921_v9 = vld [vmem:[%s203_s22 + $0x68] sm:$0xff]  ;;  %v922_v13 = vld [vmem:[%s203_s22 + $0x70] sm:$0xff] }
  0x12   : > { %900 = vmatmul.msk.bf16.vlgmr.msra.gmra.mxu3 %vm329_vm1, %v920_v5  ;;  %v911_v14 = vld [vmem:[%s203_s22 + $0x18] sm:$0xff] }
  0x13   : > { %v915_v15 = vld [vmem:[%s203_s22 + $0x38] sm:$0xff] }
  0x14   : > { %v919_v16 = vld [vmem:[%s203_s22 + $0x58] sm:$0xff] }
  0x15   : > { %v923_v17 = vld [vmem:[%s203_s22 + $0x78] sm:$0xff] }
  0x20   : > { %889 = vmatmul.msk.bf16.gmra.mxu0 %vm329_vm1, %v909_v6  ;;  %893 = vmatmul.msk.bf16.gmra.mxu1 %vm329_vm1, %v913_v7 }
  0x21   : > { %897 = vmatmul.msk.bf16.gmra.mxu2 %vm329_vm1, %v917_v8 }
  0x22   : > { %901 = vmatmul.msk.bf16.gmra.mxu3 %vm329_vm1, %v921_v9 }
  0x30   : > { %890 = vmatmul.msk.bf16.gmra.mxu0 %vm329_vm1, %v910_v10  ;;  %894 = vmatmul.msk.bf16.gmra.mxu1 %vm329_vm1, %v914_v11 }
  0x31   : > { %898 = vmatmul.msk.bf16.gmra.mxu2 %vm329_vm1, %v918_v12 }
  0x32   : > { %902 = vmatmul.msk.bf16.gmra.mxu3 %vm329_vm1, %v922_v13 }
  0x40   : > { %891 = vmatmul.msk.bf16.gmra.mxu0 %vm329_vm1, %v911_v14  ;;  %895 = vmatmul.msk.bf16.gmra.mxu1 %vm329_vm1, %v915_v15 }
  0x41   : > { %899 = vmatmul.msk.bf16.gmra.mxu2 %vm329_vm1, %v919_v16 }
  0x42   : > { %903 = vmatmul.msk.bf16.gmra.mxu3 %vm329_vm1, %v923_v17 }
  0x8d   : > { %v1010_v18 = vpop.f32.mrf.mxu0  ;;  %v1012_v19 = vpop.f32.mrf.mxu1 }
  0x8e   : > { %v645_v20 = vpack.c.bf16 %v1010_v18, %v1010_v18  ;;  %v653_v21 = vpack.c.bf16 %v1012_v19, %v1012_v19  ;;  %v543_v62 = vmul.f32 %v1010_v18, %v1010_v18  ;;  %v472_v1 = vsel %vm471_vm3, %v1010_v18, 0.0 }
  0x90   : > { %678 = vst.msk [vmem:[%s1008_s25] sm:$0xf] %vm677_vm2, %v645_v20  ;;  %v575_v6 = vsel %vm471_vm3, %v543_v62, 0.0 }
  0x91   : > { %686 = vst.msk [vmem:[%s1008_s25 + $0x20] sm:$0xf] %vm677_vm2, %v653_v21 }
  0x94   : > { %v1022_v22 = vpop.f32.mrf.mxu2 }
  0x95   : > { %v393_v23 = vpop.f32.mrf.mxu0  ;;  %v1024_v24 = vpop.f32.mrf.mxu1  ;;  %v661_v25 = vpack.c.bf16 %v1022_v22, %v1022_v22 }
  0x96   : > { %v646_v26 = vpack.c.bf16 %v393_v23, %v393_v23  ;;  %v1028_v27 = vpop.f32.mrf.mxu3  ;;  %v654_v28 = vpack.c.bf16 %v1024_v24, %v1024_v24  ;;  %v544_v58 = vmul.f32 %v393_v23, %v393_v23  ;;  %v473_v63 = vsel %vm471_vm3, %v393_v23, 0.0 }
  0x97   : > { %694 = vst.msk [vmem:[%s1008_s25 + $0x40] sm:$0xf] %vm677_vm2, %v661_v25  ;;  %v669_v29 = vpack.c.bf16 %v1028_v27, %v1028_v27  ;;  %v474_v5 = vadd.f32 %v473_v63, %v472_v1 }
  0x98   : > { %679 = vst.msk [vmem:[%s1008_s25 + $0x4] sm:$0xf] %vm677_vm2, %v646_v26  ;;  %v576_v2 = vsel %vm471_vm3, %v544_v58, 0.0 }
  0x99   : > { %687 = vst.msk [vmem:[%s1008_s25 + $0x24] sm:$0xf] %vm677_vm2, %v654_v28  ;;  %v577_v11 = vadd.f32 %v576_v2, %v575_v6  ;;  %v487_v2 = vsel %vm471_vm3, %v1012_v19, 0.0 }
  0x9a   : > { %702 = vst.msk [vmem:[%s1008_s25 + $0x60] sm:$0xf] %vm677_vm2, %v669_v29 }
  0x9c   : > { %v1040_v30 = vpop.f32.mrf.mxu2 }
  0x9d   : > { %v396_v31 = vpop.f32.mrf.mxu0  ;;  %v1044_v32 = vpop.f32.mrf.mxu1  ;;  %v662_v33 = vpack.c.bf16 %v1040_v30, %v1040_v30 }
  0x9e   : > { %v647_v34 = vpack.c.bf16 %v396_v31, %v396_v31  ;;  %v1048_v35 = vpop.f32.mrf.mxu3  ;;  %v655_v36 = vpack.c.bf16 %v1044_v32, %v1044_v32  ;;  %v545_v0 = vmul.f32 %v396_v31, %v396_v31  ;;  %v475_v3 = vsel %vm471_vm3, %v396_v31, 0.0 }
  0x9f   : > { %695 = vst.msk [vmem:[%s1008_s25 + $0x44] sm:$0xf] %vm677_vm2, %v662_v33  ;;  %v670_v37 = vpack.c.bf16 %v1048_v35, %v1048_v35  ;;  %v476_v12 = vadd.f32 %v475_v3, %v474_v5  ;;  %v552_v3 = vmul.f32 %v1024_v24, %v1024_v24  ;;  %v553_v5 = vmul.f32 %v1044_v32, %v1044_v32 }
  0xa0   : > { %680 = vst.msk [vmem:[%s1008_s25 + $0x8] sm:$0xf] %vm677_vm2, %v647_v34  ;;  %v578_v7 = vsel %vm471_vm3, %v545_v0, 0.0 }
  0xa1   : > { %688 = vst.msk [vmem:[%s1008_s25 + $0x28] sm:$0xf] %vm677_vm2, %v655_v36  ;;  %v579_v23 = vadd.f32 %v578_v7, %v577_v11 }
  0xa2   : > { %703 = vst.msk [vmem:[%s1008_s25 + $0x64] sm:$0xf] %vm677_vm2, %v670_v37 }
  0xa4   : > { %v1062_v38 = vpop.f32.mrf.mxu2 }
  0xa5   : > { %v398_v39 = vpop.f32.mrf.mxu0  ;;  %v1064_v40 = vpop.f32.mrf.mxu1  ;;  %v663_v41 = vpack.c.bf16 %v1062_v38, %v1062_v38 }
  0xa6   : > { %v648_v42 = vpack.c.bf16 %v398_v39, %v398_v39  ;;  %v1068_v43 = vpop.f32.mrf.mxu3  ;;  %v656_v44 = vpack.c.bf16 %v1064_v40, %v1064_v40  ;;  %v546_v4 = vmul.f32 %v398_v39, %v398_v39  ;;  %v477_v8 = vsel %vm471_vm3, %v398_v39, 0.0 }
  0xa7   : > { %696 = vst.msk [vmem:[%s1008_s25 + $0x48] sm:$0xf] %vm677_vm2, %v663_v41  ;;  %v671_v52 = vpack.c.bf16 %v1068_v43, %v1068_v43  ;;  %v478_v25 = vadd.f32 %v477_v8, %v476_v12  ;;  %v592_v12 = vsel %vm471_vm3, %v552_v3, 0.0 }
  0xa8   : > { %681 = vst.msk [vmem:[%s1008_s25 + $0xc] sm:$0xf] %vm677_vm2, %v648_v42  ;;  %v580_v16 = vsel %vm471_vm3, %v546_v4, 0.0 }
  0xa9   : > { %689 = vst.msk [vmem:[%s1008_s25 + $0x2c] sm:$0xf] %vm677_vm2, %v656_v44  ;;  %v581_v34 = vadd.f32 %v580_v16, %v579_v23 }
  0xaa   : > { %704 = vst.msk [vmem:[%s1008_s25 + $0x68] sm:$0xf] %vm677_vm2, %v671_v52 }
  0xac   : > { %v1078_v45 = vpop.f32.mrf.mxu2 }
  0xad   : > { %v401_v46 = vpop.f32.mrf.mxu0  ;;  %v1080_v47 = vpop.f32.mrf.mxu1  ;;  %v664_v48 = vpack.c.bf16 %v1078_v45, %v1078_v45 }
  0xae   : > { %v649_v49 = vpack.c.bf16 %v401_v46, %v401_v46  ;;  %v1084_v50 = vpop.f32.mrf.mxu3  ;;  %v657_v51 = vpack.c.bf16 %v1080_v47, %v1080_v47  ;;  %v547_v9 = vmul.f32 %v401_v46, %v401_v46  ;;  %v479_v17 = vsel %vm471_vm3, %v401_v46, 0.0 }
  0xaf   : > { %697 = vst.msk [vmem:[%s1008_s25 + $0x4c] sm:$0xf] %vm677_vm2, %v664_v48  ;;  %v672_v53 = vpack.c.bf16 %v1084_v50, %v1084_v50  ;;  %v480_v36 = vadd.f32 %v479_v17, %v478_v25  ;;  %v594_v17 = vsel %vm471_vm3, %v553_v5, 0.0  ;;  %v555_v23 = vmul.f32 %v1080_v47, %v1080_v47 }
  0xb0   : > { %682 = vst.msk [vmem:[%s1008_s25 + $0x10] sm:$0xf] %vm677_vm2, %v649_v49  ;;  %v582_v28 = vsel %vm471_vm3, %v547_v9, 0.0  ;;  %v489_v9 = vsel %vm471_vm3, %v1024_v24, 0.0  ;;  %v493_v24 = vsel %vm471_vm3, %v1064_v40, 0.0 }
  0xb1   : > { %690 = vst.msk [vmem:[%s1008_s25 + $0x30] sm:$0xf] %vm677_vm2, %v657_v51  ;;  %v583_v42 = vadd.f32 %v582_v28, %v581_v34 }
  0xb2   : > { %705 = vst.msk [vmem:[%s1008_s25 + $0x6c] sm:$0xf] %vm677_vm2, %v672_v53 }
  0xb4   : > { %v1100_v54 = vpop.f32.mrf.mxu2 }
  0xb5   : > { %v403_v55 = vpop.f32.mrf.mxu0  ;;  %v1104_v56 = vpop.f32.mrf.mxu1  ;;  %v665_v57 = vpack.c.bf16 %v1100_v54, %v1100_v54 }
  0xb6   : > { %v650_v59 = vpack.c.bf16 %v403_v55, %v403_v55  ;;  %v1108_v60 = vpop.f32.mrf.mxu3  ;;  %v658_v61 = vpack.c.bf16 %v1104_v56, %v1104_v56  ;;  %v548_v18 = vmul.f32 %v403_v55, %v403_v55  ;;  %v481_v29 = vsel %vm471_vm3, %v403_v55, 0.0 }
  0xb7   : > { %698 = vst.msk [vmem:[%s1008_s25 + $0x50] sm:$0xf] %vm677_vm2, %v665_v57  ;;  %v673_v33 = vpack.c.bf16 %v1108_v60, %v1108_v60  ;;  %v482_v44 = vadd.f32 %v481_v29, %v480_v36  ;;  %v551_v57 = vmul.f32 %v1012_v19, %v1012_v19 }
  0xb8   : > { %683 = vst.msk [vmem:[%s1008_s25 + $0x14] sm:$0xf] %vm677_vm2, %v650_v59  ;;  %v584_v37 = vsel %vm471_vm3, %v548_v18, 0.0 }
  0xb9   : > { %691 = vst.msk [vmem:[%s1008_s25 + $0x34] sm:$0xf] %vm677_vm2, %v658_v61  ;;  %v585_v49 = vadd.f32 %v584_v37, %v583_v42  ;;  %v590_v8 = vsel %vm471_vm3, %v551_v57, 0.0  ;;  %v559_v57 = vmul.f32 %v1022_v22, %v1022_v22 }
  0xba   : > { %706 = vst.msk [vmem:[%s1008_s25 + $0x70] sm:$0xf] %vm677_vm2, %v673_v33  ;;  %v495_v33 = vsel %vm471_vm3, %v1080_v47, 0.0 }
  0xbb   : > { %v606_v3 = vsel %vm471_vm3, %v559_v57, 0.0  ;;  %v570_v57 = vmul.f32 %v1084_v50, %v1084_v50 }
  0xbc   : > { %v1128_v10 = vpop.f32.mrf.mxu2 }
  0xbd   : > { %v406_v13 = vpop.f32.mrf.mxu0  ;;  %v1130_v14 = vpop.f32.mrf.mxu1  ;;  %v666_v15 = vpack.c.bf16 %v1128_v10, %v1128_v10 }
  0xbe   : > { %v651_v20 = vpack.c.bf16 %v406_v13, %v406_v13  ;;  %v1136_v21 = vpop.f32.mrf.mxu3  ;;  %v659_v26 = vpack.c.bf16 %v1130_v14, %v1130_v14  ;;  %v549_v31 = vmul.f32 %v406_v13, %v406_v13  ;;  %v483_v39 = vsel %vm471_vm3, %v406_v13, 0.0 }
  0xbf   : > { %699 = vst.msk [vmem:[%s1008_s25 + $0x54] sm:$0xf] %vm677_vm2, %v666_v15  ;;  %v674_v41 = vpack.c.bf16 %v1136_v21, %v1136_v21  ;;  %v484_v51 = vadd.f32 %v483_v39, %v482_v44  ;;  %v491_v13 = vsel %vm471_vm3, %v1044_v32, 0.0  ;;  %v554_v15 = vmul.f32 %v1064_v40, %v1064_v40 }
  0xc0   : > { %684 = vst.msk [vmem:[%s1008_s25 + $0x18] sm:$0xf] %vm677_vm2, %v651_v20  ;;  %v586_v46 = vsel %vm471_vm3, %v549_v31, 0.0  ;;  %v556_v40 = vmul.f32 %v1104_v56, %v1104_v56  ;;  %v598_v39 = vsel %vm471_vm3, %v555_v23, 0.0  ;;  %v557_v47 = vmul.f32 %v1130_v14, %v1130_v14 }
  0xc1   : > { %692 = vst.msk [vmem:[%s1008_s25 + $0x38] sm:$0xf] %vm677_vm2, %v659_v26  ;;  %v587_v63 = vadd.f32 %v586_v46, %v585_v49  ;;  %v596_v31 = vsel %vm471_vm3, %v554_v15, 0.0  ;;  %v499_v49 = vsel %vm471_vm3, %v1130_v14, 0.0 }
  0xc2   : > { %707 = vst.msk [vmem:[%s1008_s25 + $0x74] sm:$0xf] %vm677_vm2, %v674_v41  ;;  %v497_v41 = vsel %vm471_vm3, %v1104_v56, 0.0  ;;  %v600_v46 = vsel %vm471_vm3, %v556_v40, 0.0  ;;  %v602_v56 = vsel %vm471_vm3, %v557_v47, 0.0 }
  0xc4   : > { %v1157_v48 = vpop.f32.mrf.mxu2 }
  0xc5   : > { %v408_v52 = vpop.f32.mrf.mxu0  ;;  %v428_v53 = vpop.f32.mrf.mxu1  ;;  %v667_v55 = vpack.c.bf16 %v1157_v48, %v1157_v48 }
  0xc6   : > { %v485_v58 = vsel %vm471_vm3, %v408_v52, 0.0  ;;  %v550_v59 = vmul.f32 %v408_v52, %v408_v52  ;;  %v652_v61 = vpack.c.bf16 %v408_v52, %v408_v52  ;;  %v1166_v62 = vpop.f32.mrf.mxu3  ;;  %v660_v1 = vpack.c.bf16 %v428_v53, %v428_v53 }
  0xc7   : > { %v486_v0 = vadd.f32 %v485_v58, %v484_v51  ;;  %700 = vst.msk [vmem:[%s1008_s25 + $0x58] sm:$0xf] %vm677_vm2, %v667_v55  ;;  %v675_v25 = vpack.c.bf16 %v1166_v62, %v1166_v62  ;;  %v558_v51 = vmul.f32 %v428_v53, %v428_v53  ;;  %v501_v58 = vsel %vm471_vm3, %v428_v53, 0.0 }
  0xc8   : > { %v588_v4 = vsel %vm471_vm3, %v550_v59, 0.0  ;;  %685 = vst.msk [vmem:[%s1008_s25 + $0x1c] sm:$0xf] %vm677_vm2, %v652_v61  ;;  %v561_v53 = vmul.f32 %v1062_v38, %v1062_v38 }
  0xc9   : > { %v488_v6 = vadd.f32 %v487_v2, %v486_v0  ;;  %v589_v7 = vadd.f32 %v588_v4, %v587_v63  ;;  %693 = vst.msk [vmem:[%s1008_s25 + $0x3c] sm:$0xf] %vm677_vm2, %v660_v1  ;;  %v503_v63 = vsel %vm471_vm3, %v1022_v22, 0.0  ;;  %v560_v0 = vmul.f32 %v1040_v30, %v1040_v30 }
  0xca   : > { %708 = vst.msk [vmem:[%s1008_s25 + $0x78] sm:$0xf] %vm677_vm2, %v675_v25  ;;  %v604_v14 = vsel %vm471_vm3, %v558_v51, 0.0  ;;  %v505_v4 = vsel %vm471_vm3, %v1040_v30, 0.0  ;;  %v507_v22 = vsel %vm471_vm3, %v1062_v38, 0.0  ;;  %v509_v30 = vsel %vm471_vm3, %v1078_v45, 0.0 }
  0xcb   : > { %v490_v19 = vadd.f32 %v489_v9, %v488_v6  ;;  %v591_v11 = vadd.f32 %v590_v8, %v589_v7  ;;  %v608_v7 = vsel %vm471_vm3, %v560_v0, 0.0  ;;  %v562_v8 = vmul.f32 %v1078_v45, %v1078_v45 }
  0xcc   : > { %v1189_v16 = vpop.f32.mrf.mxu2  ;;  %v511_v38 = vsel %vm471_vm3, %v1100_v54, 0.0  ;;  %v513_v45 = vsel %vm471_vm3, %v1128_v10, 0.0 }
  0xcd   : > { %v492_v18 = vadd.f32 %v491_v13, %v490_v19  ;;  %v593_v20 = vadd.f32 %v592_v12, %v591_v11  ;;  %v668_v32 = vpack.c.bf16 %v1189_v16, %v1189_v16  ;;  %v610_v11 = vsel %vm471_vm3, %v561_v53, 0.0 }
  0xce   : > { %v1200_v26 = vpop.f32.mrf.mxu3  ;;  %v563_v12 = vmul.f32 %v1100_v54, %v1100_v54  ;;  %v515_v54 = vsel %vm471_vm3, %v1157_v48, 0.0  ;;  %v573_v53 = vmul.f32 %v1166_v62, %v1166_v62 }
  0xcf   : > { %v595_v28 = vadd.f32 %v594_v17, %v593_v20  ;;  %v494_v29 = vadd.f32 %v493_v24, %v492_v18  ;;  %701 = vst.msk [vmem:[%s1008_s25 + $0x5c] sm:$0xf] %vm677_vm2, %v668_v32  ;;  %v676_v34 = vpack.c.bf16 %v1200_v26, %v1200_v26  ;;  %v612_v17 = vsel %vm471_vm3, %v562_v8, 0.0 }
  0xd0   : > { %v564_v18 = vmul.f32 %v1128_v10, %v1128_v10  ;;  %v614_v23 = vsel %vm471_vm3, %v563_v12, 0.0  ;;  %v565_v32 = vmul.f32 %v1157_v48, %v1157_v48  ;;  %v568_v48 = vmul.f32 %v1048_v35, %v1048_v35 }
  0xd1   : > { %v496_v36 = vadd.f32 %v495_v33, %v494_v29  ;;  %v597_v37 = vadd.f32 %v596_v31, %v595_v28  ;;  %709 = vst.msk [vmem:[%s1008_s25 + $0x7c] sm:$0xf] %vm677_vm2, %v676_v34  ;;  %v566_v31 = vmul.f32 %v1189_v16, %v1189_v16  ;;  %v567_v34 = vmul.f32 %v1028_v27, %v1028_v27 }
  0xd2   : > { %v616_v29 = vsel %vm471_vm3, %v564_v18, 0.0  ;;  %v618_v10 = vsel %vm471_vm3, %v565_v32, 0.0 }
  0xd3   : > { %v498_v42 = vadd.f32 %v497_v41, %v496_v36  ;;  %v599_v44 = vadd.f32 %v598_v39, %v597_v37  ;;  %v517_v36 = vsel %vm471_vm3, %v1189_v16, 0.0  ;;  %v519_v41 = vsel %vm471_vm3, %v1028_v27, 0.0 }
  0xd4   : > { %v620_v47 = vsel %vm471_vm3, %v566_v31, 0.0  ;;  %v569_v16 = vmul.f32 %v1068_v43, %v1068_v43  ;;  %v523_v27 = vsel %vm471_vm3, %v1068_v43, 0.0  ;;  %v527_v43 = vsel %vm471_vm3, %v1108_v60, 0.0 }
  0xd5   : > { %v500_v52 = vadd.f32 %v499_v49, %v498_v42  ;;  %v601_v55 = vadd.f32 %v600_v46, %v599_v44  ;;  %v622_v46 = vsel %vm471_vm3, %v567_v34, 0.0  ;;  %v521_v49 = vsel %vm471_vm3, %v1048_v35, 0.0 }
  0xd6   : > { %v525_v35 = vsel %vm471_vm3, %v1084_v50, 0.0  ;;  %v529_v50 = vsel %vm471_vm3, %v1136_v21, 0.0 }
  0xd7   : > { %v603_v59 = vadd.f32 %v602_v56, %v601_v55  ;;  %v502_v61 = vadd.f32 %v501_v58, %v500_v52  ;;  %v624_v55 = vsel %vm471_vm3, %v568_v48, 0.0 }
  0xd9   : > { %v504_v1 = vadd.f32 %v503_v63, %v502_v61  ;;  %v605_v2 = vadd.f32 %v604_v14, %v603_v59  ;;  %v626_v59 = vsel %vm471_vm3, %v569_v16, 0.0  ;;  %v571_v61 = vmul.f32 %v1108_v60, %v1108_v60 }
  0xda   : > { %v628_v14 = vsel %vm471_vm3, %v570_v57, 0.0  ;;  %v531_v60 = vsel %vm471_vm3, %v1166_v62, 0.0 }
  0xdb   : > { %v506_v5 = vadd.f32 %v505_v4, %v504_v1  ;;  %v607_v6 = vadd.f32 %v606_v3, %v605_v2  ;;  %v572_v1 = vmul.f32 %v1136_v21, %v1136_v21  ;;  %v630_v4 = vsel %vm471_vm3, %v571_v61, 0.0 }
  0xdc   : > { %v533_v21 = vsel %vm471_vm3, %v1200_v26, 0.0 }
  0xdd   : > { %v508_v9 = vadd.f32 %v507_v22, %v506_v5  ;;  %v609_v19 = vadd.f32 %v608_v7, %v607_v6  ;;  %v632_v7 = vsel %vm471_vm3, %v572_v1, 0.0  ;;  %v574_v22 = vmul.f32 %v1200_v26, %v1200_v26 }
  0xdf   : > { %v611_v13 = vadd.f32 %v610_v11, %v609_v19  ;;  %v510_v15 = vadd.f32 %v509_v30, %v508_v9  ;;  %v634_v19 = vsel %vm471_vm3, %v573_v53, 0.0  ;;  %v636_v12 = vsel %vm471_vm3, %v574_v22, 0.0 }
  0xe1   : > { %v512_v20 = vadd.f32 %v511_v38, %v510_v15  ;;  %v613_v24 = vadd.f32 %v612_v17, %v611_v13 }
  0xe3   : > { %v514_v25 = vadd.f32 %v513_v45, %v512_v20  ;;  %v615_v28 = vadd.f32 %v614_v23, %v613_v24 }
  0xe5   : > { %v617_v33 = vadd.f32 %v616_v29, %v615_v28  ;;  %v516_v40 = vadd.f32 %v515_v54, %v514_v25 }
  0xe7   : > { %v619_v37 = vadd.f32 %v618_v10, %v617_v33  ;;  %v518_v39 = vadd.f32 %v517_v36, %v516_v40 }
  0xe9   : > { %v520_v42 = vadd.f32 %v519_v41, %v518_v39  ;;  %v621_v44 = vadd.f32 %v620_v47, %v619_v37 }
  0xeb   : > { %v522_v51 = vadd.f32 %v521_v49, %v520_v42  ;;  %v623_v52 = vadd.f32 %v622_v46, %v621_v44 }
  0xed   : > { %v524_v56 = vadd.f32 %v523_v27, %v522_v51  ;;  %v625_v58 = vadd.f32 %v624_v55, %v623_v52 }
  0xef   : > { %v627_v63 = vadd.f32 %v626_v59, %v625_v58  ;;  %v526_v0 = vadd.f32 %v525_v35, %v524_v56 }
  0xf1   : > { %v528_v2 = vadd.f32 %v527_v43, %v526_v0  ;;  %v629_v3 = vadd.f32 %v628_v14, %v627_v63 }
  0xf3   : > { %v530_v5 = vadd.f32 %v529_v50, %v528_v2  ;;  %v631_v6 = vadd.f32 %v630_v4, %v629_v3 }
  0xf5   : > { %v633_v8 = vadd.f32 %v632_v7, %v631_v6  ;;  %v532_v9 = vadd.f32 %v531_v60, %v530_v5 }
  0xf7   : > { %v635_v11 = vadd.f32 %v634_v19, %v633_v8  ;;  %v534_v30 = vadd.f32 %v533_v21, %v532_v9 }
  0xf9   : > { %v535_v13 = vrot.slane %v534_v30, 4  ;;  %v637_v15 = vadd.f32 %v636_v12, %v635_v11 }
  0xfb   : > { %v536_v17 = vadd.f32 %v535_v13, %v534_v30  ;;  %v638_v62 = vrot.slane %v637_v15, 4 }
  0xfd   : > { %v537_v38 = vrot.slane %v536_v17, 2  ;;  %v639_v18 = vadd.f32 %v638_v62, %v637_v15 }
  0xff   : > { %v538_v20 = vadd.f32 %v537_v38, %v536_v17  ;;  %v640_v24 = vrot.slane %v639_v18, 2 }
 0x101   : > { %v539_v23 = vrot.slane %v538_v20, 1  ;;  %v641_v45 = vadd.f32 %v640_v24, %v639_v18 }
 0x103   : > { %v540_v26 = vadd.f32 %v539_v23, %v538_v20  ;;  %v642_v32 = vrot.slane %v641_v45, 1 }
 0x105   : > { %542 = vst.msk [vmem:[%s211_s28] sm:$0x1] %vm541_vm4, %v540_v26  ;;  %v643_v25 = vadd.f32 %v642_v32, %v641_v45 }
 0x107   : > { %644 = vst.msk [vmem:[%s214_s5] sm:$0x1] %vm541_vm4, %v643_v25 }
 0x108 PF: > { %s15_s15 = sadd.s32 1, %s941_s15  }
 0x109   : > { %p12_p4 = scmp.ge.s32.totalorder %s15_s15, 4  }
 0x10b   :  { %14 = sbr.rel (!%p12_p4) target bundleno = 1 (0x1), region = 82 }

// kernel: _lambda_.102
= control target key start
LH: loop header
LB: loop body
LE: loop exit
PB: predicated region body
PF: predicated region fallthrough
CT: control target
= control target key end

     0   :  { %s5551_s15 = smov 0   ;;  %s7089_s0 = inlined_call_operand.vmem [shape: bf16[2,16,16,8], index: 0, kind: input, shape index: {}]   ;;  %s7090_s1 = inlined_call_operand.vmem [shape: bf16[9,8,8], index: 1, kind: input, shape index: {}]   ;;  %s7091_s2 = inlined_call_operand.vmem [shape: bf16[2,256,8], index: 2, kind: output, shape index: {0}]   ;;  %s7092_s3 = inlined_call_operand.vmem [shape: f32[2,1,8], index: 3, kind: output, shape index: {1}]   ;;  %s7093_s4 = inlined_call_operand.vmem [shape: f32[2,1,8], index: 4, kind: output, shape index: {2}]  }
   0x1 LB: > { %s4996_s16 = sadd.s32 4294967295, %s5523_s15   ;;  %p5000_p0 = scmp.ge.s32.totalorder %s5523_s15, 1  ;;  %s5523_s15 = sphi %s5551_s15, %s15_s15  }
   0x2   : > { %p167_p1 = scmp.lt.s32.totalorder %s5523_s15, 3 }
   0x4   : > { %p168_p2 = pnand %p5000_p0, %p167_p1 }
   0x6   : > { %171 = sbr.rel (%p168_p2) target bundleno = 852 (0x354), region = 28 }
   0xb   : > { %v5005_v0 = vld [vmem:[%s7090_s1 + $0x4] sm:$0xf]  ;;  %vm1280_vm0 = vcmask 1043456   ;;  %p199_p3 = scmp.lt.s32.totalorder %s4996_s16, 1  ;;  %vm216_vm1 = vcmask 60416   ;;  %vm219_vm2 = vcmask 57344  }
   0xc   : > { %v1282_v1 = vsel %vm1280_vm0, %v5005_v0, 0  ;;  %v5525_v2 = vmov 0   ;;  %vm304_vm3 = vsmask.f32 256  ;;  %vm305_vm4 = vsmask.f32 4368 }
   0xd   : > { %230 = vst.msk [vmem:[#allocation2 + $0x30] sm:$0xf] %vm216_vm1, %v5525_v2  ;;  %5449 = vmatpush.bf16.msra.mxu1 %v1282_v1  ;;  %5450 = vmatpush.bf16.msra.mxu2 %v1282_v1  ;;  %s7119_s16 = smov (!%p199_p3, %s4996_s16), 1  ;;  %vm629_vm5 = vsmask.f32 7938  ;;  %vm5591_vm6 = vmand %vm219_vm2, %vm304_vm3  ;;  %vm1231_vm12 = vcmask 64512  }
   0xe   : > { %231 = vst.msk [vmem:[#allocation2 + $0x34] sm:$0xf] %vm216_vm1, %v5525_v2  ;;  %5451 = vmatpush.bf16.msra.mxu3 %v1282_v1  ;;  %1291 = vmatpush.bf16.msra.mxu0 %v1282_v1  ;;  %s5399_s19 = sshll.u32 %s7119_s16, 7  ;;  %vm5598_vm7 = vmor %vm304_vm3, %vm305_vm4  ;;  %vm794_vm9 = vsmask.f32 3328  ;;  %vm1641_vm13 = vcmask 1042432   ;;  %s211_s20 = scalar_lea.vmem %s7092_s3, %s7119_s16 }
   0xf   : > { %232 = vst.msk [vmem:[#allocation2 + $0x38] sm:$0x1] %vm219_vm2, %v5525_v2  ;;  %s5579_s22 = scalar_lea.vmem %s7089_s0, %s5399_s19  ;;  %vm5606_vm8 = vmand %vm216_vm1, %vm629_vm5  ;;  %vm795_vm10 = vsmask.f32 7440  ;;  %vm1642_vm14 = vcmask 1046532   ;;  %s6722_s17 = scalar_lea.vmem %s7091_s2, %s5399_s19 }
  0x10   : > { %217 = vst.msk [vmem:[#allocation2] sm:$0xf] %vm216_vm1, %v5525_v2  ;;  %v278_v3 = vld [vmem:[%s5579_s22 + $0x18] sm:$0xf]  ;;  %v279_v4 = vld [vmem:[%s5579_s22 + $0x1c] sm:$0xf]  ;;  %vm5647_vm11 = vmor %vm794_vm9, %vm795_vm10  ;;  %s214_s23 = scalar_lea.vmem %s7093_s4, %s7119_s16 }
  0x11   : > { %218 = vst.msk [vmem:[#allocation2 + $0x4] sm:$0xf] %vm216_vm1, %v5525_v2  ;;  %v359_v5 = vshrl.u32 %v278_v3, 16  ;;  %v362_v6 = vshll.u32 %v278_v3, 16  ;;  %v367_v7 = vshrl.u32 %v279_v4, 16  ;;  %v370_v8 = vshll.u32 %v279_v4, 16  ;;  %vm6050_vm15 = vmor %vm1641_vm13, %vm1642_vm14 }
  0x12   : > { %220 = vst.msk [vmem:[#allocation2 + $0x8] sm:$0x1] %vm219_vm2, %v5525_v2  ;;  %v5672_v46 = vld [vmem:[%s5579_s22 + $0x38] sm:$0xf]  ;;  %v5677_v47 = vld [vmem:[%s5579_s22 + $0x3c] sm:$0xf] }
  0x13   : > { %221 = vst.msk [vmem:[#allocation2 + $0xc] sm:$0xf] %vm216_vm1, %v5525_v2  ;;  %v361_v11 = vrot.slane %v359_v5, 7  ;;  %v369_v12 = vrot.slane %v367_v7, 7  ;;  %v5680_v48 = vld [vmem:[%s5579_s22 + $0x58] sm:$0xf] }
  0x14   : > { %222 = vst.msk [vmem:[#allocation2 + $0x10] sm:$0xf] %vm216_vm1, %v5525_v2  ;;  %v654_v14 = vld [vmem:[#allocation2 + $0x30] sm:$0xf]  ;;  %v427_v49 = vshrl.u32 %v5672_v46, 16  ;;  %v435_v50 = vshrl.u32 %v5677_v47, 16 }
  0x15   : > { %223 = vst.msk [vmem:[#allocation2 + $0x14] sm:$0x1] %vm219_vm2, %v5525_v2  ;;  %v364_v16 = vor.u32 %v362_v6, %v361_v11  ;;  %v365_v17 = vrot.slane %v361_v11, 4  ;;  %v372_v18 = vor.u32 %v370_v8, %v369_v12  ;;  %v374_v19 = vrot.slane %v369_v12, 4  ;;  %v5692_v51 = vld [vmem:[%s5579_s22 + $0x5c] sm:$0xf] }
  0x16   : > { %v658_v15 = vld [vmem:[#allocation2 + $0x38] sm:$0x1]  ;;  %224 = vst.msk [vmem:[#allocation2 + $0x18] sm:$0xf] %vm216_vm1, %v5525_v2  ;;  %v495_v52 = vshrl.u32 %v5680_v48, 16  ;;  %v5701_v59 = vrot.slane %v427_v49, 7 }
  0x17   : > { %225 = vst.msk [vmem:[#allocation2 + $0x1c] sm:$0xf] %vm216_vm1, %v5525_v2  ;;  %v373_v20 = vsel %vm5598_vm7, %v365_v17, %v372_v18  ;;  %v655_v21 = vsel %vm5606_vm8, %v364_v16, %v654_v14  ;;  %v659_v22 = vsel %vm5591_vm6, %v374_v19, %v658_v15  ;;  %v745_v53 = vld [vmem:[#allocation2] sm:$0xf]  ;;  %v503_v60 = vshrl.u32 %v5692_v51, 16 }
  0x18   : > { %226 = vst.msk [vmem:[#allocation2 + $0x20] sm:$0x1] %vm219_vm2, %v5525_v2  ;;  %v746_v54 = vld [vmem:[#allocation2 + $0x4] sm:$0xf]  ;;  %v798_v55 = vshrl.u32 %v745_v53, 16  ;;  %v801_v56 = vshll.u32 %v745_v53, 16 }
  0x19   : > { %227 = vst.msk [vmem:[#allocation2 + $0x24] sm:$0xf] %vm216_vm1, %v5525_v2  ;;  %v807_v57 = vshll.u32 %v746_v54, 16  ;;  %v811_v58 = vshrl.u32 %v746_v54, 16  ;;  %v5705_v61 = vld [vmem:[%s5579_s22 + $0x20] sm:$0xf] }
  0x1a   : > { %656 = vst [vmem:[#allocation2 + $0x30] sm:$0xf] %v655_v21  ;;  %v800_v62 = vrot.slane %v798_v55, 4  ;;  %v803_v63 = vrot.slane %v801_v56, 5  ;;  %v778_v3 = vld [vmem:[#allocation2 + $0x8] sm:$0x1] }
  0x1b   : > { %657 = vst.msk [vmem:[#allocation2 + $0x34] sm:$0xf] %vm216_vm1, %v373_v20  ;;  %v809_v0 = vrot.slane %v807_v57, 5  ;;  %v813_v1 = vrot.slane %v811_v58, 4  ;;  %v5712_v4 = vld [vmem:[%s5579_s22 + $0x24] sm:$0xf] }
  0x1c   : > { %660 = vst [vmem:[#allocation2 + $0x38] sm:$0x1] %v659_v22  ;;  %v5716_v5 = vrot.slane %v495_v52, 7  ;;  %v804_v6 = vor.u32 %v803_v63, %v800_v62  ;;  %v817_v8 = vshll.u32 %v778_v3, 16  ;;  %v430_v11 = vshll.u32 %v5672_v46, 16 }
  0x1d   : > { %228 = vst.msk [vmem:[#allocation2 + $0x28] sm:$0xf] %vm216_vm1, %v5525_v2  ;;  %v814_v7 = vor.u32 %v813_v1, %v809_v0  ;;  %v5721_v12 = vrot.slane %v435_v50, 7  ;;  %v376_v14 = vshrl.u32 %v5705_v61, 16  ;;  %v384_v18 = vshrl.u32 %v5712_v4, 16 }
  0x1e   : > { %229 = vst.msk [vmem:[#allocation2 + $0x2c] sm:$0x1] %vm219_vm2, %v5525_v2  ;;  %v805_v15 = vrot.slane %v804_v6, 4  ;;  %v819_v17 = vrot.slane %v817_v8, 5  ;;  %v433_v19 = vrot.slane %v5701_v59, 4  ;;  %v438_v20 = vshll.u32 %v5677_v47, 16 }
  0x1f   : > { %233 = vst.msk [vmem:[#allocation2 + $0x3c] sm:$0xf] %vm216_vm1, %v5525_v2  ;;  %v815_v16 = vrot.slane %v814_v7, 4  ;;  %v442_v21 = vrot.slane %v5721_v12, 4  ;;  %v498_v22 = vshll.u32 %v5680_v48, 16  ;;  %v379_v46 = vshll.u32 %v5705_v61, 16 }
  0x20   : > { %234 = vst.msk [vmem:[#allocation2 + $0x40] sm:$0xf] %vm216_vm1, %v5525_v2  ;;  %v5216_v55 = vld [vmem:[%s7090_s1 + $0x10] sm:$0xf]  ;;  %v297_v6 = vld [vmem:[%s5579_s22 + $0x64] sm:$0xf] }
  0x21   : > { %v753_v23 = vld [vmem:[#allocation2 + $0x30] sm:$0xf]  ;;  %235 = vst.msk [vmem:[#allocation2 + $0x44] sm:$0x1] %vm219_vm2, %v5525_v2  ;;  %v500_v47 = vor.u32 %v498_v22, %v5716_v5  ;;  %v272_v22 = vld [vmem:[%s5579_s22] sm:$0xf] }
  0x22   : > { %v754_v24 = vld [vmem:[#allocation2 + $0x34] sm:$0xf]  ;;  %v894_v25 = vshrl.u32 %v753_v23, 16  ;;  %v897_v26 = vshll.u32 %v753_v23, 16  ;;  %236 = vst.msk [vmem:[#allocation2 + $0x48] sm:$0xf] %vm216_vm1, %v5525_v2 }
  0x23   : > { %v782_v27 = vld [vmem:[#allocation2 + $0x38] sm:$0x1]  ;;  %v903_v28 = vshll.u32 %v754_v24, 16  ;;  %v907_v29 = vshrl.u32 %v754_v24, 16  ;;  %237 = vst.msk [vmem:[#allocation2 + $0x4c] sm:$0xf] %vm216_vm1, %v5525_v2 }
  0x24   : > { %v896_v30 = vrot.slane %v894_v25, 4  ;;  %v899_v31 = vrot.slane %v897_v26, 5  ;;  %v913_v32 = vshll.u32 %v782_v27, 16  ;;  %238 = vst.msk [vmem:[#allocation2 + $0x50] sm:$0x1] %vm219_vm2, %v5525_v2  ;;  %v501_v23 = vrot.slane %v5716_v5, 4 }
  0x25   : > { %v905_v33 = vrot.slane %v903_v28, 5  ;;  %v909_v34 = vrot.slane %v907_v29, 4  ;;  %239 = vst.msk [vmem:[#allocation2 + $0x54] sm:$0xf] %vm216_vm1, %v5525_v2  ;;  %v5736_v24 = vrot.slane %v503_v60, 7  ;;  %v810_v25 = vsel %vm5647_vm11, %v805_v15, %v809_v0 }
  0x26   : > { %v900_v35 = vor.u32 %v899_v31, %v896_v30  ;;  %240 = vst.msk [vmem:[#allocation2 + $0x58] sm:$0xf] %vm216_vm1, %v5525_v2  ;;  %v915_v38 = vrot.slane %v913_v32, 5  ;;  %v820_v26 = vsel %vm5647_vm11, %v815_v16, %v819_v17  ;;  %v5743_v27 = vld [vmem:[%s5579_s22 + $0x40] sm:$0xf]  ;;  %v506_v29 = vshll.u32 %v5692_v51, 16 }
  0x27   : > { %v910_v37 = vor.u32 %v909_v34, %v905_v33  ;;  %241 = vst.msk [vmem:[#allocation2 + $0x5c] sm:$0x1] %vm219_vm2, %v5525_v2  ;;  %v1183_v30 = vunpack.c.l.b16 %v810_v25  ;;  %v1184_v31 = vunpack.c.l.b16 %v820_v26  ;;  %v387_v32 = vshll.u32 %v5712_v4, 16  ;;  %v777_v51 = vld [vmem:[%s7090_s1] sm:$0xf] }
  0x28   : > { %v901_v39 = vrot.slane %v900_v35, 4  ;;  %242 = vst.msk [vmem:[#allocation2 + $0x60] sm:$0xf] %vm216_vm1, %v5525_v2  ;;  %v378_v34 = vrot.slane %v376_v14, 7  ;;  %v5752_v35 = vrot.slane %v384_v18, 7  ;;  %v508_v48 = vor.u32 %v506_v29, %v5736_v24 }
  0x29   : > { %v911_v40 = vrot.slane %v910_v37, 4  ;;  %243 = vst.msk [vmem:[#allocation2 + $0x64] sm:$0xf] %vm216_vm1, %v5525_v2  ;;  %v5755_v37 = vld [vmem:[%s5579_s22 + $0x44] sm:$0xf]  ;;  %v1502_v54 = vsel %vm1280_vm0, %v777_v51, 0 }
  0x2a   : > { %v906_v41 = vsel %vm5647_vm11, %v901_v39, %v905_v33  ;;  %244 = vst.msk [vmem:[#allocation2 + $0x68] sm:$0x1] %vm219_vm2, %v5525_v2  ;;  %v432_v33 = vor.u32 %v430_v11, %v5701_v59  ;;  %v510_v39 = vrot.slane %v5736_v24, 4  ;;  %v452_v52 = vshrl.u32 %v5755_v37, 16  ;;  %1511 = vmatpush.bf16.msrb.mxu1 %v1502_v54  ;;  %v661_v60 = vld [vmem:[#allocation2 + $0x3c] sm:$0xf] }
  0x2b   : > { %v916_v42 = vsel %vm5647_vm11, %v911_v40, %v915_v38  ;;  %v1191_v43 = vunpack.c.l.b16 %v906_v41  ;;  %245 = vst.msk [vmem:[#allocation2 + $0x6c] sm:$0xf] %vm216_vm1, %v5525_v2  ;;  %v5118_v40 = vld [vmem:[%s7090_s1 + $0x8] sm:$0xf]  ;;  %v1215_v41 = vpack.c.b16 %v1184_v31, %v1183_v30  ;;  %v382_v56 = vrot.slane %v378_v34, 4 }
  0x2c   : > { %v1192_v44 = vunpack.c.l.b16 %v916_v42  ;;  %246 = vst.msk [vmem:[#allocation2 + $0x70] sm:$0xf] %vm216_vm1, %v5525_v2  ;;  %v444_v42 = vshrl.u32 %v5743_v27, 16  ;;  %v389_v57 = vor.u32 %v387_v32, %v5752_v35  ;;  %v2795_v59 = vsel %vm1280_vm0, %v5216_v55, 0  ;;  %v296_v4 = vld [vmem:[%s5579_s22 + $0x60] sm:$0xf] }
  0x2d   : > { %247 = vst.msk [vmem:[#allocation2 + $0x74] sm:$0x1] %vm219_vm2, %v5525_v2  ;;  %5006 = vmatmul.msk.bf16.vlgmr.msra.gmra.mxu0 %vm1231_vm12, %v1215_v41  ;;  %v447_v62 = vshll.u32 %v5743_v27, 16  ;;  %v455_v63 = vshll.u32 %v5755_v37, 16  ;;  %v381_v3 = vor.u32 %v379_v46, %v378_v34  ;;  %v454_v7 = vrot.slane %v452_v52, 7 }
  0x2e   : > { %v1219_v45 = vpack.c.b16 %v1192_v44, %v1191_v43  ;;  %248 = vst.msk [vmem:[#allocation2 + $0x78] sm:$0xf] %vm216_vm1, %v5525_v2  ;;  %v440_v43 = vor.u32 %v438_v20, %v5721_v12  ;;  %v1855_v44 = vsel %vm1280_vm0, %v5118_v40, 0  ;;  %v446_v61 = vrot.slane %v444_v42, 7  ;;  %2804 = vmatpush.bf16.msrb.mxu0 %v2795_v59  ;;  %v665_v16 = vld [vmem:[#allocation2 + $0x44] sm:$0x1] }
  0x2f   : > { %249 = vst.msk [vmem:[#allocation2 + $0x7c] sm:$0xf] %vm216_vm1, %v5525_v2  ;;  %v682_v28 = vld [vmem:[#allocation2 + $0x60] sm:$0xf]  ;;  %1864 = vmatpush.bf16.msrb.mxu2 %v1855_v44  ;;  %v512_v8 = vshrl.u32 %v296_v4, 16  ;;  %v515_v11 = vshll.u32 %v296_v4, 16  ;;  %v390_v18 = vsel %vm5598_vm7, %v382_v56, %v389_v57  ;;  %v662_v25 = vsel %vm5606_vm8, %v381_v3, %v661_v60 }
  0x30   : > { %5010 = vmatmul.msk.bf16.vlgmr.msra.gmra.mxu1 %vm1231_vm12, %v1219_v45  ;;  %250 = vst.msk [vmem:[#allocation2 + $0x80] sm:$0x1] %vm219_vm2, %v5525_v2  ;;  %v5135_v45 = vld [vmem:[%s7090_s1 + $0xc] sm:$0xf]  ;;  %v683_v53 = vsel %vm5606_vm8, %v432_v33, %v682_v28  ;;  %v441_v0 = vsel %vm5598_vm7, %v433_v19, %v440_v43  ;;  %v520_v12 = vshrl.u32 %v297_v6, 16  ;;  %v391_v15 = vrot.slane %v5752_v35, 4 }
  0x31   : > { %251 = vst.msk [vmem:[#allocation2 + $0x84] sm:$0xf] %vm216_vm1, %v5525_v2  ;;  %v686_v38 = vld [vmem:[#allocation2 + $0x68] sm:$0x1]  ;;  %v2141_v50 = vsel %vm1280_vm0, %v5135_v45, 0  ;;  %v523_v17 = vshll.u32 %v297_v6, 16  ;;  %v449_v26 = vor.u32 %v447_v62, %v446_v61 }
  0x32   : > { %252 = vst.msk [vmem:[#allocation2 + $0x88] sm:$0xf] %vm216_vm1, %v5525_v2  ;;  %2150 = vmatpush.bf16.msrb.mxu3 %v2141_v50  ;;  %v687_v1 = vsel %vm5591_vm6, %v442_v21, %v686_v38  ;;  %v689_v19 = vld [vmem:[#allocation2 + $0x6c] sm:$0xf]  ;;  %v514_v20 = vrot.slane %v512_v8, 7  ;;  %v522_v21 = vrot.slane %v520_v12, 7  ;;  %v666_v37 = vsel %vm5591_vm6, %v391_v15, %v665_v16 }
  0x33   : > { %253 = vst.msk [vmem:[#allocation2 + $0x8c] sm:$0x1] %vm219_vm2, %v5525_v2  ;;  %v273_v27 = vld [vmem:[%s5579_s22 + $0x4] sm:$0xf]  ;;  %v308_v5 = vshrl.u32 %v272_v22, 16  ;;  %v450_v28 = vrot.slane %v446_v61, 4  ;;  %v690_v41 = vsel %vm5606_vm8, %v449_v26, %v689_v19 }
  0x34   : > { %254 = vst.msk [vmem:[#allocation2 + $0x90] sm:$0xf] %vm216_vm1, %v5525_v2  ;;  %v459_v29 = vrot.slane %v454_v7, 4  ;;  %v693_v30 = vld [vmem:[#allocation2 + $0x74] sm:$0x1]  ;;  %v5822_v31 = vor.u32 %v515_v11, %v514_v20  ;;  %v518_v32 = vrot.slane %v514_v20, 4  ;;  %v525_v33 = vor.u32 %v523_v17, %v522_v21 }
  0x35   : > { %255 = vst.msk [vmem:[#allocation2 + $0x94] sm:$0xf] %vm216_vm1, %v5525_v2  ;;  %v5825_v34 = vrot.slane %v308_v5, 7  ;;  %v316_v35 = vshrl.u32 %v273_v27, 16  ;;  %v527_v38 = vrot.slane %v522_v21, 4  ;;  %v311_v40 = vshll.u32 %v272_v22, 16 }
  0x36   : > { %256 = vst.msk [vmem:[#allocation2 + $0x98] sm:$0x1] %vm219_vm2, %v5525_v2  ;;  %v319_v44 = vshll.u32 %v273_v27, 16  ;;  %v526_v52 = vsel %vm5598_vm7, %v518_v32, %v525_v33  ;;  %v631_v59 = vld [vmem:[#allocation2 + $0xc] sm:$0xf] }
  0x37   : > { %257 = vst.msk [vmem:[#allocation2 + $0x9c] sm:$0xf] %vm216_vm1, %v5525_v2  ;;  %v5833_v43 = vrot.slane %v316_v35, 7 }
  0x38   : > { %258 = vst.msk [vmem:[#allocation2 + $0xa0] sm:$0xf] %vm216_vm1, %v5525_v2 }
  0x39   : > { %259 = vst.msk [vmem:[#allocation2 + $0xa4] sm:$0x1] %vm219_vm2, %v5525_v2 }
  0x3a   : > { %260 = vst.msk [vmem:[#allocation2 + $0xa8] sm:$0xf] %vm216_vm1, %v5525_v2 }
  0x3b   : > { %261 = vst.msk [vmem:[#allocation2 + $0xac] sm:$0xf] %vm216_vm1, %v5525_v2  ;;  %v710_v49 = vld [vmem:[#allocation2 + $0x90] sm:$0xf] }
  0x3c   : > { %262 = vst.msk [vmem:[#allocation2 + $0xb0] sm:$0x1] %vm219_vm2, %v5525_v2  ;;  %v711_v14 = vsel %vm5606_vm8, %v500_v47, %v710_v49  ;;  %v694_v47 = vsel %vm5591_vm6, %v459_v29, %v693_v30 }
  0x3d   : > { %263 = vst.msk [vmem:[#allocation2 + $0xb4] sm:$0xf] %vm216_vm1, %v5525_v2  ;;  %v714_v58 = vld [vmem:[#allocation2 + $0x98] sm:$0x1] }
  0x3e   : > { %264 = vst.msk [vmem:[#allocation2 + $0xb8] sm:$0xf] %vm216_vm1, %v5525_v2  ;;  %v715_v24 = vsel %vm5591_vm6, %v510_v39, %v714_v58  ;;  %v5829_v39 = vld [vmem:[#allocation2 + $0x9c] sm:$0xf]  ;;  %v313_v58 = vor.u32 %v311_v40, %v5825_v34  ;;  %v5861_v40 = vld [vmem:[%s5579_s22 + $0x28] sm:$0xf] }
  0x3f   : > { %265 = vst.msk [vmem:[#allocation2 + $0xbc] sm:$0x1] %vm219_vm2, %v5525_v2 }
  0x40   : > { %266 = vst.msk [vmem:[#allocation2 + $0xc0] sm:$0xf] %vm216_vm1, %v5525_v2  ;;  %v721_v42 = vld [vmem:[#allocation2 + $0xa4] sm:$0x1] }
  0x41   : > { %267 = vst.msk [vmem:[#allocation2 + $0xc4] sm:$0xf] %vm216_vm1, %v5525_v2  ;;  %v722_v57 = vsel %vm5591_vm6, %v527_v38, %v721_v42 }
  0x42   : > { %268 = vst.msk [vmem:[#allocation2 + $0xc8] sm:$0x1] %vm219_vm2, %v5525_v2 }
  0x43   : > { %269 = vst.msk [vmem:[#allocation2 + $0xcc] sm:$0xf] %vm216_vm1, %v5525_v2 }
  0x44   : > { %270 = vst.msk [vmem:[#allocation2 + $0xd0] sm:$0xf] %vm216_vm1, %v5525_v2 }
  0x45   : > { %271 = vst.msk [vmem:[#allocation2 + $0xd4] sm:$0x1] %vm219_vm2, %v5525_v2  ;;  %v509_v2 = vsel %vm5598_vm7, %v501_v23, %v508_v48  ;;  %v457_v23 = vor.u32 %v455_v63, %v454_v7  ;;  %v314_v48 = vrot.slane %v5825_v34, 4 }
  0x46   : > { %684 = vst [vmem:[#allocation2 + $0x60] sm:$0xf] %v683_v53  ;;  %v718_v53 = vsel %vm5606_vm8, %v5822_v31, %v5829_v39 }
  0x47   : > { %685 = vst.msk [vmem:[#allocation2 + $0x64] sm:$0xf] %vm216_vm1, %v441_v0  ;;  %v458_v46 = vsel %vm5598_vm7, %v450_v28, %v457_v23  ;;  %v5851_v0 = vor.u32 %v319_v44, %v5833_v43 }
  0x48   : > { %688 = vst [vmem:[#allocation2 + $0x68] sm:$0x1] %v687_v1 }
  0x49   : > { %712 = vst [vmem:[#allocation2 + $0x90] sm:$0xf] %v711_v14 }
  0x4a   : > { %713 = vst.msk [vmem:[#allocation2 + $0x94] sm:$0xf] %vm216_vm1, %v509_v2 }
  0x4b   : > { %716 = vst [vmem:[#allocation2 + $0x98] sm:$0x1] %v715_v24 }
  0x4c   : > { %663 = vst [vmem:[#allocation2 + $0x3c] sm:$0xf] %v662_v25  ;;  %v632_v25 = vsel %vm5606_vm8, %v313_v58, %v631_v59 }
  0x4d   : > { %v761_v45 = vld [vmem:[#allocation2 + $0x60] sm:$0xf]  ;;  %664 = vst.msk [vmem:[#allocation2 + $0x40] sm:$0xf] %vm216_vm1, %v390_v18 }
  0x4e   : > { %v762_v49 = vld [vmem:[#allocation2 + $0x64] sm:$0xf]  ;;  %v990_v50 = vshrl.u32 %v761_v45, 16  ;;  %v993_v51 = vshll.u32 %v761_v45, 16  ;;  %667 = vst [vmem:[#allocation2 + $0x44] sm:$0x1] %v666_v37 }
  0x4f   : > { %v786_v54 = vld [vmem:[#allocation2 + $0x68] sm:$0x1]  ;;  %v999_v55 = vshll.u32 %v762_v49, 16  ;;  %v1003_v56 = vshrl.u32 %v762_v49, 16  ;;  %691 = vst [vmem:[#allocation2 + $0x6c] sm:$0xf] %v690_v41 }
  0x50   : > { %v992_v60 = vrot.slane %v990_v50, 4  ;;  %v995_v61 = vrot.slane %v993_v51, 5  ;;  %v1009_v62 = vshll.u32 %v786_v54, 16  ;;  %v769_v63 = vld [vmem:[#allocation2 + $0x90] sm:$0xf] }
  0x51   : > { %v1001_v1 = vrot.slane %v999_v55, 5  ;;  %v1005_v3 = vrot.slane %v1003_v56, 4  ;;  %v770_v4 = vld [vmem:[#allocation2 + $0x94] sm:$0xf]  ;;  %v1086_v6 = vshrl.u32 %v769_v63, 16  ;;  %v1089_v7 = vshll.u32 %v769_v63, 16 }
  0x52   : > { %v996_v8 = vor.u32 %v995_v61, %v992_v60  ;;  %v1011_v11 = vrot.slane %v1009_v62, 5  ;;  %v790_v12 = vld [vmem:[#allocation2 + $0x98] sm:$0x1]  ;;  %v1095_v14 = vshll.u32 %v770_v4, 16  ;;  %v1099_v15 = vshrl.u32 %v770_v4, 16 }
  0x53   : > { %v1006_v16 = vor.u32 %v1005_v3, %v1001_v1  ;;  %v1088_v17 = vrot.slane %v1086_v6, 4  ;;  %v1091_v2 = vrot.slane %v1089_v7, 5  ;;  %v1105_v18 = vshll.u32 %v790_v12, 16  ;;  %v755_v19 = vld [vmem:[#allocation2 + $0x3c] sm:$0xf] }
  0x54   : > { %v997_v20 = vrot.slane %v996_v8, 4  ;;  %v1097_v21 = vrot.slane %v1095_v14, 5  ;;  %v1101_v22 = vrot.slane %v1099_v15, 4  ;;  %v756_v24 = vld [vmem:[#allocation2 + $0x40] sm:$0xf]  ;;  %v918_v23 = vshrl.u32 %v755_v19, 16 }
  0x55   : > { %v1007_v26 = vrot.slane %v1006_v16, 4  ;;  %v1092_v27 = vor.u32 %v1091_v2, %v1088_v17  ;;  %v1107_v5 = vrot.slane %v1105_v18, 5  ;;  %v783_v28 = vld [vmem:[#allocation2 + $0x44] sm:$0x1]  ;;  %v921_v31 = vshll.u32 %v755_v19, 16 }
  0x56   : > { %v1002_v29 = vsel %vm5647_vm11, %v997_v20, %v1001_v1  ;;  %v1102_v30 = vor.u32 %v1101_v22, %v1097_v21  ;;  %v927_v32 = vshll.u32 %v756_v24, 16  ;;  %692 = vst.msk [vmem:[#allocation2 + $0x70] sm:$0xf] %vm216_vm1, %v458_v46  ;;  %v763_v33 = vld [vmem:[#allocation2 + $0x6c] sm:$0xf]  ;;  %v920_v39 = vrot.slane %v918_v23, 4 }
  0x57   : > { %v1012_v35 = vsel %vm5647_vm11, %v1007_v26, %v1011_v11  ;;  %v1199_v37 = vunpack.c.l.b16 %v1002_v29  ;;  %v1093_v38 = vrot.slane %v1092_v27, 4  ;;  %695 = vst [vmem:[#allocation2 + $0x74] sm:$0x1] %v694_v47  ;;  %v923_v44 = vrot.slane %v921_v31, 5  ;;  %v5882_v16 = vld [vmem:[%s5579_s22 + $0x2c] sm:$0xf] }
  0x58   : > { %v1200_v41 = vunpack.c.l.b16 %v1012_v35  ;;  %v1103_v42 = vrot.slane %v1102_v30, 4  ;;  %v929_v45 = vrot.slane %v927_v32, 5  ;;  %719 = vst [vmem:[#allocation2 + $0x9c] sm:$0xf] %v718_v53  ;;  %v931_v50 = vshrl.u32 %v756_v24, 16 }
  0x59   : > { %v1098_v49 = vsel %vm5647_vm11, %v1093_v38, %v1097_v21  ;;  %v937_v46 = vshll.u32 %v783_v28, 16  ;;  %v1014_v51 = vshrl.u32 %v763_v33, 16  ;;  %720 = vst.msk [vmem:[#allocation2 + $0xa0] sm:$0xf] %vm216_vm1, %v526_v52  ;;  %v924_v56 = vor.u32 %v923_v44, %v920_v39  ;;  %v637_v29 = vld [vmem:[#allocation2 + $0x14] sm:$0x1] }
  0x5a   : > { %v1223_v54 = vpack.c.b16 %v1200_v41, %v1199_v37  ;;  %v1108_v55 = vsel %vm5647_vm11, %v1103_v42, %v1107_v5  ;;  %v1207_v47 = vunpack.c.l.b16 %v1098_v49  ;;  %723 = vst [vmem:[#allocation2 + $0xa4] sm:$0x1] %v722_v57  ;;  %v933_v59 = vrot.slane %v931_v50, 4 }
  0x5b   : > { %v1208_v58 = vunpack.c.l.b16 %v1108_v55  ;;  %633 = vst [vmem:[#allocation2 + $0xc] sm:$0xf] %v632_v25  ;;  %v393_v53 = vshrl.u32 %v5861_v40, 16  ;;  %v396_v60 = vshll.u32 %v5861_v40, 16  ;;  %v925_v61 = vrot.slane %v924_v56, 4 }
  0x5c   : > { %5014 = vmatmul.msk.bf16.vlgmr.msra.gmra.mxu2 %vm1231_vm12, %v1223_v54  ;;  %v1016_v62 = vrot.slane %v1014_v51, 4  ;;  %v1017_v63 = vshll.u32 %v763_v33, 16  ;;  %v322_v52 = vsel %vm5598_vm7, %v314_v48, %v5851_v0  ;;  %v934_v57 = vor.u32 %v933_v59, %v929_v45 }
  0x5d   : > { %v1227_v1 = vpack.c.b16 %v1208_v58, %v1207_v47  ;;  %v939_v3 = vrot.slane %v937_v46, 5  ;;  %v764_v4 = vld [vmem:[#allocation2 + $0x70] sm:$0xf]  ;;  %v323_v6 = vrot.slane %v5833_v43, 4  ;;  %634 = vst.msk [vmem:[#allocation2 + $0x10] sm:$0xf] %vm216_vm1, %v322_v52  ;;  %v930_v7 = vsel %vm5647_vm11, %v925_v61, %v929_v45 }
  0x5e   : > { %v787_v8 = vld [vmem:[#allocation2 + $0x74] sm:$0x1]  ;;  %v1019_v11 = vrot.slane %v1017_v63, 5  ;;  %v1023_v12 = vshll.u32 %v764_v4, 16  ;;  %v1027_v14 = vshrl.u32 %v764_v4, 16  ;;  %v935_v34 = vrot.slane %v934_v57, 4 }
  0x5f   : > { %5018 = vmatmul.msk.bf16.vlgmr.msra.gmra.mxu3 %vm1231_vm12, %v1227_v1  ;;  %v1193_v48 = vunpack.c.l.b16 %v930_v7  ;;  %v1033_v0 = vshll.u32 %v787_v8, 16  ;;  %v771_v15 = vld [vmem:[#allocation2 + $0x9c] sm:$0xf]  ;;  %v5884_v17 = vrot.slane %v393_v53, 7  ;;  %v401_v42 = vshrl.u32 %v5882_v16, 16 }
  0x60   : > { %v1020_v43 = vor.u32 %v1019_v11, %v1016_v62  ;;  %v1025_v2 = vrot.slane %v1023_v12, 5  ;;  %v1029_v18 = vrot.slane %v1027_v14, 4  ;;  %v772_v19 = vld [vmem:[#allocation2 + $0xa0] sm:$0xf]  ;;  %v1110_v20 = vshrl.u32 %v771_v15, 16 }
  0x61   : > { %v940_v21 = vsel %vm5647_vm11, %v935_v34, %v939_v3  ;;  %v1035_v22 = vrot.slane %v1033_v0, 5  ;;  %v791_v24 = vld [vmem:[#allocation2 + $0xa4] sm:$0x1]  ;;  %v1113_v25 = vshll.u32 %v771_v15, 16  ;;  %v1119_v26 = vshll.u32 %v772_v19, 16 }
  0x62   : > { %v1194_v27 = vunpack.c.l.b16 %v940_v21  ;;  %v1021_v5 = vrot.slane %v1020_v43, 4  ;;  %v1030_v28 = vor.u32 %v1029_v18, %v1025_v2  ;;  %v1112_v23 = vrot.slane %v1110_v20, 4  ;;  %v747_v35 = vld [vmem:[#allocation2 + $0xc] sm:$0xf]  ;;  %v668_v52 = vld [vmem:[#allocation2 + $0x48] sm:$0xf] }
  0x63   : > { %v1115_v30 = vrot.slane %v1113_v25, 5  ;;  %v1121_v31 = vrot.slane %v1119_v26, 5  ;;  %v1123_v32 = vshrl.u32 %v772_v19, 16  ;;  %v1129_v33 = vshll.u32 %v791_v24, 16  ;;  %v291_v14 = vld [vmem:[%s5579_s22 + $0x4c] sm:$0xf] }
  0x64   : > { %v1220_v37 = vpack.c.b16 %v1194_v27, %v1193_v48  ;;  %v1026_v38 = vsel %vm5647_vm11, %v1021_v5, %v1025_v2  ;;  %v1031_v39 = vrot.slane %v1030_v28, 4  ;;  %v5890_v41 = vld [vmem:[#allocation2 + $0x10] sm:$0xf]  ;;  %v638_v51 = vsel %vm5591_vm6, %v323_v6, %v637_v29  ;;  %v290_v6 = vld [vmem:[%s5579_s22 + $0x48] sm:$0xf] }
  0x65   : > { %v1201_v44 = vunpack.c.l.b16 %v1026_v38  ;;  %v1116_v45 = vor.u32 %v1115_v30, %v1112_v23  ;;  %v1125_v49 = vrot.slane %v1123_v32, 4  ;;  %v1131_v50 = vrot.slane %v1129_v33, 5  ;;  %639 = vst [vmem:[#allocation2 + $0x14] sm:$0x1] %v638_v51  ;;  %v672_v2 = vld [vmem:[#allocation2 + $0x50] sm:$0x1] }
  0x66   : > { %5011 = vmatmul.msk.bf16.gmra.mxu1 %vm1231_vm12, %v1220_v37  ;;  %v1036_v46 = vsel %vm5647_vm11, %v1031_v39, %v1035_v22  ;;  %v822_v54 = vshrl.u32 %v747_v35, 16  ;;  %v825_v55 = vshll.u32 %v747_v35, 16  ;;  %v831_v59 = vshll.u32 %v5890_v41, 16  ;;  %v298_v22 = vld [vmem:[%s5579_s22 + $0x68] sm:$0xf] }
  0x67   : > { %v1202_v47 = vunpack.c.l.b16 %v1036_v46  ;;  %v1117_v56 = vrot.slane %v1116_v45, 4  ;;  %v1126_v58 = vor.u32 %v1125_v49, %v1121_v31  ;;  %v835_v62 = vshrl.u32 %v5890_v41, 16  ;;  %v299_v5 = vld [vmem:[%s5579_s22 + $0x6c] sm:$0xf]  ;;  %v700_v46 = vld [vmem:[#allocation2 + $0x80] sm:$0x1] }
  0x68   : > { %v824_v53 = vrot.slane %v822_v54, 4  ;;  %v827_v61 = vrot.slane %v825_v55, 5  ;;  %v398_v63 = vor.u32 %v396_v60, %v5884_v17  ;;  %v833_v4 = vrot.slane %v831_v59, 5  ;;  %v724_v54 = vld [vmem:[#allocation2 + $0xa8] sm:$0xf] }
  0x69   : > { %v1224_v1 = vpack.c.b16 %v1202_v47, %v1201_v44  ;;  %v1122_v57 = vsel %vm5647_vm11, %v1117_v56, %v1121_v31  ;;  %v1127_v3 = vrot.slane %v1126_v58, 4  ;;  %v837_v11 = vrot.slane %v835_v62, 4  ;;  %v696_v31 = vld [vmem:[#allocation2 + $0x78] sm:$0xf] }
  0x6a   : > { %v1209_v7 = vunpack.c.l.b16 %v1122_v57  ;;  %v828_v8 = vor.u32 %v827_v61, %v824_v53  ;;  %v399_v12 = vrot.slane %v5884_v17, 4  ;;  %v403_v40 = vrot.slane %v401_v42, 7 }
  0x6b   : > { %v1132_v34 = vsel %vm5647_vm11, %v1127_v3, %v1131_v50  ;;  %v404_v60 = vshll.u32 %v5882_v16, 16  ;;  %v669_v48 = vsel %vm5606_vm8, %v398_v63, %v668_v52  ;;  %v838_v43 = vor.u32 %v837_v11, %v833_v4  ;;  %v728_v63 = vld [vmem:[#allocation2 + $0xb0] sm:$0x1]  ;;  %v274_v52 = vld [vmem:[%s5579_s22 + $0x8] sm:$0xf] }
  0x6c   : > { %5015 = vmatmul.msk.bf16.gmra.mxu2 %vm1231_vm12, %v1224_v1  ;;  %v1210_v0 = vunpack.c.l.b16 %v1132_v34  ;;  %v829_v15 = vrot.slane %v828_v8, 4  ;;  %670 = vst [vmem:[#allocation2 + $0x48] sm:$0xf] %v669_v48  ;;  %v461_v17 = vshrl.u32 %v290_v6, 16  ;;  %v408_v19 = vrot.slane %v403_v40, 4 }
  0x6d   : > { %v406_v18 = vor.u32 %v404_v60, %v403_v40  ;;  %v464_v20 = vshll.u32 %v290_v6, 16  ;;  %v469_v21 = vshrl.u32 %v291_v14, 16  ;;  %v5915_v25 = vld [vmem:[#allocation2 + $0x14] sm:$0x1]  ;;  %v839_v26 = vrot.slane %v838_v43, 4 }
  0x6e   : > { %v1228_v24 = vpack.c.b16 %v1210_v0, %v1209_v7  ;;  %v834_v16 = vsel %vm5647_vm11, %v829_v15, %v833_v4  ;;  %v463_v27 = vrot.slane %v461_v17, 7  ;;  %v841_v28 = vshll.u32 %v5915_v25, 16  ;;  %v275_v6 = vld [vmem:[%s5579_s22 + $0xc] sm:$0xf]  ;;  %v5943_v0 = vld [vmem:[%s5579_s22 + $0x30] sm:$0xf] }
  0x6f   : > { %v1185_v23 = vunpack.c.l.b16 %v834_v16  ;;  %v407_v29 = vsel %vm5598_vm7, %v399_v12, %v406_v18  ;;  %v673_v30 = vsel %vm5591_vm6, %v408_v19, %v672_v2  ;;  %v471_v35 = vrot.slane %v469_v21, 7 }
  0x70   : > { %5019 = vmatmul.msk.bf16.gmra.mxu3 %vm1231_vm12, %v1228_v24  ;;  %671 = vst.msk [vmem:[#allocation2 + $0x4c] sm:$0xf] %vm216_vm1, %v407_v29  ;;  %v466_v32 = vor.u32 %v464_v20, %v463_v27  ;;  %v467_v33 = vrot.slane %v463_v27, 4  ;;  %v472_v37 = vshll.u32 %v291_v14, 16  ;;  %v843_v38 = vrot.slane %v841_v28, 5 }
  0x71   : > { %674 = vst [vmem:[#allocation2 + $0x50] sm:$0x1] %v673_v30  ;;  %v529_v39 = vshrl.u32 %v298_v22, 16  ;;  %v532_v42 = vshll.u32 %v298_v22, 16  ;;  %v537_v44 = vshrl.u32 %v299_v5, 16  ;;  %v476_v49 = vrot.slane %v471_v35, 4 }
  0x72   : > { %v474_v45 = vor.u32 %v472_v37, %v471_v35  ;;  %v697_v50 = vsel %vm5606_vm8, %v466_v32, %v696_v31  ;;  %v540_v51 = vshll.u32 %v299_v5, 16  ;;  %v844_v55 = vsel %vm5647_vm11, %v839_v26, %v843_v38 }
  0x73   : > { %v757_v47 = vld [vmem:[#allocation2 + $0x48] sm:$0xf]  ;;  %698 = vst [vmem:[#allocation2 + $0x78] sm:$0xf] %v697_v50  ;;  %v531_v56 = vrot.slane %v529_v39, 7  ;;  %v539_v58 = vrot.slane %v537_v44, 7  ;;  %v1186_v59 = vunpack.c.l.b16 %v844_v55  ;;  %v701_v1 = vsel %vm5591_vm6, %v476_v49, %v700_v46 }
  0x74   : > { %v942_v53 = vshrl.u32 %v757_v47, 16  ;;  %v945_v61 = vshll.u32 %v757_v47, 16  ;;  %v475_v62 = vsel %vm5598_vm7, %v467_v33, %v474_v45  ;;  %702 = vst [vmem:[#allocation2 + $0x80] sm:$0x1] %v701_v1  ;;  %v325_v60 = vshrl.u32 %v274_v52, 16 }
  0x75   : > { %699 = vst.msk [vmem:[#allocation2 + $0x7c] sm:$0xf] %vm216_vm1, %v475_v62  ;;  %v534_v57 = vor.u32 %v532_v42, %v531_v56  ;;  %v535_v3 = vrot.slane %v531_v56, 4  ;;  %v542_v4 = vor.u32 %v540_v51, %v539_v58  ;;  %v1216_v7 = vpack.c.b16 %v1186_v59, %v1185_v23 }
  0x76   : > { %v944_v8 = vrot.slane %v942_v53, 4  ;;  %v947_v11 = vrot.slane %v945_v61, 5  ;;  %v544_v12 = vrot.slane %v539_v58, 4  ;;  %v328_v48 = vshll.u32 %v274_v52, 16 }
  0x77   : > { %v758_v14 = vld [vmem:[#allocation2 + $0x4c] sm:$0xf]  ;;  %v543_v34 = vsel %vm5598_vm7, %v535_v3, %v542_v4  ;;  %v725_v40 = vsel %vm5606_vm8, %v534_v57, %v724_v54  ;;  %5007 = vmatmul.msk.bf16.gmra.mxu0 %vm1231_vm12, %v1216_v7  ;;  %v327_v20 = vrot.slane %v325_v60, 7  ;;  %v333_v21 = vshrl.u32 %v275_v6, 16  ;;  %v640_v3 = vld [vmem:[#allocation2 + $0x18] sm:$0xf] }
  0x78   : > { %v784_v15 = vld [vmem:[#allocation2 + $0x50] sm:$0x1]  ;;  %v948_v43 = vor.u32 %v947_v11, %v944_v8  ;;  %v951_v2 = vshll.u32 %v758_v14, 16  ;;  %v955_v17 = vshrl.u32 %v758_v14, 16  ;;  %726 = vst [vmem:[#allocation2 + $0xa8] sm:$0xf] %v725_v40  ;;  %v729_v18 = vsel %vm5591_vm6, %v544_v12, %v728_v63 }
  0x79   : > { %v961_v19 = vshll.u32 %v784_v15, 16  ;;  %727 = vst.msk [vmem:[#allocation2 + $0xac] sm:$0xf] %vm216_vm1, %v543_v34  ;;  %v336_v27 = vshll.u32 %v275_v6, 16  ;;  %v410_v29 = vshrl.u32 %v5943_v0, 16  ;;  %v330_v33 = vor.u32 %v328_v48, %v327_v20 }
  0x7a   : > { %v949_v22 = vrot.slane %v948_v43, 4  ;;  %v953_v24 = vrot.slane %v951_v2, 5  ;;  %v957_v16 = vrot.slane %v955_v17, 4  ;;  %v765_v26 = vld [vmem:[#allocation2 + $0x78] sm:$0xf]  ;;  %v335_v35 = vrot.slane %v333_v21, 7 }
  0x7b   : > { %v963_v5 = vrot.slane %v961_v19, 5  ;;  %v1038_v28 = vshrl.u32 %v765_v26, 16  ;;  %v1041_v23 = vshll.u32 %v765_v26, 16  ;;  %730 = vst [vmem:[#allocation2 + $0xb0] sm:$0x1] %v729_v18  ;;  %v331_v44 = vrot.slane %v327_v20, 4 }
  0x7c   : > { %v954_v30 = vsel %vm5647_vm11, %v949_v22, %v953_v24  ;;  %v958_v31 = vor.u32 %v957_v16, %v953_v24  ;;  %v766_v32 = vld [vmem:[#allocation2 + $0x7c] sm:$0xf]  ;;  %v788_v37 = vld [vmem:[#allocation2 + $0x80] sm:$0x1]  ;;  %v338_v47 = vor.u32 %v336_v27, %v335_v35  ;;  %v340_v56 = vrot.slane %v335_v35, 4 }
  0x7d   : > { %v1040_v38 = vrot.slane %v1038_v28, 4  ;;  %v1043_v39 = vrot.slane %v1041_v23, 5  ;;  %v1047_v42 = vshll.u32 %v766_v32, 16  ;;  %v1195_v49 = vunpack.c.l.b16 %v954_v30  ;;  %v644_v12 = vld [vmem:[#allocation2 + $0x20] sm:$0x1] }
  0x7e   : > { %v959_v45 = vrot.slane %v958_v31, 4  ;;  %v1051_v50 = vshrl.u32 %v766_v32, 16  ;;  %v1057_v46 = vshll.u32 %v788_v37, 16  ;;  %v339_v11 = vsel %vm5598_vm7, %v331_v44, %v338_v47  ;;  %v285_v2 = vld [vmem:[%s5579_s22 + $0x34] sm:$0xf] }
  0x7f   : > { %v1044_v51 = vor.u32 %v1043_v39, %v1040_v38  ;;  %v1049_v54 = vrot.slane %v1047_v42, 5  ;;  %v773_v55 = vld [vmem:[#allocation2 + $0xa8] sm:$0xf]  ;;  %643 = vst.msk [vmem:[#allocation2 + $0x1c] sm:$0xf] %vm216_vm1, %v339_v11  ;;  %v641_v19 = vsel %vm5606_vm8, %v330_v33, %v640_v3  ;;  %v645_v20 = vsel %vm5591_vm6, %v340_v56, %v644_v12 }
  0x80   : > { %v964_v58 = vsel %vm5647_vm11, %v959_v45, %v963_v5  ;;  %v1053_v59 = vrot.slane %v1051_v50, 4  ;;  %v1059_v53 = vrot.slane %v1057_v46, 5  ;;  %v774_v61 = vld [vmem:[#allocation2 + $0xac] sm:$0xf]  ;;  %v1134_v62 = vshrl.u32 %v773_v55, 16 }
  0x81   : > { %v1196_v63 = vunpack.c.l.b16 %v964_v58  ;;  %v1045_v52 = vrot.slane %v1044_v51, 4  ;;  %v1137_v1 = vshll.u32 %v773_v55, 16  ;;  %v1143_v57 = vshll.u32 %v774_v61, 16  ;;  %v292_v21 = vld [vmem:[%s5579_s22 + $0x50] sm:$0xf] }
  0x82   : > { %v1054_v4 = vor.u32 %v1053_v59, %v1049_v54  ;;  %v792_v6 = vld [vmem:[#allocation2 + $0xb0] sm:$0x1]  ;;  %v1136_v7 = vrot.slane %v1134_v62, 4  ;;  %v1147_v8 = vshrl.u32 %v774_v61, 16  ;;  %642 = vst [vmem:[#allocation2 + $0x18] sm:$0xf] %v641_v19 }
  0x83   : > { %v1221_v14 = vpack.c.b16 %v1196_v63, %v1195_v49  ;;  %v1050_v34 = vsel %vm5647_vm11, %v1045_v52, %v1049_v54  ;;  %v1139_v40 = vrot.slane %v1137_v1, 5  ;;  %v1145_v60 = vrot.slane %v1143_v57, 5  ;;  %646 = vst [vmem:[#allocation2 + $0x20] sm:$0x1] %v645_v20  ;;  %v675_v42 = vld [vmem:[#allocation2 + $0x54] sm:$0xf] }
  0x84   : > { %v1055_v48 = vrot.slane %v1054_v4, 4  ;;  %v1149_v15 = vrot.slane %v1147_v8, 4  ;;  %v1153_v43 = vshll.u32 %v792_v6, 16  ;;  %v1203_v17 = vunpack.c.l.b16 %v1050_v34  ;;  %v679_v47 = vld [vmem:[#allocation2 + $0x5c] sm:$0x1] }
  0x85   : > { %5012 = vmatmul.msk.bf16.gmra.mxu1 %vm1231_vm12, %v1221_v14  ;;  %v1140_v18 = vor.u32 %v1139_v40, %v1136_v7  ;;  %v412_v26 = vrot.slane %v410_v29, 7  ;;  %v413_v28 = vshll.u32 %v5943_v0, 16  ;;  %v418_v23 = vshrl.u32 %v285_v2, 16  ;;  %v293_v0 = vld [vmem:[%s5579_s22 + $0x54] sm:$0xf] }
  0x86   : > { %v1060_v22 = vsel %vm5647_vm11, %v1055_v48, %v1059_v53  ;;  %v1150_v24 = vor.u32 %v1149_v15, %v1145_v60  ;;  %v1155_v16 = vrot.slane %v1153_v43, 5  ;;  %v421_v32 = vshll.u32 %v285_v2, 16  ;;  %v5973_v45 = vld [vmem:[#allocation2 + $0x1c] sm:$0xf]  ;;  %v703_v56 = vld [vmem:[#allocation2 + $0x84] sm:$0xf] }
  0x87   : > { %v1204_v27 = vunpack.c.l.b16 %v1060_v22  ;;  %v1141_v5 = vrot.slane %v1140_v18, 4  ;;  %v416_v31 = vrot.slane %v412_v26, 4  ;;  %v478_v33 = vshrl.u32 %v292_v21, 16  ;;  %v300_v62 = vld [vmem:[%s5579_s22 + $0x70] sm:$0xf] }
  0x88   : > { %v1151_v30 = vrot.slane %v1150_v24, 4  ;;  %v415_v38 = vor.u32 %v413_v28, %v412_v26  ;;  %v420_v39 = vrot.slane %v418_v23, 7  ;;  %v481_v50 = vshll.u32 %v292_v21, 16  ;;  %v301_v63 = vld [vmem:[%s5579_s22 + $0x74] sm:$0xf] }
  0x89   : > { %v1225_v35 = vpack.c.b16 %v1204_v27, %v1203_v17  ;;  %v1146_v37 = vsel %vm5647_vm11, %v1141_v5, %v1145_v60  ;;  %v480_v49 = vrot.slane %v478_v33, 7  ;;  %v855_v51 = vshll.u32 %v5973_v45, 16  ;;  %v749_v1 = vld [vmem:[#allocation2 + $0x18] sm:$0xf]  ;;  %v5986_v6 = vld [vmem:[%s5579_s22 + $0x10] sm:$0xf] }
  0x8a   : > { %v1156_v29 = vsel %vm5647_vm11, %v1151_v30, %v1155_v16  ;;  %v1211_v44 = vunpack.c.l.b16 %v1146_v37  ;;  %v859_v54 = vshrl.u32 %v5973_v45, 16  ;;  %v423_v55 = vor.u32 %v421_v32, %v420_v39  ;;  %v5988_v7 = vld [vmem:[#allocation2 + $0x20] sm:$0x1]  ;;  %v707_v24 = vld [vmem:[#allocation2 + $0x8c] sm:$0x1] }
  0x8b   : > { %5016 = vmatmul.msk.bf16.gmra.mxu2 %vm1231_vm12, %v1225_v35  ;;  %v1212_v46 = vunpack.c.l.b16 %v1156_v29  ;;  %v425_v58 = vrot.slane %v420_v39, 4  ;;  %v676_v59 = vsel %vm5606_vm8, %v415_v38, %v675_v42  ;;  %v483_v53 = vor.u32 %v481_v50, %v480_v49  ;;  %v5482_v9 = vld [vmem:[#allocation2 + $0xb0] sm:$0x1] }
  0x8c   : > { %v484_v61 = vrot.slane %v480_v49, 4  ;;  %v857_v57 = vrot.slane %v855_v51, 5  ;;  %v861_v3 = vrot.slane %v859_v54, 4  ;;  %v424_v4 = vsel %vm5598_vm7, %v416_v31, %v423_v55  ;;  %677 = vst [vmem:[#allocation2 + $0x54] sm:$0xf] %v676_v59 }
  0x8d   : > { %v1229_v52 = vpack.c.b16 %v1212_v46, %v1211_v44  ;;  %v846_v8 = vshrl.u32 %v749_v1, 16  ;;  %v849_v11 = vshll.u32 %v749_v1, 16  ;;  %678 = vst.msk [vmem:[#allocation2 + $0x58] sm:$0xf] %vm216_vm1, %v424_v4  ;;  %v680_v12 = vsel %vm5591_vm6, %v425_v58, %v679_v47  ;;  %v735_v49 = vld [vmem:[#allocation2 + $0xbc] sm:$0x1] }
  0x8e   : > { %v704_v14 = vsel %vm5606_vm8, %v483_v53, %v703_v56  ;;  %v862_v34 = vor.u32 %v861_v3, %v857_v57  ;;  %v865_v40 = vshll.u32 %v5988_v7, 16  ;;  %681 = vst [vmem:[#allocation2 + $0x5c] sm:$0x1] %v680_v12  ;;  %v486_v60 = vshrl.u32 %v293_v0, 16 }
  0x8f   : > { %5020 = vmatmul.msk.bf16.gmra.mxu3 %vm1231_vm12, %v1229_v52  ;;  %v489_v48 = vshll.u32 %v293_v0, 16  ;;  %v848_v15 = vrot.slane %v846_v8, 4  ;;  %v851_v43 = vrot.slane %v849_v11, 5  ;;  %705 = vst [vmem:[#allocation2 + $0x84] sm:$0xf] %v704_v14  ;;  %v546_v2 = vshrl.u32 %v300_v62, 16 }
  0x90   : > { %v549_v17 = vshll.u32 %v300_v62, 16  ;;  %v863_v18 = vrot.slane %v862_v34, 4  ;;  %v867_v19 = vrot.slane %v865_v40, 5  ;;  %v488_v20 = vrot.slane %v486_v60, 7  ;;  %v731_v0 = vld [vmem:[#allocation2 + $0xb4] sm:$0xf] }
  0x91   : > { %v554_v21 = vshrl.u32 %v301_v63, 16  ;;  %v852_v22 = vor.u32 %v851_v43, %v848_v15  ;;  %v548_v16 = vrot.slane %v546_v2, 7  ;;  %v557_v26 = vshll.u32 %v301_v63, 16  ;;  %v277_v8 = vld [vmem:[%s5579_s22 + $0x14] sm:$0xf] }
  0x92   : > { %v342_v27 = vshrl.u32 %v5986_v6, 16  ;;  %v868_v5 = vsel %vm5647_vm11, %v863_v18, %v867_v19  ;;  %v491_v28 = vor.u32 %v489_v48, %v488_v20  ;;  %v493_v23 = vrot.slane %v488_v20, 4 }
  0x93   : > { %v556_v30 = vrot.slane %v554_v21, 7  ;;  %v853_v31 = vrot.slane %v852_v22, 4  ;;  %v1188_v32 = vunpack.c.l.b16 %v868_v5  ;;  %v759_v33 = vld [vmem:[#allocation2 + $0x54] sm:$0xf]  ;;  %v551_v35 = vor.u32 %v549_v17, %v548_v16  ;;  %v647_v22 = vld [vmem:[#allocation2 + $0x24] sm:$0xf] }
  0x94   : > { %v552_v37 = vrot.slane %v548_v16, 4  ;;  %v6000_v38 = vld [vmem:[#allocation2 + $0x58] sm:$0xf]  ;;  %v966_v39 = vshrl.u32 %v759_v33, 16  ;;  %v969_v42 = vshll.u32 %v759_v33, 16  ;;  %v492_v29 = vsel %vm5598_vm7, %v484_v61, %v491_v28 }
  0x95   : > { %v708_v44 = vsel %vm5591_vm6, %v493_v23, %v707_v24  ;;  %v858_v50 = vsel %vm5647_vm11, %v853_v31, %v857_v57  ;;  %v6008_v46 = vld [vmem:[#allocation2 + $0x5c] sm:$0x1]  ;;  %v975_v51 = vshll.u32 %v6000_v38, 16  ;;  %v979_v54 = vshrl.u32 %v6000_v38, 16  ;;  %706 = vst.msk [vmem:[#allocation2 + $0x88] sm:$0xf] %vm216_vm1, %v492_v29 }
  0x96   : > { %v559_v55 = vor.u32 %v557_v26, %v556_v30  ;;  %v1187_v47 = vunpack.c.l.b16 %v858_v50  ;;  %v968_v56 = vrot.slane %v966_v39, 4  ;;  %v971_v58 = vrot.slane %v969_v42, 5  ;;  %709 = vst [vmem:[#allocation2 + $0x8c] sm:$0x1] %v708_v44  ;;  %v767_v62 = vld [vmem:[#allocation2 + $0x84] sm:$0xf] }
  0x97   : > { %v985_v59 = vshll.u32 %v6008_v46, 16  ;;  %v977_v53 = vrot.slane %v975_v51, 5  ;;  %v981_v61 = vrot.slane %v979_v54, 4  ;;  %v561_v52 = vrot.slane %v556_v30, 4 }
  0x98   : > { %v560_v63 = vsel %vm5598_vm7, %v552_v37, %v559_v55  ;;  %v1217_v1 = vpack.c.b16 %v1188_v32, %v1187_v47  ;;  %v972_v57 = vor.u32 %v971_v58, %v968_v56  ;;  %v1062_v4 = vshrl.u32 %v767_v62, 16 }
  0x99   : > { %v987_v3 = vrot.slane %v985_v59, 5  ;;  %734 = vst.msk [vmem:[#allocation2 + $0xb8] sm:$0xf] %vm216_vm1, %v560_v63  ;;  %v982_v11 = vor.u32 %v981_v61, %v977_v53  ;;  %v1065_v12 = vshll.u32 %v767_v62, 16  ;;  %v732_v14 = vsel %vm5606_vm8, %v551_v35, %v731_v0  ;;  %v651_v59 = vld [vmem:[#allocation2 + $0x2c] sm:$0x1] }
  0x9a   : > { %v736_v34 = vsel %vm5591_vm6, %v561_v52, %v735_v49  ;;  %5008 = vmatmul.msk.bf16.gmra.mxu0 %vm1231_vm12, %v1217_v1  ;;  %v973_v40 = vrot.slane %v972_v57, 4  ;;  %v1064_v60 = vrot.slane %v1062_v4, 4  ;;  %733 = vst [vmem:[#allocation2 + $0xb4] sm:$0xf] %v732_v14  ;;  %v344_v48 = vrot.slane %v342_v27, 7 }
  0x9b   : > { %v345_v15 = vshll.u32 %v5986_v6, 16  ;;  %v983_v43 = vrot.slane %v982_v11, 4  ;;  %v1067_v2 = vrot.slane %v1065_v12, 5  ;;  %737 = vst [vmem:[#allocation2 + $0xbc] sm:$0x1] %v736_v34  ;;  %v350_v17 = vshrl.u32 %v277_v8, 16 }
  0x9c   : > { %v978_v18 = vsel %vm5647_vm11, %v973_v40, %v977_v53  ;;  %v768_v19 = vld [vmem:[#allocation2 + $0x88] sm:$0xf]  ;;  %v353_v21 = vshll.u32 %v277_v8, 16  ;;  %v348_v29 = vrot.slane %v344_v48, 4  ;;  %v1593_v40 = vld [vmem:[#allocation2] sm:$0xe] }
  0x9d   : > { %v347_v20 = vor.u32 %v345_v15, %v344_v48  ;;  %v988_v24 = vsel %vm5647_vm11, %v983_v43, %v987_v3  ;;  %v1197_v16 = vunpack.c.l.b16 %v978_v18  ;;  %v789_v26 = vld [vmem:[#allocation2 + $0x8c] sm:$0x1]  ;;  %v1068_v5 = vor.u32 %v1067_v2, %v1064_v60  ;;  %v5266_v3 = vld [vmem:[%s7090_s1 + $0x18] sm:$0xf]  ;;  %v5461_v43 = vld [vmem:[#allocation2 + $0x4] sm:$0xf] }
  0x9e   : > { %v1071_v27 = vshll.u32 %v768_v19, 16  ;;  %v1198_v28 = vunpack.c.l.b16 %v988_v24  ;;  %v1075_v6 = vshrl.u32 %v768_v19, 16  ;;  %v1081_v23 = vshll.u32 %v789_v26, 16 }
  0x9f   : > { %v1069_v30 = vrot.slane %v1068_v5, 4  ;;  %v352_v33 = vrot.slane %v350_v17, 7  ;;  %v648_v35 = vsel %vm5606_vm8, %v347_v20, %v647_v22  ;;  %v1646_v2 = vrot.slane %v5461_v43, 5 }
  0xa0   : > { %v1073_v31 = vrot.slane %v1071_v27, 5  ;;  %v776_v32 = vld [vmem:[#allocation2 + $0xb8] sm:$0xf]  ;;  %v1222_v37 = vpack.c.b16 %v1198_v28, %v1197_v16  ;;  %v1077_v39 = vrot.slane %v1075_v6, 4  ;;  %649 = vst [vmem:[#allocation2 + $0x24] sm:$0xf] %v648_v35 }
  0xa1   : > { %v1167_v42 = vshll.u32 %v776_v32, 16  ;;  %v1083_v44 = vrot.slane %v1081_v23, 5  ;;  %v775_v0 = vld [vmem:[#allocation2 + $0xb4] sm:$0xf]  ;;  %v1171_v49 = vshrl.u32 %v776_v32, 16  ;;  %v355_v50 = vor.u32 %v353_v21, %v352_v33 }
  0xa2   : > { %v357_v51 = vrot.slane %v352_v33, 4  ;;  %5013 = vmatmul.msk.bf16.gmra.mxu1 %vm1231_vm12, %v1222_v37  ;;  %v1074_v54 = vsel %vm5647_vm11, %v1069_v30, %v1073_v31  ;;  %v1078_v55 = vor.u32 %v1077_v39, %v1073_v31  ;;  %v793_v47 = vld [vmem:[#allocation2 + $0xbc] sm:$0x1]  ;;  %v1158_v56 = vshrl.u32 %v775_v0, 16  ;;  %v2264_v16 = vld [vmem:[#allocation2 + $0xc] sm:$0xf] }
  0xa3   : > { %v1161_v58 = vshll.u32 %v775_v0, 16  ;;  %v1169_v53 = vrot.slane %v1167_v42, 5  ;;  %v1173_v61 = vrot.slane %v1171_v49, 4  ;;  %v1177_v62 = vshll.u32 %v793_v47, 16  ;;  %v5462_v23 = vld [vmem:[#allocation2 + $0x8] sm:$0x1] }
  0xa4   : > { %v1079_v63 = vrot.slane %v1078_v55, 4  ;;  %v1160_v52 = vrot.slane %v1158_v56, 4  ;;  %v356_v57 = vsel %vm5598_vm7, %v348_v29, %v355_v50  ;;  %v1205_v4 = vunpack.c.l.b16 %v1074_v54  ;;  %v2265_v33 = vld [vmem:[#allocation2 + $0x10] sm:$0xf]  ;;  %v5401_v54 = vld [vmem:[#allocation2] sm:$0xff] }
  0xa5   : > { %v1163_v1 = vrot.slane %v1161_v58, 5  ;;  %v1174_v8 = vor.u32 %v1173_v61, %v1169_v53  ;;  %v1179_v11 = vrot.slane %v1177_v62, 5  ;;  %650 = vst.msk [vmem:[#allocation2 + $0x28] sm:$0xf] %vm216_vm1, %v356_v57  ;;  %v652_v12 = vsel %vm5591_vm6, %v357_v51, %v651_v59  ;;  %v5347_v61 = vld [vmem:[%s7090_s1 + $0x1c] sm:$0xf] }
  0xa6   : > { %v1084_v14 = vsel %vm5647_vm11, %v1079_v63, %v1083_v44  ;;  %653 = vst [vmem:[#allocation2 + $0x2c] sm:$0x1] %v652_v12  ;;  %v3480_v17 = vsel %vm1280_vm0, %v5266_v3, 0  ;;  %v5102_v24 = vrot.slane %v1593_v40, 9  ;;  %v1649_v30 = vrot.slane %v5462_v23, 5 }
  0xa7   : > { %v1164_v34 = vor.u32 %v1163_v1, %v1160_v52  ;;  %v1206_v60 = vunpack.c.l.b16 %v1084_v14  ;;  %v1175_v48 = vrot.slane %v1174_v8, 4  ;;  %v751_v15 = vld [vmem:[#allocation2 + $0x24] sm:$0xf]  ;;  %3489 = vmatpush.bf16.msra.mxu2 %v3480_v17  ;;  %v1648_v32 = vrot.slane %v1646_v2, 4  ;;  %v5249_v62 = vld [vmem:[%s7090_s1 + $0x14] sm:$0xf] }
  0xa8   : > { %v870_v19 = vshrl.u32 %v751_v15, 16  ;;  %v873_v20 = vshll.u32 %v751_v15, 16  ;;  %v2313_v39 = vshrl.u32 %v2264_v16, 16  ;;  %v1647_v49 = vsel %vm6050_vm15, %v5102_v24, %v1646_v2  ;;  %v5380_v3 = vld [vmem:[%s7090_s1 + $0x20] sm:$0xf] }
  0xa9   : > { %v1165_v18 = vrot.slane %v1164_v34, 4  ;;  %v1226_v21 = vpack.c.b16 %v1206_v60, %v1205_v4  ;;  %v1180_v22 = vsel %vm5647_vm11, %v1175_v48, %v1179_v11  ;;  %v2316_v55 = vshll.u32 %v2264_v16, 16  ;;  %v2266_v15 = vld [vmem:[#allocation2 + $0x14] sm:$0x1]  ;;  %v1594_v16 = vld [vmem:[#allocation2 + $0xc] sm:$0xe] }
  0xaa   : > { %v1214_v5 = vunpack.c.l.b16 %v1180_v22  ;;  %v872_v27 = vrot.slane %v870_v19, 4  ;;  %v875_v28 = vrot.slane %v873_v20, 5  ;;  %v2322_v47 = vshll.u32 %v2265_v33, 16 }
  0xab   : > { %v1170_v26 = vsel %vm5647_vm11, %v1165_v18, %v1169_v53  ;;  %5017 = vmatmul.msk.bf16.gmra.mxu2 %vm1231_vm12, %v1226_v21  ;;  %v1650_v59 = vsel %vm6050_vm15, %v1648_v32, %v1649_v30  ;;  %v2326_v53 = vshrl.u32 %v2265_v33, 16  ;;  %v1758_v57 = vunpack.c.l.b16 %v1647_v49  ;;  %v2267_v30 = vld [vmem:[#allocation2 + $0x18] sm:$0xf] }
  0xac   : > { %v1213_v31 = vunpack.c.l.b16 %v1170_v26  ;;  %v6055_v35 = vld [vmem:[#allocation2 + $0x28] sm:$0xf]  ;;  %v876_v37 = vor.u32 %v875_v28, %v872_v27  ;;  %v1759_v4 = vunpack.c.l.b16 %v1650_v59  ;;  %v2315_v8 = vrot.slane %v2313_v39, 4  ;;  %v5417_v26 = vld [vmem:[#allocation2 + $0xc] sm:$0xff]  ;;  %v1595_v27 = vld [vmem:[#allocation2 + $0x18] sm:$0xe] }
  0xad   : > { %v6057_v29 = vld [vmem:[#allocation2 + $0x2c] sm:$0x1]  ;;  %v879_v44 = vshll.u32 %v6055_v35, 16  ;;  %v883_v0 = vshrl.u32 %v6055_v35, 16  ;;  %v2318_v11 = vrot.slane %v2316_v55, 5  ;;  %v2324_v12 = vrot.slane %v2322_v47, 5 }
  0xae   : > { %v1230_v42 = vpack.c.b16 %v1214_v5, %v1213_v31  ;;  %v877_v50 = vrot.slane %v876_v37, 4  ;;  %v889_v51 = vshll.u32 %v6057_v29, 16  ;;  %v2328_v34 = vrot.slane %v2326_v53, 4 }
  0xaf   : > { %v881_v56 = vrot.slane %v879_v44, 5  ;;  %v885_v58 = vrot.slane %v883_v0, 4  ;;  %v4134_v40 = vsel %vm1280_vm0, %v5347_v61, 0  ;;  %v3193_v60 = vsel %vm1280_vm0, %v5249_v62, 0 }
  0xb0   : > { %5021 = vmatmul.msk.bf16.gmra.mxu3 %vm1231_vm12, %v1230_v42  ;;  %v891_v1 = vrot.slane %v889_v51, 5  ;;  %3202 = vmatpush.bf16.msra.mxu1 %v3193_v60  ;;  %v4532_v43 = vsel %vm1280_vm0, %v5380_v3, 0  ;;  %v2319_v18 = vor.u32 %v2318_v11, %v2315_v8  ;;  %v1790_v19 = vpack.c.b16 %v1759_v4, %v1758_v57  ;;  %v2268_v42 = vld [vmem:[#allocation2 + $0x1c] sm:$0xf]  ;;  %v2269_v8 = vld [vmem:[#allocation2 + $0x20] sm:$0x1] }
  0xb1   : > { %v882_v63 = vsel %vm5647_vm11, %v877_v50, %v881_v56  ;;  %v886_v52 = vor.u32 %v885_v58, %v881_v56  ;;  %4143 = vmatpush.bf16.msra.mxu3 %v4134_v40  ;;  %4541 = vmatpush.bf16.msra.mxu0 %v4532_v43  ;;  %v2329_v20 = vor.u32 %v2328_v34, %v2324_v12  ;;  %v2332_v21 = vshll.u32 %v2266_v15, 16  ;;  %v5402_v50 = vld [vmem:[#allocation2 + $0xc] sm:$0xff]  ;;  %v5418_v15 = vld [vmem:[#allocation2 + $0x18] sm:$0xff] }
  0xb2   : > { %5086 = vmatmul.msk.bf16.vlgmr.msrb.gmra.mxu1 %vm1231_vm12, %v5401_v54  ;;  %v1189_v48 = vunpack.c.l.b16 %v882_v63  ;;  %v1653_v24 = vrot.slane %v5890_v41, 5  ;;  %v2320_v5 = vrot.slane %v2319_v18, 4  ;;  %v5104_v31 = vrot.slane %v1595_v27, 9 }
  0xb3   : > { %v887_v14 = vrot.slane %v886_v52, 4  ;;  %v2330_v28 = vrot.slane %v2329_v20, 4  ;;  %v2334_v23 = vrot.slane %v2332_v21, 5  ;;  %v1660_v32 = vrot.slane %v5973_v45, 5  ;;  %v5403_v20 = vld [vmem:[#allocation2 + $0x18] sm:$0xff] }
  0xb4   : > { %v5103_v33 = vrot.slane %v1594_v16, 9  ;;  %v1655_v37 = vrot.slane %v1653_v24, 4  ;;  %v1656_v39 = vrot.slane %v5915_v25, 5  ;;  %v1663_v41 = vrot.slane %v5988_v7, 5 }
  0xb5   : > { %v892_v2 = vsel %vm5647_vm11, %v887_v14, %v891_v1  ;;  %v1661_v44 = vsel %vm6050_vm15, %v5104_v31, %v1660_v32  ;;  %v1662_v0 = vrot.slane %v1660_v32, 4  ;;  %v2325_v49 = vsel %vm5647_vm11, %v2320_v5, %v2324_v12  ;;  %v2272_v31 = vld [vmem:[#allocation2 + $0x2c] sm:$0x1] }
  0xb6   : > { %v1190_v17 = vunpack.c.l.b16 %v892_v2  ;;  %v2337_v51 = vshrl.u32 %v2267_v30, 16  ;;  %v2340_v54 = vshll.u32 %v2267_v30, 16  ;;  %v1762_v55 = vunpack.c.l.b16 %v1661_v44 }
  0xb7   : > { %v2335_v45 = vsel %vm5647_vm11, %v2330_v28, %v2334_v23  ;;  %v2346_v25 = vshll.u32 %v2268_v42, 16  ;;  %v2350_v47 = vshrl.u32 %v2268_v42, 16  ;;  %v1664_v7 = vsel %vm6050_vm15, %v1662_v0, %v1663_v41  ;;  %v1596_v42 = vld [vmem:[#allocation2 + $0x24] sm:$0xe] }
  0xb8   : > { %v1218_v22 = vpack.c.b16 %v1190_v17, %v1189_v48  ;;  %v1654_v56 = vsel %vm6050_vm15, %v5103_v33, %v1653_v24  ;;  %v1657_v58 = vsel %vm6050_vm15, %v1655_v37, %v1656_v39  ;;  %v1763_v59 = vunpack.c.l.b16 %v1664_v7  ;;  %v2270_v48 = vld [vmem:[#allocation2 + $0x24] sm:$0xf]  ;;  %v2271_v17 = vld [vmem:[#allocation2 + $0x28] sm:$0xf] }
  0xb9   : > { %v2698_v53 = vunpack.c.l.b16 %v2325_v49  ;;  %v2699_v61 = vunpack.c.l.b16 %v2335_v45  ;;  %v2339_v62 = vrot.slane %v2337_v51, 4  ;;  %v2342_v63 = vrot.slane %v2340_v54, 5  ;;  %v5419_v51 = vld [vmem:[#allocation2 + $0x24] sm:$0xff]  ;;  %v2273_v45 = vld [vmem:[#allocation2 + $0x30] sm:$0xf] }
  0xba   : > { %5009 = vmatmul.msk.bf16.gmra.mxu0 %vm1231_vm12, %v1218_v22  ;;  %v1792_v52 = vpack.c.b16 %v1763_v59, %v1762_v55  ;;  %v1760_v1 = vunpack.c.l.b16 %v1654_v56  ;;  %v1761_v57 = vunpack.c.l.b16 %v1657_v58  ;;  %v2348_v3 = vrot.slane %v2346_v25, 5  ;;  %v2274_v25 = vld [vmem:[#allocation2 + $0x34] sm:$0xf]  ;;  %v5404_v7 = vld [vmem:[#allocation2 + $0x24] sm:$0xff] }
  0xbb   : > { %5119 = vmatmul.msk.bf16.vlgmr.msrb.gmra.mxu2 %vm1231_vm12, %v1790_v19  ;;  %v2352_v4 = vrot.slane %v2350_v47, 4  ;;  %v2730_v11 = vpack.c.b16 %v2699_v61, %v2698_v53  ;;  %v2343_v12 = vor.u32 %v2342_v63, %v2339_v62  ;;  %v2356_v40 = vshll.u32 %v2269_v8, 16 }
  0xbc   : > { %v1791_v14 = vpack.c.b16 %v1761_v57, %v1760_v1  ;;  %v2361_v18 = vshrl.u32 %v2270_v48, 16  ;;  %v2364_v21 = vshll.u32 %v2270_v48, 16  ;;  %v2370_v22 = vshll.u32 %v2271_v17, 16 }
  0xbd   : > { %v2353_v34 = vor.u32 %v2352_v4, %v2348_v3  ;;  %v2344_v60 = vrot.slane %v2343_v12, 4  ;;  %v2358_v2 = vrot.slane %v2356_v40, 5  ;;  %v2374_v24 = vshrl.u32 %v2271_v17, 16  ;;  %v2275_v12 = vld [vmem:[#allocation2 + $0x38] sm:$0x1] }
  0xbe   : > { %v2363_v5 = vrot.slane %v2361_v18, 4  ;;  %v2366_v28 = vrot.slane %v2364_v21, 5  ;;  %v2372_v23 = vrot.slane %v2370_v22, 5  ;;  %v2380_v39 = vshll.u32 %v2272_v31, 16  ;;  %v2276_v17 = vld [vmem:[#allocation2 + $0x3c] sm:$0xf] }
  0xbf   : > { %v2354_v43 = vrot.slane %v2353_v34, 4  ;;  %v2349_v19 = vsel %vm5647_vm11, %v2344_v60, %v2348_v3  ;;  %v2376_v30 = vrot.slane %v2374_v24, 4  ;;  %v1667_v41 = vrot.slane %v6055_v35, 5  ;;  %v2277_v18 = vld [vmem:[#allocation2 + $0x40] sm:$0xf] }
  0xc0   : > { %5200 = vmatmul.msk.bf16.vlgmr.msrb.gmra.mxu3 %vm1231_vm12, %v5417_v26  ;;  %v2700_v26 = vunpack.c.l.b16 %v2349_v19  ;;  %v2367_v33 = vor.u32 %v2366_v28, %v2363_v5  ;;  %v2382_v49 = vrot.slane %v2380_v39, 5  ;;  %v1670_v55 = vrot.slane %v6057_v29, 5  ;;  %v5420_v19 = vld [vmem:[#allocation2 + $0x30] sm:$0xff] }
  0xc1   : > { %v2359_v16 = vsel %vm5647_vm11, %v2354_v43, %v2358_v2  ;;  %v2377_v37 = vor.u32 %v2376_v30, %v2372_v23  ;;  %v1669_v54 = vrot.slane %v1667_v41, 4  ;;  %v2385_v58 = vshrl.u32 %v2273_v45, 16  ;;  %v1597_v2 = vld [vmem:[#allocation2 + $0x30] sm:$0xe] }
  0xc2   : > { %5087 = vmatmul.msk.bf16.gmra.mxu1 %vm1231_vm12, %v5402_v50  ;;  %v2701_v27 = vunpack.c.l.b16 %v2359_v16  ;;  %v2368_v44 = vrot.slane %v2367_v33, 4  ;;  %v5105_v50 = vrot.slane %v1596_v42, 9  ;;  %v2388_v53 = vshll.u32 %v2273_v45, 16 }
  0xc3   : > { %v2378_v0 = vrot.slane %v2377_v37, 4  ;;  %v1671_v59 = vsel %vm6050_vm15, %v1669_v54, %v1670_v55  ;;  %v2394_v29 = vshll.u32 %v2274_v25, 16  ;;  %v2398_v61 = vshrl.u32 %v2274_v25, 16  ;;  %v2278_v54 = vld [vmem:[#allocation2 + $0x44] sm:$0x1] }
  0xc4   : > { %v2731_v32 = vpack.c.b16 %v2701_v27, %v2700_v26  ;;  %v2373_v47 = vsel %vm5647_vm11, %v2368_v44, %v2372_v23  ;;  %v1668_v56 = vsel %vm6050_vm15, %v5105_v50, %v1667_v41  ;;  %v1765_v1 = vunpack.c.l.b16 %v1671_v59  ;;  %v5464_v26 = vld [vmem:[#allocation2 + $0x38] sm:$0x1] }
  0xc5   : > { %v2383_v35 = vsel %vm5647_vm11, %v2378_v0, %v2382_v49  ;;  %v2702_v62 = vunpack.c.l.b16 %v2373_v47  ;;  %v2387_v57 = vrot.slane %v2385_v58, 4  ;;  %v2390_v3 = vrot.slane %v2388_v53, 5 }
  0xc6   : > { %v2703_v63 = vunpack.c.l.b16 %v2383_v35  ;;  %v2396_v4 = vrot.slane %v2394_v29, 5  ;;  %v2400_v8 = vrot.slane %v2398_v61, 4  ;;  %v2404_v48 = vshll.u32 %v2275_v12, 16  ;;  %v5465_v29 = vld [vmem:[#allocation2 + $0x40] sm:$0xf] }
  0xc7   : > { %v2391_v40 = vor.u32 %v2390_v3, %v2387_v57  ;;  %v5106_v24 = vrot.slane %v1597_v2, 9  ;;  %v1677_v5 = vrot.slane %v5464_v26, 5  ;;  %v2409_v27 = vshrl.u32 %v2276_v17, 16  ;;  %v6149_v57 = vpop.f32.mrf.mxu0  ;;  %v5421_v3 = vld [vmem:[#allocation2 + $0x3c] sm:$0xff] }
  0xc8   : > { %v2401_v60 = vor.u32 %v2400_v8, %v2396_v4  ;;  %v2406_v22 = vrot.slane %v2404_v48, 5  ;;  %v2412_v28 = vshll.u32 %v2276_v17, 16  ;;  %v2418_v23 = vshll.u32 %v2277_v18, 16  ;;  %v2280_v8 = vld [vmem:[#allocation2 + $0x4c] sm:$0xf] }
  0xc9   : > { %v2422_v30 = vshrl.u32 %v2277_v18, 16  ;;  %v2411_v41 = vrot.slane %v2409_v27, 4  ;;  %v1681_v61 = vrot.slane %v5465_v29, 5  ;;  %v2442_v18 = vshll.u32 %v2280_v8, 16 }
  0xca   : > { %5217 = vmatmul.msk.bf16.vlgmr.msrb.gmra.mxu0 %vm1231_vm12, %v2730_v11  ;;  %v6126_v11 = vpop.f32.mrf.mxu1  ;;  %v2402_v21 = vrot.slane %v2401_v60, 4  ;;  %v2414_v44 = vrot.slane %v2412_v28, 5  ;;  %v2420_v0 = vrot.slane %v2418_v23, 5 }
  0xcb   : > { %5120 = vmatmul.msk.bf16.gmra.mxu2 %vm1231_vm12, %v1791_v14  ;;  %v2732_v14 = vpack.c.b16 %v2703_v63, %v2702_v62  ;;  %v2424_v49 = vrot.slane %v2422_v30, 4  ;;  %v2444_v28 = vrot.slane %v2442_v18, 5 }
  0xcc   : > { %v2407_v37 = vsel %vm5647_vm11, %v2402_v21, %v2406_v22  ;;  %v2415_v47 = vor.u32 %v2414_v44, %v2411_v41 }
  0xcd   : > { %v2425_v35 = vor.u32 %v2424_v49, %v2420_v0 }
  0xce   : > { %v2416_v62 = vrot.slane %v2415_v47, 4 }
  0xcf   : > { %v2426_v63 = vrot.slane %v2425_v35, 4 }
  0xd0   : > { %5201 = vmatmul.msk.bf16.gmra.mxu3 %vm1231_vm12, %v5418_v15  ;;  %v5463_v15 = vld [vmem:[#allocation2 + $0x34] sm:$0xf]  ;;  %v2421_v48 = vsel %vm5647_vm11, %v2416_v62, %v2420_v0 }
  0xd1   : > { %v1674_v43 = vrot.slane %v5463_v15, 5 }
  0xd2   : > { %5088 = vmatmul.msk.bf16.gmra.mxu1 %vm1231_vm12, %v5403_v20  ;;  %v2392_v20 = vrot.slane %v2391_v40, 4  ;;  %v6130_v31 = vpop.f32.mrf.mxu1  ;;  %v5466_v40 = vld [vmem:[#allocation2 + $0x44] sm:$0x1] }
  0xd3   : > { %v1676_v16 = vrot.slane %v1674_v43, 4  ;;  %v1675_v39 = vsel %vm6050_vm15, %v5106_v24, %v1674_v43  ;;  %v1684_v60 = vrot.slane %v5466_v40, 5  ;;  %v5406_v43 = vld [vmem:[#allocation2 + $0x3c] sm:$0xff]  ;;  %v2706_v24 = vunpack.c.l.b16 %v2421_v48 }
  0xd4   : > { %v2397_v33 = vsel %vm5647_vm11, %v2392_v20, %v2396_v4  ;;  %v1766_v45 = vunpack.c.l.b16 %v1675_v39  ;;  %v2279_v4 = vld [vmem:[#allocation2 + $0x48] sm:$0xf] }
  0xd5   : > { %v1678_v42 = vsel %vm6050_vm15, %v1676_v16, %v1677_v5  ;;  %v2704_v50 = vunpack.c.l.b16 %v2397_v33  ;;  %v2433_v2 = vshrl.u32 %v2279_v4, 16  ;;  %v2436_v17 = vshll.u32 %v2279_v4, 16  ;;  %v2281_v33 = vld [vmem:[#allocation2 + $0x50] sm:$0x1]  ;;  %v5407_v4 = vld [vmem:[#allocation2 + $0x48] sm:$0xff] }
  0xd6   : > { %v1767_v25 = vunpack.c.l.b16 %v1678_v42  ;;  %v2452_v44 = vshll.u32 %v2281_v33, 16 }
  0xd7   : > { %v2435_v5 = vrot.slane %v2433_v2, 4  ;;  %v2438_v27 = vrot.slane %v2436_v17, 5 }
  0xd8   : > { %v1794_v59 = vpack.c.b16 %v1767_v25, %v1766_v45  ;;  %v2454_v47 = vrot.slane %v2452_v44, 5  ;;  %v1600_v44 = vld [vmem:[#allocation2 + $0x54] sm:$0xe] }
  0xd9   : > { %v2439_v42 = vor.u32 %v2438_v27, %v2435_v5  ;;  %v2284_v27 = vld [vmem:[#allocation2 + $0x5c] sm:$0x1] }
  0xda   : > { %5218 = vmatmul.msk.bf16.gmra.mxu0 %vm1231_vm12, %v2731_v32  ;;  %v5405_v32 = vld [vmem:[#allocation2 + $0x30] sm:$0xff] }
  0xdb   : > { %5121 = vmatmul.msk.bf16.gmra.mxu2 %vm1231_vm12, %v1792_v52  ;;  %v1764_v52 = vunpack.c.l.b16 %v1668_v56  ;;  %v2440_v45 = vrot.slane %v2439_v42, 4  ;;  %v1695_v42 = vrot.slane %v6000_v38, 5 }
  0xdd   : > { %v1793_v34 = vpack.c.b16 %v1765_v1, %v1764_v52  ;;  %v1598_v1 = vld [vmem:[#allocation2 + $0x3c] sm:$0xe] }
  0xdf   : > { %v6142_v55 = vpop.f32.mrf.mxu2 }
  0xe0   : > { %5202 = vmatmul.msk.bf16.gmra.mxu3 %vm1231_vm12, %v5419_v51  ;;  %v2705_v51 = vunpack.c.l.b16 %v2407_v37  ;;  %v6168_v37 = vpop.f32.mrf.mxu0 }
  0xe2   : > { %5089 = vmatmul.msk.bf16.gmra.mxu1 %vm1231_vm12, %v5404_v7  ;;  %v2428_v7 = vshll.u32 %v2278_v54, 16  ;;  %v2733_v56 = vpack.c.b16 %v2705_v51, %v2704_v50  ;;  %v6144_v58 = vpop.f32.mrf.mxu3  ;;  %v1599_v50 = vld [vmem:[#allocation2 + $0x48] sm:$0xe]  ;;  %v5467_v51 = vld [vmem:[#allocation2 + $0x4c] sm:$0xf] }
  0xe3   : > { %v6146_v53 = vpop.f32.mrf.mxu1  ;;  %v1688_v54 = vrot.slane %v5467_v51, 5 }
  0xe4   : > { %v2430_v52 = vrot.slane %v2428_v7, 5  ;;  %v5108_v7 = vrot.slane %v1599_v50, 9  ;;  %v5423_v50 = vld [vmem:[#allocation2 + $0x54] sm:$0xff] }
  0xe5   : > { %v1690_v29 = vrot.slane %v1688_v54, 4 }
  0xe6   : > { %v2431_v15 = vsel %vm5647_vm11, %v2426_v63, %v2430_v52  ;;  %v2282_v63 = vld [vmem:[#allocation2 + $0x54] sm:$0xf]  ;;  %v2283_v52 = vld [vmem:[#allocation2 + $0x58] sm:$0xf] }
  0xe7   : > { %v6152_v12 = vpop.f32.mrf.mxu2  ;;  %v2707_v16 = vunpack.c.l.b16 %v2431_v15  ;;  %v2466_v48 = vshll.u32 %v2283_v52, 16  ;;  %v2470_v15 = vshrl.u32 %v2283_v52, 16 }
  0xe9   : > { %v2734_v39 = vpack.c.b16 %v2707_v16, %v2706_v24  ;;  %v2468_v24 = vrot.slane %v2466_v48, 5  ;;  %v2472_v16 = vrot.slane %v2470_v15, 4 }
  0xea   : > { %5219 = vmatmul.msk.bf16.gmra.mxu0 %vm1231_vm12, %v2732_v14  ;;  %v5107_v14 = vrot.slane %v1598_v1, 9  ;;  %v6159_v20 = vpop.f32.mrf.mxu3  ;;  %v2445_v1 = vsel %vm5647_vm11, %v2440_v45, %v2444_v28 }
  0xeb   : > { %5122 = vmatmul.msk.bf16.gmra.mxu2 %vm1231_vm12, %v1793_v34  ;;  %v1683_v34 = vrot.slane %v1681_v61, 4  ;;  %v6165_v26 = vpop.f32.mrf.mxu1  ;;  %v2708_v2 = vunpack.c.l.b16 %v2445_v1  ;;  %v2473_v33 = vor.u32 %v2472_v16, %v2468_v24 }
  0xec   : > { %v1682_v21 = vsel %vm6050_vm15, %v5107_v14, %v1681_v61  ;;  %v5468_v61 = vld [vmem:[#allocation2 + $0x50] sm:$0x1]  ;;  %v2457_v14 = vshrl.u32 %v2282_v63, 16 }
  0xed   : > { %v1685_v22 = vsel %vm6050_vm15, %v1683_v34, %v1684_v60  ;;  %v1768_v30 = vunpack.c.l.b16 %v1682_v21  ;;  %v1691_v62 = vrot.slane %v5468_v61, 5  ;;  %v2460_v60 = vshll.u32 %v2282_v63, 16  ;;  %v5408_v61 = vld [vmem:[#allocation2 + $0x54] sm:$0xff] }
  0xee   : > { %v2459_v21 = vrot.slane %v2457_v14, 4 }
  0xef   : > { %v6170_v0 = vpop.f32.mrf.mxu2  ;;  %v1692_v40 = vsel %vm6050_vm15, %v1690_v29, %v1691_v62  ;;  %v2286_v29 = vld [vmem:[#allocation2 + $0x64] sm:$0xf] }
  0xf0   : > { %5203 = vmatmul.msk.bf16.gmra.mxu3 %vm1231_vm12, %v5420_v19  ;;  %v2446_v19 = vshrl.u32 %v2280_v8, 16  ;;  %v1689_v8 = vsel %vm6050_vm15, %v5108_v7, %v1688_v54  ;;  %v2474_v54 = vrot.slane %v2473_v33, 4  ;;  %v1697_v7 = vrot.slane %v1695_v42, 4 }
  0xf1   : > { %v1770_v18 = vunpack.c.l.b16 %v1689_v8  ;;  %v2494_v8 = vshrl.u32 %v2286_v29, 16 }
  0xf2   : > { %5090 = vmatmul.msk.bf16.gmra.mxu1 %vm1231_vm12, %v5405_v32  ;;  %v2448_v23 = vrot.slane %v2446_v19, 4  ;;  %v1769_v32 = vunpack.c.l.b16 %v1685_v22  ;;  %v1771_v19 = vunpack.c.l.b16 %v1692_v40  ;;  %v2462_v22 = vrot.slane %v2460_v60, 5 }
  0xf3   : > { %v6173_v35 = vpop.f32.mrf.mxu3 }
  0xf4   : > { %v2449_v41 = vor.u32 %v2448_v23, %v2444_v28  ;;  %v1795_v49 = vpack.c.b16 %v1769_v32, %v1768_v30  ;;  %v6184_v34 = vpop.f32.mrf.mxu0  ;;  %v1796_v30 = vpack.c.b16 %v1771_v19, %v1770_v18  ;;  %v2463_v32 = vor.u32 %v2462_v22, %v2459_v21 }
  0xf5   : > { %v2496_v21 = vrot.slane %v2494_v8, 4 }
  0xf6   : > { %v2450_v25 = vrot.slane %v2449_v41, 4  ;;  %v2464_v51 = vrot.slane %v2463_v32, 4 }
  0xf8   : > { %v2469_v52 = vsel %vm5647_vm11, %v2464_v51, %v2468_v24  ;;  %v2287_v24 = vld [vmem:[#allocation2 + $0x68] sm:$0x1]  ;;  %v5424_v51 = vld [vmem:[#allocation2 + $0x60] sm:$0xff] }
  0xf9   : > { %v2710_v40 = vunpack.c.l.b16 %v2469_v52  ;;  %v2500_v32 = vshll.u32 %v2287_v24, 16 }
  0xfa   : > { %5220 = vmatmul.msk.bf16.gmra.mxu0 %vm1231_vm12, %v2733_v56  ;;  %v5422_v56 = vld [vmem:[#allocation2 + $0x48] sm:$0xff] }
  0xfb   : > { %5123 = vmatmul.msk.bf16.gmra.mxu2 %vm1231_vm12, %v1794_v59  ;;  %v6192_v5 = vpop.f32.mrf.mxu3 }
  0xfc   : > { %v6197_v41 = vpop.f32.mrf.mxu0 }
 0x100   : > { %5204 = vmatmul.msk.bf16.gmra.mxu3 %vm1231_vm12, %v5421_v3  ;;  %v2455_v3 = vsel %vm5647_vm11, %v2450_v25, %v2454_v47  ;;  %v2285_v25 = vld [vmem:[#allocation2 + $0x60] sm:$0xf]  ;;  %v5109_v47 = vrot.slane %v1600_v44, 9 }
 0x101   : > { %v2709_v17 = vunpack.c.l.b16 %v2455_v3  ;;  %v2481_v62 = vshrl.u32 %v2285_v25, 16  ;;  %v2484_v63 = vshll.u32 %v2285_v25, 16  ;;  %v2502_v25 = vrot.slane %v2500_v32, 5 }
 0x102   : > { %5091 = vmatmul.msk.bf16.gmra.mxu1 %vm1231_vm12, %v5406_v43  ;;  %v6176_v59 = vpop.f32.mrf.mxu1  ;;  %v6189_v43 = vpop.f32.mrf.mxu2 }
 0x103   : > { %v2735_v23 = vpack.c.b16 %v2709_v17, %v2708_v2  ;;  %v2483_v48 = vrot.slane %v2481_v62, 4  ;;  %v2486_v15 = vrot.slane %v2484_v63, 5  ;;  %v2289_v62 = vld [vmem:[#allocation2 + $0x70] sm:$0xf] }
 0x10a   : > { %5221 = vmatmul.msk.bf16.gmra.mxu0 %vm1231_vm12, %v2734_v39  ;;  %v6194_v28 = vpop.f32.mrf.mxu1  ;;  %v2476_v39 = vshll.u32 %v2284_v27, 16 }
 0x10b   : > { %5124 = vmatmul.msk.bf16.gmra.mxu2 %vm1231_vm12, %v1795_v49 }
 0x10c   : > { %v2478_v45 = vrot.slane %v2476_v39, 5 }
 0x10e   : > { %v6200_v49 = vpop.f32.mrf.mxu2  ;;  %v2479_v1 = vsel %vm5647_vm11, %v2474_v54, %v2478_v45 }
 0x10f   : > { %v2711_v60 = vunpack.c.l.b16 %v2479_v1  ;;  %v5409_v1 = vld [vmem:[#allocation2 + $0x60] sm:$0xff] }
 0x110   : > { %5205 = vmatmul.msk.bf16.gmra.mxu3 %vm1231_vm12, %v5422_v56  ;;  %v1698_v56 = vrot.slane %v6008_v46, 5  ;;  %v1696_v46 = vsel %vm6050_vm15, %v5109_v47, %v1695_v42  ;;  %v5469_v42 = vld [vmem:[#allocation2 + $0x64] sm:$0xf]  ;;  %v2288_v47 = vld [vmem:[#allocation2 + $0x6c] sm:$0xf] }
 0x111   : > { %v1772_v17 = vunpack.c.l.b16 %v1696_v46  ;;  %v2736_v16 = vpack.c.b16 %v2711_v60, %v2710_v40  ;;  %v1702_v44 = vrot.slane %v5469_v42, 5  ;;  %v2508_v8 = vshll.u32 %v2288_v47, 16 }
 0x112   : > { %5092 = vmatmul.msk.bf16.gmra.mxu1 %vm1231_vm12, %v5407_v4  ;;  %v6204_v38 = vpop.f32.mrf.mxu3  ;;  %v2490_v4 = vshll.u32 %v2286_v29, 16  ;;  %v1699_v14 = vsel %vm6050_vm15, %v1697_v7, %v1698_v56  ;;  %v5470_v7 = vld [vmem:[#allocation2 + $0x68] sm:$0x1]  ;;  %v2514_v60 = vshll.u32 %v2289_v62, 16 }
 0x113   : > { %v1773_v18 = vunpack.c.l.b16 %v1699_v14  ;;  %v1705_v56 = vrot.slane %v5470_v7, 5 }
 0x114   : > { %v2492_v19 = vrot.slane %v2490_v4, 5  ;;  %v2505_v4 = vshrl.u32 %v2288_v47, 16  ;;  %v2516_v32 = vrot.slane %v2514_v60, 5  ;;  %v2292_v60 = vld [vmem:[#allocation2 + $0x7c] sm:$0xf] }
 0x115   : > { %v1797_v27 = vpack.c.b16 %v1773_v18, %v1772_v17 }
 0x116   : > { %v6220_v22 = vpop.f32.mrf.mxu2 }
 0x117   : > { %v6218_v2 = vpop.f32.mrf.mxu0 }
 0x11a   : > { %5222 = vmatmul.msk.bf16.gmra.mxu0 %vm1231_vm12, %v2735_v23  ;;  %v2487_v23 = vor.u32 %v2486_v15, %v2483_v48  ;;  %v6224_v39 = vpop.f32.mrf.mxu3  ;;  %v2518_v48 = vshrl.u32 %v2289_v62, 16 }
 0x11b   : > { %5125 = vmatmul.msk.bf16.gmra.mxu2 %vm1231_vm12, %v1796_v30  ;;  %v2497_v30 = vor.u32 %v2496_v21, %v2492_v19  ;;  %7104 = vst [vmem:[#allocation3_spill] sm:$0xff] %v6224_v39 }
 0x11c   : > { %v2488_v54 = vrot.slane %v2487_v23, 4  ;;  %v2520_v42 = vrot.slane %v2518_v48, 4  ;;  %v5472_v48 = vld [vmem:[#allocation2 + $0x74] sm:$0x1] }
 0x11d   : > { %v2498_v45 = vrot.slane %v2497_v30, 4  ;;  %v2290_v30 = vld [vmem:[#allocation2 + $0x74] sm:$0x1] }
 0x11e   : > { %v2493_v46 = vsel %vm5647_vm11, %v2488_v54, %v2492_v19  ;;  %v2510_v19 = vrot.slane %v2508_v8, 5  ;;  %v2524_v54 = vshll.u32 %v2290_v30, 16  ;;  %v2521_v47 = vor.u32 %v2520_v42, %v2516_v32  ;;  %v5425_v8 = vld [vmem:[#allocation2 + $0x6c] sm:$0xff] }
 0x11f   : > { %v6211_v3 = vpop.f32.mrf.mxu1  ;;  %v6228_v63 = vpop.f32.mrf.mxu0  ;;  %v2503_v14 = vsel %vm5647_vm11, %v2498_v45, %v2502_v25  ;;  %v2712_v18 = vunpack.c.l.b16 %v2493_v46  ;;  %v2538_v42 = vshll.u32 %v2292_v60, 16 }
 0x120   : > { %5206 = vmatmul.msk.bf16.gmra.mxu3 %vm1231_vm12, %v5423_v50  ;;  %v1601_v50 = vld [vmem:[#allocation2 + $0x60] sm:$0xe]  ;;  %v2713_v21 = vunpack.c.l.b16 %v2503_v14  ;;  %v2522_v46 = vrot.slane %v2521_v47, 4  ;;  %v2291_v14 = vld [vmem:[#allocation2 + $0x78] sm:$0xf]  ;;  %v2542_v47 = vshrl.u32 %v2292_v60, 16 }
 0x121   : > { %v5110_v29 = vrot.slane %v1601_v50, 9  ;;  %v2532_v30 = vshll.u32 %v2291_v14, 16 }
 0x122   : > { %5093 = vmatmul.msk.bf16.gmra.mxu1 %vm1231_vm12, %v5408_v61  ;;  %v1704_v61 = vrot.slane %v1702_v44, 4  ;;  %v2737_v50 = vpack.c.b16 %v2713_v21, %v2712_v18 }
 0x123   : > { %v1703_v15 = vsel %vm6050_vm15, %v5110_v29, %v1702_v44 }
 0x124   : > { %v1706_v17 = vsel %vm6050_vm15, %v1704_v61, %v1705_v56  ;;  %v5471_v56 = vld [vmem:[#allocation2 + $0x70] sm:$0xf]  ;;  %v1602_v61 = vld [vmem:[#allocation2 + $0x6c] sm:$0xe] }
 0x125   : > { %v1775_v23 = vunpack.c.l.b16 %v1706_v17  ;;  %v1709_v29 = vrot.slane %v5471_v56, 5  ;;  %v5111_v17 = vrot.slane %v1602_v61, 9 }
 0x127   : > { %v6222_v33 = vpop.f32.mrf.mxu1  ;;  %v1711_v18 = vrot.slane %v1709_v29, 4 }
 0x12a   : > { %5223 = vmatmul.msk.bf16.gmra.mxu0 %vm1231_vm12, %v2736_v16  ;;  %v2507_v16 = vrot.slane %v2505_v4, 4  ;;  %v2526_v4 = vrot.slane %v2524_v54, 5 }
 0x12b   : > { %5126 = vmatmul.msk.bf16.gmra.mxu2 %vm1231_vm12, %v1797_v27  ;;  %v1774_v27 = vunpack.c.l.b16 %v1703_v15  ;;  %v1712_v15 = vrot.slane %v5472_v48, 5 }
 0x12c   : > { %v2511_v44 = vor.u32 %v2510_v19, %v2507_v16 }
 0x12d   : > { %v1798_v25 = vpack.c.b16 %v1775_v23, %v1774_v27  ;;  %v5410_v27 = vld [vmem:[#allocation2 + $0x6c] sm:$0xff]  ;;  %v2529_v23 = vshrl.u32 %v2291_v14, 16  ;;  %v2534_v14 = vrot.slane %v2532_v30, 5 }
 0x12e   : > { %v6230_v52 = vpop.f32.mrf.mxu2 }
 0x12f   : > { %v1513_v40 = vpop.f32.mrf.mxu1 }
 0x130   : > { %5207 = vmatmul.msk.bf16.gmra.mxu3 %vm1231_vm12, %v5424_v51  ;;  %v1514_v21 = vadd.f32 %v1513_v40, %v6149_v57  ;;  %v1710_v57 = vsel %vm6050_vm15, %v5111_v17, %v1709_v29  ;;  %v1713_v40 = vsel %vm6050_vm15, %v1711_v18, %v1712_v15 }
 0x132   : > { %5094 = vmatmul.msk.bf16.gmra.mxu1 %vm1231_vm12, %v5409_v1  ;;  %v2512_v1 = vrot.slane %v2511_v44, 4  ;;  %v2527_v44 = vsel %vm5647_vm11, %v2522_v46, %v2526_v4  ;;  %v1777_v4 = vunpack.c.l.b16 %v1713_v40  ;;  %v2544_v46 = vrot.slane %v2542_v47, 4 }
 0x133   : > { %v6241_v24 = vpop.f32.mrf.mxu3  ;;  %v2715_v56 = vunpack.c.l.b16 %v2527_v44 }
 0x134   : > { %7105 = vst [vmem:[#allocation4_spill] sm:$0xff] %v6241_v24  ;;  %v2517_v16 = vsel %vm5647_vm11, %v2512_v1, %v2516_v32  ;;  %v2531_v1 = vrot.slane %v2529_v23, 4 }
 0x135   : > { %v2714_v32 = vunpack.c.l.b16 %v2517_v16 }
 0x136   : > { %v6244_v51 = vpop.f32.mrf.mxu2  ;;  %v2535_v17 = vor.u32 %v2534_v14, %v2531_v1 }
 0x137   : > { %v6246_v45 = vpop.f32.mrf.mxu0  ;;  %v1515_v7 = vpop.f32.mrf.mxu1 }
 0x138   : > { %v1516_v60 = vadd.f32 %v1515_v7, %v6168_v37  ;;  %v5426_v7 = vld [vmem:[#allocation2 + $0x78] sm:$0xff]  ;;  %v2536_v40 = vrot.slane %v2535_v17, 4 }
 0x13a   : > { %5224 = vmatmul.msk.bf16.gmra.mxu0 %vm1231_vm12, %v2737_v50 }
 0x13b   : > { %v6249_v62 = vpop.f32.mrf.mxu3  ;;  %5127 = vmatmul.msk.bf16.gmra.mxu2 %vm1231_vm12, %v1798_v25 }
 0x13c   : > { %7106 = vst [vmem:[#allocation5_spill] sm:$0xff] %v6249_v62  ;;  %v1776_v62 = vunpack.c.l.b16 %v1710_v57  ;;  %v2295_v57 = vld [vmem:[#allocation2 + $0x88] sm:$0xf] }
 0x13e   : > { %v1866_v19 = vpop.f32.mrf.mxu2  ;;  %v1799_v18 = vpack.c.b16 %v1777_v4, %v1776_v62 }
 0x13f   : > { %v6255_v50 = vpop.f32.mrf.mxu0  ;;  %v1946_v54 = vadd.f32 %v1866_v19, %v1514_v21  ;;  %v1518_v25 = vpop.f32.mrf.mxu1  ;;  %v2293_v21 = vld [vmem:[#allocation2 + $0x80] sm:$0x1]  ;;  %v2738_v19 = vpack.c.b16 %v2715_v56, %v2714_v32 }
 0x140   : > { %5208 = vmatmul.msk.bf16.gmra.mxu3 %vm1231_vm12, %v5425_v8  ;;  %v2540_v8 = vrot.slane %v2538_v42, 5  ;;  %v2548_v44 = vshll.u32 %v2293_v21, 16  ;;  %v1603_v42 = vld [vmem:[#allocation2 + $0x78] sm:$0xe]  ;;  %v5474_v56 = vld [vmem:[#allocation2 + $0x80] sm:$0x1] }
 0x141   : > { %v5112_v1 = vrot.slane %v1603_v42, 9  ;;  %v2566_v21 = vshrl.u32 %v2295_v57, 16 }
 0x142   : > { %5095 = vmatmul.msk.bf16.gmra.mxu1 %vm1231_vm12, %v5410_v27  ;;  %v2545_v16 = vor.u32 %v2544_v46, %v2540_v8  ;;  %v5473_v27 = vld [vmem:[#allocation2 + $0x7c] sm:$0xf]  ;;  %v2550_v62 = vrot.slane %v2548_v44, 5  ;;  %v2562_v46 = vshll.u32 %v2295_v57, 16  ;;  %v2541_v17 = vsel %vm5647_vm11, %v2536_v40, %v2540_v8 }
 0x143   : > { %v2152_v61 = vpop.f32.mrf.mxu3  ;;  %v1716_v23 = vrot.slane %v5473_v27, 5  ;;  %v2568_v57 = vrot.slane %v2566_v21, 4  ;;  %v2716_v8 = vunpack.c.l.b16 %v2541_v17 }
 0x144   : > { %v2232_v48 = vadd.f32 %v2152_v61, %v1946_v54  ;;  %v2294_v54 = vld [vmem:[#allocation2 + $0x84] sm:$0xf]  ;;  %v2546_v32 = vrot.slane %v2545_v16, 4  ;;  %v1719_v61 = vrot.slane %v5474_v56, 5 }
 0x145   : > { %v1718_v14 = vrot.slane %v1716_v23, 4  ;;  %v2553_v4 = vshrl.u32 %v2294_v54, 16 }
 0x146   : > { %v1868_v29 = vpop.f32.mrf.mxu2 }
 0x147   : > { %v2806_v24 = vpop.f32.mrf.mxu0  ;;  %v1947_v15 = vadd.f32 %v1868_v29, %v1516_v60  ;;  %v1520_v39 = vpop.f32.mrf.mxu1  ;;  %v2555_v42 = vrot.slane %v2553_v4, 4 }
 0x148   : > { %v6266_v30 = vadd.f32 %v2806_v24, %v2232_v48  ;;  %v1519_v24 = vadd.f32 %v1518_v25, %v6184_v34  ;;  %v2556_v48 = vshll.u32 %v2294_v54, 16  ;;  %v1717_v34 = vsel %vm6050_vm15, %v5112_v1, %v1716_v23 }
 0x149   : > { %v1720_v25 = vsel %vm6050_vm15, %v1718_v14, %v1719_v61  ;;  %v1521_v23 = vadd.f32 %v1520_v39, %v6197_v41 }
 0x14a   : > { %5225 = vmatmul.msk.bf16.gmra.mxu0 %vm1231_vm12, %v2738_v19  ;;  %v5411_v19 = vld [vmem:[#allocation2 + $0x78] sm:$0xff]  ;;  %v2558_v54 = vrot.slane %v2556_v48, 5  ;;  %v1779_v56 = vunpack.c.l.b16 %v1720_v25  ;;  %v5427_v25 = vld [vmem:[#allocation2 + $0x84] sm:$0xff] }
 0x14b   : > { %v2154_v47 = vpop.f32.mrf.mxu3  ;;  %5128 = vmatmul.msk.bf16.gmra.mxu2 %vm1231_vm12, %v1799_v18 }
 0x14c   : > { %v2233_v37 = vadd.f32 %v2154_v47, %v1947_v15  ;;  %v2551_v15 = vsel %vm5647_vm11, %v2546_v32, %v2550_v62  ;;  %v2564_v47 = vrot.slane %v2562_v46, 5  ;;  %v2296_v32 = vld [vmem:[#allocation2 + $0x8c] sm:$0x1]  ;;  %v2559_v1 = vor.u32 %v2558_v54, %v2555_v42  ;;  %v2297_v42 = vld [vmem:[#allocation2 + $0x90] sm:$0xf] }
 0x14d   : > { %v2572_v61 = vshll.u32 %v2296_v32, 16  ;;  %v2298_v54 = vld [vmem:[#allocation2 + $0x94] sm:$0xf] }
 0x14e   : > { %v1871_v60 = vpop.f32.mrf.mxu2 }
 0x14f   : > { %v2808_v29 = vpop.f32.mrf.mxu0  ;;  %v1948_v18 = vadd.f32 %v1871_v60, %v1519_v24  ;;  %v1523_v16 = vpop.f32.mrf.mxu1  ;;  %v2569_v24 = vor.u32 %v2568_v57, %v2564_v47  ;;  %v5476_v57 = vld [vmem:[#allocation2 + $0x8c] sm:$0x1] }
 0x150   : > { %5209 = vmatmul.msk.bf16.gmra.mxu3 %vm1231_vm12, %v5426_v7  ;;  %v1524_v44 = vadd.f32 %v1523_v16, %v6218_v2  ;;  %v6281_v27 = vadd.f32 %v2808_v29, %v2233_v37  ;;  %v2717_v7 = vunpack.c.l.b16 %v2551_v15  ;;  %v1778_v2 = vunpack.c.l.b16 %v1717_v34  ;;  %v5475_v29 = vld [vmem:[#allocation2 + $0x88] sm:$0xf]  ;;  %v1604_v34 = vld [vmem:[#allocation2 + $0x84] sm:$0xe] }
 0x151   : > { %v1723_v17 = vrot.slane %v5475_v29, 5  ;;  %v2560_v15 = vrot.slane %v2559_v1, 4  ;;  %v2574_v16 = vrot.slane %v2572_v61, 5  ;;  %v2586_v1 = vshll.u32 %v2298_v54, 16 }
 0x152   : > { %5096 = vmatmul.msk.bf16.gmra.mxu1 %vm1231_vm12, %v5411_v19  ;;  %v2739_v37 = vpack.c.b16 %v2717_v7, %v2716_v8  ;;  %v1800_v46 = vpack.c.b16 %v1779_v56, %v1778_v2  ;;  %v1726_v8 = vrot.slane %v5476_v57, 5  ;;  %v5412_v2 = vld [vmem:[#allocation2 + $0x84] sm:$0xff]  ;;  %v2577_v56 = vshrl.u32 %v2297_v42, 16 }
 0x153   : > { %v2157_v40 = vpop.f32.mrf.mxu3  ;;  %v1725_v7 = vrot.slane %v1723_v17, 4 }
 0x154   : > { %v2234_v62 = vadd.f32 %v2157_v40, %v1948_v18  ;;  %v2570_v18 = vrot.slane %v2569_v24, 4  ;;  %v2565_v40 = vsel %vm5647_vm11, %v2560_v15, %v2564_v47  ;;  %v2590_v24 = vshrl.u32 %v2298_v54, 16 }
 0x155   : > { %v1727_v47 = vsel %vm6050_vm15, %v1725_v7, %v1726_v8 }
 0x156   : > { %v1873_v14 = vpop.f32.mrf.mxu2  ;;  %v2575_v32 = vsel %vm5647_vm11, %v2570_v18, %v2574_v16  ;;  %v2579_v18 = vrot.slane %v2577_v56, 4 }
 0x157   : > { %v2811_v4 = vpop.f32.mrf.mxu0  ;;  %v1949_v48 = vadd.f32 %v1873_v14, %v1521_v23  ;;  %v1525_v21 = vpop.f32.mrf.mxu1  ;;  %v2580_v23 = vshll.u32 %v2297_v42, 16  ;;  %v2719_v29 = vunpack.c.l.b16 %v2575_v32  ;;  %v2299_v42 = vld [vmem:[#allocation2 + $0x98] sm:$0x1] }
 0x158   : > { %v1526_v60 = vadd.f32 %v1525_v21, %v6228_v63  ;;  %v6286_v19 = vadd.f32 %v2811_v4, %v2234_v62  ;;  %v5113_v63 = vrot.slane %v1604_v34, 9  ;;  %v2718_v21 = vunpack.c.l.b16 %v2565_v40 }
 0x159   : > { %v2582_v16 = vrot.slane %v2580_v23, 5  ;;  %v2588_v34 = vrot.slane %v2586_v1, 5  ;;  %v2596_v8 = vshll.u32 %v2299_v42, 16  ;;  %v2300_v23 = vld [vmem:[#allocation2 + $0x9c] sm:$0xf] }
 0x15a   : > { %5226 = vmatmul.msk.bf16.gmra.mxu0 %vm1231_vm12, %v2739_v37  ;;  %v2740_v54 = vpack.c.b16 %v2719_v29, %v2718_v21  ;;  %v2301_v1 = vld [vmem:[#allocation2 + $0xa0] sm:$0xf]  ;;  %v2601_v29 = vshrl.u32 %v2300_v23, 16 }
 0x15b   : > { %v2159_v41 = vpop.f32.mrf.mxu3  ;;  %5129 = vmatmul.msk.bf16.gmra.mxu2 %vm1231_vm12, %v1800_v46  ;;  %v2583_v57 = vor.u32 %v2582_v16, %v2579_v18  ;;  %v5478_v18 = vld [vmem:[#allocation2 + $0x98] sm:$0x1] }
 0x15c   : > { %v2235_v39 = vadd.f32 %v2159_v41, %v1949_v48  ;;  %v1724_v48 = vsel %vm6050_vm15, %v5113_v63, %v1723_v17  ;;  %v1733_v16 = vrot.slane %v5478_v18, 5 }
 0x15e   : > { %v1876_v62 = vpop.f32.mrf.mxu2 }
 0x15f   : > { %v2813_v61 = vpop.f32.mrf.mxu0  ;;  %v1950_v37 = vadd.f32 %v1876_v62, %v1524_v44  ;;  %v1528_v14 = vpop.f32.mrf.mxu1  ;;  %v2592_v44 = vrot.slane %v2590_v24, 4 }
 0x160   : > { %5210 = vmatmul.msk.bf16.gmra.mxu3 %vm1231_vm12, %v5427_v25  ;;  %v1529_v4 = vadd.f32 %v1528_v14, %v6246_v45  ;;  %v6300_v46 = vadd.f32 %v2813_v61, %v2235_v39  ;;  %v1780_v25 = vunpack.c.l.b16 %v1724_v48  ;;  %v1781_v45 = vunpack.c.l.b16 %v1727_v47  ;;  %v1605_v61 = vld [vmem:[#allocation2 + $0x90] sm:$0xe] }
 0x161   : > { %v2593_v63 = vor.u32 %v2592_v44, %v2588_v34  ;;  %v2584_v14 = vrot.slane %v2583_v57, 4  ;;  %v2598_v47 = vrot.slane %v2596_v8, 5  ;;  %v5114_v44 = vrot.slane %v1605_v61, 9 }
 0x162   : > { %5097 = vmatmul.msk.bf16.gmra.mxu1 %vm1231_vm12, %v5412_v2  ;;  %v1801_v40 = vpack.c.b16 %v1781_v45, %v1780_v25  ;;  %v5477_v2 = vld [vmem:[#allocation2 + $0x94] sm:$0xf] }
 0x163   : > { %v2162_v15 = vpop.f32.mrf.mxu3  ;;  %v1730_v56 = vrot.slane %v5477_v2, 5  ;;  %v2594_v48 = vrot.slane %v2593_v63, 4  ;;  %v2589_v45 = vsel %vm5647_vm11, %v2584_v14, %v2588_v34 }
 0x164   : > { %v2236_v41 = vadd.f32 %v2162_v15, %v1950_v37  ;;  %v2604_v15 = vshll.u32 %v2300_v23, 16  ;;  %v2720_v61 = vunpack.c.l.b16 %v2589_v45  ;;  %v5479_v45 = vld [vmem:[#allocation2 + $0xa0] sm:$0xf] }
 0x165   : > { %v1732_v25 = vrot.slane %v1730_v56, 4  ;;  %v2599_v42 = vsel %vm5647_vm11, %v2594_v48, %v2598_v47 }
 0x166   : > { %v1878_v17 = vpop.f32.mrf.mxu2 }
 0x167   : > { %v2816_v39 = vpop.f32.mrf.mxu0  ;;  %v1951_v7 = vadd.f32 %v1878_v17, %v1526_v60  ;;  %v1530_v32 = vpop.f32.mrf.mxu1  ;;  %v5428_v60 = vld [vmem:[#allocation2 + $0x90] sm:$0xff]  ;;  %v1734_v2 = vsel %vm6050_vm15, %v1732_v25, %v1733_v16 }
 0x168   : > { %v1531_v62 = vadd.f32 %v1530_v32, %v6255_v50  ;;  %v6304_v24 = vadd.f32 %v2816_v39, %v2236_v41  ;;  %v2610_v50 = vshll.u32 %v2301_v1, 16  ;;  %v2614_v41 = vshrl.u32 %v2301_v1, 16  ;;  %v5413_v17 = vld [vmem:[#allocation2 + $0x90] sm:$0xff]  ;;  %v2302_v1 = vld [vmem:[#allocation2 + $0xa4] sm:$0x1] }
 0x169   : > { %v2603_v39 = vrot.slane %v2601_v29, 4  ;;  %v1731_v32 = vsel %vm6050_vm15, %v5114_v44, %v1730_v56  ;;  %v1783_v47 = vunpack.c.l.b16 %v1734_v2 }
 0x16a   : > { %5227 = vmatmul.msk.bf16.gmra.mxu0 %vm1231_vm12, %v2740_v54  ;;  %v2616_v34 = vrot.slane %v2614_v41, 4  ;;  %v1782_v48 = vunpack.c.l.b16 %v1731_v32  ;;  %v5480_v32 = vld [vmem:[#allocation2 + $0xa4] sm:$0x1] }
 0x16b   : > { %v2164_v37 = vpop.f32.mrf.mxu3  ;;  %5130 = vmatmul.msk.bf16.gmra.mxu2 %vm1231_vm12, %v1801_v40  ;;  %v2612_v40 = vrot.slane %v2610_v50, 5  ;;  %v1740_v2 = vrot.slane %v5480_v32, 5 }
 0x16c   : > { %v2237_v21 = vadd.f32 %v2164_v37, %v1951_v7  ;;  %v2606_v7 = vrot.slane %v2604_v15, 5  ;;  %v2721_v37 = vunpack.c.l.b16 %v2599_v42  ;;  %v2620_v15 = vshll.u32 %v2302_v1, 16 }
 0x16d   : > { %v2617_v29 = vor.u32 %v2616_v34, %v2612_v40  ;;  %v1802_v16 = vpack.c.b16 %v1783_v47, %v1782_v48  ;;  %v1737_v42 = vrot.slane %v5479_v45, 5 }
 0x16e   : > { %v1881_v54 = vpop.f32.mrf.mxu2  ;;  %v2741_v50 = vpack.c.b16 %v2721_v37, %v2720_v61 }
 0x16f   : > { %v2818_v57 = vpop.f32.mrf.mxu0  ;;  %v1952_v63 = vadd.f32 %v1881_v54, %v1529_v4  ;;  %v1533_v8 = vpop.f32.mrf.mxu1  ;;  %v2618_v41 = vrot.slane %v2617_v29, 4  ;;  %v2622_v54 = vrot.slane %v2620_v15, 5  ;;  %v302_v29 = vld [vmem:[%s5579_s22 + $0x78] sm:$0xf] }
 0x170   : > { %5211 = vmatmul.msk.bf16.gmra.mxu3 %vm1231_vm12, %v5428_v60  ;;  %v6317_v23 = vadd.f32 %v2818_v57, %v2237_v21  ;;  %v2607_v60 = vor.u32 %v2606_v7, %v2603_v39  ;;  %v2303_v39 = vld [vmem:[#allocation2 + $0xa8] sm:$0xf]  ;;  %v2304_v7 = vld [vmem:[#allocation2 + $0xac] sm:$0xf] }
 0x171   : > { %v2623_v61 = vsel %vm5647_vm11, %v2618_v41, %v2622_v54  ;;  %v2625_v48 = vshrl.u32 %v2303_v39, 16  ;;  %v2628_v47 = vshll.u32 %v2303_v39, 16  ;;  %v303_v41 = vld [vmem:[%s5579_s22 + $0x7c] sm:$0xf] }
 0x172   : > { %7107 = vst [vmem:[#allocation6_spill] sm:$0xff] %v6317_v23  ;;  %5098 = vmatmul.msk.bf16.gmra.mxu1 %vm1231_vm12, %v5413_v17  ;;  %v2608_v25 = vrot.slane %v2607_v60, 4  ;;  %v1606_v17 = vld [vmem:[#allocation2 + $0x9c] sm:$0xe]  ;;  %v2634_v60 = vshll.u32 %v2304_v7, 16  ;;  %v2723_v54 = vunpack.c.l.b16 %v2623_v61 }
 0x173   : > { %v2167_v14 = vpop.f32.mrf.mxu3  ;;  %v5115_v37 = vrot.slane %v1606_v17, 9  ;;  %v2627_v17 = vrot.slane %v2625_v48, 4  ;;  %v738_v23 = vld [vmem:[#allocation2 + $0xc0] sm:$0xf] }
 0x174   : > { %v2238_v4 = vadd.f32 %v2167_v14, %v1952_v63  ;;  %v2613_v1 = vsel %vm5647_vm11, %v2608_v25, %v2612_v40  ;;  %v1739_v14 = vrot.slane %v1737_v42, 4  ;;  %v6340_v39 = vrot.slane %v2634_v60, 5 }
 0x175   : > { %v2722_v40 = vunpack.c.l.b16 %v2613_v1  ;;  %v566_v1 = vshll.u32 %v302_v29, 16 }
 0x176   : > { %v1883_v56 = vpop.f32.mrf.mxu2 }
 0x177   : > { %v2821_v18 = vpop.f32.mrf.mxu0  ;;  %v1953_v44 = vadd.f32 %v1883_v56, %v1531_v62  ;;  %v1535_v21 = vpop.f32.mrf.mxu1  ;;  %v5429_v62 = vld [vmem:[#allocation2 + $0x9c] sm:$0xff]  ;;  %v2638_v56 = vshrl.u32 %v2304_v7, 16 }
 0x178   : > { %v6320_v57 = vadd.f32 %v2821_v18, %v2238_v4  ;;  %v1534_v4 = vadd.f32 %v1533_v8, %v6126_v11  ;;  %v563_v18 = vshrl.u32 %v302_v29, 16  ;;  %v1738_v11 = vsel %vm6050_vm15, %v5115_v37, %v1737_v42  ;;  %v2305_v42 = vld [vmem:[#allocation2 + $0xb0] sm:$0x1] }
 0x179   : > { %v1741_v8 = vsel %vm6050_vm15, %v1739_v14, %v1740_v2  ;;  %v2640_v32 = vrot.slane %v2638_v56, 4  ;;  %v2742_v37 = vpack.c.b16 %v2723_v54, %v2722_v40  ;;  %v1536_v2 = vadd.f32 %v1535_v21, %v6130_v31  ;;  %v742_v54 = vld [vmem:[#allocation2 + $0xc8] sm:$0x1]  ;;  %v2306_v21 = vld [vmem:[#allocation2 + $0xb4] sm:$0xf] }
 0x17a   : > { %7108 = vst [vmem:[#allocation7_spill] sm:$0xff] %v6320_v57  ;;  %5228 = vmatmul.msk.bf16.gmra.mxu0 %vm1231_vm12, %v2741_v50  ;;  %v5414_v50 = vld [vmem:[#allocation2 + $0x9c] sm:$0xff]  ;;  %v1785_v57 = vunpack.c.l.b16 %v1741_v8  ;;  %v574_v56 = vshll.u32 %v303_v41, 16  ;;  %v5481_v8 = vld [vmem:[#allocation2 + $0xac] sm:$0xf] }
 0x17b   : > { %v2169_v63 = vpop.f32.mrf.mxu3  ;;  %5131 = vmatmul.msk.bf16.gmra.mxu2 %vm1231_vm12, %v1802_v16  ;;  %v2641_v60 = vor.u32 %v2640_v32, %v6340_v39  ;;  %v1744_v31 = vrot.slane %v5481_v8, 5 }
 0x17c   : > { %v2239_v34 = vadd.f32 %v2169_v63, %v1953_v44  ;;  %v2630_v63 = vrot.slane %v2628_v47, 5 }
 0x17e   : > { %v1886_v15 = vpop.f32.mrf.mxu2 }
 0x17f   : > { %v2823_v44 = vpop.f32.mrf.mxu0  ;;  %v1954_v16 = vadd.f32 %v1886_v15, %v1534_v4  ;;  %v6331_v25 = vpop.f32.mrf.mxu1  ;;  %v571_v4 = vshrl.u32 %v303_v41, 16  ;;  %v1784_v15 = vunpack.c.l.b16 %v1738_v11 }
 0x180   : > { %5212 = vmatmul.msk.bf16.gmra.mxu3 %vm1231_vm12, %v5429_v62  ;;  %v6338_v45 = vadd.f32 %v2823_v44, %v2239_v34  ;;  %v565_v62 = vrot.slane %v563_v18, 7  ;;  %v2631_v34 = vor.u32 %v2630_v63, %v2627_v17  ;;  %v2644_v44 = vshll.u32 %v2305_v42, 16 }
 0x181   : > { %v573_v48 = vrot.slane %v571_v4, 7  ;;  %v2642_v4 = vrot.slane %v2641_v60, 4  ;;  %v1747_v42 = vrot.slane %v5482_v9, 5 }
 0x182   : > { %7109 = vst [vmem:[#allocation8_spill] sm:$0xff] %v6338_v45  ;;  %5099 = vmatmul.msk.bf16.gmra.mxu1 %vm1231_vm12, %v5414_v50  ;;  %v568_v14 = vor.u32 %v566_v1, %v565_v62  ;;  %v569_v50 = vrot.slane %v565_v62, 4  ;;  %v1803_v45 = vpack.c.b16 %v1785_v57, %v1784_v15  ;;  %v2632_v32 = vrot.slane %v2631_v34, 4  ;;  %v2307_v62 = vld [vmem:[#allocation2 + $0xb8] sm:$0xf]  ;;  %v5430_v1 = vld [vmem:[#allocation2 + $0xa8] sm:$0xff] }
 0x183   : > { %v2172_v7 = vpop.f32.mrf.mxu3  ;;  %v578_v11 = vrot.slane %v573_v48, 4  ;;  %v576_v17 = vor.u32 %v574_v56, %v573_v48  ;;  %v2649_v15 = vshrl.u32 %v2306_v21, 16  ;;  %v1539_v34 = vadd.f32 %v6331_v25, %v6146_v53 }
 0x184   : > { %v2240_v61 = vadd.f32 %v2172_v7, %v1954_v16  ;;  %v739_v40 = vsel %vm5606_vm8, %v568_v14, %v738_v23  ;;  %v1607_v7 = vld [vmem:[#allocation2 + $0xa8] sm:$0xe]  ;;  %v2652_v14 = vshll.u32 %v2306_v21, 16  ;;  %v2658_v10 = vshll.u32 %v2307_v62, 16 }
 0x185   : > { %740 = vst [vmem:[#allocation2 + $0xc0] sm:$0xf] %v739_v40  ;;  %v743_v41 = vsel %vm5591_vm6, %v578_v11, %v742_v54  ;;  %v577_v13 = vsel %vm5598_vm7, %v569_v50, %v576_v17  ;;  %v2662_v48 = vshrl.u32 %v2307_v62, 16  ;;  %v5415_v50 = vld [vmem:[#allocation2 + $0xa8] sm:$0xff] }
 0x186   : > { %v1888_v47 = vpop.f32.mrf.mxu2  ;;  %744 = vst [vmem:[#allocation2 + $0xc8] sm:$0x1] %v743_v41  ;;  %v2654_v11 = vrot.slane %v2652_v14, 5  ;;  %v2660_v54 = vrot.slane %v2658_v10, 5 }
 0x187   : > { %v2826_v18 = vpop.f32.mrf.mxu0  ;;  %v1955_v29 = vadd.f32 %v1888_v47, %v1536_v2  ;;  %v1540_v16 = vpop.f32.mrf.mxu1  ;;  %741 = vst.msk [vmem:[#allocation2 + $0xc4] sm:$0xf] %vm216_vm1, %v577_v13  ;;  %v5116_v2 = vrot.slane %v1607_v7, 9  ;;  %v2664_v8 = vrot.slane %v2662_v48, 4  ;;  %v2308_v7 = vld [vmem:[#allocation2 + $0xbc] sm:$0x1] }
 0x188   : > { %v6347_v63 = vadd.f32 %v2826_v18, %v2240_v61  ;;  %v2646_v61 = vrot.slane %v2644_v44, 5 }
 0x189   : > { %v1745_v53 = vsel %vm6050_vm15, %v5116_v2, %v1744_v31  ;;  %v2665_v13 = vor.u32 %v2664_v8, %v2660_v54  ;;  %v1608_v2 = vld [vmem:[#allocation2 + $0xb4] sm:$0xe] }
 0x18a   : > { %5229 = vmatmul.msk.bf16.gmra.mxu0 %vm1231_vm12, %v2742_v37  ;;  %v1746_v37 = vrot.slane %v1744_v31, 4  ;;  %v2647_v60 = vsel %vm5647_vm11, %v2642_v4, %v2646_v61  ;;  %v1541_v31 = vadd.f32 %v1540_v16, %v6165_v26  ;;  %v5117_v16 = vrot.slane %v1608_v2, 9  ;;  %v2918_v2 = vld [vmem:[#allocation2 + $0xc] sm:$0xe] }
 0x18b   : > { %v2174_v57 = vpop.f32.mrf.mxu3  ;;  %5132 = vmatmul.msk.bf16.gmra.mxu2 %vm1231_vm12, %v1803_v45  ;;  %v2637_v45 = vsel %vm5647_vm11, %v2632_v32, %v6340_v39  ;;  %v2725_v17 = vunpack.c.l.b16 %v2647_v60  ;;  %v2666_v48 = vrot.slane %v2665_v13, 4  ;;  %v5485_v60 = vld [vmem:[#allocation2 + $0x10] sm:$0xf] }
 0x18c   : > { %v2241_v23 = vadd.f32 %v2174_v57, %v1955_v29  ;;  %v2651_v29 = vrot.slane %v2649_v15, 4  ;;  %v1748_v25 = vsel %vm6050_vm15, %v1746_v37, %v1747_v42  ;;  %v2724_v21 = vunpack.c.l.b16 %v2637_v45  ;;  %v5483_v37 = vld [vmem:[#allocation2 + $0xb8] sm:$0xf] }
 0x18d   : > { %v1786_v57 = vunpack.c.l.b16 %v1745_v53  ;;  %v1787_v32 = vunpack.c.l.b16 %v1748_v25  ;;  %v1751_v14 = vrot.slane %v5483_v37, 5  ;;  %v5431_v53 = vld [vmem:[#allocation2 + $0xb4] sm:$0xff] }
 0x18e   : > { %v1891_v47 = vpop.f32.mrf.mxu2  ;;  %v2655_v62 = vor.u32 %v2654_v11, %v2651_v29  ;;  %v2743_v4 = vpack.c.b16 %v2725_v17, %v2724_v21  ;;  %v2310_v11 = vld [vmem:[#allocation2 + $0xc4] sm:$0xf] }
 0x18f   : > { %v2828_v56 = vpop.f32.mrf.mxu0  ;;  %v1956_v44 = vadd.f32 %v1891_v47, %v1539_v34  ;;  %v1543_v18 = vpop.f32.mrf.mxu1  ;;  %v1804_v9 = vpack.c.b16 %v1787_v32, %v1786_v57  ;;  %v1753_v25 = vrot.slane %v1751_v14, 4  ;;  %v5416_v57 = vld [vmem:[#allocation2 + $0xb4] sm:$0xff]  ;;  %v1752_v32 = vsel %vm6050_vm15, %v5117_v16, %v1751_v14 }
 0x190   : > { %5213 = vmatmul.msk.bf16.gmra.mxu3 %vm1231_vm12, %v5430_v1  ;;  %v6368_v40 = vadd.f32 %v2828_v56, %v2241_v23  ;;  %v2668_v1 = vshll.u32 %v2308_v7, 16  ;;  %v2656_v34 = vrot.slane %v2655_v62, 4  ;;  %v5484_v56 = vld [vmem:[#allocation2 + $0xbc] sm:$0x1]  ;;  %v1544_v21 = vadd.f32 %v1543_v18, %v6176_v59 }
 0x191   : > { %v1754_v45 = vrot.slane %v5484_v56, 5  ;;  %v2682_v62 = vshll.u32 %v2310_v11, 16  ;;  %v1788_v14 = vunpack.c.l.b16 %v1752_v32 }
 0x192   : > { %5100 = vmatmul.msk.bf16.gmra.mxu1 %vm1231_vm12, %v5415_v50  ;;  %v2670_v47 = vrot.slane %v2668_v1, 5  ;;  %v2309_v50 = vld [vmem:[#allocation2 + $0xc0] sm:$0xf]  ;;  %v2661_v8 = vsel %vm5647_vm11, %v2656_v34, %v2660_v54  ;;  %v5486_v1 = vld [vmem:[#allocation2 + $0x14] sm:$0x1] }
 0x193   : > { %v2177_v39 = vpop.f32.mrf.mxu3  ;;  %v2676_v7 = vshll.u32 %v2309_v50, 16  ;;  %v1755_v18 = vsel %vm6050_vm15, %v1753_v25, %v1754_v45  ;;  %v2684_v56 = vrot.slane %v2682_v62, 5  ;;  %v2311_v25 = vld [vmem:[#allocation2 + $0xc8] sm:$0x1] }
 0x194   : > { %v2242_v41 = vadd.f32 %v2177_v39, %v1956_v44  ;;  %v2984_v44 = vrot.slane %v5485_v60, 5  ;;  %v2671_v17 = vsel %vm5647_vm11, %v2666_v48, %v2670_v47  ;;  %v2673_v39 = vshrl.u32 %v2309_v50, 16 }
 0x195   : > { %v2678_v48 = vrot.slane %v2676_v7, 5  ;;  %v5233_v47 = vrot.slane %v2918_v2, 9  ;;  %v1789_v50 = vunpack.c.l.b16 %v1755_v18 }
 0x196   : > { %v1893_v61 = vpop.f32.mrf.mxu2  ;;  %v2986_v13 = vrot.slane %v2984_v44, 4  ;;  %v2675_v34 = vrot.slane %v2673_v39, 4 }
 0x197   : > { %v2831_v23 = vpop.f32.mrf.mxu0  ;;  %v1957_v15 = vadd.f32 %v1893_v61, %v1541_v31  ;;  %v6372_v42 = vpop.f32.mrf.mxu1  ;;  %v2686_v31 = vshrl.u32 %v2310_v11, 16  ;;  %v2985_v11 = vsel %vm6050_vm15, %v5233_v47, %v2984_v44  ;;  %v1805_v62 = vpack.c.b16 %v1789_v50, %v1788_v14 }
 0x198   : > { %v6374_v10 = vadd.f32 %v2831_v23, %v2242_v41  ;;  %v3603_v23 = vld [vmem:[#allocation2 + $0x18] sm:$0xf] }
 0x199   : > { %v2688_v60 = vrot.slane %v2686_v31, 4  ;;  %v2679_v31 = vor.u32 %v2678_v48, %v2675_v34 }
 0x19a   : > { %5230 = vmatmul.msk.bf16.gmra.mxu0 %vm1231_vm12, %v2743_v4  ;;  %v2987_v4 = vrot.slane %v5486_v1, 5  ;;  %v2692_v1 = vshll.u32 %v2311_v25, 16 }
 0x19b   : > { %v2179_v26 = vpop.f32.mrf.mxu3  ;;  %5133 = vmatmul.msk.bf16.gmra.mxu2 %vm1231_vm12, %v1804_v9  ;;  %v2727_v9 = vunpack.c.l.b16 %v2671_v17  ;;  %v2689_v18 = vor.u32 %v2688_v60, %v2684_v56 }
 0x19c   : > { %v2243_v29 = vadd.f32 %v2179_v26, %v1957_v15  ;;  %v2726_v15 = vunpack.c.l.b16 %v2661_v8  ;;  %v6390_v26 = vld [vmem:[#allocation2 + $0x1c] sm:$0xf]  ;;  %v3655_v8 = vshll.u32 %v3603_v23, 16  ;;  %v2694_v34 = vrot.slane %v2692_v1, 5 }
 0x19d   : > { %v3661_v39 = vshll.u32 %v6390_v26, 16  ;;  %v3665_v7 = vshrl.u32 %v6390_v26, 16  ;;  %v2690_v14 = vrot.slane %v2689_v18, 4 }
 0x19e   : > { %v1896_v41 = vpop.f32.mrf.mxu2 }
 0x19f   : > { %v2833_v61 = vpop.f32.mrf.mxu0  ;;  %v1958_v54 = vadd.f32 %v1896_v41, %v1544_v21  ;;  %v1548_v59 = vpop.f32.mrf.mxu1  ;;  %v3096_v21 = vunpack.c.l.b16 %v2985_v11  ;;  %v2744_v41 = vpack.c.b16 %v2727_v9, %v2726_v15  ;;  %v3663_v2 = vrot.slane %v3661_v39, 5  ;;  %v6403_v11 = vld [vmem:[#allocation2 + $0x20] sm:$0x1] }
 0x1a0   : > { %5214 = vmatmul.msk.bf16.gmra.mxu3 %vm1231_vm12, %v5431_v53  ;;  %v6388_v37 = vadd.f32 %v2833_v61, %v2243_v29  ;;  %v3652_v53 = vshrl.u32 %v3603_v23, 16  ;;  %v2988_v29 = vsel %vm6050_vm15, %v2986_v13, %v2987_v4  ;;  %v3657_v23 = vrot.slane %v3655_v8, 5  ;;  %v5432_v9 = vld [vmem:[#allocation2 + $0xc0] sm:$0xff] }
 0x1a1   : > { %v3097_v17 = vunpack.c.l.b16 %v2988_v29  ;;  %v3667_v47 = vrot.slane %v3665_v7, 4  ;;  %v3671_v60 = vshll.u32 %v6403_v11, 16  ;;  %v3606_v29 = vld [vmem:[#allocation2 + $0x24] sm:$0xf] }
 0x1a2   : > { %5101 = vmatmul.msk.bf16.gmra.mxu1 %vm1231_vm12, %v5416_v57  ;;  %v1546_v57 = vadd.f32 %v6372_v42, %v6194_v28  ;;  %v3654_v4 = vrot.slane %v3652_v53, 4  ;;  %v2680_v42 = vrot.slane %v2679_v31, 4  ;;  %v1549_v53 = vadd.f32 %v1548_v59, %v6211_v3  ;;  %v2919_v59 = vld [vmem:[#allocation2 + $0x18] sm:$0xe] }
 0x1a3   : > { %v2182_v16 = vpop.f32.mrf.mxu3  ;;  %v3128_v61 = vpack.c.b16 %v3097_v17, %v3096_v21  ;;  %v3668_v50 = vor.u32 %v3667_v47, %v3663_v2  ;;  %v2695_v21 = vsel %vm5647_vm11, %v2690_v14, %v2694_v34  ;;  %v3673_v3 = vrot.slane %v3671_v60, 5 }
 0x1a4   : > { %v2244_v45 = vadd.f32 %v2182_v16, %v1958_v54  ;;  %v3658_v48 = vor.u32 %v3657_v23, %v3654_v4  ;;  %v2729_v4 = vunpack.c.l.b16 %v2695_v21  ;;  %v5234_v14 = vrot.slane %v2919_v59, 9 }
 0x1a6   : > { %v1898_v32 = vpop.f32.mrf.mxu2  ;;  %v3659_v7 = vrot.slane %v3658_v48, 4 }
 0x1a7   : > { %v2836_v44 = vpop.f32.mrf.mxu0  ;;  %v1959_v54 = vadd.f32 %v1898_v32, %v1546_v57  ;;  %v1550_v13 = vpop.f32.mrf.mxu1  ;;  %v6414_v32 = vld [vmem:[#allocation2 + $0x28] sm:$0xf] }
 0x1a8   : > { %v6401_v16 = vadd.f32 %v2836_v44, %v2244_v45  ;;  %v2685_v45 = vsel %vm5647_vm11, %v2680_v42, %v2684_v56  ;;  %v5488_v56 = vld [vmem:[#allocation2 + $0x20] sm:$0x1]  ;;  %v3676_v44 = vshrl.u32 %v3606_v29, 16  ;;  %v3685_v47 = vshll.u32 %v6414_v32, 16 }
 0x1a9   : > { %v2994_v1 = vrot.slane %v5488_v56, 5  ;;  %v2728_v18 = vunpack.c.l.b16 %v2685_v45  ;;  %v1551_v48 = vadd.f32 %v1550_v13, %v6222_v33 }
 0x1aa   : > { %5231 = vmatmul.msk.bf16.gmra.mxu0 %vm1231_vm12, %v2744_v41  ;;  %v5487_v41 = vld [vmem:[#allocation2 + $0x1c] sm:$0xf]  ;;  %v3678_v60 = vrot.slane %v3676_v44, 4  ;;  %v4326_v44 = vrot.slane %v6403_v11, 5 }
 0x1ab   : > { %v2184_v28 = vpop.f32.mrf.mxu3  ;;  %5134 = vmatmul.msk.bf16.gmra.mxu2 %vm1231_vm12, %v1805_v62  ;;  %v2991_v57 = vrot.slane %v5487_v41, 5  ;;  %v3669_v62 = vrot.slane %v3668_v50, 4  ;;  %v4323_v50 = vrot.slane %v6390_v26, 5  ;;  %v6431_v26 = vld [vmem:[#allocation2 + $0x2c] sm:$0x1] }
 0x1ac   : > { %v2245_v15 = vadd.f32 %v2184_v28, %v1959_v54  ;;  %v3679_v54 = vshll.u32 %v3606_v29, 16  ;;  %v3689_v28 = vshrl.u32 %v6414_v32, 16  ;;  %v4257_v29 = vld [vmem:[#allocation2 + $0x18] sm:$0xe] }
 0x1ad   : > { %v3674_v34 = vsel %vm5647_vm11, %v3669_v62, %v3673_v3  ;;  %v2992_v62 = vsel %vm6050_vm15, %v5234_v14, %v2991_v57  ;;  %v5364_v3 = vrot.slane %v4257_v29, 9  ;;  %v4325_v56 = vrot.slane %v4323_v50, 4  ;;  %v5489_v29 = vld [vmem:[#allocation2 + $0x28] sm:$0xf] }
 0x1ae   : > { %v1901_v25 = vpop.f32.mrf.mxu2  ;;  %v3691_v21 = vrot.slane %v3689_v28, 4 }
 0x1af   : > { %v2838_v8 = vpop.f32.mrf.mxu0  ;;  %v1960_v17 = vadd.f32 %v1901_v25, %v1549_v53  ;;  %v1553_v39 = vpop.f32.mrf.mxu1  ;;  %v3681_v53 = vrot.slane %v3679_v54, 5  ;;  %v4327_v11 = vsel %vm6050_vm15, %v4325_v56, %v4326_v44 }
 0x1b0   : > { %5215 = vmatmul.msk.bf16.gmra.mxu3 %vm1231_vm12, %v5432_v9  ;;  %v6416_v31 = vadd.f32 %v2838_v8, %v2245_v15  ;;  %v3664_v9 = vsel %vm5647_vm11, %v3659_v7, %v3663_v2  ;;  %v2993_v15 = vrot.slane %v2991_v57, 4  ;;  %v3687_v8 = vrot.slane %v3685_v47, 5  ;;  %v5433_v2 = vld [vmem:[#allocation2 + $0x18] sm:$0xff] }
 0x1b1   : > { %v4037_v25 = vunpack.c.l.b16 %v3664_v9  ;;  %v4038_v7 = vunpack.c.l.b16 %v3674_v34  ;;  %v3682_v54 = vor.u32 %v3681_v53, %v3678_v60  ;;  %v3695_v57 = vshll.u32 %v6431_v26, 16 }
 0x1b2   : > { %5250 = vmatmul.msk.bf16.vlgmr.msra.gmra.mxu1 %vm1231_vm12, %v3128_v61  ;;  %v2745_v61 = vpack.c.b16 %v2729_v4, %v2728_v18  ;;  %v2995_v33 = vsel %vm6050_vm15, %v2993_v15, %v2994_v1  ;;  %v3098_v4 = vunpack.c.l.b16 %v2992_v62  ;;  %v3692_v47 = vor.u32 %v3691_v21, %v3687_v8  ;;  %v3609_v21 = vld [vmem:[#allocation2 + $0x30] sm:$0xf] }
 0x1b3   : > { %v2187_v23 = vpop.f32.mrf.mxu3  ;;  %v4069_v1 = vpack.c.b16 %v4038_v7, %v4037_v25  ;;  %v4324_v9 = vsel %vm6050_vm15, %v5364_v3, %v4323_v50  ;;  %v3683_v34 = vrot.slane %v3682_v54, 4  ;;  %v3697_v60 = vrot.slane %v3695_v57, 5 }
 0x1b4   : > { %v2246_v42 = vadd.f32 %v2187_v23, %v1960_v17  ;;  %v3099_v23 = vunpack.c.l.b16 %v2995_v33  ;;  %v2998_v25 = vrot.slane %v5489_v29, 5  ;;  %v4435_v50 = vunpack.c.l.b16 %v4324_v9 }
 0x1b5   : > { %v3688_v33 = vsel %vm5647_vm11, %v3683_v34, %v3687_v8  ;;  %v3700_v56 = vshrl.u32 %v3609_v21, 16  ;;  %v4330_v8 = vrot.slane %v6414_v32, 5  ;;  %v5434_v34 = vld [vmem:[#allocation2 + $0x24] sm:$0xff] }
 0x1b6   : > { %v1903_v45 = vpop.f32.mrf.mxu2  ;;  %v3129_v15 = vpack.c.b16 %v3099_v23, %v3098_v4  ;;  %v3703_v4 = vshll.u32 %v3609_v21, 16 }
 0x1b7   : > { %v2841_v17 = vpop.f32.mrf.mxu0  ;;  %v1961_v41 = vadd.f32 %v1903_v45, %v1551_v48  ;;  %v1555_v59 = vpop.f32.mrf.mxu1  ;;  %v3693_v48 = vrot.slane %v3692_v47, 4 }
 0x1b8   : > { %v6433_v13 = vadd.f32 %v2841_v17, %v2246_v42  ;;  %v1554_v42 = vadd.f32 %v1553_v39, %v6142_v55  ;;  %v2920_v55 = vld [vmem:[#allocation2 + $0x24] sm:$0xe]  ;;  %v4436_v17 = vunpack.c.l.b16 %v4327_v11  ;;  %v3702_v11 = vrot.slane %v3700_v56, 4 }
 0x1b9   : > { %v3698_v3 = vsel %vm5647_vm11, %v3693_v48, %v3697_v60  ;;  %v5235_v54 = vrot.slane %v2920_v55, 9  ;;  %v4258_v48 = vld [vmem:[#allocation2 + $0x24] sm:$0xe]  ;;  %v3705_v29 = vrot.slane %v3703_v4, 5  ;;  %v6464_v55 = vld [vmem:[#allocation2 + $0x38] sm:$0x1] }
 0x1ba   : > { %5232 = vmatmul.msk.bf16.gmra.mxu0 %vm1231_vm12, %v2745_v61  ;;  %v4467_v57 = vpack.c.b16 %v4436_v17, %v4435_v50  ;;  %v4040_v9 = vunpack.c.l.b16 %v3698_v3  ;;  %v5365_v50 = vrot.slane %v4258_v48, 9  ;;  %v4332_v17 = vrot.slane %v4330_v8, 4 }
 0x1bb   : > { %v2189_v18 = vpop.f32.mrf.mxu3  ;;  %5331 = vmatmul.msk.bf16.vlgmr.msra.gmra.mxu2 %vm1231_vm12, %v5433_v2  ;;  %v5490_v2 = vld [vmem:[#allocation2 + $0x2c] sm:$0x1]  ;;  %v3706_v3 = vor.u32 %v3705_v29, %v3702_v11 }
 0x1bc   : > { %v2247_v28 = vadd.f32 %v2189_v18, %v1961_v41  ;;  %v6447_v41 = vld [vmem:[#allocation2 + $0x34] sm:$0xf]  ;;  %v3001_v7 = vrot.slane %v5490_v2, 5  ;;  %v3000_v18 = vrot.slane %v2998_v25, 4 }
 0x1bd   : > { %v3709_v23 = vshll.u32 %v6447_v41, 16  ;;  %v3713_v47 = vshrl.u32 %v6447_v41, 16 }
 0x1be   : > { %v1906_v14 = vpop.f32.mrf.mxu2 }
 0x1bf   : > { %v2843_v53 = vpop.f32.mrf.mxu0  ;;  %v1962_v61 = vadd.f32 %v1906_v14, %v1554_v42  ;;  %v1558_v45 = vpop.f32.mrf.mxu1  ;;  %v4039_v42 = vunpack.c.l.b16 %v3688_v33  ;;  %v3711_v21 = vrot.slane %v3709_v23, 5 }
 0x1c0   : > { %5348 = vmatmul.msk.bf16.vlgmr.msra.gmra.mxu3 %vm1231_vm12, %v4069_v1  ;;  %v6445_v39 = vadd.f32 %v2843_v53, %v2247_v28  ;;  %v1556_v28 = vadd.f32 %v1555_v59, %v6152_v12  ;;  %v2999_v53 = vsel %vm6050_vm15, %v5235_v54, %v2998_v25  ;;  %v3715_v12 = vrot.slane %v3713_v47, 4  ;;  %v3612_v47 = vld [vmem:[#allocation2 + $0x3c] sm:$0xf] }
 0x1c1   : > { %v3100_v2 = vunpack.c.l.b16 %v2999_v53  ;;  %v4070_v25 = vpack.c.b16 %v4040_v9, %v4039_v42  ;;  %v1559_v54 = vadd.f32 %v1558_v45, %v6170_v0  ;;  %v3707_v42 = vrot.slane %v3706_v3, 4  ;;  %v5491_v9 = vld [vmem:[#allocation2 + $0x34] sm:$0xf] }
 0x1c2   : > { %5251 = vmatmul.msk.bf16.gmra.mxu1 %vm1231_vm12, %v3129_v15  ;;  %v3716_v56 = vor.u32 %v3715_v12, %v3711_v21  ;;  %v3005_v11 = vrot.slane %v5491_v9, 5  ;;  %v3724_v53 = vshrl.u32 %v3612_v47, 16 }
 0x1c3   : > { %v2192_v62 = vpop.f32.mrf.mxu3 }
 0x1c4   : > { %v2248_v44 = vadd.f32 %v2192_v62, %v1962_v61  ;;  %v3002_v61 = vsel %vm6050_vm15, %v3000_v18, %v3001_v7  ;;  %v4333_v7 = vrot.slane %v6431_v26, 5  ;;  %v4331_v18 = vsel %vm6050_vm15, %v5365_v50, %v4330_v8 }
 0x1c5   : > { %v3101_v62 = vunpack.c.l.b16 %v3002_v61  ;;  %v3717_v0 = vrot.slane %v3716_v56, 4  ;;  %v3727_v61 = vshll.u32 %v3612_v47, 16  ;;  %v4437_v29 = vunpack.c.l.b16 %v4331_v18  ;;  %v4259_v47 = vld [vmem:[#allocation2 + $0x30] sm:$0xe] }
 0x1c6   : > { %v1908_v1 = vpop.f32.mrf.mxu2  ;;  %v4337_v56 = vrot.slane %v6447_v41, 5  ;;  %v6493_v41 = vld [vmem:[#allocation2 + $0x44] sm:$0x1] }
 0x1c7   : > { %v2846_v14 = vpop.f32.mrf.mxu0  ;;  %v1963_v15 = vadd.f32 %v1908_v1, %v1556_v28  ;;  %v1560_v60 = vpop.f32.mrf.mxu1  ;;  %v3130_v23 = vpack.c.b16 %v3101_v62, %v3100_v2  ;;  %v4334_v28 = vsel %vm6050_vm15, %v4332_v17, %v4333_v7  ;;  %v3712_v62 = vsel %vm5647_vm11, %v3707_v42, %v3711_v21  ;;  %v5435_v21 = vld [vmem:[#allocation2 + $0x30] sm:$0xff] }
 0x1c8   : > { %v6462_v59 = vadd.f32 %v2846_v14, %v2248_v44  ;;  %v3719_v44 = vshll.u32 %v6464_v55, 16  ;;  %v6476_v14 = vld [vmem:[#allocation2 + $0x40] sm:$0xf]  ;;  %v4438_v12 = vunpack.c.l.b16 %v4334_v28  ;;  %v1561_v3 = vadd.f32 %v1560_v60, %v6189_v43 }
 0x1c9   : > { %v3733_v50 = vshll.u32 %v6476_v14, 16  ;;  %v3737_v17 = vshrl.u32 %v6476_v14, 16 }
 0x1ca   : > { %5381 = vmatmul.msk.bf16.vlgmr.msra.gmra.mxu0 %vm1231_vm12, %v4467_v57  ;;  %v3721_v45 = vrot.slane %v3719_v44, 5  ;;  %v3726_v44 = vrot.slane %v3724_v53, 4  ;;  %v4468_v18 = vpack.c.b16 %v4438_v12, %v4437_v29  ;;  %v4340_v53 = vrot.slane %v6464_v55, 5 }
 0x1cb   : > { %v2194_v32 = vpop.f32.mrf.mxu3  ;;  %5332 = vmatmul.msk.bf16.gmra.mxu2 %vm1231_vm12, %v5434_v34  ;;  %v5492_v34 = vld [vmem:[#allocation2 + $0x38] sm:$0x1]  ;;  %v3739_v28 = vrot.slane %v3737_v17, 4 }
 0x1cc   : > { %v2249_v33 = vadd.f32 %v2194_v32, %v1963_v15  ;;  %v2921_v15 = vld [vmem:[#allocation2 + $0x30] sm:$0xe]  ;;  %v3008_v48 = vrot.slane %v5492_v34, 5  ;;  %v3722_v7 = vsel %vm5647_vm11, %v3717_v0, %v3721_v45  ;;  %v5366_v45 = vrot.slane %v4259_v47, 9  ;;  %v5493_v47 = vld [vmem:[#allocation2 + $0x40] sm:$0xf] }
 0x1cd   : > { %v4042_v42 = vunpack.c.l.b16 %v3722_v7  ;;  %v4339_v34 = vrot.slane %v4337_v56, 4 }
 0x1ce   : > { %v1911_v4 = vpop.f32.mrf.mxu2 }
 0x1cf   : > { %v2848_v57 = vpop.f32.mrf.mxu0  ;;  %v1964_v1 = vadd.f32 %v1911_v4, %v1559_v54  ;;  %v1563_v26 = vpop.f32.mrf.mxu1  ;;  %v3729_v54 = vrot.slane %v3727_v61, 5  ;;  %v4341_v55 = vsel %vm6050_vm15, %v4339_v34, %v4340_v53 }
 0x1d0   : > { %5349 = vmatmul.msk.bf16.gmra.mxu3 %vm1231_vm12, %v4070_v25  ;;  %v6478_v8 = vadd.f32 %v2848_v57, %v2249_v33  ;;  %v5236_v25 = vrot.slane %v2921_v15, 9  ;;  %v3007_v33 = vrot.slane %v3005_v11, 4  ;;  %v3735_v57 = vrot.slane %v3733_v50, 5 }
 0x1d1   : > { %v3730_v61 = vor.u32 %v3729_v54, %v3726_v44 }
 0x1d2   : > { %5252 = vmatmul.msk.bf16.gmra.mxu1 %vm1231_vm12, %v3130_v23  ;;  %v4041_v23 = vunpack.c.l.b16 %v3712_v62  ;;  %v3006_v0 = vsel %vm6050_vm15, %v5236_v25, %v3005_v11  ;;  %v3009_v43 = vsel %vm6050_vm15, %v3007_v33, %v3008_v48  ;;  %v3740_v50 = vor.u32 %v3739_v28, %v3735_v57  ;;  %v3615_v28 = vld [vmem:[#allocation2 + $0x48] sm:$0xf] }
 0x1d3   : > { %v2197_v32 = vpop.f32.mrf.mxu3  ;;  %v3102_v12 = vunpack.c.l.b16 %v3006_v0  ;;  %v3743_v11 = vshll.u32 %v6493_v41, 16  ;;  %v4338_v62 = vsel %vm6050_vm15, %v5366_v45, %v4337_v56  ;;  %v3731_v7 = vrot.slane %v3730_v61, 4 }
 0x1d4   : > { %v2250_v2 = vadd.f32 %v2197_v32, %v1964_v1  ;;  %v3103_v32 = vunpack.c.l.b16 %v3009_v43  ;;  %v4071_v48 = vpack.c.b16 %v4042_v42, %v4041_v23  ;;  %v3012_v23 = vrot.slane %v5493_v47, 5 }
 0x1d5   : > { %v3745_v44 = vrot.slane %v3743_v11, 5  ;;  %v4439_v56 = vunpack.c.l.b16 %v4338_v62  ;;  %v3736_v43 = vsel %vm5647_vm11, %v3731_v7, %v3735_v57  ;;  %v3748_v34 = vshrl.u32 %v3615_v28, 16  ;;  %v5436_v7 = vld [vmem:[#allocation2 + $0x3c] sm:$0xff] }
 0x1d6   : > { %v1913_v4 = vpop.f32.mrf.mxu2  ;;  %v3131_v33 = vpack.c.b16 %v3103_v32, %v3102_v12  ;;  %v3751_v12 = vshll.u32 %v3615_v28, 16  ;;  %v4344_v57 = vrot.slane %v6476_v14, 5 }
 0x1d7   : > { %v2851_v1 = vpop.f32.mrf.mxu0  ;;  %v1965_v9 = vadd.f32 %v1913_v4, %v1561_v3  ;;  %v1565_v15 = vpop.f32.mrf.mxu1  ;;  %v3741_v3 = vrot.slane %v3740_v50, 4 }
 0x1d8   : > { %v6495_v60 = vadd.f32 %v2851_v1, %v2250_v2  ;;  %v1564_v2 = vadd.f32 %v1563_v26, %v6200_v49  ;;  %v2922_v49 = vld [vmem:[#allocation2 + $0x3c] sm:$0xe]  ;;  %v4440_v1 = vunpack.c.l.b16 %v4341_v55  ;;  %v3750_v55 = vrot.slane %v3748_v34, 4 }
 0x1d9   : > { %v3746_v45 = vsel %vm5647_vm11, %v3741_v3, %v3745_v44  ;;  %v5237_v61 = vrot.slane %v2922_v49, 9  ;;  %v4260_v3 = vld [vmem:[#allocation2 + $0x3c] sm:$0xe]  ;;  %v3753_v47 = vrot.slane %v3751_v12, 5  ;;  %v6526_v49 = vld [vmem:[#allocation2 + $0x50] sm:$0x1] }
 0x1da   : > { %5382 = vmatmul.msk.bf16.gmra.mxu0 %vm1231_vm12, %v4468_v18  ;;  %v4469_v11 = vpack.c.b16 %v4440_v1, %v4439_v56  ;;  %v4044_v62 = vunpack.c.l.b16 %v3746_v45  ;;  %v5367_v56 = vrot.slane %v4260_v3, 9  ;;  %v4346_v1 = vrot.slane %v4344_v57, 4 }
 0x1db   : > { %v2199_v29 = vpop.f32.mrf.mxu3  ;;  %5333 = vmatmul.msk.bf16.gmra.mxu2 %vm1231_vm12, %v5435_v21  ;;  %v5494_v21 = vld [vmem:[#allocation2 + $0x44] sm:$0x1]  ;;  %v3754_v45 = vor.u32 %v3753_v47, %v3750_v55 }
 0x1dc   : > { %v2251_v17 = vadd.f32 %v2199_v29, %v1965_v9  ;;  %v6509_v9 = vld [vmem:[#allocation2 + $0x4c] sm:$0xf]  ;;  %v3015_v42 = vrot.slane %v5494_v21, 5  ;;  %v3014_v29 = vrot.slane %v3012_v23, 4 }
 0x1dd   : > { %v3757_v32 = vshll.u32 %v6509_v9, 16  ;;  %v3761_v50 = vshrl.u32 %v6509_v9, 16 }
 0x1de   : > { %v1916_v25 = vpop.f32.mrf.mxu2 }
 0x1df   : > { %v2853_v54 = vpop.f32.mrf.mxu0  ;;  %v1966_v18 = vadd.f32 %v1916_v25, %v1564_v2  ;;  %v1568_v4 = vpop.f32.mrf.mxu1  ;;  %v4043_v2 = vunpack.c.l.b16 %v3736_v43  ;;  %v3759_v28 = vrot.slane %v3757_v32, 5 }
 0x1e0   : > { %5350 = vmatmul.msk.bf16.gmra.mxu3 %vm1231_vm12, %v4071_v48  ;;  %v6507_v26 = vadd.f32 %v2853_v54, %v2251_v17  ;;  %v1566_v17 = vadd.f32 %v1565_v15, %v6220_v22  ;;  %v3013_v54 = vsel %vm6050_vm15, %v5237_v61, %v3012_v23  ;;  %v3763_v22 = vrot.slane %v3761_v50, 4  ;;  %v3618_v50 = vld [vmem:[#allocation2 + $0x54] sm:$0xf] }
 0x1e1   : > { %v3104_v21 = vunpack.c.l.b16 %v3013_v54  ;;  %v4072_v23 = vpack.c.b16 %v4044_v62, %v4043_v2  ;;  %v1569_v61 = vadd.f32 %v1568_v4, %v6230_v52  ;;  %v3755_v2 = vrot.slane %v3754_v45, 4  ;;  %v5495_v62 = vld [vmem:[#allocation2 + $0x4c] sm:$0xf] }
 0x1e2   : > { %5253 = vmatmul.msk.bf16.gmra.mxu1 %vm1231_vm12, %v3131_v33  ;;  %v3764_v34 = vor.u32 %v3763_v22, %v3759_v28  ;;  %v3019_v55 = vrot.slane %v5495_v62, 5  ;;  %v3772_v54 = vshrl.u32 %v3618_v50, 16 }
 0x1e3   : > { %v2202_v0 = vpop.f32.mrf.mxu3 }
 0x1e4   : > { %v2252_v53 = vadd.f32 %v2202_v0, %v1966_v18  ;;  %v3016_v18 = vsel %vm6050_vm15, %v3014_v29, %v3015_v42  ;;  %v4347_v42 = vrot.slane %v6493_v41, 5  ;;  %v4345_v29 = vsel %vm6050_vm15, %v5367_v56, %v4344_v57 }
 0x1e5   : > { %v3105_v0 = vunpack.c.l.b16 %v3016_v18  ;;  %v3765_v52 = vrot.slane %v3764_v34, 4  ;;  %v3775_v18 = vshll.u32 %v3618_v50, 16  ;;  %v4441_v47 = vunpack.c.l.b16 %v4345_v29  ;;  %v4261_v50 = vld [vmem:[#allocation2 + $0x48] sm:$0xe] }
 0x1e6   : > { %v1918_v48 = vpop.f32.mrf.mxu2  ;;  %v4351_v34 = vrot.slane %v6509_v9, 5  ;;  %v6555_v9 = vld [vmem:[#allocation2 + $0x5c] sm:$0x1] }
 0x1e7   : > { %v2856_v25 = vpop.f32.mrf.mxu0  ;;  %v1967_v33 = vadd.f32 %v1918_v48, %v1566_v17  ;;  %v1570_v44 = vpop.f32.mrf.mxu1  ;;  %v3132_v32 = vpack.c.b16 %v3105_v0, %v3104_v21  ;;  %v4348_v17 = vsel %vm6050_vm15, %v4346_v1, %v4347_v42  ;;  %v3760_v0 = vsel %vm5647_vm11, %v3755_v2, %v3759_v28  ;;  %v5437_v28 = vld [vmem:[#allocation2 + $0x48] sm:$0xff] }
 0x1e8   : > { %v6524_v15 = vadd.f32 %v2856_v25, %v2252_v53  ;;  %v3767_v53 = vshll.u32 %v6526_v49, 16  ;;  %v6538_v25 = vld [vmem:[#allocation2 + $0x58] sm:$0xf]  ;;  %v4442_v22 = vunpack.c.l.b16 %v4348_v17  ;;  %v1571_v45 = vadd.f32 %v1570_v44, %v6244_v51 }
 0x1e9   : > { %v3781_v56 = vshll.u32 %v6538_v25, 16  ;;  %v3785_v1 = vshrl.u32 %v6538_v25, 16 }
 0x1ea   : > { %5383 = vmatmul.msk.bf16.gmra.mxu0 %vm1231_vm12, %v4469_v11  ;;  %v3769_v4 = vrot.slane %v3767_v53, 5  ;;  %v3774_v53 = vrot.slane %v3772_v54, 4  ;;  %v4470_v29 = vpack.c.b16 %v4442_v22, %v4441_v47  ;;  %v4354_v54 = vrot.slane %v6526_v49, 5 }
 0x1eb   : > { %v2204_v14 = vpop.f32.mrf.mxu3  ;;  %5334 = vmatmul.msk.bf16.gmra.mxu2 %vm1231_vm12, %v5436_v7  ;;  %v5496_v7 = vld [vmem:[#allocation2 + $0x50] sm:$0x1]  ;;  %v3787_v17 = vrot.slane %v3785_v1, 4 }
 0x1ec   : > { %v2253_v43 = vadd.f32 %v2204_v14, %v1967_v33  ;;  %v2923_v33 = vld [vmem:[#allocation2 + $0x48] sm:$0xe]  ;;  %v3022_v3 = vrot.slane %v5496_v7, 5  ;;  %v3770_v42 = vsel %vm5647_vm11, %v3765_v52, %v3769_v4  ;;  %v5368_v4 = vrot.slane %v4261_v50, 9  ;;  %v5497_v50 = vld [vmem:[#allocation2 + $0x58] sm:$0xf] }
 0x1ed   : > { %v4046_v2 = vunpack.c.l.b16 %v3770_v42  ;;  %v4353_v7 = vrot.slane %v4351_v34, 4 }
 0x1ee   : > { %v1921_v12 = vpop.f32.mrf.mxu2 }
 0x1ef   : > { %v2858_v11 = vpop.f32.mrf.mxu0  ;;  %v1968_v48 = vadd.f32 %v1921_v12, %v1569_v61  ;;  %v1573_v41 = vpop.f32.mrf.mxu1  ;;  %v3777_v61 = vrot.slane %v3775_v18, 5  ;;  %v4355_v49 = vsel %vm6050_vm15, %v4353_v7, %v4354_v54 }
 0x1f0   : > { %5351 = vmatmul.msk.bf16.gmra.mxu3 %vm1231_vm12, %v4072_v23  ;;  %v6540_v57 = vadd.f32 %v2858_v11, %v2253_v43  ;;  %v5238_v23 = vrot.slane %v2923_v33, 9  ;;  %v3021_v43 = vrot.slane %v3019_v55, 4  ;;  %v3783_v11 = vrot.slane %v3781_v56, 5 }
 0x1f1   : > { %v3778_v18 = vor.u32 %v3777_v61, %v3774_v53 }
 0x1f2   : > { %5254 = vmatmul.msk.bf16.gmra.mxu1 %vm1231_vm12, %v3132_v32  ;;  %v4045_v32 = vunpack.c.l.b16 %v3760_v0  ;;  %v3020_v52 = vsel %vm6050_vm15, %v5238_v23, %v3019_v55  ;;  %v3023_v51 = vsel %vm6050_vm15, %v3021_v43, %v3022_v3  ;;  %v3788_v56 = vor.u32 %v3787_v17, %v3783_v11  ;;  %v3621_v17 = vld [vmem:[#allocation2 + $0x60] sm:$0xf] }
 0x1f3   : > { %v2207_v14 = vpop.f32.mrf.mxu3  ;;  %v3106_v22 = vunpack.c.l.b16 %v3020_v52  ;;  %v3791_v55 = vshll.u32 %v6555_v9, 16  ;;  %v4352_v0 = vsel %vm6050_vm15, %v5368_v4, %v4351_v34  ;;  %v3779_v42 = vrot.slane %v3778_v18, 4 }
 0x1f4   : > { %v2254_v21 = vadd.f32 %v2207_v14, %v1968_v48  ;;  %v3107_v14 = vunpack.c.l.b16 %v3023_v51  ;;  %v4073_v3 = vpack.c.b16 %v4046_v2, %v4045_v32  ;;  %v3026_v32 = vrot.slane %v5497_v50, 5 }
 0x1f5   : > { %v3793_v53 = vrot.slane %v3791_v55, 5  ;;  %v4443_v34 = vunpack.c.l.b16 %v4352_v0  ;;  %v3784_v51 = vsel %vm5647_vm11, %v3779_v42, %v3783_v11  ;;  %v3796_v7 = vshrl.u32 %v3621_v17, 16  ;;  %v5438_v42 = vld [vmem:[#allocation2 + $0x54] sm:$0xff] }
 0x1f6   : > { %v1923_v12 = vpop.f32.mrf.mxu2  ;;  %v3133_v43 = vpack.c.b16 %v3107_v14, %v3106_v22  ;;  %v3799_v22 = vshll.u32 %v3621_v17, 16  ;;  %v4358_v11 = vrot.slane %v6538_v25, 5 }
 0x1f7   : > { %v2861_v48 = vpop.f32.mrf.mxu0  ;;  %v1969_v62 = vadd.f32 %v1923_v12, %v1571_v45  ;;  %v1575_v33 = vpop.f32.mrf.mxu1  ;;  %v3789_v45 = vrot.slane %v3788_v56, 4 }
 0x1f8   : > { %v6557_v44 = vadd.f32 %v2861_v48, %v2254_v21  ;;  %v1574_v21 = vadd.f32 %v1573_v41, %v6144_v58  ;;  %v2924_v58 = vld [vmem:[#allocation2 + $0x54] sm:$0xe]  ;;  %v4444_v48 = vunpack.c.l.b16 %v4355_v49  ;;  %v3798_v49 = vrot.slane %v3796_v7, 4 }
 0x1f9   : > { %v3794_v4 = vsel %vm5647_vm11, %v3789_v45, %v3793_v53  ;;  %v5239_v18 = vrot.slane %v2924_v58, 9  ;;  %v4262_v45 = vld [vmem:[#allocation2 + $0x54] sm:$0xe]  ;;  %v3801_v50 = vrot.slane %v3799_v22, 5  ;;  %v6588_v58 = vld [vmem:[#allocation2 + $0x68] sm:$0x1] }
 0x1fa   : > { %5384 = vmatmul.msk.bf16.gmra.mxu0 %vm1231_vm12, %v4470_v29  ;;  %v4471_v55 = vpack.c.b16 %v4444_v48, %v4443_v34  ;;  %v4048_v0 = vunpack.c.l.b16 %v3794_v4  ;;  %v5369_v34 = vrot.slane %v4262_v45, 9  ;;  %v4360_v48 = vrot.slane %v4358_v11, 4  ;;  %v6602_v45 = vld [vmem:[#allocation2 + $0x70] sm:$0xf] }
 0x1fb   : > { %v2209_v47 = vpop.f32.mrf.mxu3  ;;  %5335 = vmatmul.msk.bf16.gmra.mxu2 %vm1231_vm12, %v5437_v28  ;;  %v5498_v28 = vld [vmem:[#allocation2 + $0x5c] sm:$0x1]  ;;  %v3802_v4 = vor.u32 %v3801_v50, %v3798_v49  ;;  %v3624_v49 = vld [vmem:[#allocation2 + $0x6c] sm:$0xf] }
 0x1fc   : > { %v2255_v1 = vadd.f32 %v2209_v47, %v1969_v62  ;;  %v6571_v62 = vld [vmem:[#allocation2 + $0x64] sm:$0xf]  ;;  %v3029_v2 = vrot.slane %v5498_v28, 5  ;;  %v3028_v47 = vrot.slane %v3026_v32, 4 }
 0x1fd   : > { %v3805_v14 = vshll.u32 %v6571_v62, 16  ;;  %v3809_v56 = vshrl.u32 %v6571_v62, 16 }
 0x1fe   : > { %v1926_v23 = vpop.f32.mrf.mxu2 }
 0x1ff   : > { %v2863_v61 = vpop.f32.mrf.mxu0  ;;  %v1970_v29 = vadd.f32 %v1926_v23, %v1574_v21  ;;  %v1578_v12 = vpop.f32.mrf.mxu1  ;;  %v4047_v21 = vunpack.c.l.b16 %v3784_v51  ;;  %v3807_v17 = vrot.slane %v3805_v14, 5 }
 0x200   : > { %5352 = vmatmul.msk.bf16.gmra.mxu3 %vm1231_vm12, %v4073_v3  ;;  %v6569_v41 = vadd.f32 %v2863_v61, %v2255_v1  ;;  %v1576_v1 = vadd.f32 %v1575_v33, %v6159_v20  ;;  %v3027_v61 = vsel %vm6050_vm15, %v5239_v18, %v3026_v32  ;;  %v3811_v20 = vrot.slane %v3809_v56, 4 }
 0x201   : > { %v3108_v28 = vunpack.c.l.b16 %v3027_v61  ;;  %v4074_v32 = vpack.c.b16 %v4048_v0, %v4047_v21  ;;  %v1579_v18 = vadd.f32 %v1578_v12, %v6173_v35  ;;  %v5499_v21 = vld [vmem:[#allocation2 + $0x64] sm:$0xf]  ;;  %v2925_v35 = vld [vmem:[#allocation2 + $0x60] sm:$0xe] }
 0x202   : > { %5255 = vmatmul.msk.bf16.gmra.mxu1 %vm1231_vm12, %v3133_v43  ;;  %v3812_v7 = vor.u32 %v3811_v20, %v3807_v17  ;;  %v3033_v0 = vrot.slane %v5499_v21, 5  ;;  %v3820_v20 = vshrl.u32 %v3624_v49, 16 }
 0x203   : > { %v2212_v52 = vpop.f32.mrf.mxu3 }
 0x204   : > { %v2256_v54 = vadd.f32 %v2212_v52, %v1970_v29  ;;  %v3030_v29 = vsel %vm6050_vm15, %v3028_v47, %v3029_v2  ;;  %v4361_v2 = vrot.slane %v6555_v9, 5  ;;  %v4359_v47 = vsel %vm6050_vm15, %v5369_v34, %v4358_v11  ;;  %v5500_v11 = vld [vmem:[#allocation2 + $0x68] sm:$0x1] }
 0x205   : > { %v3109_v52 = vunpack.c.l.b16 %v3030_v29  ;;  %v3803_v9 = vrot.slane %v3802_v4, 4  ;;  %v4445_v61 = vunpack.c.l.b16 %v4359_v47 }
 0x206   : > { %v1928_v3 = vpop.f32.mrf.mxu2 }
 0x207   : > { %v2866_v23 = vpop.f32.mrf.mxu0  ;;  %v1971_v43 = vadd.f32 %v1928_v3, %v1576_v1  ;;  %v1580_v53 = vpop.f32.mrf.mxu1  ;;  %v3134_v14 = vpack.c.b16 %v3109_v52, %v3108_v28  ;;  %v5240_v28 = vrot.slane %v2925_v35, 9  ;;  %v3035_v52 = vrot.slane %v3033_v0, 4 }
 0x208   : > { %v6586_v33 = vadd.f32 %v2866_v23, %v2256_v54  ;;  %v3815_v54 = vshll.u32 %v6588_v58, 16  ;;  %v3813_v23 = vrot.slane %v3812_v7, 4  ;;  %v1581_v4 = vadd.f32 %v1580_v53, %v6192_v5 }
 0x209   : > { %v4365_v7 = vrot.slane %v6571_v62, 5 }
 0x20a   : > { %5385 = vmatmul.msk.bf16.gmra.mxu0 %vm1231_vm12, %v4471_v55  ;;  %v4362_v55 = vsel %vm6050_vm15, %v4360_v48, %v4361_v2  ;;  %v3808_v48 = vsel %vm5647_vm11, %v3803_v9, %v3807_v17  ;;  %v3833_v2 = vshrl.u32 %v6602_v45, 16 }
 0x20b   : > { %v2214_v25 = vpop.f32.mrf.mxu3  ;;  %5336 = vmatmul.msk.bf16.gmra.mxu2 %vm1231_vm12, %v5438_v42  ;;  %v3036_v42 = vrot.slane %v5500_v11, 5  ;;  %v4446_v29 = vunpack.c.l.b16 %v4362_v55  ;;  %v4049_v47 = vunpack.c.l.b16 %v3808_v48  ;;  %v4367_v35 = vrot.slane %v4365_v7, 4  ;;  %v6619_v11 = vld [vmem:[#allocation2 + $0x74] sm:$0x1] }
 0x20c   : > { %v2257_v51 = vadd.f32 %v2214_v25, %v1971_v43  ;;  %v3817_v43 = vrot.slane %v3815_v54, 5  ;;  %v3823_v25 = vshll.u32 %v3624_v49, 16  ;;  %v3034_v49 = vsel %vm6050_vm15, %v5240_v28, %v3033_v0 }
 0x20d   : > { %v4472_v54 = vpack.c.b16 %v4446_v29, %v4445_v61  ;;  %v3835_v53 = vrot.slane %v3833_v2, 4  ;;  %v4368_v29 = vrot.slane %v6588_v58, 5 }
 0x20e   : > { %v1931_v22 = vpop.f32.mrf.mxu2 }
 0x20f   : > { %v2868_v56 = vpop.f32.mrf.mxu0  ;;  %v1972_v1 = vadd.f32 %v1931_v22, %v1579_v18  ;;  %v1583_v3 = vpop.f32.mrf.mxu1  ;;  %v4263_v22 = vld [vmem:[#allocation2 + $0x60] sm:$0xe] }
 0x210   : > { %5353 = vmatmul.msk.bf16.gmra.mxu3 %vm1231_vm12, %v4074_v32  ;;  %v6600_v12 = vadd.f32 %v2868_v56, %v2257_v51  ;;  %v3818_v51 = vsel %vm5647_vm11, %v3813_v23, %v3817_v43  ;;  %v3829_v32 = vshll.u32 %v6602_v45, 16  ;;  %v3825_v56 = vrot.slane %v3823_v25, 5 }
 0x211   : > { %v4050_v9 = vunpack.c.l.b16 %v3818_v51  ;;  %v3037_v23 = vsel %vm6050_vm15, %v3035_v52, %v3036_v42  ;;  %v5370_v43 = vrot.slane %v4263_v22, 9  ;;  %v1584_v28 = vadd.f32 %v1583_v3, %v6204_v38  ;;  %v2926_v38 = vld [vmem:[#allocation2 + $0x6c] sm:$0xe] }
 0x212   : > { %5256 = vmatmul.msk.bf16.gmra.mxu1 %vm1231_vm12, %v3134_v14  ;;  %v3822_v14 = vrot.slane %v3820_v20, 4  ;;  %v3831_v5 = vrot.slane %v3829_v32, 5  ;;  %v3111_v20 = vunpack.c.l.b16 %v3037_v23  ;;  %v4369_v51 = vsel %vm6050_vm15, %v4367_v35, %v4368_v29  ;;  %v5502_v29 = vld [vmem:[#allocation2 + $0x74] sm:$0x1] }
 0x213   : > { %v2217_v50 = vpop.f32.mrf.mxu3  ;;  %v4075_v42 = vpack.c.b16 %v4050_v9, %v4049_v47  ;;  %v4366_v52 = vsel %vm6050_vm15, %v5370_v43, %v4365_v7  ;;  %v5501_v47 = vld [vmem:[#allocation2 + $0x70] sm:$0xf]  ;;  %v5241_v35 = vrot.slane %v2926_v38, 9 }
 0x214   : > { %v2258_v34 = vadd.f32 %v2217_v50, %v1972_v1  ;;  %v5439_v1 = vld [vmem:[#allocation2 + $0x60] sm:$0xff]  ;;  %v3110_v50 = vunpack.c.l.b16 %v3034_v49  ;;  %v3826_v25 = vor.u32 %v3825_v56, %v3822_v14  ;;  %v3836_v48 = vor.u32 %v3835_v53, %v3831_v5  ;;  %v3627_v14 = vld [vmem:[#allocation2 + $0x78] sm:$0xf] }
 0x215   : > { %v3040_v22 = vrot.slane %v5501_v47, 5  ;;  %v4447_v7 = vunpack.c.l.b16 %v4366_v52  ;;  %v3844_v23 = vshrl.u32 %v3627_v14, 16  ;;  %v3847_v53 = vshll.u32 %v3627_v14, 16  ;;  %v4264_v47 = vld [vmem:[#allocation2 + $0x6c] sm:$0xe] }
 0x216   : > { %v1933_v18 = vpop.f32.mrf.mxu2  ;;  %v3135_v58 = vpack.c.b16 %v3111_v20, %v3110_v50  ;;  %v3827_v2 = vrot.slane %v3826_v25, 4  ;;  %v3837_v56 = vrot.slane %v3836_v48, 4  ;;  %v3043_v50 = vrot.slane %v5502_v29, 5  ;;  %v7110_v48 = vld [vmem:[#allocation3_spill] sm:$0xff] }
 0x217   : > { %v2871_v17 = vpop.f32.mrf.mxu0  ;;  %v1973_v55 = vadd.f32 %v1933_v18, %v1581_v4  ;;  %v1585_v21 = vpop.f32.mrf.mxu1 }
 0x218   : > { %v6617_v62 = vadd.f32 %v2871_v17, %v2258_v34  ;;  %v3839_v34 = vshll.u32 %v6619_v11, 16  ;;  %v3832_v49 = vsel %vm5647_vm11, %v3827_v2, %v3831_v5  ;;  %v4372_v5 = vrot.slane %v6602_v45, 5 }
 0x219   : > { %v4051_v52 = vunpack.c.l.b16 %v3832_v49 }
 0x21a   : > { %5386 = vmatmul.msk.bf16.gmra.mxu0 %vm1231_vm12, %v4472_v54  ;;  %v3841_v17 = vrot.slane %v3839_v34, 5  ;;  %v1586_v34 = vadd.f32 %v1585_v21, %v7110_v48 }
 0x21b   : > { %v2219_v61 = vpop.f32.mrf.mxu3  ;;  %5337 = vmatmul.msk.bf16.gmra.mxu2 %vm1231_vm12, %v5439_v1  ;;  %v6633_v1 = vld [vmem:[#allocation2 + $0x7c] sm:$0xf] }
 0x21c   : > { %v2259_v0 = vadd.f32 %v2219_v61, %v1973_v55  ;;  %v4448_v55 = vunpack.c.l.b16 %v4369_v51  ;;  %v3042_v61 = vrot.slane %v3040_v22, 4  ;;  %v3842_v20 = vsel %vm5647_vm11, %v3837_v56, %v3841_v17 }
 0x21d   : > { %v3853_v25 = vshll.u32 %v6633_v1, 16  ;;  %v3846_v51 = vrot.slane %v3844_v23, 4  ;;  %v3041_v56 = vsel %vm6050_vm15, %v5241_v35, %v3040_v22  ;;  %v4374_v35 = vrot.slane %v4372_v5, 4 }
 0x21e   : > { %v1936_v32 = vpop.f32.mrf.mxu2  ;;  %v3044_v17 = vsel %vm6050_vm15, %v3042_v61, %v3043_v50  ;;  %v3112_v49 = vunpack.c.l.b16 %v3041_v56  ;;  %v4375_v61 = vrot.slane %v6619_v11, 5 }
 0x21f   : > { %v2873_v4 = vpop.f32.mrf.mxu0  ;;  %v1974_v54 = vadd.f32 %v1936_v32, %v1584_v28  ;;  %v1588_v18 = vpop.f32.mrf.mxu1  ;;  %v3849_v32 = vrot.slane %v3847_v53, 5  ;;  %v3855_v38 = vrot.slane %v3853_v25, 5  ;;  %v3113_v23 = vunpack.c.l.b16 %v3044_v17 }
 0x220   : > { %5354 = vmatmul.msk.bf16.gmra.mxu3 %vm1231_vm12, %v4075_v42  ;;  %v6631_v3 = vadd.f32 %v2873_v4, %v2259_v0  ;;  %v3857_v0 = vshrl.u32 %v6633_v1, 16  ;;  %v4473_v42 = vpack.c.b16 %v4448_v55, %v4447_v7  ;;  %v5440_v4 = vld [vmem:[#allocation2 + $0x6c] sm:$0xff]  ;;  %v6650_v55 = vld [vmem:[#allocation2 + $0x80] sm:$0x1] }
 0x221   : > { %v3850_v53 = vor.u32 %v3849_v32, %v3846_v51  ;;  %v3136_v48 = vpack.c.b16 %v3113_v23, %v3112_v49 }
 0x222   : > { %5257 = vmatmul.msk.bf16.gmra.mxu1 %vm1231_vm12, %v3135_v58  ;;  %v3859_v21 = vrot.slane %v3857_v0, 4 }
 0x223   : > { %v2222_v9 = vpop.f32.mrf.mxu3 }
 0x224   : > { %v2260_v43 = vadd.f32 %v2222_v9, %v1974_v54  ;;  %v4052_v54 = vunpack.c.l.b16 %v3842_v20  ;;  %v5371_v9 = vrot.slane %v4264_v47, 9  ;;  %v3860_v50 = vor.u32 %v3859_v21, %v3855_v38  ;;  %v7111_v20 = vld [vmem:[#allocation4_spill] sm:$0xff]  ;;  %v2927_v47 = vld [vmem:[#allocation2 + $0x78] sm:$0xe] }
 0x225   : > { %v1589_v25 = vadd.f32 %v1588_v18, %v7111_v20  ;;  %v7113_v20 = vld [vmem:[#allocation5_spill] sm:$0xff] }
 0x226   : > { %v1938_v28 = vpop.f32.mrf.mxu2  ;;  %v4076_v22 = vpack.c.b16 %v4052_v54, %v4051_v52  ;;  %v4373_v0 = vsel %vm6050_vm15, %v5371_v9, %v4372_v5  ;;  %v4376_v52 = vsel %vm6050_vm15, %v4374_v35, %v4375_v61  ;;  %v3861_v18 = vrot.slane %v3860_v50, 4  ;;  %v5504_v50 = vld [vmem:[#allocation2 + $0x80] sm:$0x1] }
 0x227   : > { %v2876_v58 = vpop.f32.mrf.mxu0  ;;  %v1975_v2 = vadd.f32 %v1938_v28, %v1586_v34  ;;  %v1590_v14 = vpop.f32.mrf.mxu1  ;;  %v3851_v34 = vrot.slane %v3850_v53, 4  ;;  %v3630_v28 = vld [vmem:[#allocation2 + $0x84] sm:$0xf]  ;;  %v4449_v56 = vunpack.c.l.b16 %v4373_v0  ;;  %v5242_v35 = vrot.slane %v2927_v47, 9 }
 0x228   : > { %v6648_v7 = vadd.f32 %v2876_v58, %v2260_v43  ;;  %v3863_v43 = vshll.u32 %v6650_v55, 16  ;;  %v5503_v58 = vld [vmem:[#allocation2 + $0x7c] sm:$0xf]  ;;  %v3868_v17 = vshrl.u32 %v3630_v28, 16  ;;  %v3871_v21 = vshll.u32 %v3630_v28, 16 }
 0x229   : > { %v3856_v49 = vsel %vm5647_vm11, %v3851_v34, %v3855_v38  ;;  %v4379_v0 = vrot.slane %v6633_v1, 5  ;;  %v6679_v1 = vld [vmem:[#allocation2 + $0x8c] sm:$0x1] }
 0x22a   : > { %5387 = vmatmul.msk.bf16.gmra.mxu0 %vm1231_vm12, %v4473_v42  ;;  %v3865_v54 = vrot.slane %v3863_v43, 5  ;;  %v4053_v34 = vunpack.c.l.b16 %v3856_v49 }
 0x22b   : > { %v2224_v45 = vpop.f32.mrf.mxu3  ;;  %5338 = vmatmul.msk.bf16.gmra.mxu2 %vm1231_vm12, %v5440_v4  ;;  %v6662_v4 = vld [vmem:[#allocation2 + $0x88] sm:$0xf] }
 0x22c   : > { %v2261_v29 = vadd.f32 %v2224_v45, %v1975_v2  ;;  %v3047_v2 = vrot.slane %v5503_v58, 5  ;;  %v4450_v45 = vunpack.c.l.b16 %v4376_v52  ;;  %v3877_v23 = vshll.u32 %v6662_v4, 16 }
 0x22d   : > { %v3881_v53 = vshrl.u32 %v6662_v4, 16  ;;  %v3866_v43 = vsel %vm5647_vm11, %v3861_v18, %v3865_v54 }
 0x22e   : > { %v1941_v42 = vpop.f32.mrf.mxu2  ;;  %v3049_v61 = vrot.slane %v3047_v2, 4  ;;  %v4474_v28 = vpack.c.b16 %v4450_v45, %v4449_v56  ;;  %v3879_v52 = vrot.slane %v3877_v23, 5  ;;  %v3048_v18 = vsel %vm6050_vm15, %v5242_v35, %v3047_v2 }
 0x22f   : > { %v2878_v51 = vpop.f32.mrf.mxu0  ;;  %v1976_v32 = vadd.f32 %v1941_v42, %v1589_v25  ;;  %v3204_v11 = vpop.f32.mrf.mxu1  ;;  %v1591_v25 = vadd.f32 %v1590_v14, %v7113_v20  ;;  %v3870_v42 = vrot.slane %v3868_v17, 4  ;;  %v3883_v58 = vrot.slane %v3881_v53, 4  ;;  %v3633_v20 = vld [vmem:[#allocation2 + $0x90] sm:$0xf] }
 0x230   : > { %5355 = vmatmul.msk.bf16.gmra.mxu3 %vm1231_vm12, %v4076_v22  ;;  %v6664_v5 = vadd.f32 %v2878_v51, %v2261_v29  ;;  %v3050_v29 = vrot.slane %v5504_v50, 5  ;;  %v4265_v51 = vld [vmem:[#allocation2 + $0x78] sm:$0xe]  ;;  %v4381_v17 = vrot.slane %v4379_v0, 4  ;;  %v3114_v23 = vunpack.c.l.b16 %v3048_v18 }
 0x231   : > { %v5372_v56 = vrot.slane %v4265_v51, 9  ;;  %v3887_v2 = vshll.u32 %v6679_v1, 16 }
 0x232   : > { %7112 = vst [vmem:[#allocation3_spill] sm:$0xff] %v6664_v5  ;;  %5258 = vmatmul.msk.bf16.gmra.mxu1 %vm1231_vm12, %v3136_v48  ;;  %v3873_v48 = vrot.slane %v3871_v21, 5  ;;  %v4054_v5 = vunpack.c.l.b16 %v3866_v43  ;;  %v3051_v14 = vsel %vm6050_vm15, %v3049_v61, %v3050_v29  ;;  %v4382_v21 = vrot.slane %v6650_v55, 5 }
 0x233   : > { %v2227_v9 = vpop.f32.mrf.mxu3  ;;  %v3115_v53 = vunpack.c.l.b16 %v3051_v14  ;;  %v3884_v43 = vor.u32 %v3883_v58, %v3879_v52  ;;  %v4380_v29 = vsel %vm6050_vm15, %v5372_v56, %v4379_v0  ;;  %v3892_v0 = vshrl.u32 %v3633_v20, 16 }
 0x234   : > { %v2262_v22 = vadd.f32 %v2227_v9, %v1976_v32  ;;  %v5441_v9 = vld [vmem:[#allocation2 + $0x78] sm:$0xff]  ;;  %v3874_v45 = vor.u32 %v3873_v48, %v3870_v42  ;;  %v4077_v61 = vpack.c.b16 %v4054_v5, %v4053_v34  ;;  %v4383_v55 = vsel %vm6050_vm15, %v4381_v17, %v4382_v21  ;;  %v6693_v34 = vld [vmem:[#allocation2 + $0x94] sm:$0xf] }
 0x235   : > { %v3137_v42 = vpack.c.b16 %v3115_v53, %v3114_v23  ;;  %v4451_v18 = vunpack.c.l.b16 %v4380_v29  ;;  %v4452_v14 = vunpack.c.l.b16 %v4383_v55  ;;  %v4266_v23 = vld [vmem:[#allocation2 + $0x84] sm:$0xe]  ;;  %v3894_v29 = vrot.slane %v3892_v0, 4 }
 0x236   : > { %v1943_v38 = vpop.f32.mrf.mxu2  ;;  %v3875_v48 = vrot.slane %v3874_v45, 4  ;;  %v4386_v45 = vrot.slane %v6662_v4, 5  ;;  %v5373_v4 = vrot.slane %v4266_v23, 9 }
 0x237   : > { %v2881_v32 = vpop.f32.mrf.mxu0  ;;  %v1977_v47 = vadd.f32 %v1943_v38, %v1591_v25  ;;  %v3206_v50 = vpop.f32.mrf.mxu1  ;;  %v3889_v38 = vrot.slane %v3887_v2, 5  ;;  %v5506_v2 = vld [vmem:[#allocation2 + $0x8c] sm:$0x1] }
 0x238   : > { %v6681_v54 = vadd.f32 %v2881_v32, %v2262_v22  ;;  %v3284_v22 = vadd.f32 %v3204_v11, %v6266_v30  ;;  %v5505_v32 = vld [vmem:[#allocation2 + $0x88] sm:$0xf]  ;;  %v2928_v11 = vld [vmem:[#allocation2 + $0x84] sm:$0xe]  ;;  %v3880_v17 = vsel %vm5647_vm11, %v3875_v48, %v3879_v52  ;;  %v3285_v52 = vadd.f32 %v3206_v50, %v6281_v27 }
 0x239   : > { %v3054_v5 = vrot.slane %v5505_v32, 5  ;;  %v5243_v53 = vrot.slane %v2928_v11, 9  ;;  %v4389_v50 = vrot.slane %v6679_v1, 5  ;;  %v4387_v1 = vsel %vm6050_vm15, %v5373_v4, %v4386_v45 }
 0x23a   : > { %5388 = vmatmul.msk.bf16.gmra.mxu0 %vm1231_vm12, %v4474_v28  ;;  %v3885_v28 = vrot.slane %v3884_v43, 4 }
 0x23b   : > { %v2229_v49 = vpop.f32.mrf.mxu3  ;;  %5339 = vmatmul.msk.bf16.gmra.mxu2 %vm1231_vm12, %v5441_v9  ;;  %v3056_v43 = vrot.slane %v3054_v5, 4  ;;  %v3055_v11 = vsel %vm6050_vm15, %v5243_v53, %v3054_v5 }
 0x23c   : > { %v2263_v35 = vadd.f32 %v2229_v49, %v1977_v47  ;;  %v3895_v47 = vshll.u32 %v3633_v20, 16  ;;  %v3890_v21 = vsel %vm5647_vm11, %v3885_v28, %v3889_v38  ;;  %v3901_v49 = vshll.u32 %v6693_v34, 16 }
 0x23d   : > { %v4475_v20 = vpack.c.b16 %v4452_v14, %v4451_v18  ;;  %v4056_v48 = vunpack.c.l.b16 %v3890_v21  ;;  %v4388_v28 = vrot.slane %v4386_v45, 4  ;;  %v6715_v14 = vld [vmem:[#allocation2 + $0x98] sm:$0x1]  ;;  %v3116_v21 = vunpack.c.l.b16 %v3055_v11 }
 0x23e   : > { %v3491_v25 = vpop.f32.mrf.mxu2  ;;  %v3897_v55 = vrot.slane %v3895_v47, 5  ;;  %v6712_v0 = vrot.slane %v3901_v49, 5 }
 0x23f   : > { %v2883_v51 = vpop.f32.mrf.mxu0  ;;  %v3209_v58 = vpop.f32.mrf.mxu1  ;;  %v3571_v30 = vadd.f32 %v3491_v25, %v3284_v22  ;;  %v4055_v25 = vunpack.c.l.b16 %v3880_v17 }
 0x240   : > { %5356 = vmatmul.msk.bf16.gmra.mxu3 %vm1231_vm12, %v4077_v61  ;;  %v6695_v9 = vadd.f32 %v2883_v51, %v2263_v35  ;;  %v3057_v35 = vrot.slane %v5506_v2, 5  ;;  %v3905_v61 = vshrl.u32 %v6693_v34, 16  ;;  %v5442_v51 = vld [vmem:[#allocation2 + $0x84] sm:$0xff] }
 0x241   : > { %v4078_v23 = vpack.c.b16 %v4056_v48, %v4055_v25  ;;  %v3636_v25 = vld [vmem:[#allocation2 + $0x9c] sm:$0xf] }
 0x242   : > { %5259 = vmatmul.msk.bf16.gmra.mxu1 %vm1231_vm12, %v3137_v42  ;;  %v3907_v47 = vrot.slane %v3905_v61, 4 }
 0x243   : > { %v4145_v56 = vpop.f32.mrf.mxu3 }
 0x244   : > { %v4225_v22 = vadd.f32 %v4145_v56, %v3571_v30  ;;  %v3058_v30 = vsel %vm6050_vm15, %v3056_v43, %v3057_v35  ;;  %v3898_v56 = vor.u32 %v3897_v55, %v3894_v29  ;;  %v3908_v53 = vor.u32 %v3907_v47, %v6712_v0 }
 0x245   : > { %v3117_v49 = vunpack.c.l.b16 %v3058_v30  ;;  %v3911_v43 = vshll.u32 %v6715_v14, 16  ;;  %v4390_v35 = vsel %vm6050_vm15, %v4388_v28, %v4389_v50  ;;  %v4453_v29 = vunpack.c.l.b16 %v4387_v1 }
 0x246   : > { %v3493_v42 = vpop.f32.mrf.mxu2  ;;  %v3899_v61 = vrot.slane %v3898_v56, 4  ;;  %v3909_v4 = vrot.slane %v3908_v53, 4  ;;  %v3916_v50 = vshrl.u32 %v3636_v25, 16  ;;  %v3919_v56 = vshll.u32 %v3636_v25, 16 }
 0x247   : > { %v4543_v38 = vpop.f32.mrf.mxu0  ;;  %v6706_v32 = vpop.f32.mrf.mxu1  ;;  %v3572_v27 = vadd.f32 %v3493_v42, %v3285_v52  ;;  %v6735_v52 = vld [vmem:[#allocation2 + $0xa0] sm:$0xf]  ;;  %v4454_v42 = vunpack.c.l.b16 %v4390_v35 }
 0x248   : > { %v4623_v18 = vadd.f32 %v4543_v38, %v4225_v22  ;;  %v3286_v22 = vadd.f32 %v3209_v58, %v6286_v19  ;;  %v3913_v38 = vrot.slane %v3911_v43, 5  ;;  %v3904_v19 = vsel %vm5647_vm11, %v3899_v61, %v6712_v0  ;;  %v2929_v58 = vld [vmem:[#allocation2 + $0x90] sm:$0xe] }
 0x249   : > { %v5244_v1 = vrot.slane %v2929_v58, 9  ;;  %v3929_v35 = vshrl.u32 %v6735_v52, 16  ;;  %v4476_v58 = vpack.c.b16 %v4454_v42, %v4453_v29 }
 0x24a   : > { %5389 = vmatmul.msk.bf16.gmra.mxu0 %vm1231_vm12, %v4475_v20  ;;  %v4827_v5 = vpack.c.bf16 %v4623_v18, %v4623_v18  ;;  %v3138_v20 = vpack.c.b16 %v3117_v49, %v3116_v21  ;;  %v4725_v28 = vmul.f32 %v4623_v18, %v4623_v18 }
 0x24b   : > { %v4147_v17 = vpop.f32.mrf.mxu3  ;;  %5340 = vmatmul.msk.bf16.gmra.mxu2 %vm1231_vm12, %v5442_v51  ;;  %v5507_v51 = vld [vmem:[#allocation2 + $0x94] sm:$0xf] }
 0x24c   : > { %4859 = vst.msk [vmem:[%s6722_s17] sm:$0xf] %vm216_vm1, %v4827_v5  ;;  %v4226_v2 = vadd.f32 %v4147_v17, %v3572_v27  ;;  %v3061_v11 = vrot.slane %v5507_v51, 5  ;;  %v4655_v27 = vsel %vm1231_vm12, %v4623_v18, 0.0  ;;  %v3925_v5 = vshll.u32 %v6735_v52, 16 }
 0x24d   : > { %v4757_v18 = vsel %vm1231_vm12, %v4725_v28, 0.0  ;;  %v3918_v51 = vrot.slane %v3916_v50, 4  ;;  %v4057_v28 = vunpack.c.l.b16 %v3904_v19 }
 0x24e   : > { %v3496_v55 = vpop.f32.mrf.mxu2  ;;  %v3063_v43 = vrot.slane %v3061_v11, 4 }
 0x24f   : > { %v4545_v45 = vpop.f32.mrf.mxu0  ;;  %v6738_v48 = vpop.f32.mrf.mxu1  ;;  %v3573_v47 = vadd.f32 %v3496_v55, %v3286_v22  ;;  %v3914_v55 = vsel %vm5647_vm11, %v3909_v4, %v3913_v38  ;;  %v3931_v38 = vrot.slane %v3929_v35, 4 }
 0x250   : > { %5357 = vmatmul.msk.bf16.gmra.mxu3 %vm1231_vm12, %v4078_v23  ;;  %v4624_v30 = vadd.f32 %v4545_v45, %v4226_v2  ;;  %v5508_v2 = vld [vmem:[#allocation2 + $0x98] sm:$0x1]  ;;  %v4267_v45 = vld [vmem:[#allocation2 + $0x90] sm:$0xe] }
 0x251   : > { %v3064_v0 = vrot.slane %v5508_v2, 5  ;;  %v5374_v50 = vrot.slane %v4267_v45, 9 }
 0x252   : > { %v4656_v17 = vsel %vm1231_vm12, %v4624_v30, 0.0  ;;  %v4726_v21 = vmul.f32 %v4624_v30, %v4624_v30  ;;  %v4828_v49 = vpack.c.bf16 %v4624_v30, %v4624_v30  ;;  %5260 = vmatmul.msk.bf16.gmra.mxu1 %vm1231_vm12, %v3138_v20  ;;  %v4393_v20 = vrot.slane %v6693_v34, 5 }
 0x253   : > { %v4150_v23 = vpop.f32.mrf.mxu3  ;;  %v4657_v53 = vadd.f32 %v4656_v17, %v4655_v27  ;;  %v3921_v30 = vrot.slane %v3919_v56, 5  ;;  %v3287_v27 = vadd.f32 %v6706_v32, %v6300_v46  ;;  %v3065_v4 = vsel %vm6050_vm15, %v3063_v43, %v3064_v0  ;;  %v6765_v46 = vld [vmem:[#allocation2 + $0xa4] sm:$0x1] }
 0x254   : > { %v4758_v61 = vsel %vm1231_vm12, %v4726_v21, 0.0  ;;  %4860 = vst.msk [vmem:[%s6722_s17 + $0x4] sm:$0xf] %vm216_vm1, %v4828_v49  ;;  %v4227_v22 = vadd.f32 %v4150_v23, %v3573_v47  ;;  %v3062_v21 = vsel %vm6050_vm15, %v5244_v1, %v3061_v11  ;;  %v5443_v47 = vld [vmem:[#allocation2 + $0x90] sm:$0xff]  ;;  %v4058_v23 = vunpack.c.l.b16 %v3914_v55 }
 0x255   : > { %v4759_v25 = vadd.f32 %v4758_v61, %v4757_v18  ;;  %v6763_v34 = vrot.slane %v3925_v5, 5  ;;  %v4395_v32 = vrot.slane %v4393_v20, 4  ;;  %v4396_v11 = vrot.slane %v6715_v14, 5 }
 0x256   : > { %v3498_v17 = vpop.f32.mrf.mxu2  ;;  %v3118_v19 = vunpack.c.l.b16 %v3062_v21  ;;  %v3922_v56 = vor.u32 %v3921_v30, %v3918_v51  ;;  %v3119_v0 = vunpack.c.l.b16 %v3065_v4  ;;  %v4079_v61 = vpack.c.b16 %v4058_v23, %v4057_v28  ;;  %v3639_v21 = vld [vmem:[#allocation2 + $0xa8] sm:$0xf]  ;;  %v5509_v4 = vld [vmem:[#allocation2 + $0xa0] sm:$0xf] }
 0x257   : > { %v4548_v49 = vpop.f32.mrf.mxu0  ;;  %v6759_v2 = vpop.f32.mrf.mxu1  ;;  %v3574_v42 = vadd.f32 %v3498_v17, %v3287_v27  ;;  %v3935_v55 = vshll.u32 %v6765_v46, 16  ;;  %v4394_v30 = vsel %vm6050_vm15, %v5374_v50, %v4393_v20  ;;  %v3288_v27 = vadd.f32 %v6738_v48, %v6304_v24 }
 0x258   : > { %v4625_v29 = vadd.f32 %v4548_v49, %v4227_v22  ;;  %v3932_v22 = vor.u32 %v3931_v38, %v6763_v34  ;;  %v3139_v28 = vpack.c.b16 %v3119_v0, %v3118_v19  ;;  %v3068_v38 = vrot.slane %v5509_v4, 5 }
 0x259   : > { %v4400_v48 = vrot.slane %v6735_v52, 5  ;;  %v3940_v19 = vshrl.u32 %v3639_v21, 16  ;;  %v5510_v52 = vld [vmem:[#allocation2 + $0xa4] sm:$0x1] }
 0x25a   : > { %5390 = vmatmul.msk.bf16.gmra.mxu0 %vm1231_vm12, %v4476_v58  ;;  %v4658_v1 = vsel %vm1231_vm12, %v4625_v29, 0.0  ;;  %v4727_v18 = vmul.f32 %v4625_v29, %v4625_v29  ;;  %v4829_v43 = vpack.c.bf16 %v4625_v29, %v4625_v29  ;;  %v4397_v58 = vsel %vm6050_vm15, %v4395_v32, %v4396_v11  ;;  %v2930_v32 = vld [vmem:[#allocation2 + $0x9c] sm:$0xe]  ;;  %v6789_v11 = vld [vmem:[#allocation2 + $0xac] sm:$0xf] }
 0x25b   : > { %v4152_v5 = vpop.f32.mrf.mxu3  ;;  %v4659_v35 = vadd.f32 %v4658_v1, %v4657_v53  ;;  %5341 = vmatmul.msk.bf16.gmra.mxu2 %vm1231_vm12, %v5443_v47  ;;  %v3923_v53 = vrot.slane %v3922_v56, 4  ;;  %v3933_v23 = vrot.slane %v3932_v22, 4  ;;  %v4455_v29 = vunpack.c.l.b16 %v4394_v30 }
 0x25c   : > { %v4760_v14 = vsel %vm1231_vm12, %v4727_v18, 0.0  ;;  %4861 = vst.msk [vmem:[%s6722_s17 + $0x8] sm:$0xf] %vm216_vm1, %v4829_v43  ;;  %v4228_v45 = vadd.f32 %v4152_v5, %v3574_v42  ;;  %v4456_v42 = vunpack.c.l.b16 %v4397_v58  ;;  %v3943_v56 = vshll.u32 %v3639_v21, 16  ;;  %v7114_v21 = vld [vmem:[#allocation6_spill] sm:$0xff] }
 0x25d   : > { %v4761_v51 = vadd.f32 %v4760_v14, %v4759_v25  ;;  %v3937_v25 = vrot.slane %v3935_v55, 5  ;;  %v3928_v24 = vsel %vm5647_vm11, %v3923_v53, %v6763_v34  ;;  %v5245_v0 = vrot.slane %v2930_v32, 9  ;;  %v4268_v34 = vld [vmem:[#allocation2 + $0x9c] sm:$0xe] }
 0x25e   : > { %v3501_v17 = vpop.f32.mrf.mxu2  ;;  %v3070_v55 = vrot.slane %v3068_v38, 4  ;;  %v3071_v14 = vrot.slane %v5510_v52, 5  ;;  %v3949_v58 = vshll.u32 %v6789_v11, 16  ;;  %v3953_v53 = vshrl.u32 %v6789_v11, 16 }
 0x25f   : > { %v4550_v49 = vpop.f32.mrf.mxu0  ;;  %v6783_v47 = vpop.f32.mrf.mxu1  ;;  %v3575_v50 = vadd.f32 %v3501_v17, %v3288_v27  ;;  %v3938_v22 = vsel %vm5647_vm11, %v3933_v23, %v3937_v25  ;;  %v4477_v17 = vpack.c.b16 %v4456_v42, %v4455_v29  ;;  %v4059_v25 = vunpack.c.l.b16 %v3928_v24 }
 0x260   : > { %5358 = vmatmul.msk.bf16.gmra.mxu3 %vm1231_vm12, %v4079_v61  ;;  %v4626_v20 = vadd.f32 %v4550_v49, %v4228_v45  ;;  %v3289_v49 = vadd.f32 %v6759_v2, %v7114_v21  ;;  %v5375_v4 = vrot.slane %v4268_v34, 9  ;;  %v6809_v2 = vrot.slane %v3949_v58, 5  ;;  %v7115_v21 = vld [vmem:[#allocation7_spill] sm:$0xff] }
 0x261   : > { %v3955_v24 = vrot.slane %v3953_v53, 4 }
 0x262   : > { %v4660_v1 = vsel %vm1231_vm12, %v4626_v20, 0.0  ;;  %v4728_v18 = vmul.f32 %v4626_v20, %v4626_v20  ;;  %v4830_v43 = vpack.c.bf16 %v4626_v20, %v4626_v20  ;;  %5261 = vmatmul.msk.bf16.gmra.mxu1 %vm1231_vm12, %v3139_v28  ;;  %v3942_v28 = vrot.slane %v3940_v19, 4 }
 0x263   : > { %v4155_v5 = vpop.f32.mrf.mxu3  ;;  %v4661_v61 = vadd.f32 %v4660_v1, %v4659_v35  ;;  %v3945_v35 = vrot.slane %v3943_v56, 5  ;;  %v3069_v20 = vsel %vm6050_vm15, %v5245_v0, %v3068_v38  ;;  %v5444_v1 = vld [vmem:[#allocation2 + $0x9c] sm:$0xff]  ;;  %v6811_v56 = vld [vmem:[#allocation2 + $0xb0] sm:$0x1] }
 0x264   : > { %v4762_v45 = vsel %vm1231_vm12, %v4728_v18, 0.0  ;;  %4862 = vst.msk [vmem:[%s6722_s17 + $0xc] sm:$0xf] %vm216_vm1, %v4830_v43  ;;  %v4229_v30 = vadd.f32 %v4155_v5, %v3575_v50  ;;  %v4060_v50 = vunpack.c.l.b16 %v3938_v22  ;;  %v4402_v18 = vrot.slane %v4400_v48, 4 }
 0x265   : > { %v4763_v27 = vadd.f32 %v4762_v45, %v4761_v51  ;;  %v4403_v43 = vrot.slane %v6765_v46, 5  ;;  %v3072_v51 = vsel %vm6050_vm15, %v3070_v55, %v3071_v14  ;;  %v3120_v19 = vunpack.c.l.b16 %v3069_v20 }
 0x266   : > { %v3503_v23 = vpop.f32.mrf.mxu2  ;;  %v3946_v38 = vor.u32 %v3945_v35, %v3942_v28  ;;  %v3121_v52 = vunpack.c.l.b16 %v3072_v51  ;;  %v4080_v55 = vpack.c.b16 %v4060_v50, %v4059_v25  ;;  %v4401_v14 = vsel %vm6050_vm15, %v5375_v4, %v4400_v48  ;;  %v3642_v48 = vld [vmem:[#allocation2 + $0xb4] sm:$0xf]  ;;  %v6827_v4 = vld [vmem:[#allocation2 + $0xb8] sm:$0xf] }
 0x267   : > { %v4553_v32 = vpop.f32.mrf.mxu0  ;;  %v6805_v5 = vpop.f32.mrf.mxu1  ;;  %v3576_v42 = vadd.f32 %v3503_v23, %v3289_v49  ;;  %v3959_v28 = vshll.u32 %v6811_v56, 16  ;;  %v3290_v49 = vadd.f32 %v6783_v47, %v7115_v21 }
 0x268   : > { %v4627_v29 = vadd.f32 %v4553_v32, %v4229_v30  ;;  %v4404_v30 = vsel %vm6050_vm15, %v4402_v18, %v4403_v43  ;;  %v3140_v25 = vpack.c.b16 %v3121_v52, %v3120_v19  ;;  %v4457_v32 = vunpack.c.l.b16 %v4401_v14  ;;  %v5511_v18 = vld [vmem:[#allocation2 + $0xac] sm:$0xf] }
 0x269   : > { %v3075_v43 = vrot.slane %v5511_v18, 5  ;;  %v3964_v19 = vshrl.u32 %v3642_v48, 16 }
 0x26a   : > { %5391 = vmatmul.msk.bf16.gmra.mxu0 %vm1231_vm12, %v4477_v17  ;;  %v4662_v0 = vsel %vm1231_vm12, %v4627_v29, 0.0  ;;  %v4729_v46 = vmul.f32 %v4627_v29, %v4627_v29  ;;  %v4831_v22 = vpack.c.bf16 %v4627_v29, %v4627_v29  ;;  %v3956_v17 = vor.u32 %v3955_v24, %v6809_v2  ;;  %v2931_v24 = vld [vmem:[#allocation2 + $0xa8] sm:$0xe] }
 0x26b   : > { %v4157_v34 = vpop.f32.mrf.mxu3  ;;  %v4663_v45 = vadd.f32 %v4662_v0, %v4661_v61  ;;  %5342 = vmatmul.msk.bf16.gmra.mxu2 %vm1231_vm12, %v5444_v1  ;;  %v3947_v61 = vrot.slane %v3946_v38, 4  ;;  %v4458_v1 = vunpack.c.l.b16 %v4404_v30  ;;  %v3967_v38 = vshll.u32 %v3642_v48, 16  ;;  %v4269_v30 = vld [vmem:[#allocation2 + $0xa8] sm:$0xe] }
 0x26c   : > { %v4764_v58 = vsel %vm1231_vm12, %v4729_v46, 0.0  ;;  %4863 = vst.msk [vmem:[%s6722_s17 + $0x10] sm:$0xf] %vm216_vm1, %v4831_v22  ;;  %v4230_v53 = vadd.f32 %v4157_v34, %v3576_v42  ;;  %v3957_v29 = vrot.slane %v3956_v17, 4  ;;  %v3961_v42 = vrot.slane %v3959_v28, 5 }
 0x26d   : > { %v4765_v35 = vadd.f32 %v4764_v58, %v4763_v27  ;;  %v3952_v47 = vsel %vm5647_vm11, %v3947_v61, %v6809_v2  ;;  %v3973_v0 = vshll.u32 %v6827_v4, 16  ;;  %v3077_v58 = vrot.slane %v3075_v43, 4 }
 0x26e   : > { %v3506_v23 = vpop.f32.mrf.mxu2  ;;  %v3977_v2 = vshrl.u32 %v6827_v4, 16  ;;  %v3962_v21 = vsel %vm5647_vm11, %v3957_v29, %v3961_v42  ;;  %v3966_v48 = vrot.slane %v3964_v19, 4  ;;  %v4410_v42 = vrot.slane %v6811_v56, 5  ;;  %v6856_v19 = vld [vmem:[#allocation2 + $0xbc] sm:$0x1] }
 0x26f   : > { %v4555_v20 = vpop.f32.mrf.mxu0  ;;  %v6830_v50 = vpop.f32.mrf.mxu1  ;;  %v3577_v27 = vadd.f32 %v3506_v23, %v3290_v49  ;;  %v4407_v49 = vrot.slane %v6789_v11, 5 }
 0x270   : > { %5359 = vmatmul.msk.bf16.gmra.mxu3 %vm1231_vm12, %v4080_v55  ;;  %v4628_v51 = vadd.f32 %v4555_v20, %v4230_v53  ;;  %v5246_v55 = vrot.slane %v2931_v24, 9  ;;  %v5512_v53 = vld [vmem:[#allocation2 + $0xb0] sm:$0x1]  ;;  %v7116_v20 = vld [vmem:[#allocation8_spill] sm:$0xff]  ;;  %v4061_v24 = vunpack.c.l.b16 %v3952_v47 }
 0x271   : > { %v3078_v17 = vrot.slane %v5512_v53, 5  ;;  %v3291_v18 = vadd.f32 %v6805_v5, %v7116_v20  ;;  %v4409_v5 = vrot.slane %v4407_v49, 4  ;;  %v3645_v20 = vld [vmem:[#allocation2 + $0xc0] sm:$0xf] }
 0x272   : > { %v4664_v46 = vsel %vm1231_vm12, %v4628_v51, 0.0  ;;  %v4730_v22 = vmul.f32 %v4628_v51, %v4628_v51  ;;  %v4832_v34 = vpack.c.bf16 %v4628_v51, %v4628_v51  ;;  %5262 = vmatmul.msk.bf16.gmra.mxu1 %vm1231_vm12, %v3140_v25  ;;  %v4478_v25 = vpack.c.b16 %v4458_v1, %v4457_v32 }
 0x273   : > { %v4160_v52 = vpop.f32.mrf.mxu3  ;;  %v4665_v14 = vadd.f32 %v4664_v46, %v4663_v45  ;;  %v3969_v45 = vrot.slane %v3967_v38, 5  ;;  %v5376_v46 = vrot.slane %v4269_v30, 9  ;;  %v3079_v11 = vsel %vm6050_vm15, %v3077_v58, %v3078_v17 }
 0x274   : > { %v4766_v28 = vsel %vm1231_vm12, %v4730_v22, 0.0  ;;  %4864 = vst.msk [vmem:[%s6722_s17 + $0x14] sm:$0xf] %vm216_vm1, %v4832_v34  ;;  %v4231_v61 = vadd.f32 %v4160_v52, %v3577_v27  ;;  %v3076_v22 = vsel %vm6050_vm15, %v5246_v55, %v3075_v43  ;;  %v5445_v27 = vld [vmem:[#allocation2 + $0xa8] sm:$0xff]  ;;  %v4062_v52 = vunpack.c.l.b16 %v3962_v21 }
 0x275   : > { %v4767_v23 = vadd.f32 %v4766_v28, %v4765_v35  ;;  %v6853_v35 = vrot.slane %v3973_v0, 5  ;;  %v3979_v32 = vrot.slane %v3977_v2, 4  ;;  %v3122_v47 = vunpack.c.l.b16 %v3076_v22 }
 0x276   : > { %v3508_v51 = vpop.f32.mrf.mxu2  ;;  %v3970_v43 = vor.u32 %v3969_v45, %v3966_v48  ;;  %v3123_v0 = vunpack.c.l.b16 %v3079_v11  ;;  %v4081_v2 = vpack.c.b16 %v4062_v52, %v4061_v24  ;;  %v4408_v56 = vsel %vm6050_vm15, %v5376_v46, %v4407_v49  ;;  %v6872_v24 = vld [vmem:[#allocation2 + $0xc4] sm:$0xf]  ;;  %v5513_v11 = vld [vmem:[#allocation2 + $0xb8] sm:$0xf] }
 0x277   : > { %v4558_v34 = vpop.f32.mrf.mxu0  ;;  %v6849_v53 = vpop.f32.mrf.mxu1  ;;  %v3578_v29 = vadd.f32 %v3508_v51, %v3291_v18  ;;  %v3980_v28 = vor.u32 %v3979_v32, %v6853_v35  ;;  %v3983_v48 = vshll.u32 %v6856_v19, 16  ;;  %v3292_v18 = vadd.f32 %v6830_v50, %v6347_v63 }
 0x278   : > { %v4629_v1 = vadd.f32 %v4558_v34, %v4231_v61  ;;  %v3141_v49 = vpack.c.b16 %v3123_v0, %v3122_v47  ;;  %v4459_v22 = vunpack.c.l.b16 %v4408_v56  ;;  %v3082_v32 = vrot.slane %v5513_v11, 5 }
 0x279   : > { %v3981_v52 = vrot.slane %v3980_v28, 4  ;;  %v3991_v50 = vshll.u32 %v3645_v20, 16  ;;  %v3997_v47 = vshll.u32 %v6872_v24, 16  ;;  %v4414_v56 = vrot.slane %v6827_v4, 5 }
 0x27a   : > { %5392 = vmatmul.msk.bf16.gmra.mxu0 %vm1231_vm12, %v4478_v25  ;;  %v4666_v38 = vsel %vm1231_vm12, %v4629_v1, 0.0  ;;  %v4731_v55 = vmul.f32 %v4629_v1, %v4629_v1  ;;  %v4833_v30 = vpack.c.bf16 %v4629_v1, %v4629_v1  ;;  %v4411_v25 = vsel %vm6050_vm15, %v4409_v5, %v4410_v42  ;;  %v2932_v5 = vld [vmem:[#allocation2 + $0xb4] sm:$0xe] }
 0x27b   : > { %v4162_v58 = vpop.f32.mrf.mxu3  ;;  %v4667_v17 = vadd.f32 %v4666_v38, %v4665_v14  ;;  %5343 = vmatmul.msk.bf16.gmra.mxu2 %vm1231_vm12, %v5445_v27  ;;  %v3971_v14 = vrot.slane %v3970_v43, 4  ;;  %v4460_v34 = vunpack.c.l.b16 %v4411_v25  ;;  %v3988_v42 = vshrl.u32 %v3645_v20, 16 }
 0x27c   : > { %v4768_v61 = vsel %vm1231_vm12, %v4731_v55, 0.0  ;;  %4865 = vst.msk [vmem:[%s6722_s17 + $0x18] sm:$0xf] %vm216_vm1, %v4833_v30  ;;  %v4232_v21 = vadd.f32 %v4162_v58, %v3578_v29  ;;  %v3985_v29 = vrot.slane %v3983_v48, 5  ;;  %v4001_v43 = vshrl.u32 %v6872_v24, 16 }
 0x27d   : > { %v4769_v45 = vadd.f32 %v4768_v61, %v4767_v23  ;;  %v3976_v63 = vsel %vm5647_vm11, %v3971_v14, %v6853_v35  ;;  %v5247_v0 = vrot.slane %v2932_v5, 9  ;;  %v3084_v28 = vrot.slane %v3082_v32, 4  ;;  %v5514_v61 = vld [vmem:[#allocation2 + $0xbc] sm:$0x1]  ;;  %v4270_v14 = vld [vmem:[#allocation2 + $0xb4] sm:$0xe] }
 0x27e   : > { %v3511_v51 = vpop.f32.mrf.mxu2  ;;  %v3085_v35 = vrot.slane %v5514_v61, 5  ;;  %v3986_v48 = vsel %vm5647_vm11, %v3981_v52, %v3985_v29  ;;  %v3990_v20 = vrot.slane %v3988_v42, 4  ;;  %v3293_v4 = vadd.f32 %v6849_v53, %v6368_v40  ;;  %v6896_v5 = vld [vmem:[#allocation2 + $0xc8] sm:$0x1] }
 0x27f   : > { %v4560_v46 = vpop.f32.mrf.mxu0  ;;  %v6875_v27 = vpop.f32.mrf.mxu1  ;;  %v3579_v1 = vadd.f32 %v3511_v51, %v3292_v18  ;;  %v3993_v51 = vrot.slane %v3991_v50, 5  ;;  %v4063_v52 = vunpack.c.l.b16 %v3976_v63  ;;  %v4064_v29 = vunpack.c.l.b16 %v3986_v48 }
 0x280   : > { %5360 = vmatmul.msk.bf16.gmra.mxu3 %vm1231_vm12, %v4081_v2  ;;  %v4630_v23 = vadd.f32 %v4560_v46, %v4232_v21  ;;  %v4479_v46 = vpack.c.b16 %v4460_v34, %v4459_v22  ;;  %v5377_v42 = vrot.slane %v4270_v14, 9  ;;  %v3086_v50 = vsel %vm6050_vm15, %v3084_v28, %v3085_v35 }
 0x281   : > { %v4417_v40 = vrot.slane %v6856_v19, 5  ;;  %v3125_v28 = vunpack.c.l.b16 %v3086_v50  ;;  %v4082_v35 = vpack.c.b16 %v4064_v29, %v4063_v52 }
 0x282   : > { %v4668_v38 = vsel %vm1231_vm12, %v4630_v23, 0.0  ;;  %v4732_v55 = vmul.f32 %v4630_v23, %v4630_v23  ;;  %v4834_v30 = vpack.c.bf16 %v4630_v23, %v4630_v23  ;;  %5263 = vmatmul.msk.bf16.gmra.mxu1 %vm1231_vm12, %v3141_v49  ;;  %v6890_v49 = vrot.slane %v3997_v47, 5 }
 0x283   : > { %v4165_v58 = vpop.f32.mrf.mxu3  ;;  %v4669_v2 = vadd.f32 %v4668_v38, %v4667_v17  ;;  %v4003_v17 = vrot.slane %v4001_v43, 4  ;;  %v3083_v23 = vsel %vm6050_vm15, %v5247_v0, %v3082_v32  ;;  %v5446_v38 = vld [vmem:[#allocation2 + $0xb4] sm:$0xff]  ;;  %v4416_v47 = vrot.slane %v4414_v56, 4 }
 0x284   : > { %v4770_v21 = vsel %vm1231_vm12, %v4732_v55, 0.0  ;;  %4866 = vst.msk [vmem:[%s6722_s17 + $0x1c] sm:$0xf] %vm216_vm1, %v4834_v30  ;;  %v4233_v25 = vadd.f32 %v4165_v58, %v3579_v1  ;;  %v3124_v53 = vunpack.c.l.b16 %v3083_v23  ;;  %v3994_v32 = vor.u32 %v3993_v51, %v3990_v20 }
 0x285   : > { %v4771_v18 = vadd.f32 %v4770_v21, %v4769_v45  ;;  %v4004_v43 = vor.u32 %v4003_v17, %v6890_v49  ;;  %v4007_v55 = vshll.u32 %v6896_v5, 16  ;;  %v3294_v17 = vadd.f32 %v6875_v27, %v6374_v10 }
 0x286   : > { %v3513_v11 = vpop.f32.mrf.mxu2  ;;  %v3995_v14 = vrot.slane %v3994_v32, 4 }
 0x287   : > { %v4563_v1 = vpop.f32.mrf.mxu0  ;;  %v6898_v45 = vpop.f32.mrf.mxu1  ;;  %v3580_v34 = vadd.f32 %v3513_v11, %v3293_v4  ;;  %v4005_v20 = vrot.slane %v4004_v43, 4  ;;  %v4009_v51 = vrot.slane %v4007_v55, 5  ;;  %v3142_v4 = vpack.c.b16 %v3125_v28, %v3124_v53  ;;  %v3648_v11 = vld [vmem:[#allocation2 + $0xcc] sm:$0xf] }
 0x288   : > { %v4631_v22 = vadd.f32 %v4563_v1, %v4233_v25  ;;  %v4415_v25 = vsel %vm6050_vm15, %v5377_v42, %v4414_v56  ;;  %v2933_v42 = vld [vmem:[#allocation2 + $0xc0] sm:$0xe]  ;;  %v4000_v10 = vsel %vm5647_vm11, %v3995_v14, %v6890_v49  ;;  %v4015_v49 = vshll.u32 %v3648_v11, 16 }
 0x289   : > { %v4461_v52 = vunpack.c.l.b16 %v4415_v25  ;;  %v4010_v27 = vsel %vm5647_vm11, %v4005_v20, %v4009_v51  ;;  %v5248_v43 = vrot.slane %v2933_v42, 9  ;;  %v3295_v14 = vadd.f32 %v6898_v45, %v6388_v37  ;;  %v4271_v51 = vld [vmem:[#allocation2 + $0xc0] sm:$0xe] }
 0x28a   : > { %5393 = vmatmul.msk.bf16.gmra.mxu0 %vm1231_vm12, %v4479_v46  ;;  %v4670_v63 = vsel %vm1231_vm12, %v4631_v22, 0.0  ;;  %v4733_v30 = vmul.f32 %v4631_v22, %v4631_v22  ;;  %v4835_v58 = vpack.c.bf16 %v4631_v22, %v4631_v22  ;;  %v6925_v22 = vld [vmem:[#allocation2 + $0xd0] sm:$0xf]  ;;  %v5378_v42 = vrot.slane %v4271_v51, 9 }
 0x28b   : > { %v4167_v0 = vpop.f32.mrf.mxu3  ;;  %v4671_v61 = vadd.f32 %v4670_v63, %v4669_v2  ;;  %5344 = vmatmul.msk.bf16.gmra.mxu2 %vm1231_vm12, %v5446_v38  ;;  %v4418_v2 = vsel %vm6050_vm15, %v4416_v47, %v4417_v40  ;;  %v5515_v38 = vld [vmem:[#allocation2 + $0xc4] sm:$0xf] }
 0x28c   : > { %v4772_v19 = vsel %vm1231_vm12, %v4733_v30, 0.0  ;;  %4867 = vst.msk [vmem:[%s6722_s17 + $0x20] sm:$0xf] %vm216_vm1, %v4835_v58  ;;  %v4234_v21 = vadd.f32 %v4167_v0, %v3580_v34  ;;  %v3089_v56 = vrot.slane %v5515_v38, 5  ;;  %v4462_v50 = vunpack.c.l.b16 %v4418_v2  ;;  %v5516_v30 = vld [vmem:[#allocation2 + $0xc8] sm:$0x1] }
 0x28d   : > { %v4773_v48 = vadd.f32 %v4772_v19, %v4771_v18  ;;  %v4012_v34 = vshrl.u32 %v3648_v11, 16  ;;  %v3092_v58 = vrot.slane %v5516_v30, 5  ;;  %v4025_v19 = vshrl.u32 %v6925_v22, 16 }
 0x28e   : > { %v3516_v46 = vpop.f32.mrf.mxu2  ;;  %v3091_v63 = vrot.slane %v3089_v56, 4  ;;  %v4480_v25 = vpack.c.b16 %v4462_v50, %v4461_v52  ;;  %v3090_v2 = vsel %vm6050_vm15, %v5248_v43, %v3089_v56  ;;  %v4066_v11 = vunpack.c.l.b16 %v4010_v27 }
 0x28f   : > { %v4565_v23 = vpop.f32.mrf.mxu0  ;;  %v6918_v1 = vpop.f32.mrf.mxu1  ;;  %v3581_v29 = vadd.f32 %v3516_v46, %v3294_v17  ;;  %v4421_v17 = vrot.slane %v6872_v24, 5  ;;  %v4027_v45 = vrot.slane %v4025_v19, 4  ;;  %v4424_v24 = vrot.slane %v6896_v5, 5 }
 0x290   : > { %5361 = vmatmul.msk.bf16.gmra.mxu3 %vm1231_vm12, %v4082_v35  ;;  %v4632_v18 = vadd.f32 %v4565_v23, %v4234_v21  ;;  %v4021_v35 = vshll.u32 %v6925_v22, 16  ;;  %v3093_v38 = vsel %vm6050_vm15, %v3091_v63, %v3092_v58  ;;  %v3126_v50 = vunpack.c.l.b16 %v3090_v2 }
 0x291   : > { %v4423_v43 = vrot.slane %v4421_v17, 4 }
 0x292   : > { %v4672_v47 = vsel %vm1231_vm12, %v4632_v18, 0.0  ;;  %v4734_v40 = vmul.f32 %v4632_v18, %v4632_v18  ;;  %v4836_v53 = vpack.c.bf16 %v4632_v18, %v4632_v18  ;;  %5264 = vmatmul.msk.bf16.gmra.mxu1 %vm1231_vm12, %v3142_v4  ;;  %v5447_v4 = vld [vmem:[#allocation2 + $0xc0] sm:$0xff]  ;;  %v4017_v18 = vrot.slane %v4015_v49, 5 }
 0x293   : > { %v4170_v32 = vpop.f32.mrf.mxu3  ;;  %v4673_v55 = vadd.f32 %v4672_v47, %v4671_v61  ;;  %v4065_v61 = vunpack.c.l.b16 %v4000_v10  ;;  %v4023_v37 = vrot.slane %v4021_v35, 5  ;;  %v6942_v10 = vld [vmem:[#allocation2 + $0xd4] sm:$0x1] }
 0x294   : > { %v4774_v0 = vsel %vm1231_vm12, %v4734_v40, 0.0  ;;  %4868 = vst.msk [vmem:[%s6722_s17 + $0x24] sm:$0xf] %vm216_vm1, %v4836_v53  ;;  %v4235_v28 = vadd.f32 %v4170_v32, %v3581_v29  ;;  %v4031_v49 = vshll.u32 %v6942_v10, 16 }
 0x295   : > { %v4775_v21 = vadd.f32 %v4774_v0, %v4773_v48  ;;  %v4014_v48 = vrot.slane %v4012_v34, 4  ;;  %v3127_v34 = vunpack.c.l.b16 %v3093_v38  ;;  %v4083_v32 = vpack.c.b16 %v4066_v11, %v4065_v61 }
 0x296   : > { %v3518_v20 = vpop.f32.mrf.mxu2  ;;  %v4028_v58 = vor.u32 %v4027_v45, %v4023_v37 }
 0x297   : > { %v4568_v46 = vpop.f32.mrf.mxu0  ;;  %v3236_v23 = vpop.f32.mrf.mxu1  ;;  %v3582_v29 = vadd.f32 %v3518_v20, %v3295_v14  ;;  %v4018_v63 = vor.u32 %v4017_v18, %v4014_v48  ;;  %v3143_v19 = vpack.c.b16 %v3127_v34, %v3126_v50  ;;  %v4425_v14 = vsel %vm6050_vm15, %v4423_v43, %v4424_v24 }
 0x298   : > { %v4633_v52 = vadd.f32 %v4568_v46, %v4235_v28  ;;  %v3296_v28 = vadd.f32 %v6918_v1, %v6401_v16  ;;  %v4033_v46 = vrot.slane %v4031_v49, 5  ;;  %v4464_v11 = vunpack.c.l.b16 %v4425_v14 }
 0x299   : > { %v4019_v61 = vrot.slane %v4018_v63, 4  ;;  %v3297_v50 = vadd.f32 %v3236_v23, %v6416_v31 }
 0x29a   : > { %5394 = vmatmul.msk.bf16.gmra.mxu0 %vm1231_vm12, %v4480_v25  ;;  %v4674_v56 = vsel %vm1231_vm12, %v4633_v52, 0.0  ;;  %v4735_v27 = vmul.f32 %v4633_v52, %v4633_v52  ;;  %v4837_v47 = vpack.c.bf16 %v4633_v52, %v4633_v52 }
 0x29b   : > { %v4172_v40 = vpop.f32.mrf.mxu3  ;;  %v4675_v53 = vadd.f32 %v4674_v56, %v4673_v55  ;;  %5345 = vmatmul.msk.bf16.gmra.mxu2 %vm1231_vm12, %v5447_v4  ;;  %v4422_v55 = vsel %vm6050_vm15, %v5378_v42, %v4421_v17 }
 0x29c   : > { %v4776_v30 = vsel %vm1231_vm12, %v4735_v27, 0.0  ;;  %4869 = vst.msk [vmem:[%s6722_s17 + $0x28] sm:$0xf] %vm216_vm1, %v4837_v47  ;;  %v4236_v5 = vadd.f32 %v4172_v40, %v3582_v29  ;;  %v4463_v4 = vunpack.c.l.b16 %v4422_v55  ;;  %v4024_v29 = vsel %vm5647_vm11, %v4019_v61, %v4023_v37  ;;  %v5448_v47 = vld [vmem:[#allocation2 + $0xcc] sm:$0xff] }
 0x29d   : > { %v4777_v0 = vadd.f32 %v4776_v30, %v4775_v21  ;;  %v4029_v21 = vrot.slane %v4028_v58, 4  ;;  %v4067_v40 = vunpack.c.l.b16 %v4024_v29 }
 0x29e   : > { %v3521_v35 = vpop.f32.mrf.mxu2  ;;  %v4481_v24 = vpack.c.b16 %v4464_v11, %v4463_v4 }
 0x29f   : > { %v4570_v25 = vpop.f32.mrf.mxu0  ;;  %v3239_v20 = vpop.f32.mrf.mxu1  ;;  %v3583_v2 = vadd.f32 %v3521_v35, %v3296_v28  ;;  %v4034_v45 = vsel %vm5647_vm11, %v4029_v21, %v4033_v46  ;;  %v4431_v28 = vrot.slane %v6942_v10, 5 }
 0x2a0   : > { %5362 = vmatmul.msk.bf16.gmra.mxu3 %vm1231_vm12, %v4083_v32  ;;  %v4634_v51 = vadd.f32 %v4570_v25, %v4236_v5  ;;  %v4068_v34 = vunpack.c.l.b16 %v4034_v45  ;;  %v4428_v32 = vrot.slane %v6925_v22, 5 }
 0x2a2   : > { %v4676_v16 = vsel %vm1231_vm12, %v4634_v51, 0.0  ;;  %v4736_v1 = vmul.f32 %v4634_v51, %v4634_v51  ;;  %v4838_v17 = vpack.c.bf16 %v4634_v51, %v4634_v51  ;;  %5265 = vmatmul.msk.bf16.gmra.mxu1 %vm1231_vm12, %v3143_v19  ;;  %v4084_v49 = vpack.c.b16 %v4068_v34, %v4067_v40 }
 0x2a3   : > { %v4175_v38 = vpop.f32.mrf.mxu3  ;;  %v4677_v48 = vadd.f32 %v4676_v16, %v4675_v53  ;;  %v4272_v53 = vld [vmem:[#allocation2 + $0xcc] sm:$0xe]  ;;  %v3298_v19 = vadd.f32 %v3239_v20, %v6433_v13 }
 0x2a4   : > { %v4778_v18 = vsel %vm1231_vm12, %v4736_v1, 0.0  ;;  %4870 = vst.msk [vmem:[%s6722_s17 + $0x2c] sm:$0xf] %vm216_vm1, %v4838_v17  ;;  %v4237_v52 = vadd.f32 %v4175_v38, %v3583_v2  ;;  %v5379_v31 = vrot.slane %v4272_v53, 9 }
 0x2a5   : > { %v4779_v42 = vadd.f32 %v4778_v18, %v4777_v0  ;;  %v4430_v0 = vrot.slane %v4428_v32, 4 }
 0x2a6   : > { %v3523_v56 = vpop.f32.mrf.mxu2  ;;  %v4429_v25 = vsel %vm6050_vm15, %v5379_v31, %v4428_v32 }
 0x2a7   : > { %v4573_v27 = vpop.f32.mrf.mxu0  ;;  %v3241_v43 = vpop.f32.mrf.mxu1  ;;  %v3584_v30 = vadd.f32 %v3523_v56, %v3297_v50  ;;  %v4432_v51 = vsel %vm6050_vm15, %v4430_v0, %v4431_v28  ;;  %v4465_v46 = vunpack.c.l.b16 %v4429_v25 }
 0x2a8   : > { %v4635_v63 = vadd.f32 %v4573_v27, %v4237_v52  ;;  %v4466_v13 = vunpack.c.l.b16 %v4432_v51  ;;  %v3299_v18 = vadd.f32 %v3241_v43, %v6445_v39 }
 0x2aa   : > { %5395 = vmatmul.msk.bf16.gmra.mxu0 %vm1231_vm12, %v4481_v24  ;;  %v4678_v36 = vsel %vm1231_vm12, %v4635_v63, 0.0  ;;  %v4737_v37 = vmul.f32 %v4635_v63, %v4635_v63  ;;  %v4839_v5 = vpack.c.bf16 %v4635_v63, %v4635_v63  ;;  %v4482_v6 = vpack.c.b16 %v4466_v13, %v4465_v46 }
 0x2ab   : > { %v4177_v58 = vpop.f32.mrf.mxu3  ;;  %v4679_v23 = vadd.f32 %v4678_v36, %v4677_v48  ;;  %5346 = vmatmul.msk.bf16.gmra.mxu2 %vm1231_vm12, %v5448_v47 }
 0x2ac   : > { %v4780_v22 = vsel %vm1231_vm12, %v4737_v37, 0.0  ;;  %4871 = vst.msk [vmem:[%s6722_s17 + $0x30] sm:$0xf] %vm216_vm1, %v4839_v5  ;;  %v4238_v55 = vadd.f32 %v4177_v58, %v3584_v30 }
 0x2ad   : > { %v4781_v35 = vadd.f32 %v4780_v22, %v4779_v42 }
 0x2ae   : > { %v3526_v14 = vpop.f32.mrf.mxu2 }
 0x2af   : > { %v4575_v61 = vpop.f32.mrf.mxu0  ;;  %v3244_v10 = vpop.f32.mrf.mxu1  ;;  %v3585_v21 = vadd.f32 %v3526_v14, %v3298_v19 }
 0x2b0   : > { %5363 = vmatmul.msk.bf16.gmra.mxu3 %vm1231_vm12, %v4084_v49  ;;  %v4636_v2 = vadd.f32 %v4575_v61, %v4238_v55  ;;  %v3300_v32 = vadd.f32 %v3244_v10, %v6462_v59 }
 0x2b2   : > { %v4680_v4 = vsel %vm1231_vm12, %v4636_v2, 0.0  ;;  %v4738_v16 = vmul.f32 %v4636_v2, %v4636_v2  ;;  %v4840_v1 = vpack.c.bf16 %v4636_v2, %v4636_v2 }
 0x2b3   : > { %v4180_v20 = vpop.f32.mrf.mxu3  ;;  %v4681_v17 = vadd.f32 %v4680_v4, %v4679_v23 }
 0x2b4   : > { %v4782_v11 = vsel %vm1231_vm12, %v4738_v16, 0.0  ;;  %4872 = vst.msk [vmem:[%s6722_s17 + $0x34] sm:$0xf] %vm216_vm1, %v4840_v1  ;;  %v4239_v38 = vadd.f32 %v4180_v20, %v3585_v21 }
 0x2b5   : > { %v4783_v48 = vadd.f32 %v4782_v11, %v4781_v35 }
 0x2b6   : > { %v3528_v52 = vpop.f32.mrf.mxu2 }
 0x2b7   : > { %v4578_v29 = vpop.f32.mrf.mxu0  ;;  %v3246_v45 = vpop.f32.mrf.mxu1  ;;  %v3586_v24 = vadd.f32 %v3528_v52, %v3299_v18 }
 0x2b8   : > { %v4637_v42 = vadd.f32 %v4578_v29, %v4239_v38  ;;  %v3301_v59 = vadd.f32 %v3246_v45, %v6478_v8 }
 0x2ba   : > { %5396 = vmatmul.msk.bf16.gmra.mxu0 %vm1231_vm12, %v4482_v6  ;;  %v4682_v50 = vsel %vm1231_vm12, %v4637_v42, 0.0  ;;  %v4739_v56 = vmul.f32 %v4637_v42, %v4637_v42  ;;  %v4841_v27 = vpack.c.bf16 %v4637_v42, %v4637_v42 }
 0x2bb   : > { %v4182_v47 = vpop.f32.mrf.mxu3  ;;  %v4683_v40 = vadd.f32 %v4682_v50, %v4681_v17 }
 0x2bc   : > { %v4784_v34 = vsel %vm1231_vm12, %v4739_v56, 0.0  ;;  %4873 = vst.msk [vmem:[%s6722_s17 + $0x38] sm:$0xf] %vm216_vm1, %v4841_v27  ;;  %v4240_v53 = vadd.f32 %v4182_v47, %v3586_v24 }
 0x2bd   : > { %v4785_v39 = vadd.f32 %v4784_v34, %v4783_v48 }
 0x2be   : > { %v3531_v43 = vpop.f32.mrf.mxu2 }
 0x2bf   : > { %v4580_v63 = vpop.f32.mrf.mxu0  ;;  %v3249_v30 = vpop.f32.mrf.mxu1  ;;  %v3587_v37 = vadd.f32 %v3531_v43, %v3300_v32 }
 0x2c0   : > { %v4638_v36 = vadd.f32 %v4580_v63, %v4240_v53  ;;  %v3302_v8 = vadd.f32 %v3249_v30, %v6495_v60 }
 0x2c2   : > { %v4684_v5 = vsel %vm1231_vm12, %v4638_v36, 0.0  ;;  %v4740_v58 = vmul.f32 %v4638_v36, %v4638_v36  ;;  %v4842_v31 = vpack.c.bf16 %v4638_v36, %v4638_v36 }
 0x2c3   : > { %v4185_v23 = vpop.f32.mrf.mxu3  ;;  %v4685_v49 = vadd.f32 %v4684_v5, %v4683_v40 }
 0x2c4   : > { %v4786_v0 = vsel %vm1231_vm12, %v4740_v58, 0.0  ;;  %4874 = vst.msk [vmem:[%s6722_s17 + $0x3c] sm:$0xf] %vm216_vm1, %v4842_v31  ;;  %v4241_v28 = vadd.f32 %v4185_v23, %v3587_v37 }
 0x2c5   : > { %v4787_v22 = vadd.f32 %v4786_v0, %v4785_v39 }
 0x2c6   : > { %v3533_v55 = vpop.f32.mrf.mxu2 }
 0x2c7   : > { %v4583_v35 = vpop.f32.mrf.mxu0  ;;  %v3251_v19 = vpop.f32.mrf.mxu1  ;;  %v3588_v14 = vadd.f32 %v3533_v55, %v3301_v59 }
 0x2c8   : > { %v4639_v25 = vadd.f32 %v4583_v35, %v4241_v28  ;;  %v3303_v60 = vadd.f32 %v3251_v19, %v6507_v26 }
 0x2ca   : > { %v4686_v61 = vsel %vm1231_vm12, %v4639_v25, 0.0  ;;  %v4741_v51 = vmul.f32 %v4639_v25, %v4639_v25  ;;  %v4843_v10 = vpack.c.bf16 %v4639_v25, %v4639_v25 }
 0x2cb   : > { %v4187_v2 = vpop.f32.mrf.mxu3  ;;  %v4687_v21 = vadd.f32 %v4686_v61, %v4685_v49 }
 0x2cc   : > { %v4788_v46 = vsel %vm1231_vm12, %v4741_v51, 0.0  ;;  %4875 = vst.msk [vmem:[%s6722_s17 + $0x40] sm:$0xf] %vm216_vm1, %v4843_v10  ;;  %v4242_v4 = vadd.f32 %v4187_v2, %v3588_v14 }
 0x2cd   : > { %v4789_v16 = vadd.f32 %v4788_v46, %v4787_v22 }
 0x2ce   : > { %v3536_v1 = vpop.f32.mrf.mxu2 }
 0x2cf   : > { %v4585_v13 = vpop.f32.mrf.mxu0  ;;  %v3254_v20 = vpop.f32.mrf.mxu1  ;;  %v3589_v11 = vadd.f32 %v3536_v1, %v3302_v8 }
 0x2d0   : > { %v4640_v17 = vadd.f32 %v4585_v13, %v4242_v4  ;;  %v3304_v26 = vadd.f32 %v3254_v20, %v6524_v15 }
 0x2d2   : > { %v4688_v38 = vsel %vm1231_vm12, %v4640_v17, 0.0  ;;  %v4742_v48 = vmul.f32 %v4640_v17, %v4640_v17  ;;  %v4844_v6 = vpack.c.bf16 %v4640_v17, %v4640_v17 }
 0x2d3   : > { %v4190_v18 = vpop.f32.mrf.mxu3  ;;  %v4689_v52 = vadd.f32 %v4688_v38, %v4687_v21 }
 0x2d4   : > { %v4790_v29 = vsel %vm1231_vm12, %v4742_v48, 0.0  ;;  %4876 = vst.msk [vmem:[%s6722_s17 + $0x44] sm:$0xf] %vm216_vm1, %v4844_v6  ;;  %v4243_v45 = vadd.f32 %v4190_v18, %v3589_v11 }
 0x2d5   : > { %v4791_v42 = vadd.f32 %v4790_v29, %v4789_v16 }
 0x2d6   : > { %v3538_v24 = vpop.f32.mrf.mxu2 }
 0x2d7   : > { %v4588_v50 = vpop.f32.mrf.mxu0  ;;  %v3256_v56 = vpop.f32.mrf.mxu1  ;;  %v3590_v47 = vadd.f32 %v3538_v24, %v3303_v60 }
 0x2d8   : > { %v4641_v27 = vadd.f32 %v4588_v50, %v4243_v45  ;;  %v3305_v15 = vadd.f32 %v3256_v56, %v6540_v57 }
 0x2da   : > { %v4690_v40 = vsel %vm1231_vm12, %v4641_v27, 0.0  ;;  %v4743_v34 = vmul.f32 %v4641_v27, %v4641_v27  ;;  %v4845_v53 = vpack.c.bf16 %v4641_v27, %v4641_v27 }
 0x2db   : > { %v4192_v39 = vpop.f32.mrf.mxu3  ;;  %v4691_v32 = vadd.f32 %v4690_v40, %v4689_v52 }
 0x2dc   : > { %v4792_v43 = vsel %vm1231_vm12, %v4743_v34, 0.0  ;;  %4877 = vst.msk [vmem:[%s6722_s17 + $0x48] sm:$0xf] %vm216_vm1, %v4845_v53  ;;  %v4244_v63 = vadd.f32 %v4192_v39, %v3590_v47 }
 0x2dd   : > { %v4793_v30 = vadd.f32 %v4792_v43, %v4791_v42 }
 0x2de   : > { %v3541_v36 = vpop.f32.mrf.mxu2 }
 0x2df   : > { %v4590_v37 = vpop.f32.mrf.mxu0  ;;  %v3259_v5 = vpop.f32.mrf.mxu1  ;;  %v3591_v31 = vadd.f32 %v3541_v36, %v3304_v26 }
 0x2e0   : > { %v4642_v58 = vadd.f32 %v4590_v37, %v4244_v63  ;;  %v3306_v57 = vadd.f32 %v3259_v5, %v6557_v44 }
 0x2e2   : > { %v4692_v23 = vsel %vm1231_vm12, %v4642_v58, 0.0  ;;  %v4744_v49 = vmul.f32 %v4642_v58, %v4642_v58  ;;  %v4846_v0 = vpack.c.bf16 %v4642_v58, %v4642_v58 }
 0x2e3   : > { %v4195_v28 = vpop.f32.mrf.mxu3  ;;  %v4693_v22 = vadd.f32 %v4692_v23, %v4691_v32 }
 0x2e4   : > { %v4794_v59 = vsel %vm1231_vm12, %v4744_v49, 0.0  ;;  %4878 = vst.msk [vmem:[%s6722_s17 + $0x4c] sm:$0xf] %vm216_vm1, %v4846_v0  ;;  %v4245_v55 = vadd.f32 %v4195_v28, %v3591_v31 }
 0x2e5   : > { %v4795_v35 = vadd.f32 %v4794_v59, %v4793_v30 }
 0x2e6   : > { %v3543_v19 = vpop.f32.mrf.mxu2 }
 0x2e7   : > { %v4593_v25 = vpop.f32.mrf.mxu0  ;;  %v3261_v14 = vpop.f32.mrf.mxu1  ;;  %v3592_v51 = vadd.f32 %v3543_v19, %v3305_v15 }
 0x2e8   : > { %v4643_v61 = vadd.f32 %v4593_v25, %v4245_v55  ;;  %v3307_v44 = vadd.f32 %v3261_v14, %v6569_v41 }
 0x2ea   : > { %v4694_v10 = vsel %vm1231_vm12, %v4643_v61, 0.0  ;;  %v4745_v2 = vmul.f32 %v4643_v61, %v4643_v61  ;;  %v4847_v21 = vpack.c.bf16 %v4643_v61, %v4643_v61 }
 0x2eb   : > { %v4197_v46 = vpop.f32.mrf.mxu3  ;;  %v4695_v4 = vadd.f32 %v4694_v10, %v4693_v22 }
 0x2ec   : > { %v4796_v16 = vsel %vm1231_vm12, %v4745_v2, 0.0  ;;  %4879 = vst.msk [vmem:[%s6722_s17 + $0x50] sm:$0xf] %vm216_vm1, %v4847_v21  ;;  %v4246_v8 = vadd.f32 %v4197_v46, %v3592_v51 }
 0x2ed   : > { %v4797_v1 = vadd.f32 %v4796_v16, %v4795_v35 }
 0x2ee   : > { %v3546_v13 = vpop.f32.mrf.mxu2 }
 0x2ef   : > { %v4595_v20 = vpop.f32.mrf.mxu0  ;;  %v3264_v17 = vpop.f32.mrf.mxu1  ;;  %v3593_v38 = vadd.f32 %v3546_v13, %v3306_v57 }
 0x2f0   : > { %v4644_v11 = vadd.f32 %v4595_v20, %v4246_v8  ;;  %v3308_v41 = vadd.f32 %v3264_v17, %v6586_v33 }
 0x2f2   : > { %v4696_v48 = vsel %vm1231_vm12, %v4644_v11, 0.0  ;;  %v4746_v6 = vmul.f32 %v4644_v11, %v4644_v11  ;;  %v4848_v18 = vpack.c.bf16 %v4644_v11, %v4644_v11 }
 0x2f3   : > { %v4200_v52 = vpop.f32.mrf.mxu3  ;;  %v4697_v29 = vadd.f32 %v4696_v48, %v4695_v4 }
 0x2f4   : > { %v4798_v45 = vsel %vm1231_vm12, %v4746_v6, 0.0  ;;  %4880 = vst.msk [vmem:[%s6722_s17 + $0x54] sm:$0xf] %vm216_vm1, %v4848_v18  ;;  %v4247_v42 = vadd.f32 %v4200_v52, %v3593_v38 }
 0x2f5   : > { %v4799_v60 = vadd.f32 %v4798_v45, %v4797_v1 }
 0x2f6   : > { %v3548_v24 = vpop.f32.mrf.mxu2 }
 0x2f7   : > { %v4598_v50 = vpop.f32.mrf.mxu0  ;;  %v3266_v56 = vpop.f32.mrf.mxu1  ;;  %v3594_v47 = vadd.f32 %v3548_v24, %v3307_v44 }
 0x2f8   : > { %v4645_v27 = vadd.f32 %v4598_v50, %v4247_v42  ;;  %v3309_v33 = vadd.f32 %v3266_v56, %v6600_v12 }
 0x2fa   : > { %v4698_v40 = vsel %vm1231_vm12, %v4645_v27, 0.0  ;;  %v4747_v34 = vmul.f32 %v4645_v27, %v4645_v27  ;;  %v4849_v53 = vpack.c.bf16 %v4645_v27, %v4645_v27 }
 0x2fb   : > { %v4202_v39 = vpop.f32.mrf.mxu3  ;;  %v4699_v32 = vadd.f32 %v4698_v40, %v4697_v29 }
 0x2fc   : > { %v4800_v43 = vsel %vm1231_vm12, %v4747_v34, 0.0  ;;  %4881 = vst.msk [vmem:[%s6722_s17 + $0x58] sm:$0xf] %vm216_vm1, %v4849_v53  ;;  %v4248_v63 = vadd.f32 %v4202_v39, %v3594_v47 }
 0x2fd   : > { %v4801_v30 = vadd.f32 %v4800_v43, %v4799_v60 }
 0x2fe   : > { %v3551_v26 = vpop.f32.mrf.mxu2 }
 0x2ff   : > { %v4600_v36 = vpop.f32.mrf.mxu0  ;;  %v3595_v5 = vadd.f32 %v3551_v26, %v3308_v41  ;;  %v3269_v58 = vpop.f32.mrf.mxu1 }
 0x300   : > { %v4646_v37 = vadd.f32 %v4600_v36, %v4248_v63  ;;  %v3310_v12 = vadd.f32 %v3269_v58, %v6617_v62 }
 0x302   : > { %v4700_v31 = vsel %vm1231_vm12, %v4646_v37, 0.0  ;;  %v4748_v23 = vmul.f32 %v4646_v37, %v4646_v37  ;;  %v4850_v49 = vpack.c.bf16 %v4646_v37, %v4646_v37 }
 0x303   : > { %v4205_v0 = vpop.f32.mrf.mxu3  ;;  %v4701_v28 = vadd.f32 %v4700_v31, %v4699_v32 }
 0x304   : > { %v4802_v22 = vsel %vm1231_vm12, %v4748_v23, 0.0  ;;  %4882 = vst.msk [vmem:[%s6722_s17 + $0x5c] sm:$0xf] %vm216_vm1, %v4850_v49  ;;  %v4249_v59 = vadd.f32 %v4205_v0, %v3595_v5  ;;  %v7117_v49 = vld [vmem:[#allocation3_spill] sm:$0xff] }
 0x305   : > { %v4803_v55 = vadd.f32 %v4802_v22, %v4801_v30 }
 0x306   : > { %v3553_v35 = vpop.f32.mrf.mxu2 }
 0x307   : > { %v4603_v15 = vpop.f32.mrf.mxu0  ;;  %v3596_v25 = vadd.f32 %v3553_v35, %v3309_v33  ;;  %v3271_v21 = vpop.f32.mrf.mxu1 }
 0x308   : > { %v4647_v19 = vadd.f32 %v4603_v15, %v4249_v59  ;;  %v3311_v62 = vadd.f32 %v3271_v21, %v6631_v3 }
 0x30a   : > { %v4702_v14 = vsel %vm1231_vm12, %v4647_v19, 0.0  ;;  %v4749_v61 = vmul.f32 %v4647_v19, %v4647_v19  ;;  %v4851_v51 = vpack.c.bf16 %v4647_v19, %v4647_v19 }
 0x30b   : > { %v4207_v10 = vpop.f32.mrf.mxu3  ;;  %v4703_v2 = vadd.f32 %v4702_v14, %v4701_v28 }
 0x30c   : > { %v4804_v46 = vsel %vm1231_vm12, %v4749_v61, 0.0  ;;  %4883 = vst.msk [vmem:[%s6722_s17 + $0x60] sm:$0xf] %vm216_vm1, %v4851_v51  ;;  %v4250_v4 = vadd.f32 %v4207_v10, %v3596_v25 }
 0x30d   : > { %v4805_v16 = vadd.f32 %v4804_v46, %v4803_v55 }
 0x30e   : > { %v3556_v8 = vpop.f32.mrf.mxu2 }
 0x30f   : > { %v4605_v1 = vpop.f32.mrf.mxu0  ;;  %v3597_v13 = vadd.f32 %v3556_v8, %v3310_v12  ;;  %v3274_v29 = vpop.f32.mrf.mxu1 }
 0x310   : > { %v4648_v57 = vadd.f32 %v4605_v1, %v4250_v4  ;;  %v3312_v39 = vadd.f32 %v3274_v29, %v6648_v7 }
 0x312   : > { %v4704_v20 = vsel %vm1231_vm12, %v4648_v57, 0.0  ;;  %v4750_v17 = vmul.f32 %v4648_v57, %v4648_v57  ;;  %v4852_v11 = vpack.c.bf16 %v4648_v57, %v4648_v57 }
 0x313   : > { %v4210_v38 = vpop.f32.mrf.mxu3  ;;  %v4705_v48 = vadd.f32 %v4704_v20, %v4703_v2 }
 0x314   : > { %v4806_v6 = vsel %vm1231_vm12, %v4750_v17, 0.0  ;;  %4884 = vst.msk [vmem:[%s6722_s17 + $0x64] sm:$0xf] %vm216_vm1, %v4852_v11  ;;  %v4251_v18 = vadd.f32 %v4210_v38, %v3597_v13 }
 0x315   : > { %v4807_v52 = vadd.f32 %v4806_v6, %v4805_v16 }
 0x316   : > { %v3558_v45 = vpop.f32.mrf.mxu2 }
 0x317   : > { %v4608_v42 = vpop.f32.mrf.mxu0  ;;  %v3598_v44 = vadd.f32 %v3558_v45, %v3311_v62  ;;  %v3276_v43 = vpop.f32.mrf.mxu1 }
 0x318   : > { %v4649_v60 = vadd.f32 %v4608_v42, %v4251_v18  ;;  %v3313_v7 = vadd.f32 %v3276_v43, %v7117_v49 }
 0x31a   : > { %v4706_v24 = vsel %vm1231_vm12, %v4649_v60, 0.0  ;;  %v4751_v50 = vmul.f32 %v4649_v60, %v4649_v60  ;;  %v4853_v56 = vpack.c.bf16 %v4649_v60, %v4649_v60 }
 0x31b   : > { %v4212_v27 = vpop.f32.mrf.mxu3  ;;  %v4707_v47 = vadd.f32 %v4706_v24, %v4705_v48 }
 0x31c   : > { %v4808_v40 = vsel %vm1231_vm12, %v4751_v50, 0.0  ;;  %4885 = vst.msk [vmem:[%s6722_s17 + $0x68] sm:$0xf] %vm216_vm1, %v4853_v56  ;;  %v4252_v34 = vadd.f32 %v4212_v27, %v3598_v44 }
 0x31d   : > { %v4809_v53 = vadd.f32 %v4808_v40, %v4807_v52 }
 0x31e   : > { %v3561_v3 = vpop.f32.mrf.mxu2 }
 0x31f   : > { %v4610_v32 = vpop.f32.mrf.mxu0  ;;  %v3599_v30 = vadd.f32 %v3561_v3, %v3312_v39  ;;  %v3279_v55 = vpop.f32.mrf.mxu1 }
 0x320   : > { %v4650_v63 = vadd.f32 %v4610_v32, %v4252_v34  ;;  %v3314_v10 = vadd.f32 %v3279_v55, %v6681_v54 }
 0x322   : > { %v4708_v41 = vsel %vm1231_vm12, %v4650_v63, 0.0  ;;  %v4752_v26 = vmul.f32 %v4650_v63, %v4650_v63  ;;  %v4854_v36 = vpack.c.bf16 %v4650_v63, %v4650_v63 }
 0x323   : > { %v4215_v37 = vpop.f32.mrf.mxu3  ;;  %v4709_v5 = vadd.f32 %v4708_v41, %v4707_v47 }
 0x324   : > { %v4810_v58 = vsel %vm1231_vm12, %v4752_v26, 0.0  ;;  %4886 = vst.msk [vmem:[%s6722_s17 + $0x6c] sm:$0xf] %vm216_vm1, %v4854_v36  ;;  %v4253_v31 = vadd.f32 %v4215_v37, %v3599_v30 }
 0x325   : > { %v4811_v23 = vadd.f32 %v4810_v58, %v4809_v53 }
 0x326   : > { %v3563_v0 = vpop.f32.mrf.mxu2 }
 0x327   : > { %v4613_v28 = vpop.f32.mrf.mxu0  ;;  %v3600_v59 = vadd.f32 %v3563_v0, %v3313_v7  ;;  %v3281_v13 = vpop.f32.mrf.mxu1 }
 0x328   : > { %v4651_v22 = vadd.f32 %v4613_v28, %v4253_v31  ;;  %v3315_v54 = vadd.f32 %v3281_v13, %v6695_v9 }
 0x32a   : > { %v4710_v33 = vsel %vm1231_vm12, %v4651_v22, 0.0  ;;  %v4753_v35 = vmul.f32 %v4651_v22, %v4651_v22  ;;  %v4855_v15 = vpack.c.bf16 %v4651_v22, %v4651_v22 }
 0x32b   : > { %v4217_v19 = vpop.f32.mrf.mxu3  ;;  %v4711_v25 = vadd.f32 %v4710_v33, %v4709_v5 }
 0x32c   : > { %v4812_v14 = vsel %vm1231_vm12, %v4753_v35, 0.0  ;;  %4887 = vst.msk [vmem:[%s6722_s17 + $0x70] sm:$0xf] %vm216_vm1, %v4855_v15  ;;  %v4254_v61 = vadd.f32 %v4217_v19, %v3600_v59 }
 0x32d   : > { %v4813_v51 = vadd.f32 %v4812_v14, %v4811_v23 }
 0x32e   : > { %v3566_v2 = vpop.f32.mrf.mxu2 }
 0x32f   : > { %v4615_v21 = vpop.f32.mrf.mxu0  ;;  %v3601_v4 = vadd.f32 %v3566_v2, %v3314_v10 }
 0x330   : > { %v4652_v46 = vadd.f32 %v4615_v21, %v4254_v61 }
 0x332   : > { %v4712_v16 = vsel %vm1231_vm12, %v4652_v46, 0.0  ;;  %v4754_v12 = vmul.f32 %v4652_v46, %v4652_v46  ;;  %v4856_v8 = vpack.c.bf16 %v4652_v46, %v4652_v46 }
 0x333   : > { %v4220_v1 = vpop.f32.mrf.mxu3  ;;  %v4713_v57 = vadd.f32 %v4712_v16, %v4711_v25 }
 0x334   : > { %v4814_v20 = vsel %vm1231_vm12, %v4754_v12, 0.0  ;;  %4888 = vst.msk [vmem:[%s6722_s17 + $0x74] sm:$0xf] %vm216_vm1, %v4856_v8  ;;  %v4255_v17 = vadd.f32 %v4220_v1, %v3601_v4 }
 0x335   : > { %v4815_v11 = vadd.f32 %v4814_v20, %v4813_v51 }
 0x336   : > { %v3568_v38 = vpop.f32.mrf.mxu2 }
 0x337   : > { %v4618_v48 = vpop.f32.mrf.mxu0  ;;  %v3602_v18 = vadd.f32 %v3568_v38, %v3315_v54 }
 0x338   : > { %v4653_v6 = vadd.f32 %v4618_v48, %v4255_v17 }
 0x33a   : > { %v4714_v52 = vsel %vm1231_vm12, %v4653_v6, 0.0  ;;  %v4755_v29 = vmul.f32 %v4653_v6, %v4653_v6  ;;  %v4857_v62 = vpack.c.bf16 %v4653_v6, %v4653_v6 }
 0x33b   : > { %v4715_v45 = vadd.f32 %v4714_v52, %v4713_v57  ;;  %v4222_v42 = vpop.f32.mrf.mxu3 }
 0x33c   : > { %v4816_v60 = vsel %vm1231_vm12, %v4755_v29, 0.0  ;;  %4889 = vst.msk [vmem:[%s6722_s17 + $0x78] sm:$0xf] %vm216_vm1, %v4857_v62  ;;  %v4256_v44 = vadd.f32 %v4222_v42, %v3602_v18 }
 0x33d   : > { %v4817_v24 = vadd.f32 %v4816_v60, %v4815_v11 }
 0x33f   : > { %v4620_v50 = vpop.f32.mrf.mxu0 }
 0x340   : > { %v4654_v56 = vadd.f32 %v4620_v50, %v4256_v44 }
 0x342   : > { %v4716_v9 = vsel %vm1231_vm12, %v4654_v56, 0.0  ;;  %v4756_v27 = vmul.f32 %v4654_v56, %v4654_v56  ;;  %v4858_v47 = vpack.c.bf16 %v4654_v56, %v4654_v56 }
 0x343   : > { %v4717_v40 = vadd.f32 %v4716_v9, %v4715_v45 }
 0x344   : > { %v4818_v34 = vsel %vm1231_vm12, %v4756_v27, 0.0  ;;  %4890 = vst.msk [vmem:[%s6722_s17 + $0x7c] sm:$0xf] %vm216_vm1, %v4858_v47 }
 0x345   : > { %v4718_v53 = vrot.slane %v4717_v40, 4  ;;  %v4819_v39 = vadd.f32 %v4818_v34, %v4817_v24 }
 0x347   : > { %v4719_v3 = vadd.f32 %v4718_v53, %v4717_v40  ;;  %v4820_v32 = vrot.slane %v4819_v39, 4 }
 0x349   : > { %v4720_v43 = vrot.slane %v4719_v3, 2  ;;  %v4821_v63 = vadd.f32 %v4820_v32, %v4819_v39 }
 0x34b   : > { %v4721_v30 = vadd.f32 %v4720_v43, %v4719_v3  ;;  %v4822_v41 = vrot.slane %v4821_v63, 2 }
 0x34d   : > { %v4722_v26 = vrot.slane %v4721_v30, 1  ;;  %v4823_v36 = vadd.f32 %v4822_v41, %v4821_v63 }
 0x34f   : > { %v4723_v37 = vadd.f32 %v4722_v26, %v4721_v30  ;;  %v4824_v5 = vrot.slane %v4823_v36, 1 }
 0x351   : > { %4724 = vst.msk [vmem:[%s211_s20] sm:$0x1] %vm219_vm2, %v4723_v37  ;;  %v4825_v58 = vadd.f32 %v4824_v5, %v4823_v36 }
 0x353   : > { %4826 = vst.msk [vmem:[%s214_s23] sm:$0x1] %vm219_vm2, %v4825_v58 }
 0x354 PF: > { %s15_s15 = sadd.s32 1, %s5523_s15  }
 0x355   : > { %p12_p4 = scmp.ge.s32.totalorder %s15_s15, 4  }
 0x357   :  { %14 = sbr.rel (!%p12_p4) target bundleno = 1 (0x1), region = 92 }

</bundles_post_ra>
